<compile_context>
chip_gen: v5e
topology: v5e:2x2
jax: 0.10.0
libtpu: 0.0.40
codegen_flags: <defaults>
</compile_context>

<pallas_src>
import jax
import jax.numpy as jnp
from jax.experimental import pallas as pl
from jax.experimental.pallas import tpu as pltpu

BATCH = 2          # batch size
ROI = 16           # roi_num (small test size)
NODE_DIM = 16      # node_input_dim
EMBED = 8          # embed_dim (must be 8: fcn input is 8 * roi_num)
SITE_NUM = 4       # site_num
T1_IN = 2416       # t1_map input dim (hard-coded in the module)
T1_OUT = 928       # t1_map output dim (hard-coded in the module)
SLOPE = 0.2        # LeakyReLU negative_slope
EPS = 1e-5         # BatchNorm eps (torch default)


def _lrelu(v):
    return jnp.where(v >= 0, v, SLOPE * v)


def gnn_kernel(m_ref, nf_ref, t1_ref,
               wg1_ref, bg1_ref, wg2_ref, bg2_ref, bn1s_ref, bn1h_ref,
               wh1_ref, bh1_ref, bn2s_ref, bn2h_ref,
               wk1_ref, bk1_ref, wk2_ref, bk2_ref, bn3s_ref, bn3h_ref,
               wqa_ref, bqa_ref, wka_ref, bka_ref, wva_ref, bva_ref,
               wf1_ref, bf1_ref, wf2_ref, bf2_ref, wf3_ref, bf3_ref,
               ws1_ref, bs1_ref, ws2_ref, bs2_ref, ws3_ref, bs3_ref,
               wt_ref, bt_ref,
               ox_ref, olog_ref, osite_ref, oatt_ref, ot1_ref):
    bn_rows, n = m_ref.shape                # (B*roi, roi)
    b = bn_rows // n
    e = wk2_ref.shape[1]                    # embed_dim

    M = m_ref[...]                                                     # (B*roi, roi)
    # einsum('ijk,ijp->ijp', m, y) == rowsum(m) * y ; compute rowsum once, reuse 3x.
    rs = jnp.sum(M, axis=1, keepdims=True)                             # (B*roi, 1)

    # ---- gcn: Linear(F, roi) -> LeakyReLU -> Linear(roi, roi), then bn1 (eval) ----
    x = rs * nf_ref[...]
    x = _lrelu(jnp.dot(x, wg1_ref[...], preferred_element_type=jnp.float32) + bg1_ref[...])
    x = jnp.dot(x, wg2_ref[...], preferred_element_type=jnp.float32) + bg2_ref[...]
    x = x * bn1s_ref[...] + bn1h_ref[...]

    # ---- gcn1: Linear(roi, roi) -> LeakyReLU, then bn2 (eval) ----
    x = rs * x
    x = _lrelu(jnp.dot(x, wh1_ref[...], preferred_element_type=jnp.float32) + bh1_ref[...])
    x = x * bn2s_ref[...] + bn2h_ref[...]

    # ---- gcn2: Linear(roi, 64) -> LReLU -> Linear(64, embed) -> LReLU, then bn3 ----
    x = rs * x
    x = _lrelu(jnp.dot(x, wk1_ref[...], preferred_element_type=jnp.float32) + bk1_ref[...])
    x = _lrelu(jnp.dot(x, wk2_ref[...], preferred_element_type=jnp.float32) + bk2_ref[...])
    x3 = x.reshape(b, n, e)                                            # split batch dim (benign)
    x3 = x3 * bn3s_ref[...] + bn3h_ref[...]                            # bn3: per-ROI channel

    # ---- self-attention over m (no 1/sqrt(dk) factor, matching the torch forward) ----
    q = jnp.dot(M, wqa_ref[...], preferred_element_type=jnp.float32) + bqa_ref[...]   # (B*roi, 32)
    k = jnp.dot(M, wka_ref[...], preferred_element_type=jnp.float32) + bka_ref[...]   # (B*roi, 32)
    v = jnp.dot(M, wva_ref[...], preferred_element_type=jnp.float32) + bva_ref[...]   # (B*roi, 1)
    q3 = q.reshape(b, n, q.shape[1])
    k3 = k.reshape(b, n, k.shape[1])
    v3 = v.reshape(b, n, 1)

    s = jnp.einsum('bnd,bmd->bnm', q3, k3, preferred_element_type=jnp.float32)        # (B, roi, roi)
    s = s - jnp.max(s, axis=-1, keepdims=True)
    pe = jnp.exp(s)
    a = pe / jnp.sum(pe, axis=-1, keepdims=True)                       # softmax(dim=-1)
    att = jnp.einsum('bnm,bmj->bnj', a, v3, preferred_element_type=jnp.float32)       # (B, roi, 1)

    att = att - jnp.max(att, axis=1, keepdims=True)                    # softmax over ROI axis
    att = jnp.exp(att)
    att = att / jnp.sum(att, axis=1, keepdims=True)
    att_score = att * jnp.float32(n)                                   # * m.shape[-1]
    oatt_ref[...] = att_score

    # ---- attention-gate the node embeddings and flatten to lane-dense (B, roi*embed) ----
    xw = x3 * att_score                                                # (B, roi, embed)
    for j in range(n):                                                 # static, tiny, independent stores
        ox_ref[:, j * e:(j + 1) * e] = xw[:, j, :]
    xf = ox_ref[...]                                                   # (B, roi*embed) = (B, 128)

    # ---- fcn head: 128 -> 256 -> 32 -> 2 ----
    f = _lrelu(jnp.dot(xf, wf1_ref[...], preferred_element_type=jnp.float32) + bf1_ref[...])
    f = _lrelu(jnp.dot(f, wf2_ref[...], preferred_element_type=jnp.float32) + bf2_ref[...])
    olog_ref[...] = jnp.dot(f, wf3_ref[...], preferred_element_type=jnp.float32) + bf3_ref[...]

    # ---- site_d head on reverse_x (identity in forward): 128 -> 128 -> 32 -> site_num ----
    sd = _lrelu(jnp.dot(xf, ws1_ref[...], preferred_element_type=jnp.float32) + bs1_ref[...])
    sd = _lrelu(jnp.dot(sd, ws2_ref[...], preferred_element_type=jnp.float32) + bs2_ref[...])
    osite_ref[...] = jnp.dot(sd, ws3_ref[...], preferred_element_type=jnp.float32) + bs3_ref[...]

    # ---- t1_map: Linear(2416, 928) -> ReLU ----
    t1r = jnp.dot(t1_ref[...], wt_ref[...], preferred_element_type=jnp.float32) + bt_ref[...]
    ot1_ref[...] = jnp.maximum(t1r, 0.0)


@jax.jit
def gnn_forward(m, node_feature, t1_feature, kparams):
    bz, n, _ = m.shape
    m2d = m.reshape(bz * n, n)
    nf2d = node_feature.reshape(bz * n, node_feature.shape[-1])
    outs = pl.pallas_call(
        gnn_kernel,
        out_shape=(
            jax.ShapeDtypeStruct((bz, n * EMBED), jnp.float32),   # x (flattened, gated)
            jax.ShapeDtypeStruct((bz, 2), jnp.float32),           # fcn logits
            jax.ShapeDtypeStruct((bz, SITE_NUM), jnp.float32),    # site_d logits
            jax.ShapeDtypeStruct((bz, n, 1), jnp.float32),        # attention_score
            jax.ShapeDtypeStruct((bz, T1_OUT), jnp.float32),      # t1_reduced
        ),
        compiler_params=pltpu.CompilerParams(vmem_limit_bytes=32 * 1024 * 1024),
    )(m2d, nf2d, t1_feature, *kparams)
    xf, logits, site, att_score, t1r = outs
    # Same return order as the PyTorch module.
    return logits, site, xf, att_score, t1r


# --------------------------------------------------------------------------
# Deterministic parameter init (PyTorch-shaped), plus kernel-layout repack.
# --------------------------------------------------------------------------
def init_params(key):
    ks = iter(jax.random.split(key, 48))

    def nrm(shape, scale=0.1):
        return scale * jax.random.normal(next(ks), shape, jnp.float32)

    def uni(shape, lo, hi):
        return jax.random.uniform(next(ks), shape, jnp.float32, lo, hi)

    p = dict(
        g1_w=nrm((ROI, NODE_DIM)), g1_b=nrm((ROI,)),
        g2_w=nrm((ROI, ROI)), g2_b=nrm((ROI,)),
        bn1_g=uni((ROI,), 0.8, 1.2), bn1_b=nrm((ROI,)),
        bn1_rm=nrm((ROI,)), bn1_rv=uni((ROI,), 0.5, 1.5),
        gc1_w=nrm((ROI, ROI)), gc1_b=nrm((ROI,)),
        bn2_g=uni((ROI,), 0.8, 1.2), bn2_b=nrm((ROI,)),
        bn2_rm=nrm((ROI,)), bn2_rv=uni((ROI,), 0.5, 1.5),
        k1_w=nrm((64, ROI)), k1_b=nrm((64,)),
        k2_w=nrm((EMBED, 64)), k2_b=nrm((EMBED,)),
        bn3_g=uni((ROI,), 0.8, 1.2), bn3_b=nrm((ROI,)),
        bn3_rm=nrm((ROI,)), bn3_rv=uni((ROI,), 0.5, 1.5),
        q_w=nrm((32, ROI)), q_b=nrm((32,)),
        kk_w=nrm((32, ROI)), kk_b=nrm((32,)),
        v_w=nrm((1, ROI)), v_b=nrm((1,)),
        f1_w=nrm((256, EMBED * ROI)), f1_b=nrm((256,)),
        f2_w=nrm((32, 256)), f2_b=nrm((32,)),
        f3_w=nrm((2, 32)), f3_b=nrm((2,)),
        s1_w=nrm((128, EMBED * ROI)), s1_b=nrm((128,)),
        s2_w=nrm((32, 128)), s2_b=nrm((32,)),
        s3_w=nrm((SITE_NUM, 32)), s3_b=nrm((SITE_NUM,)),
        t_w=nrm((T1_OUT, T1_IN), scale=0.02), t_b=nrm((T1_OUT,)),
    )
    return p


def _bn_fold(g, bb, rm, rv):
    scale = g / jnp.sqrt(rv + EPS)
    shift = bb - rm * scale
    return scale, shift


def pack_for_kernel(p):
    """Host-side repack: weights as [contraction, output], biases as (1, out) rows,
    BatchNorm (eval) folded to scale/shift.  No reshapes/transposes inside the kernel."""
    s1, h1 = _bn_fold(p["bn1_g"], p["bn1_b"], p["bn1_rm"], p["bn1_rv"])
    s2, h2 = _bn_fold(p["bn2_g"], p["bn2_b"], p["bn2_rm"], p["bn2_rv"])
    s3, h3 = _bn_fold(p["bn3_g"], p["bn3_b"], p["bn3_rm"], p["bn3_rv"])
    return (
        p["g1_w"].T, p["g1_b"][None, :],
        p["g2_w"].T, p["g2_b"][None, :],
        s1[None, :], h1[None, :],
        p["gc1_w"].T, p["gc1_b"][None, :],
        s2[None, :], h2[None, :],
        p["k1_w"].T, p["k1_b"][None, :],
        p["k2_w"].T, p["k2_b"][None, :],
        s3[None, :, None], h3[None, :, None],          # (1, roi, 1): bn3 is per-ROI channel
        p["q_w"].T, p["q_b"][None, :],
        p["kk_w"].T, p["kk_b"][None, :],
        p["v_w"].T, p["v_b"][None, :],
        p["f1_w"].T, p["f1_b"][None, :],
        p["f2_w"].T, p["f2_b"][None, :],
        p["f3_w"].T, p["f3_b"][None, :],
        p["s1_w"].T, p["s1_b"][None, :],
        p["s2_w"].T, p["s2_b"][None, :],
        p["s3_w"].T, p["s3_b"][None, :],
        p["t_w"].T, p["t_b"][None, :],
    )


def reference_forward(m, nf, t1, p):
    """Plain-JAX replica of the PyTorch forward (eval-mode BN, gradient reversal = identity)."""
    lre = lambda v: jnp.where(v >= 0, v, SLOPE * v)
    bz, n, _ = m.shape
    rs = jnp.sum(m, axis=-1, keepdims=True)            # einsum('ijk,ijp->ijp', m, y) == rs*y

    x = rs * nf
    x = lre(x @ p["g1_w"].T + p["g1_b"])
    x = x @ p["g2_w"].T + p["g2_b"]
    sc1 = p["bn1_g"] / jnp.sqrt(p["bn1_rv"] + EPS)
    x = (x - p["bn1_rm"]) * sc1 + p["bn1_b"]

    x = rs * x
    x = lre(x @ p["gc1_w"].T + p["gc1_b"])
    sc2 = p["bn2_g"] / jnp.sqrt(p["bn2_rv"] + EPS)
    x = (x - p["bn2_rm"]) * sc2 + p["bn2_b"]

    x = rs * x
    x = lre(x @ p["k1_w"].T + p["k1_b"])
    x = lre(x @ p["k2_w"].T + p["k2_b"])
    sc3 = p["bn3_g"] / jnp.sqrt(p["bn3_rv"] + EPS)
    x = (x - p["bn3_rm"][None, :, None]) * sc3[None, :, None] + p["bn3_b"][None, :, None]

    q = m @ p["q_w"].T + p["q_b"]
    k = m @ p["kk_w"].T + p["kk_b"]
    v = m @ p["v_w"].T + p["v_b"]
    a = jax.nn.softmax(jnp.einsum("bnd,bmd->bnm", q, k), axis=-1)
    att = jnp.einsum("bnm,bmj->bnj", a, v)
    att_score = jax.nn.softmax(att, axis=1) * n

    xw = att_score * x
    xf = xw.reshape(bz, -1)

    f = lre(xf @ p["f1_w"].T + p["f1_b"])
    f = lre(f @ p["f2_w"].T + p["f2_b"])
    logits = f @ p["f3_w"].T + p["f3_b"]

    s = lre(xf @ p["s1_w"].T + p["s1_b"])
    s = lre(s @ p["s2_w"].T + p["s2_b"])
    site = s @ p["s3_w"].T + p["s3_b"]

    t1r = jnp.maximum(t1 @ p["t_w"].T + p["t_b"], 0.0)
    return logits, site, xf, att_score, t1r


if __name__ == "__main__":
    key = jax.random.PRNGKey(0)
    k_m, k_nf, k_t1, k_p = jax.random.split(key, 4)
    m = jax.random.normal(k_m, (BATCH, ROI, ROI), jnp.float32)
    node_feature = jax.random.normal(k_nf, (BATCH, ROI, NODE_DIM), jnp.float32)
    t1_feature = jax.random.normal(k_t1, (BATCH, T1_IN), jnp.float32)

    params = init_params(k_p)
    kparams = pack_for_kernel(params)

    outs = gnn_forward(m, node_feature, t1_feature, kparams)
    outs = jax.block_until_ready(outs)

    refs = reference_forward(m, node_feature, t1_feature, params)
    names = ("fcn_logits", "site_logits", "x_flat", "attention_score", "t1_reduced")
    for name, got, ref in zip(names, outs, refs):
        got = jnp.asarray(got)
        ref = jnp.asarray(ref)
        if got.shape != ref.shape or not bool(jnp.all(jnp.isfinite(got))):
            raise RuntimeError(f"{name}: bad output (shape={got.shape}, expected {ref.shape})")
        err = float(jnp.max(jnp.abs(got - ref)))
        tol = 5e-2 * (1.0 + float(jnp.max(jnp.abs(ref))))
        if err > tol:
            raise AssertionError(f"{name}: max abs err {err} > tol {tol}")
    print("KERNEL_OK")
</pallas_src>

<mosaic_0001>
module attributes {stable_mosaic.version = 11 : i64} {
  func.func @gnn_kernel(%arg0: memref<32x16xf32, #tpu.memory_space<vmem>>, %arg1: memref<32x16xf32, #tpu.memory_space<vmem>>, %arg2: memref<2x2416xf32, #tpu.memory_space<vmem>>, %arg3: memref<16x16xf32, #tpu.memory_space<vmem>>, %arg4: memref<1x16xf32, #tpu.memory_space<vmem>>, %arg5: memref<16x16xf32, #tpu.memory_space<vmem>>, %arg6: memref<1x16xf32, #tpu.memory_space<vmem>>, %arg7: memref<1x16xf32, #tpu.memory_space<vmem>>, %arg8: memref<1x16xf32, #tpu.memory_space<vmem>>, %arg9: memref<16x16xf32, #tpu.memory_space<vmem>>, %arg10: memref<1x16xf32, #tpu.memory_space<vmem>>, %arg11: memref<1x16xf32, #tpu.memory_space<vmem>>, %arg12: memref<1x16xf32, #tpu.memory_space<vmem>>, %arg13: memref<16x64xf32, #tpu.memory_space<vmem>>, %arg14: memref<1x64xf32, #tpu.memory_space<vmem>>, %arg15: memref<64x8xf32, #tpu.memory_space<vmem>>, %arg16: memref<1x8xf32, #tpu.memory_space<vmem>>, %arg17: memref<1x16x1xf32, #tpu.memory_space<vmem>>, %arg18: memref<1x16x1xf32, #tpu.memory_space<vmem>>, %arg19: memref<16x32xf32, #tpu.memory_space<vmem>>, %arg20: memref<1x32xf32, #tpu.memory_space<vmem>>, %arg21: memref<16x32xf32, #tpu.memory_space<vmem>>, %arg22: memref<1x32xf32, #tpu.memory_space<vmem>>, %arg23: memref<16x1xf32, #tpu.memory_space<vmem>>, %arg24: memref<1x1xf32, #tpu.memory_space<vmem>>, %arg25: memref<128x256xf32, #tpu.memory_space<vmem>>, %arg26: memref<1x256xf32, #tpu.memory_space<vmem>>, %arg27: memref<256x32xf32, #tpu.memory_space<vmem>>, %arg28: memref<1x32xf32, #tpu.memory_space<vmem>>, %arg29: memref<32x2xf32, #tpu.memory_space<vmem>>, %arg30: memref<1x2xf32, #tpu.memory_space<vmem>>, %arg31: memref<128x128xf32, #tpu.memory_space<vmem>>, %arg32: memref<1x128xf32, #tpu.memory_space<vmem>>, %arg33: memref<128x32xf32, #tpu.memory_space<vmem>>, %arg34: memref<1x32xf32, #tpu.memory_space<vmem>>, %arg35: memref<32x4xf32, #tpu.memory_space<vmem>>, %arg36: memref<1x4xf32, #tpu.memory_space<vmem>>, %arg37: memref<2416x928xf32, #tpu.memory_space<vmem>>, %arg38: memref<1x928xf32, #tpu.memory_space<vmem>>, %arg39: memref<2x128xf32, #tpu.memory_space<vmem>>, %arg40: memref<2x2xf32, #tpu.memory_space<vmem>>, %arg41: memref<2x4xf32, #tpu.memory_space<vmem>>, %arg42: memref<2x16x1xf32, #tpu.memory_space<vmem>>, %arg43: memref<2x928xf32, #tpu.memory_space<vmem>>) attributes {dimension_semantics = [], scalar_prefetch = 0 : i64, scratch_operands = 0 : i64, tpu.core_type = #tpu.core_type<tc>} {
    %c0 = arith.constant 0 : index
    %c0_0 = arith.constant 0 : index
    %0 = vector.load %arg0[%c0, %c0_0] : memref<32x16xf32, #tpu.memory_space<vmem>>, vector<32x16xf32>
    %cst = arith.constant dense<0.000000e+00> : vector<32xf32>
    %1 = vector.multi_reduction <add>, %0, %cst [1] : vector<32x16xf32> to vector<32xf32>
    %2 = vector.shape_cast %1 : vector<32xf32> to vector<32x1xf32>
    %c0_1 = arith.constant 0 : index
    %c0_2 = arith.constant 0 : index
    %3 = vector.load %arg1[%c0_1, %c0_2] : memref<32x16xf32, #tpu.memory_space<vmem>>, vector<32x16xf32>
    %4 = vector.broadcast %2 : vector<32x1xf32> to vector<32x16xf32>
    %5 = arith.mulf %4, %3 : vector<32x16xf32>
    %c0_3 = arith.constant 0 : index
    %c0_4 = arith.constant 0 : index
    %6 = vector.load %arg3[%c0_3, %c0_4] : memref<16x16xf32, #tpu.memory_space<vmem>>, vector<16x16xf32>
    %cst_5 = arith.constant dense<0.000000e+00> : vector<32x16xf32>
    %7 = tpu.matmul %5, %6, %cst_5 {dimension_numbers = #tpu.dot_dimension_numbers<[1], [0], [0], [1], [0, 0, 1, 1], [], []>} : vector<32x16xf32>, vector<16x16xf32>, vector<32x16xf32> -> vector<32x16xf32>
    %c0_6 = arith.constant 0 : index
    %c0_7 = arith.constant 0 : index
    %8 = vector.load %arg4[%c0_6, %c0_7] : memref<1x16xf32, #tpu.memory_space<vmem>>, vector<1x16xf32>
    %9 = vector.broadcast %8 : vector<1x16xf32> to vector<32x16xf32>
    %10 = arith.addf %7, %9 : vector<32x16xf32>
    %cst_8 = arith.constant 0.000000e+00 : f32
    %11 = vector.broadcast %cst_8 : f32 to vector<32x16xf32>
    %12 = arith.cmpf oge, %10, %11 : vector<32x16xf32>
    %cst_9 = arith.constant 2.000000e-01 : f32
    %13 = vector.broadcast %cst_9 : f32 to vector<32x16xf32>
    %14 = arith.mulf %13, %10 : vector<32x16xf32>
    %15 = arith.select %12, %10, %14 : vector<32x16xi1>, vector<32x16xf32>
    %c0_10 = arith.constant 0 : index
    %c0_11 = arith.constant 0 : index
    %16 = vector.load %arg5[%c0_10, %c0_11] : memref<16x16xf32, #tpu.memory_space<vmem>>, vector<16x16xf32>
    %cst_12 = arith.constant dense<0.000000e+00> : vector<32x16xf32>
    %17 = tpu.matmul %15, %16, %cst_12 {dimension_numbers = #tpu.dot_dimension_numbers<[1], [0], [0], [1], [0, 0, 1, 1], [], []>} : vector<32x16xf32>, vector<16x16xf32>, vector<32x16xf32> -> vector<32x16xf32>
    %c0_13 = arith.constant 0 : index
    %c0_14 = arith.constant 0 : index
    %18 = vector.load %arg6[%c0_13, %c0_14] : memref<1x16xf32, #tpu.memory_space<vmem>>, vector<1x16xf32>
    %19 = vector.broadcast %18 : vector<1x16xf32> to vector<32x16xf32>
    %20 = arith.addf %17, %19 : vector<32x16xf32>
    %c0_15 = arith.constant 0 : index
    %c0_16 = arith.constant 0 : index
    %21 = vector.load %arg7[%c0_15, %c0_16] : memref<1x16xf32, #tpu.memory_space<vmem>>, vector<1x16xf32>
    %22 = vector.broadcast %21 : vector<1x16xf32> to vector<32x16xf32>
    %23 = arith.mulf %20, %22 : vector<32x16xf32>
    %c0_17 = arith.constant 0 : index
    %c0_18 = arith.constant 0 : index
    %24 = vector.load %arg8[%c0_17, %c0_18] : memref<1x16xf32, #tpu.memory_space<vmem>>, vector<1x16xf32>
    %25 = vector.broadcast %24 : vector<1x16xf32> to vector<32x16xf32>
    %26 = arith.addf %23, %25 : vector<32x16xf32>
    %27 = vector.broadcast %2 : vector<32x1xf32> to vector<32x16xf32>
    %28 = arith.mulf %27, %26 : vector<32x16xf32>
    %c0_19 = arith.constant 0 : index
    %c0_20 = arith.constant 0 : index
    %29 = vector.load %arg9[%c0_19, %c0_20] : memref<16x16xf32, #tpu.memory_space<vmem>>, vector<16x16xf32>
    %cst_21 = arith.constant dense<0.000000e+00> : vector<32x16xf32>
    %30 = tpu.matmul %28, %29, %cst_21 {dimension_numbers = #tpu.dot_dimension_numbers<[1], [0], [0], [1], [0, 0, 1, 1], [], []>} : vector<32x16xf32>, vector<16x16xf32>, vector<32x16xf32> -> vector<32x16xf32>
    %c0_22 = arith.constant 0 : index
    %c0_23 = arith.constant 0 : index
    %31 = vector.load %arg10[%c0_22, %c0_23] : memref<1x16xf32, #tpu.memory_space<vmem>>, vector<1x16xf32>
    %32 = vector.broadcast %31 : vector<1x16xf32> to vector<32x16xf32>
    %33 = arith.addf %30, %32 : vector<32x16xf32>
    %cst_24 = arith.constant 0.000000e+00 : f32
    %34 = vector.broadcast %cst_24 : f32 to vector<32x16xf32>
    %35 = arith.cmpf oge, %33, %34 : vector<32x16xf32>
    %cst_25 = arith.constant 2.000000e-01 : f32
    %36 = vector.broadcast %cst_25 : f32 to vector<32x16xf32>
    %37 = arith.mulf %36, %33 : vector<32x16xf32>
    %38 = arith.select %35, %33, %37 : vector<32x16xi1>, vector<32x16xf32>
    %c0_26 = arith.constant 0 : index
    %c0_27 = arith.constant 0 : index
    %39 = vector.load %arg11[%c0_26, %c0_27] : memref<1x16xf32, #tpu.memory_space<vmem>>, vector<1x16xf32>
    %40 = vector.broadcast %39 : vector<1x16xf32> to vector<32x16xf32>
    %41 = arith.mulf %38, %40 : vector<32x16xf32>
    %c0_28 = arith.constant 0 : index
    %c0_29 = arith.constant 0 : index
    %42 = vector.load %arg12[%c0_28, %c0_29] : memref<1x16xf32, #tpu.memory_space<vmem>>, vector<1x16xf32>
    %43 = vector.broadcast %42 : vector<1x16xf32> to vector<32x16xf32>
    %44 = arith.addf %41, %43 : vector<32x16xf32>
    %45 = vector.broadcast %2 : vector<32x1xf32> to vector<32x16xf32>
    %46 = arith.mulf %45, %44 : vector<32x16xf32>
    %c0_30 = arith.constant 0 : index
    %c0_31 = arith.constant 0 : index
    %47 = vector.load %arg13[%c0_30, %c0_31] : memref<16x64xf32, #tpu.memory_space<vmem>>, vector<16x64xf32>
    %cst_32 = arith.constant dense<0.000000e+00> : vector<32x64xf32>
    %48 = tpu.matmul %46, %47, %cst_32 {dimension_numbers = #tpu.dot_dimension_numbers<[1], [0], [0], [1], [0, 0, 1, 1], [], []>} : vector<32x16xf32>, vector<16x64xf32>, vector<32x64xf32> -> vector<32x64xf32>
    %c0_33 = arith.constant 0 : index
    %c0_34 = arith.constant 0 : index
    %49 = vector.load %arg14[%c0_33, %c0_34] : memref<1x64xf32, #tpu.memory_space<vmem>>, vector<1x64xf32>
    %50 = vector.broadcast %49 : vector<1x64xf32> to vector<32x64xf32>
    %51 = arith.addf %48, %50 : vector<32x64xf32>
    %cst_35 = arith.constant 0.000000e+00 : f32
    %52 = vector.broadcast %cst_35 : f32 to vector<32x64xf32>
    %53 = arith.cmpf oge, %51, %52 : vector<32x64xf32>
    %cst_36 = arith.constant 2.000000e-01 : f32
    %54 = vector.broadcast %cst_36 : f32 to vector<32x64xf32>
    %55 = arith.mulf %54, %51 : vector<32x64xf32>
    %56 = arith.select %53, %51, %55 : vector<32x64xi1>, vector<32x64xf32>
    %c0_37 = arith.constant 0 : index
    %c0_38 = arith.constant 0 : index
    %57 = vector.load %arg15[%c0_37, %c0_38] : memref<64x8xf32, #tpu.memory_space<vmem>>, vector<64x8xf32>
    %cst_39 = arith.constant dense<0.000000e+00> : vector<32x8xf32>
    %58 = tpu.matmul %56, %57, %cst_39 {dimension_numbers = #tpu.dot_dimension_numbers<[1], [0], [0], [1], [0, 0, 1, 1], [], []>} : vector<32x64xf32>, vector<64x8xf32>, vector<32x8xf32> -> vector<32x8xf32>
    %c0_40 = arith.constant 0 : index
    %c0_41 = arith.constant 0 : index
    %59 = vector.load %arg16[%c0_40, %c0_41] : memref<1x8xf32, #tpu.memory_space<vmem>>, vector<1x8xf32>
    %60 = vector.broadcast %59 : vector<1x8xf32> to vector<32x8xf32>
    %61 = arith.addf %58, %60 : vector<32x8xf32>
    %cst_42 = arith.constant 0.000000e+00 : f32
    %62 = vector.broadcast %cst_42 : f32 to vector<32x8xf32>
    %63 = arith.cmpf oge, %61, %62 : vector<32x8xf32>
    %cst_43 = arith.constant 2.000000e-01 : f32
    %64 = vector.broadcast %cst_43 : f32 to vector<32x8xf32>
    %65 = arith.mulf %64, %61 : vector<32x8xf32>
    %66 = arith.select %63, %61, %65 : vector<32x8xi1>, vector<32x8xf32>
    %67 = vector.shape_cast %66 : vector<32x8xf32> to vector<2x16x8xf32>
    %c0_44 = arith.constant 0 : index
    %c0_45 = arith.constant 0 : index
    %c0_46 = arith.constant 0 : index
    %68 = vector.load %arg17[%c0_44, %c0_45, %c0_46] : memref<1x16x1xf32, #tpu.memory_space<vmem>>, vector<1x16x1xf32>
    %69 = vector.broadcast %68 : vector<1x16x1xf32> to vector<2x16x8xf32>
    %70 = arith.mulf %67, %69 : vector<2x16x8xf32>
    %c0_47 = arith.constant 0 : index
    %c0_48 = arith.constant 0 : index
    %c0_49 = arith.constant 0 : index
    %71 = vector.load %arg18[%c0_47, %c0_48, %c0_49] : memref<1x16x1xf32, #tpu.memory_space<vmem>>, vector<1x16x1xf32>
    %72 = vector.broadcast %71 : vector<1x16x1xf32> to vector<2x16x8xf32>
    %73 = arith.addf %70, %72 : vector<2x16x8xf32>
    %c0_50 = arith.constant 0 : index
    %c0_51 = arith.constant 0 : index
    %74 = vector.load %arg19[%c0_50, %c0_51] : memref<16x32xf32, #tpu.memory_space<vmem>>, vector<16x32xf32>
    %cst_52 = arith.constant dense<0.000000e+00> : vector<32x32xf32>
    %75 = tpu.matmul %0, %74, %cst_52 {dimension_numbers = #tpu.dot_dimension_numbers<[1], [0], [0], [1], [0, 0, 1, 1], [], []>} : vector<32x16xf32>, vector<16x32xf32>, vector<32x32xf32> -> vector<32x32xf32>
    %c0_53 = arith.constant 0 : index
    %c0_54 = arith.constant 0 : index
    %76 = vector.load %arg20[%c0_53, %c0_54] : memref<1x32xf32, #tpu.memory_space<vmem>>, vector<1x32xf32>
    %77 = vector.broadcast %76 : vector<1x32xf32> to vector<32x32xf32>
    %78 = arith.addf %75, %77 : vector<32x32xf32>
    %c0_55 = arith.constant 0 : index
    %c0_56 = arith.constant 0 : index
    %79 = vector.load %arg21[%c0_55, %c0_56] : memref<16x32xf32, #tpu.memory_space<vmem>>, vector<16x32xf32>
    %cst_57 = arith.constant dense<0.000000e+00> : vector<32x32xf32>
    %80 = tpu.matmul %0, %79, %cst_57 {dimension_numbers = #tpu.dot_dimension_numbers<[1], [0], [0], [1], [0, 0, 1, 1], [], []>} : vector<32x16xf32>, vector<16x32xf32>, vector<32x32xf32> -> vector<32x32xf32>
    %c0_58 = arith.constant 0 : index
    %c0_59 = arith.constant 0 : index
    %81 = vector.load %arg22[%c0_58, %c0_59] : memref<1x32xf32, #tpu.memory_space<vmem>>, vector<1x32xf32>
    %82 = vector.broadcast %81 : vector<1x32xf32> to vector<32x32xf32>
    %83 = arith.addf %80, %82 : vector<32x32xf32>
    %c0_60 = arith.constant 0 : index
    %c0_61 = arith.constant 0 : index
    %84 = vector.load %arg23[%c0_60, %c0_61] : memref<16x1xf32, #tpu.memory_space<vmem>>, vector<16x1xf32>
    %cst_62 = arith.constant dense<0.000000e+00> : vector<32x1xf32>
    %85 = tpu.matmul %0, %84, %cst_62 {dimension_numbers = #tpu.dot_dimension_numbers<[1], [0], [0], [1], [0, 0, 1, 1], [], []>} : vector<32x16xf32>, vector<16x1xf32>, vector<32x1xf32> -> vector<32x1xf32>
    %c0_63 = arith.constant 0 : index
    %c0_64 = arith.constant 0 : index
    %86 = vector.load %arg24[%c0_63, %c0_64] : memref<1x1xf32, #tpu.memory_space<vmem>>, vector<1x1xf32>
    %87 = vector.broadcast %86 : vector<1x1xf32> to vector<32x1xf32>
    %88 = arith.addf %85, %87 : vector<32x1xf32>
    %89 = vector.shape_cast %78 : vector<32x32xf32> to vector<2x16x32xf32>
    %90 = vector.shape_cast %83 : vector<32x32xf32> to vector<2x16x32xf32>
    %91 = vector.shape_cast %88 : vector<32x1xf32> to vector<2x16x1xf32>
    "tpu.trace_start"() <{level = 10 : i32, message = "bnd,bmd->bnm"}> : () -> ()
    %cst_65 = arith.constant dense<0.000000e+00> : vector<2x16x16xf32>
    %92 = tpu.matmul %89, %90, %cst_65 {dimension_numbers = #tpu.dot_dimension_numbers<[2], [2], [1], [1], [0, 0, 0, 1, 1, 1], [0], [0]>} : vector<2x16x32xf32>, vector<2x16x32xf32>, vector<2x16x16xf32> -> vector<2x16x16xf32>
    "tpu.trace_stop"() : () -> ()
    %cst_66 = arith.constant dense<0xFF800000> : vector<2x16xf32>
    %93 = vector.multi_reduction <maximumf>, %92, %cst_66 [2] : vector<2x16x16xf32> to vector<2x16xf32>
    %94 = vector.shape_cast %93 : vector<2x16xf32> to vector<2x16x1xf32>
    %95 = vector.broadcast %94 : vector<2x16x1xf32> to vector<2x16x16xf32>
    %96 = arith.subf %92, %95 : vector<2x16x16xf32>
    %97 = math.exp %96 : vector<2x16x16xf32>
    %cst_67 = arith.constant dense<0.000000e+00> : vector<2x16xf32>
    %98 = vector.multi_reduction <add>, %97, %cst_67 [2] : vector<2x16x16xf32> to vector<2x16xf32>
    %99 = vector.shape_cast %98 : vector<2x16xf32> to vector<2x16x1xf32>
    %100 = vector.broadcast %99 : vector<2x16x1xf32> to vector<2x16x16xf32>
    %101 = arith.divf %97, %100 : vector<2x16x16xf32>
    "tpu.trace_start"() <{level = 10 : i32, message = "bnm,bmj->bnj"}> : () -> ()
    %cst_68 = arith.constant dense<0.000000e+00> : vector<2x16x1xf32>
    %102 = tpu.matmul %101, %91, %cst_68 {dimension_numbers = #tpu.dot_dimension_numbers<[2], [1], [1], [2], [0, 0, 0, 1, 1, 2], [0], [0]>} : vector<2x16x16xf32>, vector<2x16x1xf32>, vector<2x16x1xf32> -> vector<2x16x1xf32>
    "tpu.trace_stop"() : () -> ()
    %cst_69 = arith.constant dense<0xFF800000> : vector<2x1xf32>
    %103 = vector.multi_reduction <maximumf>, %102, %cst_69 [1] : vector<2x16x1xf32> to vector<2x1xf32>
    %104 = vector.shape_cast %103 : vector<2x1xf32> to vector<2x1x1xf32>
    %105 = vector.broadcast %104 : vector<2x1x1xf32> to vector<2x16x1xf32>
    %106 = arith.subf %102, %105 : vector<2x16x1xf32>
    %107 = math.exp %106 : vector<2x16x1xf32>
    %cst_70 = arith.constant dense<0.000000e+00> : vector<2x1xf32>
    %108 = vector.multi_reduction <add>, %107, %cst_70 [1] : vector<2x16x1xf32> to vector<2x1xf32>
    %109 = vector.shape_cast %108 : vector<2x1xf32> to vector<2x1x1xf32>
    %110 = vector.broadcast %109 : vector<2x1x1xf32> to vector<2x16x1xf32>
    %111 = arith.divf %107, %110 : vector<2x16x1xf32>
    %cst_71 = arith.constant 1.600000e+01 : f32
    %112 = vector.broadcast %cst_71 : f32 to vector<2x16x1xf32>
    %113 = arith.mulf %111, %112 : vector<2x16x1xf32>
    %c0_72 = arith.constant 0 : index
    %c0_73 = arith.constant 0 : index
    %c0_74 = arith.constant 0 : index
    %114 = vector.load %arg42[%c0_72, %c0_73, %c0_74] : memref<2x16x1xf32, #tpu.memory_space<vmem>>, vector<2x16x1xf32>
    tpu.vector_store %arg42[%c0_72, %c0_73, %c0_74], %113 {strides = array<i32>} : memref<2x16x1xf32, #tpu.memory_space<vmem>>, vector<2x16x1xf32>,
    %115 = vector.broadcast %113 : vector<2x16x1xf32> to vector<2x16x8xf32>
    %116 = arith.mulf %73, %115 : vector<2x16x8xf32>
    %117 = vector.extract_strided_slice %116 {offsets = [0, 0, 0], sizes = [2, 1, 8], strides = [1, 1, 1]} : vector<2x16x8xf32> to vector<2x1x8xf32>
    %118 = vector.shape_cast %117 : vector<2x1x8xf32> to vector<2x8xf32>
    %c0_75 = arith.constant 0 : index
    %c0_76 = arith.constant 0 : index
    %119 = vector.load %arg39[%c0_75, %c0_76] : memref<2x128xf32, #tpu.memory_space<vmem>>, vector<2x8xf32>
    tpu.vector_store %arg39[%c0_75, %c0_76], %118 {strides = array<i32>} : memref<2x128xf32, #tpu.memory_space<vmem>>, vector<2x8xf32>,
    %120 = vector.extract_strided_slice %116 {offsets = [0, 1, 0], sizes = [2, 1, 8], strides = [1, 1, 1]} : vector<2x16x8xf32> to vector<2x1x8xf32>
    %121 = vector.shape_cast %120 : vector<2x1x8xf32> to vector<2x8xf32>
    %c0_77 = arith.constant 0 : index
    %c8 = arith.constant 8 : index
    %122 = vector.load %arg39[%c0_77, %c8] : memref<2x128xf32, #tpu.memory_space<vmem>>, vector<2x8xf32>
    tpu.vector_store %arg39[%c0_77, %c8], %121 {strides = array<i32>} : memref<2x128xf32, #tpu.memory_space<vmem>>, vector<2x8xf32>,
    %123 = vector.extract_strided_slice %116 {offsets = [0, 2, 0], sizes = [2, 1, 8], strides = [1, 1, 1]} : vector<2x16x8xf32> to vector<2x1x8xf32>
    %124 = vector.shape_cast %123 : vector<2x1x8xf32> to vector<2x8xf32>
    %c0_78 = arith.constant 0 : index
    %c16 = arith.constant 16 : index
    %125 = vector.load %arg39[%c0_78, %c16] : memref<2x128xf32, #tpu.memory_space<vmem>>, vector<2x8xf32>
    tpu.vector_store %arg39[%c0_78, %c16], %124 {strides = array<i32>} : memref<2x128xf32, #tpu.memory_space<vmem>>, vector<2x8xf32>,
    %126 = vector.extract_strided_slice %116 {offsets = [0, 3, 0], sizes = [2, 1, 8], strides = [1, 1, 1]} : vector<2x16x8xf32> to vector<2x1x8xf32>
    %127 = vector.shape_cast %126 : vector<2x1x8xf32> to vector<2x8xf32>
    %c0_79 = arith.constant 0 : index
    %c24 = arith.constant 24 : index
    %128 = vector.load %arg39[%c0_79, %c24] : memref<2x128xf32, #tpu.memory_space<vmem>>, vector<2x8xf32>
    tpu.vector_store %arg39[%c0_79, %c24], %127 {strides = array<i32>} : memref<2x128xf32, #tpu.memory_space<vmem>>, vector<2x8xf32>,
    %129 = vector.extract_strided_slice %116 {offsets = [0, 4, 0], sizes = [2, 1, 8], strides = [1, 1, 1]} : vector<2x16x8xf32> to vector<2x1x8xf32>
    %130 = vector.shape_cast %129 : vector<2x1x8xf32> to vector<2x8xf32>
    %c0_80 = arith.constant 0 : index
    %c32 = arith.constant 32 : index
    %131 = vector.load %arg39[%c0_80, %c32] : memref<2x128xf32, #tpu.memory_space<vmem>>, vector<2x8xf32>
    tpu.vector_store %arg39[%c0_80, %c32], %130 {strides = array<i32>} : memref<2x128xf32, #tpu.memory_space<vmem>>, vector<2x8xf32>,
    %132 = vector.extract_strided_slice %116 {offsets = [0, 5, 0], sizes = [2, 1, 8], strides = [1, 1, 1]} : vector<2x16x8xf32> to vector<2x1x8xf32>
    %133 = vector.shape_cast %132 : vector<2x1x8xf32> to vector<2x8xf32>
    %c0_81 = arith.constant 0 : index
    %c40 = arith.constant 40 : index
    %134 = vector.load %arg39[%c0_81, %c40] : memref<2x128xf32, #tpu.memory_space<vmem>>, vector<2x8xf32>
    tpu.vector_store %arg39[%c0_81, %c40], %133 {strides = array<i32>} : memref<2x128xf32, #tpu.memory_space<vmem>>, vector<2x8xf32>,
    %135 = vector.extract_strided_slice %116 {offsets = [0, 6, 0], sizes = [2, 1, 8], strides = [1, 1, 1]} : vector<2x16x8xf32> to vector<2x1x8xf32>
    %136 = vector.shape_cast %135 : vector<2x1x8xf32> to vector<2x8xf32>
    %c0_82 = arith.constant 0 : index
    %c48 = arith.constant 48 : index
    %137 = vector.load %arg39[%c0_82, %c48] : memref<2x128xf32, #tpu.memory_space<vmem>>, vector<2x8xf32>
    tpu.vector_store %arg39[%c0_82, %c48], %136 {strides = array<i32>} : memref<2x128xf32, #tpu.memory_space<vmem>>, vector<2x8xf32>,
    %138 = vector.extract_strided_slice %116 {offsets = [0, 7, 0], sizes = [2, 1, 8], strides = [1, 1, 1]} : vector<2x16x8xf32> to vector<2x1x8xf32>
    %139 = vector.shape_cast %138 : vector<2x1x8xf32> to vector<2x8xf32>
    %c0_83 = arith.constant 0 : index
    %c56 = arith.constant 56 : index
    %140 = vector.load %arg39[%c0_83, %c56] : memref<2x128xf32, #tpu.memory_space<vmem>>, vector<2x8xf32>
    tpu.vector_store %arg39[%c0_83, %c56], %139 {strides = array<i32>} : memref<2x128xf32, #tpu.memory_space<vmem>>, vector<2x8xf32>,
    %141 = vector.extract_strided_slice %116 {offsets = [0, 8, 0], sizes = [2, 1, 8], strides = [1, 1, 1]} : vector<2x16x8xf32> to vector<2x1x8xf32>
    %142 = vector.shape_cast %141 : vector<2x1x8xf32> to vector<2x8xf32>
    %c0_84 = arith.constant 0 : index
    %c64 = arith.constant 64 : index
    %143 = vector.load %arg39[%c0_84, %c64] : memref<2x128xf32, #tpu.memory_space<vmem>>, vector<2x8xf32>
    tpu.vector_store %arg39[%c0_84, %c64], %142 {strides = array<i32>} : memref<2x128xf32, #tpu.memory_space<vmem>>, vector<2x8xf32>,
    %144 = vector.extract_strided_slice %116 {offsets = [0, 9, 0], sizes = [2, 1, 8], strides = [1, 1, 1]} : vector<2x16x8xf32> to vector<2x1x8xf32>
    %145 = vector.shape_cast %144 : vector<2x1x8xf32> to vector<2x8xf32>
    %c0_85 = arith.constant 0 : index
    %c72 = arith.constant 72 : index
    %146 = vector.load %arg39[%c0_85, %c72] : memref<2x128xf32, #tpu.memory_space<vmem>>, vector<2x8xf32>
    tpu.vector_store %arg39[%c0_85, %c72], %145 {strides = array<i32>} : memref<2x128xf32, #tpu.memory_space<vmem>>, vector<2x8xf32>,
    %147 = vector.extract_strided_slice %116 {offsets = [0, 10, 0], sizes = [2, 1, 8], strides = [1, 1, 1]} : vector<2x16x8xf32> to vector<2x1x8xf32>
    %148 = vector.shape_cast %147 : vector<2x1x8xf32> to vector<2x8xf32>
    %c0_86 = arith.constant 0 : index
    %c80 = arith.constant 80 : index
    %149 = vector.load %arg39[%c0_86, %c80] : memref<2x128xf32, #tpu.memory_space<vmem>>, vector<2x8xf32>
    tpu.vector_store %arg39[%c0_86, %c80], %148 {strides = array<i32>} : memref<2x128xf32, #tpu.memory_space<vmem>>, vector<2x8xf32>,
    %150 = vector.extract_strided_slice %116 {offsets = [0, 11, 0], sizes = [2, 1, 8], strides = [1, 1, 1]} : vector<2x16x8xf32> to vector<2x1x8xf32>
    %151 = vector.shape_cast %150 : vector<2x1x8xf32> to vector<2x8xf32>
    %c0_87 = arith.constant 0 : index
    %c88 = arith.constant 88 : index
    %152 = vector.load %arg39[%c0_87, %c88] : memref<2x128xf32, #tpu.memory_space<vmem>>, vector<2x8xf32>
    tpu.vector_store %arg39[%c0_87, %c88], %151 {strides = array<i32>} : memref<2x128xf32, #tpu.memory_space<vmem>>, vector<2x8xf32>,
    %153 = vector.extract_strided_slice %116 {offsets = [0, 12, 0], sizes = [2, 1, 8], strides = [1, 1, 1]} : vector<2x16x8xf32> to vector<2x1x8xf32>
    %154 = vector.shape_cast %153 : vector<2x1x8xf32> to vector<2x8xf32>
    %c0_88 = arith.constant 0 : index
    %c96 = arith.constant 96 : index
    %155 = vector.load %arg39[%c0_88, %c96] : memref<2x128xf32, #tpu.memory_space<vmem>>, vector<2x8xf32>
    tpu.vector_store %arg39[%c0_88, %c96], %154 {strides = array<i32>} : memref<2x128xf32, #tpu.memory_space<vmem>>, vector<2x8xf32>,
    %156 = vector.extract_strided_slice %116 {offsets = [0, 13, 0], sizes = [2, 1, 8], strides = [1, 1, 1]} : vector<2x16x8xf32> to vector<2x1x8xf32>
    %157 = vector.shape_cast %156 : vector<2x1x8xf32> to vector<2x8xf32>
    %c0_89 = arith.constant 0 : index
    %c104 = arith.constant 104 : index
    %158 = vector.load %arg39[%c0_89, %c104] : memref<2x128xf32, #tpu.memory_space<vmem>>, vector<2x8xf32>
    tpu.vector_store %arg39[%c0_89, %c104], %157 {strides = array<i32>} : memref<2x128xf32, #tpu.memory_space<vmem>>, vector<2x8xf32>,
    %159 = vector.extract_strided_slice %116 {offsets = [0, 14, 0], sizes = [2, 1, 8], strides = [1, 1, 1]} : vector<2x16x8xf32> to vector<2x1x8xf32>
    %160 = vector.shape_cast %159 : vector<2x1x8xf32> to vector<2x8xf32>
    %c0_90 = arith.constant 0 : index
    %c112 = arith.constant 112 : index
    %161 = vector.load %arg39[%c0_90, %c112] : memref<2x128xf32, #tpu.memory_space<vmem>>, vector<2x8xf32>
    tpu.vector_store %arg39[%c0_90, %c112], %160 {strides = array<i32>} : memref<2x128xf32, #tpu.memory_space<vmem>>, vector<2x8xf32>,
    %162 = vector.extract_strided_slice %116 {offsets = [0, 15, 0], sizes = [2, 1, 8], strides = [1, 1, 1]} : vector<2x16x8xf32> to vector<2x1x8xf32>
    %163 = vector.shape_cast %162 : vector<2x1x8xf32> to vector<2x8xf32>
    %c0_91 = arith.constant 0 : index
    %c120 = arith.constant 120 : index
    %164 = vector.load %arg39[%c0_91, %c120] : memref<2x128xf32, #tpu.memory_space<vmem>>, vector<2x8xf32>
    tpu.vector_store %arg39[%c0_91, %c120], %163 {strides = array<i32>} : memref<2x128xf32, #tpu.memory_space<vmem>>, vector<2x8xf32>,
    %c0_92 = arith.constant 0 : index
    %c0_93 = arith.constant 0 : index
    %165 = vector.load %arg39[%c0_92, %c0_93] : memref<2x128xf32, #tpu.memory_space<vmem>>, vector<2x128xf32>
    %c0_94 = arith.constant 0 : index
    %c0_95 = arith.constant 0 : index
    %166 = vector.load %arg25[%c0_94, %c0_95] : memref<128x256xf32, #tpu.memory_space<vmem>>, vector<128x256xf32>
    %cst_96 = arith.constant dense<0.000000e+00> : vector<2x256xf32>
    %167 = tpu.matmul %165, %166, %cst_96 {dimension_numbers = #tpu.dot_dimension_numbers<[1], [0], [0], [1], [0, 0, 1, 1], [], []>} : vector<2x128xf32>, vector<128x256xf32>, vector<2x256xf32> -> vector<2x256xf32>
    %c0_97 = arith.constant 0 : index
    %c0_98 = arith.constant 0 : index
    %168 = vector.load %arg26[%c0_97, %c0_98] : memref<1x256xf32, #tpu.memory_space<vmem>>, vector<1x256xf32>
    %169 = vector.broadcast %168 : vector<1x256xf32> to vector<2x256xf32>
    %170 = arith.addf %167, %169 : vector<2x256xf32>
    %cst_99 = arith.constant 0.000000e+00 : f32
    %171 = vector.broadcast %cst_99 : f32 to vector<2x256xf32>
    %172 = arith.cmpf oge, %170, %171 : vector<2x256xf32>
    %cst_100 = arith.constant 2.000000e-01 : f32
    %173 = vector.broadcast %cst_100 : f32 to vector<2x256xf32>
    %174 = arith.mulf %173, %170 : vector<2x256xf32>
    %175 = arith.select %172, %170, %174 : vector<2x256xi1>, vector<2x256xf32>
    %c0_101 = arith.constant 0 : index
    %c0_102 = arith.constant 0 : index
    %176 = vector.load %arg27[%c0_101, %c0_102] : memref<256x32xf32, #tpu.memory_space<vmem>>, vector<256x32xf32>
    %cst_103 = arith.constant dense<0.000000e+00> : vector<2x32xf32>
    %177 = tpu.matmul %175, %176, %cst_103 {dimension_numbers = #tpu.dot_dimension_numbers<[1], [0], [0], [1], [0, 0, 1, 1], [], []>} : vector<2x256xf32>, vector<256x32xf32>, vector<2x32xf32> -> vector<2x32xf32>
    %c0_104 = arith.constant 0 : index
    %c0_105 = arith.constant 0 : index
    %178 = vector.load %arg28[%c0_104, %c0_105] : memref<1x32xf32, #tpu.memory_space<vmem>>, vector<1x32xf32>
    %179 = vector.broadcast %178 : vector<1x32xf32> to vector<2x32xf32>
    %180 = arith.addf %177, %179 : vector<2x32xf32>
    %cst_106 = arith.constant 0.000000e+00 : f32
    %181 = vector.broadcast %cst_106 : f32 to vector<2x32xf32>
    %182 = arith.cmpf oge, %180, %181 : vector<2x32xf32>
    %cst_107 = arith.constant 2.000000e-01 : f32
    %183 = vector.broadcast %cst_107 : f32 to vector<2x32xf32>
    %184 = arith.mulf %183, %180 : vector<2x32xf32>
    %185 = arith.select %182, %180, %184 : vector<2x32xi1>, vector<2x32xf32>
    %c0_108 = arith.constant 0 : index
    %c0_109 = arith.constant 0 : index
    %186 = vector.load %arg29[%c0_108, %c0_109] : memref<32x2xf32, #tpu.memory_space<vmem>>, vector<32x2xf32>
    %cst_110 = arith.constant dense<0.000000e+00> : vector<2x2xf32>
    %187 = tpu.matmul %185, %186, %cst_110 {dimension_numbers = #tpu.dot_dimension_numbers<[1], [0], [0], [1], [0, 0, 1, 1], [], []>} : vector<2x32xf32>, vector<32x2xf32>, vector<2x2xf32> -> vector<2x2xf32>
    %c0_111 = arith.constant 0 : index
    %c0_112 = arith.constant 0 : index
    %188 = vector.load %arg30[%c0_111, %c0_112] : memref<1x2xf32, #tpu.memory_space<vmem>>, vector<1x2xf32>
    %189 = vector.broadcast %188 : vector<1x2xf32> to vector<2x2xf32>
    %190 = arith.addf %187, %189 : vector<2x2xf32>
    %c0_113 = arith.constant 0 : index
    %c0_114 = arith.constant 0 : index
    %191 = vector.load %arg40[%c0_113, %c0_114] : memref<2x2xf32, #tpu.memory_space<vmem>>, vector<2x2xf32>
    tpu.vector_store %arg40[%c0_113, %c0_114], %190 {strides = array<i32>} : memref<2x2xf32, #tpu.memory_space<vmem>>, vector<2x2xf32>,
    %c0_115 = arith.constant 0 : index
    %c0_116 = arith.constant 0 : index
    %192 = vector.load %arg31[%c0_115, %c0_116] : memref<128x128xf32, #tpu.memory_space<vmem>>, vector<128x128xf32>
    %cst_117 = arith.constant dense<0.000000e+00> : vector<2x128xf32>
    %193 = tpu.matmul %165, %192, %cst_117 {dimension_numbers = #tpu.dot_dimension_numbers<[1], [0], [0], [1], [0, 0, 1, 1], [], []>} : vector<2x128xf32>, vector<128x128xf32>, vector<2x128xf32> -> vector<2x128xf32>
    %c0_118 = arith.constant 0 : index
    %c0_119 = arith.constant 0 : index
    %194 = vector.load %arg32[%c0_118, %c0_119] : memref<1x128xf32, #tpu.memory_space<vmem>>, vector<1x128xf32>
    %195 = vector.broadcast %194 : vector<1x128xf32> to vector<2x128xf32>
    %196 = arith.addf %193, %195 : vector<2x128xf32>
    %cst_120 = arith.constant 0.000000e+00 : f32
    %197 = vector.broadcast %cst_120 : f32 to vector<2x128xf32>
    %198 = arith.cmpf oge, %196, %197 : vector<2x128xf32>
    %cst_121 = arith.constant 2.000000e-01 : f32
    %199 = vector.broadcast %cst_121 : f32 to vector<2x128xf32>
    %200 = arith.mulf %199, %196 : vector<2x128xf32>
    %201 = arith.select %198, %196, %200 : vector<2x128xi1>, vector<2x128xf32>
    %c0_122 = arith.constant 0 : index
    %c0_123 = arith.constant 0 : index
    %202 = vector.load %arg33[%c0_122, %c0_123] : memref<128x32xf32, #tpu.memory_space<vmem>>, vector<128x32xf32>
    %cst_124 = arith.constant dense<0.000000e+00> : vector<2x32xf32>
    %203 = tpu.matmul %201, %202, %cst_124 {dimension_numbers = #tpu.dot_dimension_numbers<[1], [0], [0], [1], [0, 0, 1, 1], [], []>} : vector<2x128xf32>, vector<128x32xf32>, vector<2x32xf32> -> vector<2x32xf32>
    %c0_125 = arith.constant 0 : index
    %c0_126 = arith.constant 0 : index
    %204 = vector.load %arg34[%c0_125, %c0_126] : memref<1x32xf32, #tpu.memory_space<vmem>>, vector<1x32xf32>
    %205 = vector.broadcast %204 : vector<1x32xf32> to vector<2x32xf32>
    %206 = arith.addf %203, %205 : vector<2x32xf32>
    %cst_127 = arith.constant 0.000000e+00 : f32
    %207 = vector.broadcast %cst_127 : f32 to vector<2x32xf32>
    %208 = arith.cmpf oge, %206, %207 : vector<2x32xf32>
    %cst_128 = arith.constant 2.000000e-01 : f32
    %209 = vector.broadcast %cst_128 : f32 to vector<2x32xf32>
    %210 = arith.mulf %209, %206 : vector<2x32xf32>
    %211 = arith.select %208, %206, %210 : vector<2x32xi1>, vector<2x32xf32>
    %c0_129 = arith.constant 0 : index
    %c0_130 = arith.constant 0 : index
    %212 = vector.load %arg35[%c0_129, %c0_130] : memref<32x4xf32, #tpu.memory_space<vmem>>, vector<32x4xf32>
    %cst_131 = arith.constant dense<0.000000e+00> : vector<2x4xf32>
    %213 = tpu.matmul %211, %212, %cst_131 {dimension_numbers = #tpu.dot_dimension_numbers<[1], [0], [0], [1], [0, 0, 1, 1], [], []>} : vector<2x32xf32>, vector<32x4xf32>, vector<2x4xf32> -> vector<2x4xf32>
    %c0_132 = arith.constant 0 : index
    %c0_133 = arith.constant 0 : index
    %214 = vector.load %arg36[%c0_132, %c0_133] : memref<1x4xf32, #tpu.memory_space<vmem>>, vector<1x4xf32>
    %215 = vector.broadcast %214 : vector<1x4xf32> to vector<2x4xf32>
    %216 = arith.addf %213, %215 : vector<2x4xf32>
    %c0_134 = arith.constant 0 : index
    %c0_135 = arith.constant 0 : index
    %217 = vector.load %arg41[%c0_134, %c0_135] : memref<2x4xf32, #tpu.memory_space<vmem>>, vector<2x4xf32>
    tpu.vector_store %arg41[%c0_134, %c0_135], %216 {strides = array<i32>} : memref<2x4xf32, #tpu.memory_space<vmem>>, vector<2x4xf32>,
    %c0_136 = arith.constant 0 : index
    %c0_137 = arith.constant 0 : index
    %218 = vector.load %arg2[%c0_136, %c0_137] : memref<2x2416xf32, #tpu.memory_space<vmem>>, vector<2x2416xf32>
    %c0_138 = arith.constant 0 : index
    %c0_139 = arith.constant 0 : index
    %219 = vector.load %arg37[%c0_138, %c0_139] : memref<2416x928xf32, #tpu.memory_space<vmem>>, vector<2416x928xf32>
    %cst_140 = arith.constant dense<0.000000e+00> : vector<2x928xf32>
    %220 = tpu.matmul %218, %219, %cst_140 {dimension_numbers = #tpu.dot_dimension_numbers<[1], [0], [0], [1], [0, 0, 1, 1], [], []>} : vector<2x2416xf32>, vector<2416x928xf32>, vector<2x928xf32> -> vector<2x928xf32>
    %c0_141 = arith.constant 0 : index
    %c0_142 = arith.constant 0 : index
    %221 = vector.load %arg38[%c0_141, %c0_142] : memref<1x928xf32, #tpu.memory_space<vmem>>, vector<1x928xf32>
    %222 = vector.broadcast %221 : vector<1x928xf32> to vector<2x928xf32>
    %223 = arith.addf %220, %222 : vector<2x928xf32>
    %cst_143 = arith.constant 0.000000e+00 : f32
    %224 = vector.broadcast %cst_143 : f32 to vector<2x928xf32>
    %225 = arith.maximumf %223, %224 : vector<2x928xf32>
    %c0_144 = arith.constant 0 : index
    %c0_145 = arith.constant 0 : index
    %226 = vector.load %arg43[%c0_144, %c0_145] : memref<2x928xf32, #tpu.memory_space<vmem>>, vector<2x928xf32>
    tpu.vector_store %arg43[%c0_144, %c0_145], %225 {strides = array<i32>} : memref<2x928xf32, #tpu.memory_space<vmem>>, vector<2x928xf32>,
    return
  }
}

</mosaic_0001>

<bundles_post_ra>
// kernel: gnn_forward.1
= control target key start
LH: loop header
LB: loop body
LE: loop exit
PB: predicated region body
PF: predicated region fallthrough
CT: control target
= control target key end

     0   :  { %s7450_s6 = smov 1   ;;  %s7451_s10 = smov 2   ;;  %s10832_s0 = inlined_call_operand.smem [shape: u32[44], index: -1, kind: input, shape index: {}] }
   0x1   :  { %s7521_s5 = sld [smem:[%s10832_s0]]   ;;  %s7452_s14 = smov 3  }
   0x2   :  { %s7526_s9 = sld [smem:[%s10832_s0 + %s7450_s6]]   ;;  %s7453_s18 = smov 4  }
   0x3   :  { %s7531_s13 = sld [smem:[%s10832_s0 + %s7451_s10]]   ;;  %s7454_s22 = smov 5  }
   0x4   :  { %s7536_s17 = sld [smem:[%s10832_s0 + %s7452_s14]]   ;;  %s7455_s26 = smov 6  }
   0x5   :  { %s7541_s21 = sld [smem:[%s10832_s0 + %s7453_s18]]   ;;  %s7456_s30 = smov 7  }
   0x6   :  { %s7546_s25 = sld [smem:[%s10832_s0 + %s7454_s22]]   ;;  %s7457_s4 = smov 8  }
   0x7   :  { %s7551_s29 = sld [smem:[%s10832_s0 + %s7455_s26]]   ;;  %s7458_s10 = smov 9  }
   0x8   :  { %s7556_s3 = sld [smem:[%s10832_s0 + %s7456_s30]]   ;;  %s7459_s15 = smov 10  }
   0x9   :  { %10862 = sst [smem:[#allocation13_spill]] %s7531_s13  ;;  %s7460_s20 = smov 11  }
   0xa   :  { %s7561_s8 = sld [smem:[%s10832_s0 + %s7457_s4]]   ;;  %s7461_s26 = smov 12  }
   0xb   :  { %s7566_s14 = sld [smem:[%s10832_s0 + %s7458_s10]]   ;;  %s7462_s1 = smov 13  }
   0xc   :  { %s7571_s19 = sld [smem:[%s10832_s0 + %s7459_s15]]   ;;  %s7463_s7 = smov 14  }
   0xd   :  { %s7576_s24 = sld [smem:[%s10832_s0 + %s7460_s20]]   ;;  %s7464_s15 = smov 15  }
   0xe   :  { %s7581_s30 = sld [smem:[%s10832_s0 + %s7461_s26]]   ;;  %s7465_s22 = smov 16  }
   0xf   :  { %s7586_s6 = sld [smem:[%s10832_s0 + %s7462_s1]]   ;;  %s7466_s28 = smov 17  }
  0x10   :  { %s7591_s12 = sld [smem:[%s10832_s0 + %s7463_s7]]   ;;  %s7467_s7 = smov 18  }
  0x11   :  { %s7596_s20 = sld [smem:[%s10832_s0 + %s7464_s15]]   ;;  %s7468_s15 = smov 19  }
  0x12   :  { %s7601_s27 = sld [smem:[%s10832_s0 + %s7465_s22]]   ;;  %s7469_s22 = smov 20  }
  0x13   :  { %10863 = sst [smem:[#allocation14_spill]] %s7576_s24  ;;  %s7474_s1 = smov 25  }
  0x14   :  { %10864 = sst [smem:[#allocation15_spill]] %s7581_s30  ;;  %s7475_s10 = smov 26  }
  0x15   :  { %s7606_s4 = sld [smem:[%s10832_s0 + %s7466_s28]]   ;;  %s7470_s28 = smov 21  }
  0x16   :  { %10865 = sst [smem:[#allocation16_spill]] %s7591_s12  ;;  %s7476_s16 = smov 27  }
  0x17   :  { %10866 = sst [smem:[#allocation17_spill]] %s7596_s20  ;;  %s7477_s23 = smov 28  }
  0x18   :  { %10867 = sst [smem:[#allocation18_spill]] %s7601_s27 }
  0x19   :  { %s7611_s13 = sld [smem:[%s10832_s0 + %s7467_s7]]   ;;  %s7471_s7 = smov 22  }
  0x1a   :  { %s7616_s12 = sld [smem:[%s10832_s0 + %s7468_s15]]   ;;  %s7472_s15 = smov 23  }
  0x1b   :  { %10868 = sst [smem:[#allocation19_spill]] %s7606_s4 }
  0x1c   :  { %s7621_s27 = sld [smem:[%s10832_s0 + %s7469_s22]]   ;;  %s7473_s22 = smov 24  }
  0x1d   :  { %s7626_s4 = sld [smem:[%s10832_s0 + %s7470_s28]]   ;;  %s7482_s28 = smov 33  }
  0x1e   :  { %s7636_s20 = sld [smem:[%s10832_s0 + %s7472_s15]]  }
  0x1f   :  { %10869 = sst [smem:[#allocation20_spill]] %s7611_s13 }
  0x20   :  { %s7631_s13 = sld [smem:[%s10832_s0 + %s7471_s7]]  }
  0x21   :  { %s7644_s30 = sld [smem:[%s10832_s0 + %s7474_s1]]   ;;  %s7478_s1 = smov 29  }
  0x22   :  { %10870 = sst [smem:[#allocation21_spill]] %s7621_s27 }
  0x23   :  { %s7109_s27 = sld [smem:[%s10832_s0 + %s7473_s22]]  }
  0x24   :  { %10872 = sst [smem:[#allocation23_spill]] %s7636_s20 }
  0x25   :  { %s7654_s20 = sld [smem:[%s10832_s0 + %s7476_s16]]   ;;  %s7480_s16 = smov 31  }
  0x26   :  { %10871 = sst [smem:[#allocation22_spill]] %s7631_s13 }
  0x27   :  { %10873 = sst [smem:[#allocation24_spill]] %s7644_s30 }
  0x28   :  { %s7649_s13 = sld [smem:[%s10832_s0 + %s7475_s10]]   ;;  %s7479_s10 = smov 30  }
  0x29   :  { %s7659_s24 = sld [smem:[%s10832_s0 + %s7477_s23]]   ;;  %v93_v0 = vstv %s7109_s27  ;;  %s7481_s23 = smov 32  }
  0x2a   :  { %s7664_s30 = sld [smem:[%s10832_s0 + %s7478_s1]]   ;;  %94 = vst [vmem:[#allocation2] sm:$0x1] %v93_v0  ;;  %s7483_s27 = smov 34  }
  0x2b   :  { %10875 = sst [smem:[#allocation26_spill]] %s7654_s20 }
  0x2c   :  { %s7674_s22 = sld [smem:[%s10832_s0 + %s7480_s16]]   ;;  %s7484_s16 = smov 35  }
  0x2d   :  { %s7679_s1 = sld [smem:[%s10832_s0 + %s7481_s23]]  }
  0x2e   :  { %10874 = sst [smem:[#allocation25_spill]] %s7649_s13 }
  0x2f   :  { %10876 = sst [smem:[#allocation27_spill]] %s7659_s24  ;;  %s7485_s24 = smov 36  }
  0x30   :  { %10877 = sst [smem:[#allocation28_spill]] %s7664_s30  ;;  %s7486_s30 = smov 37  }
  0x31   :  { %s7669_s13 = sld [smem:[%s10832_s0 + %s7479_s10]]  }
  0x32   :  { %s7684_s10 = sld [smem:[%s10832_s0 + %s7482_s28]]  }
  0x33   :  { %10879 = sst [smem:[#allocation30_spill]] %s7679_s1 }
  0x34   :  { %s7689_s15 = sld [smem:[%s10832_s0 + %s7483_s27]]   ;;  %s7487_s27 = smov 38  }
  0x35   :  { %s7694_s20 = sld [smem:[%s10832_s0 + %s7484_s16]]  }
  0x36   :  { %s7699_s1 = sld [smem:[%s10832_s0 + %s7485_s24]]   ;;  %s7489_s24 = smov 40  }
  0x37   :  { %10878 = sst [smem:[#allocation29_spill]] %s7669_s13  ;;  %s7488_s13 = smov 39  }
  0x38   :  { %10880 = sst [smem:[#allocation31_spill]] %s7684_s10 }
  0x39   :  { %s7704_s10 = sld [smem:[%s10832_s0 + %s7486_s30]]   ;;  %s7490_s30 = smov 41  }
  0x3a   :  { %10881 = sst [smem:[#allocation32_spill]] %s7689_s15 }
  0x3b   :  { %10882 = sst [smem:[#allocation33_spill]] %s7694_s20 }
  0x3c   :  { %10883 = sst [smem:[#allocation34_spill]] %s7699_s1 }
  0x3d   :  { %s7709_s15 = sld [smem:[%s10832_s0 + %s7487_s27]]   ;;  %s7491_s27 = smov 42  }
  0x3e   :  { %s7714_s20 = sld [smem:[%s10832_s0 + %s7488_s13]]   ;;  %s7492_s13 = smov 43  }
  0x3f   :  { %10884 = sst [smem:[#allocation35_spill]] %s7704_s10 }
  0x40   :  { %s7719_s1 = sld [smem:[%s10832_s0 + %s7489_s24]]  }
  0x41   :  { %s7724_s10 = sld [smem:[%s10832_s0 + %s7490_s30]]  }
  0x43   :  { %10885 = sst [smem:[#allocation36_spill]] %s7709_s15 }
  0x44   :  { %10886 = sst [smem:[#allocation37_spill]] %s7714_s20 }
  0x45   :  { %s7729_s15 = sld [smem:[%s10832_s0 + %s7491_s27]]  }
  0x46   :  { %s7734_s20 = sld [smem:[%s10832_s0 + %s7492_s13]]  }
  0x47   :  { %95 = vsyncpa [#allocation4], 0 }
  0x48   :  { %96 = vsyncpa [#allocation6], 0  ;;  %v7737_v1 = vld [vmem:[%s7521_s5] sm:$0xff]  ;;  %vm180_vm0 = vcmask 130048   ;;  %v7740_v2 = vld [vmem:[%s7521_s5 + $0x8] sm:$0xff] }
  0x49   :  { %v7743_v3 = vld [vmem:[%s7521_s5 + $0x10] sm:$0xff]  ;;  %v181_v4 = vsel %vm180_vm0, %v7737_v1, 0.0  ;;  %v7750_v6 = vld [vmem:[%s7521_s5 + $0x18] sm:$0xff]  ;;  %v202_v7 = vld [vmem:[%s7536_s17 + $0x8] sm:$0xff]  ;;  %v184_v8 = vsel %vm180_vm0, %v7740_v2, 0.0 }
  0x4a   :  { %v187_v5 = vsel %vm180_vm0, %v7743_v3, 0.0  ;;  %182 = vadd.xlane.f32.xlu0 %v181_v4  ;;  %v190_v9 = vsel %vm180_vm0, %v7750_v6, 0.0  ;;  %233 = vmatpush.msra.mxu0 %v202_v7 }
  0x4b   :  { %188 = vadd.xlane.f32.xlu1 %v187_v5 }
  0x4c   :  { %97 = vsyncpa [#allocation9], 0  ;;  %v201_v10 = vld [vmem:[%s7536_s17] sm:$0xff]  ;;  %v194_v14 = vld [vmem:[%s7526_s9 + $0x8] sm:$0xff]  ;;  %s10887_s0 = sld [smem:[#allocation14_spill]]  ;;  %vm680_vm9 = vcmask 261120  }
  0x4d   :  { %234 = vmatpush.msra.mxu0 %v201_v10  ;;  %v193_v11 = vld [vmem:[%s7526_s9] sm:$0xff]  ;;  %v195_v18 = vld [vmem:[%s7526_s9 + $0x10] sm:$0xff]  ;;  %v196_v20 = vld [vmem:[%s7526_s9 + $0x18] sm:$0xff]  ;;  %s10888_s5 = sld [smem:[#allocation15_spill]]  ;;  %vm477_vm11 = vcmask 523264   ;;  %s7499_s24 = smov 40  }
  0x4e   :  { %v261_v23 = vld [vmem:[%s7546_s25 + $0x8] sm:$0xff]  ;;  %v260_v24 = vld [vmem:[%s7546_s25] sm:$0xff]  ;;  %s10889_s9 = sld [smem:[#allocation23_spill]]  ;;  %s7500_s23 = smov 32  }
  0x4f   :  { %292 = vmatpush.msra.mxu1 %v261_v23  ;;  %v7251_v25 = vld [vmem:[%s7541_s21] ss:$0 sm:$0xff]  ;;  %v328_v42 = vld [vmem:[%s7566_s14 + $0x8] sm:$0xff]  ;;  %s10890_s17 = sld [smem:[#allocation17_spill]]  ;;  %s7501_s26 = smov 80  }
  0x50   :  { %7183 = vmatpush.msra.mxu2 %v328_v42  ;;  %v327_v43 = vld [vmem:[%s7566_s14] sm:$0xff]  ;;  %v611_v49 = vld [vmem:[%s7626_s4 + $0x8] sm:$0xff]  ;;  %s10891_s21 = sld [smem:[#allocation22_spill]]  ;;  %s7502_s30 = smov 72  }
  0x51   :  { %293 = vmatpush.msra.mxu1 %v260_v24  ;;  %v7252_v44 = vld [vmem:[%s7551_s29] ss:$0 sm:$0xff]  ;;  %v564_v5 = vld [vmem:[%s7616_s12 + $0x8] sm:$0xff]  ;;  %s10892_s25 = sld [smem:[#allocation21_spill]]  ;;  %s7503_s28 = smov 64  }
  0x52   :  { %185 = vadd.xlane.f32.xlu0 %v184_v8  ;;  %7184 = vmatpush.msra.mxu2 %v327_v43  ;;  %v7253_v45 = vld [vmem:[%s7556_s3] ss:$0 sm:$0xff]  ;;  %s10893_s29 = sld [smem:[#allocation16_spill]]  ;;  %s7504_s27 = smov 104  }
  0x53   :  { %191 = vadd.xlane.f32.xlu1 %v190_v9  ;;  %359 = vmatpush.msrb.mxu1 %v328_v42  ;;  %v7254_v48 = vld [vmem:[%s7561_s8] ss:$0 sm:$0xff]  ;;  %s10894_s3 = sld [smem:[#allocation20_spill]]  ;;  %s7505_s7 = smov 96  }
  0x54   :  { %v610_v50 = vld [vmem:[%s7626_s4] sm:$0xff]  ;;  %630 = vmatpush.msrb.mxu2 %v611_v49  ;;  %s10895_s8 = sld [smem:[#allocation19_spill]]  ;;  %s7497_s4 = smov 8  }
  0x55   :  { %360 = vmatpush.msrb.mxu1 %v327_v43  ;;  %v563_v7 = vld [vmem:[%s7616_s12] sm:$0xff]  ;;  %s10896_s14 = sld [smem:[#allocation18_spill]]  ;;  %s7496_s12 = smov 16  }
  0x56   :  { %631 = vmatpush.msrb.mxu2 %v610_v50  ;;  %s10897_s2 = sld [smem:[#allocation24_spill]]  ;;  %s7506_s11 = smov 88  }
  0x57   :  { %s7507_s13 = smov 120   ;;  %s7508_s16 = smov 112  }
  0x58   :  { %s10898_s18 = sld [smem:[#allocation26_spill]] }
  0xbd   :  { %v7759_v12 = vpop.xlane.xlu0 %182 }
  0xbe   :  { %v197_v13 = vmul.f32 %v193_v11, %v7759_v12  ;;  %v7767_v17 = vpop.xlane.xlu1 %188  ;;  %v407_v11 = vld [vmem:[%s7586_s6 + $0x8] sm:$0xff] }
  0xbf   :  { %v199_v19 = vmul.f32 %v195_v18, %v7767_v17  ;;  %438 = vmatpush.msra.mxu3 %v407_v11 }
  0xc0   :  { %7129 = vmatmul.msk.f32.vlgmr.msra.gmra.mxu0 %vm180_vm0, %v197_v13  ;;  %v406_v13 = vld [vmem:[%s7586_s6] sm:$0xff]  ;;  %s7495_s6 = smov 24  }
  0xc1   :  { %439 = vmatpush.msra.mxu3 %v406_v13 }
  0xc5   :  { %v7764_v15 = vpop.xlane.xlu0 %185 }
  0xc6   :  { %v198_v16 = vmul.f32 %v194_v14, %v7764_v15  ;;  %v7774_v21 = vpop.xlane.xlu1 %191  ;;  %v7255_v14 = vld [vmem:[%s7571_s19] ss:$0 sm:$0xff]  ;;  %s7494_s19 = smov 56  }
  0xc7   :  { %v200_v22 = vmul.f32 %v196_v20, %v7774_v21 }
  0xc8   :  { %7130 = vmatmul.msk.f32.gmra.mxu0 %vm180_vm0, %v198_v16 }
  0xd0   :  { %7131 = vmatmul.msk.f32.gmra.mxu0 %vm180_vm0, %v199_v19  ;;  %v7256_v19 = vld [vmem:[%s10887_s0] ss:$0 sm:$0xff]  ;;  %s10900_s0 = sld [smem:[#allocation28_spill]] }
  0xd8   :  { %7132 = vmatmul.msk.f32.gmra.mxu0 %vm180_vm0, %v200_v22  ;;  %v7257_v22 = vld [vmem:[%s10888_s5] ss:$0 sm:$0xff]  ;;  %s10901_s5 = sld [smem:[#allocation33_spill]] }
 0x13d   :  { %v236_v26 = vpop.f32.mrf.mxu0 }
 0x13e   :  { %v237_v27 = vadd.f32 %v7251_v25, %v236_v26 }
 0x140   :  { %vm248_vm1 = vcmp.ge.f32.partialorder %v237_v27, 0.0  ;;  %v252_v28 = vmul.f32 0.2, %v237_v27 }
 0x142   :  { %v256_v29 = vsel %vm248_vm1, %v237_v27, %v252_v28 }
 0x143   :  { %7133 = vmatmul.msk.f32.vlgmr.msra.gmra.mxu1 %vm180_vm0, %v256_v29  ;;  %v646_v29 = vld [vmem:[%s10889_s9 + $0x8] sm:$0xff] }
 0x144   :  { %595 = vmatpush.msra.mxu1 %v564_v5  ;;  %665 = vmatpush.msrb.mxu3 %v646_v29  ;;  %v7261_v29 = vld [vmem:[#allocation2] ss:$0 sm:$0xff] }
 0x145   :  { %v239_v30 = vpop.f32.mrf.mxu0 }
 0x146   :  { %v240_v31 = vadd.f32 %v7251_v25, %v239_v30  ;;  %596 = vmatpush.msra.mxu1 %v563_v7  ;;  %v645_v30 = vld [vmem:[%s10889_s9] sm:$0xff]  ;;  %s10902_s9 = sld [smem:[#allocation35_spill]] }
 0x147   :  { %666 = vmatpush.msrb.mxu3 %v645_v30  ;;  %v7260_v7 = vld [vmem:[%s10893_s29] ss:$0 sm:$0xff]  ;;  %s10906_s29 = sld [smem:[#allocation13_spill]] }
 0x148   :  { %vm249_vm2 = vcmp.ge.f32.partialorder %v240_v31, 0.0  ;;  %v253_v32 = vmul.f32 0.2, %v240_v31 }
 0x14a   :  { %v257_v33 = vsel %vm249_vm2, %v240_v31, %v253_v32 }
 0x14b   :  { %7134 = vmatmul.msk.f32.gmra.mxu1 %vm180_vm0, %v257_v33 }
 0x14d   :  { %v242_v34 = vpop.f32.mrf.mxu0 }
 0x14e   :  { %v243_v35 = vadd.f32 %v7251_v25, %v242_v34 }
 0x150   :  { %vm250_vm3 = vcmp.ge.f32.partialorder %v243_v35, 0.0  ;;  %v254_v36 = vmul.f32 0.2, %v243_v35 }
 0x152   :  { %v258_v37 = vsel %vm250_vm3, %v243_v35, %v254_v36 }
 0x153   :  { %7135 = vmatmul.msk.f32.gmra.mxu1 %vm180_vm0, %v258_v37 }
 0x155   :  { %v245_v38 = vpop.f32.mrf.mxu0 }
 0x156   :  { %v246_v39 = vadd.f32 %v7251_v25, %v245_v38 }
 0x158   :  { %vm251_vm4 = vcmp.ge.f32.partialorder %v246_v39, 0.0  ;;  %v255_v40 = vmul.f32 0.2, %v246_v39 }
 0x15a   :  { %v259_v41 = vsel %vm251_vm4, %v246_v39, %v255_v40 }
 0x15b   :  { %7136 = vmatmul.msk.f32.gmra.mxu1 %vm180_vm0, %v259_v41 }
 0x1c0   :  { %v295_v46 = vpop.f32.mrf.mxu1 }
 0x1c1   :  { %v296_v47 = vadd.f32 %v7252_v44, %v295_v46 }
 0x1c3   :  { %v311_v51 = vmul.f32 %v7253_v45, %v296_v47 }
 0x1c5   :  { %v319_v52 = vadd.f32 %v7254_v48, %v311_v51  ;;  %v472_v51 = vld [vmem:[%s10890_s17 + $0x38] sm:$0xff] }
 0x1c6   :  { %498 = vmatpush.msrb.mxu0 %v472_v51 }
 0x1c7   :  { %v323_v53 = vmul.f32 %v319_v52, %v7759_v12  ;;  %v471_v52 = vld [vmem:[%s10890_s17 + $0x30] sm:$0xff] }
 0x1c8   :  { %v298_v54 = vpop.f32.mrf.mxu1  ;;  %499 = vmatpush.msrb.mxu0 %v471_v52 }
 0x1c9   :  { %v299_v55 = vadd.f32 %v7252_v44, %v298_v54  ;;  %7137 = vmatmul.msk.f32.vlgmr.msrb.gmra.mxu1 %vm180_vm0, %v323_v53  ;;  %v7258_v53 = vld [vmem:[%s10891_s21] ss:$0 sm:$0xff]  ;;  %s10904_s21 = sld [smem:[#allocation30_spill]] }
 0x1cb   :  { %v312_v56 = vmul.f32 %v7253_v45, %v299_v55  ;;  %v469_v55 = vld [vmem:[%s10890_s17 + $0x20] sm:$0xff] }
 0x1cd   :  { %v320_v57 = vadd.f32 %v7254_v48, %v312_v56 }
 0x1cf   :  { %v324_v58 = vmul.f32 %v320_v57, %v7764_v15  ;;  %v468_v57 = vld [vmem:[%s10890_s17 + $0x18] sm:$0xff] }
 0x1d0   :  { %v301_v59 = vpop.f32.mrf.mxu1 }
 0x1d1   :  { %v302_v60 = vadd.f32 %v7252_v44, %v301_v59  ;;  %7138 = vmatmul.msk.f32.gmra.mxu1 %vm180_vm0, %v324_v58  ;;  %v466_v59 = vld [vmem:[%s10890_s17 + $0x8] sm:$0xff] }
 0x1d3   :  { %v313_v61 = vmul.f32 %v7253_v45, %v302_v60 }
 0x1d5   :  { %v321_v62 = vadd.f32 %v7254_v48, %v313_v61  ;;  %v465_v61 = vld [vmem:[%s10890_s17] sm:$0xff] }
 0x1d7   :  { %v325_v63 = vmul.f32 %v321_v62, %v7767_v17 }
 0x1d8   :  { %v304_v0 = vpop.f32.mrf.mxu1 }
 0x1d9   :  { %v305_v4 = vadd.f32 %v7252_v44, %v304_v0  ;;  %7139 = vmatmul.msk.f32.vlgmr.msra.gmra.mxu2 %vm180_vm0, %v325_v63  ;;  %7149 = vmatmul.msk.f32.vlgmr.msra.gmra.mxu1 %vm180_vm0, %v7737_v1  ;;  %v7259_v0 = vld [vmem:[%s10892_s25] ss:$0 sm:$0xff]  ;;  %s10905_s25 = sld [smem:[#allocation27_spill]] }
 0x1db   :  { %v314_v8 = vmul.f32 %v7253_v45, %v305_v4 }
 0x1dd   :  { %v322_v9 = vadd.f32 %v7254_v48, %v314_v8 }
 0x1df   :  { %v326_v10 = vmul.f32 %v322_v9, %v7774_v21 }
 0x1e1   :  { %7140 = vmatmul.msk.f32.gmra.mxu2 %vm180_vm0, %v326_v10  ;;  %7150 = vmatmul.msk.f32.gmra.mxu1 %vm180_vm0, %v7740_v2 }
 0x1e9   :  { %7153 = vmatmul.msk.f32.vlgmr.msrb.gmra.mxu2 %vm180_vm0, %v7737_v1  ;;  %7151 = vmatmul.msk.f32.gmra.mxu1 %vm180_vm0, %v7743_v3 }
 0x1f1   :  { %7154 = vmatmul.msk.f32.gmra.mxu2 %vm180_vm0, %v7740_v2  ;;  %7152 = vmatmul.msk.f32.gmra.mxu1 %vm180_vm0, %v7750_v6 }
 0x1f9   :  { %7155 = vmatmul.msk.f32.gmra.mxu2 %vm180_vm0, %v7743_v3 }
 0x201   :  { %7156 = vmatmul.msk.f32.gmra.mxu2 %vm180_vm0, %v7750_v6 }
 0x246   :  { %v362_v16 = vpop.f32.mrf.mxu1 }
 0x247   :  { %v363_v18 = vadd.f32 %v7255_v14, %v362_v16 }
 0x249   :  { %vm374_vm5 = vcmp.ge.f32.partialorder %v363_v18, 0.0  ;;  %v378_v20 = vmul.f32 0.2, %v363_v18 }
 0x24b   :  { %v382_v23 = vsel %vm374_vm5, %v363_v18, %v378_v20 }
 0x24c   :  { %v390_v24 = vmul.f32 %v7256_v19, %v382_v23 }
 0x24e   :  { %v365_v25 = vpop.f32.mrf.mxu1  ;;  %v398_v26 = vadd.f32 %v7257_v22, %v390_v24 }
 0x24f   :  { %v366_v27 = vadd.f32 %v7255_v14, %v365_v25 }
 0x250   :  { %v402_v28 = vmul.f32 %v398_v26, %v7759_v12 }
 0x251   :  { %vm375_vm6 = vcmp.ge.f32.partialorder %v366_v27, 0.0  ;;  %v379_v31 = vmul.f32 0.2, %v366_v27 }
 0x252   :  { %7141 = vmatmul.msk.f32.vlgmr.msra.gmra.mxu3 %vm180_vm0, %v402_v28 }
 0x253   :  { %v383_v32 = vsel %vm375_vm6, %v366_v27, %v379_v31 }
 0x254   :  { %v391_v33 = vmul.f32 %v7256_v19, %v383_v32 }
 0x256   :  { %v399_v34 = vadd.f32 %v7257_v22, %v391_v33 }
 0x258   :  { %v403_v35 = vmul.f32 %v399_v34, %v7764_v15 }
 0x25a   :  { %7142 = vmatmul.msk.f32.gmra.mxu3 %vm180_vm0, %v403_v35 }
 0x25c   :  { %v368_v36 = vpop.f32.mrf.mxu2 }
 0x25d   :  { %v369_v37 = vadd.f32 %v7255_v14, %v368_v36 }
 0x25f   :  { %vm376_vm7 = vcmp.ge.f32.partialorder %v369_v37, 0.0  ;;  %v380_v38 = vmul.f32 0.2, %v369_v37 }
 0x261   :  { %v384_v12 = vsel %vm376_vm7, %v369_v37, %v380_v38 }
 0x262   :  { %v392_v39 = vmul.f32 %v7256_v19, %v384_v12 }
 0x264   :  { %v371_v40 = vpop.f32.mrf.mxu2  ;;  %v400_v41 = vadd.f32 %v7257_v22, %v392_v39 }
 0x265   :  { %v372_v42 = vadd.f32 %v7255_v14, %v371_v40 }
 0x266   :  { %v404_v43 = vmul.f32 %v400_v41, %v7767_v17  ;;  %v7835_v17 = vpop.f32.mrf.mxu1 }
 0x267   :  { %vm377_vm8 = vcmp.ge.f32.partialorder %v372_v42, 0.0  ;;  %v381_v44 = vmul.f32 0.2, %v372_v42  ;;  %v599_v28 = vadd.f32 %v7259_v0, %v7835_v17 }
 0x268   :  { %7143 = vmatmul.msk.f32.gmra.mxu3 %vm180_vm0, %v404_v43 }
 0x269   :  { %v385_v15 = vsel %vm377_vm8, %v372_v42, %v381_v44 }
 0x26a   :  { %v393_v45 = vmul.f32 %v7256_v19, %v385_v15 }
 0x26c   :  { %v401_v46 = vadd.f32 %v7257_v22, %v393_v45  ;;  %v633_v47 = vpop.f32.mrf.mxu2 }
 0x26d   :  { %v634_v63 = vadd.f32 %v7258_v53, %v633_v47  ;;  %v7493_v47 = vmov 0  }
 0x26e   :  { %v405_v48 = vmul.f32 %v401_v46, %v7774_v21  ;;  %v470_v21 = vld [vmem:[%s10890_s17 + $0x28] sm:$0xff]  ;;  %7249 = vset.pattern.permute.xlu1 %v7493_v47  ;;  %7248 = vset.pattern.permute.xlu0 %v7493_v47 }
 0x26f   :  { %500 = vmatpush.msrb.mxu0 %v470_v21  ;;  %7250 = vset.pattern.permute.xlu2 %v7493_v47 }
 0x270   :  { %7144 = vmatmul.msk.f32.gmra.mxu3 %vm180_vm0, %v405_v48 }
 0x271   :  { %501 = vmatpush.msrb.mxu0 %v469_v55 }
 0x273   :  { %502 = vmatpush.msrb.mxu0 %v468_v57  ;;  %v532_v57 = vld [vmem:[%s10895_s8 + $0x8] sm:$0xff] }
 0x274   :  { %v636_v49 = vpop.f32.mrf.mxu2 }
 0x275   :  { %v637_v60 = vadd.f32 %v7258_v53, %v636_v49 }
 0x278   :  { %7157 = vmatmul.msk.f32.vlgmr.msrb.gmra.mxu3 %vm180_vm0, %v7737_v1  ;;  %v601_v1 = vpop.f32.mrf.mxu1 }
 0x279   :  { %v602_v33 = vadd.f32 %v7259_v0, %v601_v1 }
 0x27c   :  { %v639_v50 = vpop.f32.mrf.mxu2 }
 0x27d   :  { %v640_v58 = vadd.f32 %v7258_v53, %v639_v50 }
 0x280   :  { %7158 = vmatmul.msk.f32.gmra.mxu3 %vm180_vm0, %v7740_v2  ;;  %v467_v2 = vld [vmem:[%s10890_s17 + $0x10] sm:$0xff]  ;;  %v604_v62 = vpop.f32.mrf.mxu1  ;;  %s10903_s17 = sld [smem:[#allocation25_spill]] }
 0x281   :  { %503 = vmatpush.msrb.mxu0 %v467_v2 }
 0x283   :  { %504 = vmatpush.msrb.mxu0 %v466_v59 }
 0x284   :  { %v642_v54 = vpop.f32.mrf.mxu2 }
 0x285   :  { %v643_v56 = vadd.f32 %v7258_v53, %v642_v54  ;;  %505 = vmatpush.msrb.mxu0 %v465_v61 }
 0x287   :  { %7165 = vmatpush.xpose.msk.msra.mxu3 %vm680_vm9, %v643_v56  ;;  %7161 = vmatpush.xpose.msk.msra.mxu0 %vm680_vm9, %v637_v60  ;;  %v547_v56 = vld [vmem:[%s10894_s3] sm:$0xff] }
 0x288   :  { %7159 = vmatmul.msk.f32.gmra.mxu3 %vm180_vm0, %v7743_v3  ;;  %v605_v3 = vadd.f32 %v7259_v0, %v604_v62  ;;  %v607_v4 = vpop.f32.mrf.mxu1 }
 0x289   :  { %v608_v5 = vadd.f32 %v7259_v0, %v607_v4 }
 0x28b   :  { %7166 = vmatpush.xpose.msk.msra.mxu3 %vm680_vm9, %v640_v58  ;;  %7162 = vmatpush.xpose.msk.msra.mxu0 %vm680_vm9, %v634_v63 }
 0x290   :  { %7160 = vmatmul.msk.f32.gmra.mxu3 %vm180_vm0, %v7750_v6 }
 0x298   :  { %7167 = vmatmul.msk.f32.vlgmr.msra.gmra.mxu3 %vm680_vm9, %v605_v3 }
 0x2a0   :  { %7168 = vmatmul.msk.f32.gmra.mxu3 %vm680_vm9, %v608_v5 }
 0x2d5   :  { %v441_v8 = vpop.f32.mrf.mxu3 }
 0x2d6   :  { %v442_v9 = vadd.f32 %v7260_v7, %v441_v8 }
 0x2d8   :  { %v457_v10 = vmul.f32 0.2, %v442_v9  ;;  %vm453_vm10 = vcmp.ge.f32.partialorder %v442_v9, 0.0 }
 0x2da   :  { %v461_v11 = vsel %vm453_vm10, %v442_v9, %v457_v10 }
 0x2db   :  { %7145 = vmatmul.msk.f32.vlgmr.msrb.gmra.mxu0 %vm477_vm11, %v461_v11 }
 0x2dd   :  { %v444_v6 = vpop.f32.mrf.mxu3 }
 0x2de   :  { %v445_v13 = vadd.f32 %v7260_v7, %v444_v6 }
 0x2e0   :  { %vm454_vm12 = vcmp.ge.f32.partialorder %v445_v13, 0.0  ;;  %v458_v14 = vmul.f32 0.2, %v445_v13 }
 0x2e2   :  { %v462_v16 = vsel %vm454_vm12, %v445_v13, %v458_v14 }
 0x2e3   :  { %7146 = vmatmul.msk.f32.gmra.mxu0 %vm477_vm11, %v462_v16 }
 0x2eb   :  { %v447_v18 = vpop.f32.mrf.mxu3 }
 0x2ec   :  { %v448_v19 = vadd.f32 %v7260_v7, %v447_v18 }
 0x2ee   :  { %vm455_vm13 = vcmp.ge.f32.partialorder %v448_v19, 0.0  ;;  %v459_v20 = vmul.f32 0.2, %v448_v19 }
 0x2f0   :  { %v463_v22 = vsel %vm455_vm13, %v448_v19, %v459_v20 }
 0x2f1   :  { %7147 = vmatmul.msk.f32.gmra.mxu0 %vm477_vm11, %v463_v22 }
 0x2f3   :  { %v450_v23 = vpop.f32.mrf.mxu3 }
 0x2f4   :  { %v451_v24 = vadd.f32 %v7260_v7, %v450_v23  ;;  %v531_v7 = vld [vmem:[%s10895_s8] sm:$0xff]  ;;  %s10916_s8 = sld [smem:[#allocation29_spill]] }
 0x2f6   :  { %vm456_vm14 = vcmp.ge.f32.partialorder %v451_v24, 0.0  ;;  %v460_v25 = vmul.f32 0.2, %v451_v24 }
 0x2f8   :  { %v464_v26 = vsel %vm456_vm14, %v451_v24, %v460_v25 }
 0x2f9   :  { %7148 = vmatmul.msk.f32.gmra.mxu0 %vm477_vm11, %v464_v26 }
 0x2fb   :  { %v668_v27 = vpop.f32.mrf.mxu3 }
 0x2fc   :  { %v669_v31 = vadd.f32 %v7261_v29, %v668_v27 }
 0x301   :  { %7163 = vmatmul.msk.f32.vlgmr.msra.gmra.mxu0 %vm680_vm9, %v599_v28 }
 0x303   :  { %v671_v30 = vpop.f32.mrf.mxu3 }
 0x304   :  { %v672_v32 = vadd.f32 %v7261_v29, %v671_v30 }
 0x306   :  { %867 = vmatpush.msra.mxu2 %v672_v32 }
 0x308   :  { %868 = vmatpush.msra.mxu2 %v669_v31 }
 0x309   :  { %7164 = vmatmul.msk.f32.gmra.mxu0 %vm680_vm9, %v602_v33 }
 0x30b   :  { %v674_v34 = vpop.f32.mrf.mxu3 }
 0x30c   :  { %v675_v36 = vadd.f32 %v7261_v29, %v674_v34 }
 0x313   :  { %v677_v35 = vpop.f32.mrf.mxu3 }
 0x314   :  { %v678_v37 = vadd.f32 %v7261_v29, %v677_v35 }
 0x316   :  { %896 = vmatpush.msrb.mxu3 %v678_v37 }
 0x318   :  { %897 = vmatpush.msrb.mxu3 %v675_v36 }
 0x31b   :  { %v745_v38 = vpop.f32.mrf.mxu3 }
 0x31c   :  { %v757_v12 = vsel %vm180_vm0, %v745_v38, -inf }
 0x31d   :  { %758 = vmax.xlane.f32.xlu2 %v757_v12 }
 0x323   :  { %v748_v39 = vpop.f32.mrf.mxu3 }
 0x324   :  { %v760_v40 = vsel %vm180_vm0, %v748_v39, -inf }
 0x325   :  { %761 = vmax.xlane.f32.xlu0 %v760_v40 }
 0x358   :  { %v7869_v41 = vpop.f32.mrf.mxu0 }
 0x360   :  { %v7871_v42 = vpop.f32.mrf.mxu0 }
 0x36e   :  { %v7873_v43 = vpop.f32.mrf.mxu0 }
 0x376   :  { %v7875_v44 = vpop.f32.mrf.mxu0 }
 0x37e   :  { %v710_v15 = vpop.f32.mrf.mxu0 }
 0x37f   :  { %v751_v45 = vsel %vm180_vm0, %v710_v15, -inf }
 0x380   :  { %752 = vmax.xlane.f32.xlu2 %v751_v45 }
 0x386   :  { %v713_v46 = vpop.f32.mrf.mxu0 }
 0x387   :  { %v754_v48 = vsel %vm180_vm0, %v713_v46, -inf }
 0x388   :  { %755 = vmax.xlane.f32.xlu1 %v754_v48 }
 0x390   :  { %v759_v49 = vpop.xlane.xlu2 %758 }
 0x391   :  { %v765_v17 = vsub.f32 %v745_v38, %v759_v49 }
 0x393   :  { %v771_v50 = vmul.f32 1.442695, %v765_v17 }
 0x395   :  { %7268 = vpow2.f32 %v771_v50 }
 0x398   :  { %v762_v51 = vpop.xlane.xlu0 %761 }
 0x399   :  { %v766_v52 = vsub.f32 %v748_v39, %v762_v51 }
 0x39b   :  { %v7269_v53 = vpop.eup %7268  ;;  %v773_v21 = vmul.f32 1.442695, %v766_v52 }
 0x39c   :  { %v781_v54 = vsel %vm180_vm0, %v7269_v53, 0.0 }
 0x39d   :  { %7270 = vpow2.f32 %v773_v21  ;;  %782 = vadd.xlane.f32.xlu2 %v781_v54 }
 0x3a3   :  { %v7271_v55 = vpop.eup %7270 }
 0x3a4   :  { %v784_v1 = vsel %vm180_vm0, %v7271_v55, 0.0 }
 0x3a5   :  { %785 = vadd.xlane.f32.xlu1 %v784_v1 }
 0x3be   :  { %551 = vperm.xlu1 %7249, %v547_v56  }
 0x3c6   :  { %540 = vperm.xlu1 %7249, %v532_v57  }
 0x3f3   :  { %v753_v58 = vpop.xlane.xlu2 %752 }
 0x3f4   :  { %v763_v2 = vsub.f32 %v710_v15, %v753_v58 }
 0x3f6   :  { %v767_v59 = vmul.f32 1.442695, %v763_v2 }
 0x3f8   :  { %7272 = vpow2.f32 %v767_v59 }
 0x3fb   :  { %v756_v60 = vpop.xlane.xlu1 %755 }
 0x3fc   :  { %v764_v61 = vsub.f32 %v713_v46, %v756_v60 }
 0x3fe   :  { %v7883_v62 = vpop.eup %7272  ;;  %v769_v63 = vmul.f32 1.442695, %v764_v61 }
 0x3ff   :  { %v775_v0 = vsel %vm180_vm0, %v7883_v62, 0.0 }
 0x400   :  { %7274 = vpow2.f32 %v769_v63  ;;  %776 = vadd.xlane.f32.xlu0 %v775_v0 }
 0x406   :  { %v7887_v3 = vpop.eup %7274 }
 0x407   :  { %v778_v4 = vsel %vm180_vm0, %v7887_v3, 0.0 }
 0x408   :  { %779 = vadd.xlane.f32.xlu2 %v778_v4 }
 0x410   :  { %v783_v5 = vpop.xlane.xlu2 %782 }
 0x411   :  { %7276 = vrcp.f32 %v783_v5  ;;  %v828_v6 = vand.u32 2147483648, %v783_v5  ;;  %v826_v14 = vand.u32 2147483647, %v783_v5  ;;  %vm822_vm1 = vweird.f32 %v783_v5 }
 0x413   :  { %v829_v19 = vor.u32 1.1754944e-38, %v828_v6  ;;  %vm827_vm3 = vcmp.eq.f32.partialorder %v826_v14, 8.507059e+37 }
 0x414   :  { %535 = vperm.xlu0 %7248, %v531_v7  }
 0x417   :  { %v7277_v8 = vpop.eup %7276 }
 0x418   :  { %v818_v9 = vmul.f32 %v7277_v8, %v783_v5  ;;  %v786_v10 = vpop.xlane.xlu1 %785  ;;  %vm823_vm15 = vweird.f32 %v7277_v8 }
 0x419   :  { %7278 = vrcp.f32 %v786_v10  ;;  %vm824_vm2 = vmor %vm822_vm1, %vm823_vm15  ;;  %v843_v26 = vand.u32 2147483648, %v786_v10  ;;  %v841_v28 = vand.u32 2147483647, %v786_v10  ;;  %vm837_vm5 = vweird.f32 %v786_v10 }
 0x41a   :  { %v819_v11 = vsub.f32 1.0, %v818_v9 }
 0x41b   :  { %v844_v30 = vor.u32 1.1754944e-38, %v843_v26  ;;  %vm842_vm7 = vcmp.eq.f32.partialorder %v841_v28, 8.507059e+37 }
 0x41c   :  { %v820_v13 = vmul.f32 %v7277_v8, %v819_v11 }
 0x41e   :  { %v821_v16 = vadd.f32 %v7277_v8, %v820_v13 }
 0x41f   :  { %v7279_v18 = vpop.eup %7278 }
 0x420   :  { %v825_v20 = vsel %vm824_vm2, %v7277_v8, %v821_v16  ;;  %v833_v22 = vmul.f32 %v7279_v18, %v786_v10  ;;  %vm838_vm4 = vweird.f32 %v7279_v18  ;;  %vm905_vm2 = vcmask 7168  }
 0x421   :  { %v830_v23 = vsel %vm827_vm3, %v829_v19, %v825_v20  ;;  %vm839_vm6 = vmor %vm837_vm5, %vm838_vm4 }
 0x422   :  { %v834_v24 = vsub.f32 1.0, %v833_v22  ;;  %v831_v25 = vmul.f32 %v7269_v53, %v830_v23 }
 0x424   :  { %v835_v27 = vmul.f32 %v7279_v18, %v834_v24  ;;  %7171 = vmatmul.msk.f32.vlgmr.msrb.gmra.mxu3 %vm180_vm0, %v831_v25 }
 0x426   :  { %v836_v29 = vadd.f32 %v7279_v18, %v835_v27 }
 0x428   :  { %v840_v31 = vsel %vm839_vm6, %v7279_v18, %v836_v29 }
 0x429   :  { %v845_v32 = vsel %vm842_vm7, %v844_v30, %v840_v31 }
 0x42a   :  { %v846_v33 = vmul.f32 %v7271_v55, %v845_v32 }
 0x42c   :  { %7172 = vmatmul.msk.f32.gmra.mxu3 %vm180_vm0, %v846_v33 }
 0x473   :  { %v777_v34 = vpop.xlane.xlu0 %776 }
 0x474   :  { %7280 = vrcp.f32 %v777_v34  ;;  %v798_v12 = vand.u32 2147483648, %v777_v34  ;;  %v796_v40 = vand.u32 2147483647, %v777_v34  ;;  %vm792_vm10 = vweird.f32 %v777_v34 }
 0x476   :  { %v799_v46 = vor.u32 1.1754944e-38, %v798_v12  ;;  %vm797_vm12 = vcmp.eq.f32.partialorder %v796_v40, 8.507059e+37 }
 0x47a   :  { %v7281_v35 = vpop.eup %7280 }
 0x47b   :  { %v788_v36 = vmul.f32 %v7281_v35, %v777_v34  ;;  %v780_v37 = vpop.xlane.xlu2 %779  ;;  %vm793_vm8 = vweird.f32 %v7281_v35 }
 0x47c   :  { %7282 = vrcp.f32 %v780_v37  ;;  %vm794_vm11 = vmor %vm792_vm10, %vm793_vm8  ;;  %v813_v51 = vand.u32 2147483648, %v780_v37  ;;  %v811_v53 = vand.u32 2147483647, %v780_v37  ;;  %vm807_vm14 = vweird.f32 %v780_v37 }
 0x47d   :  { %v789_v38 = vsub.f32 1.0, %v788_v36 }
 0x47e   :  { %v814_v54 = vor.u32 1.1754944e-38, %v813_v51  ;;  %vm812_vm1 = vcmp.eq.f32.partialorder %v811_v53, 8.507059e+37 }
 0x47f   :  { %v790_v39 = vmul.f32 %v7281_v35, %v789_v38 }
 0x481   :  { %v791_v15 = vadd.f32 %v7281_v35, %v790_v39 }
 0x482   :  { %v7283_v45 = vpop.eup %7282 }
 0x483   :  { %v795_v47 = vsel %vm794_vm11, %v7281_v35, %v791_v15  ;;  %v803_v48 = vmul.f32 %v7283_v45, %v780_v37  ;;  %vm808_vm13 = vweird.f32 %v7283_v45 }
 0x484   :  { %v800_v49 = vsel %vm797_vm12, %v799_v46, %v795_v47  ;;  %vm809_vm15 = vmor %vm807_vm14, %vm808_vm13  ;;  %vm1040_vm13 = vcmask 1044484   ;;  %vm1033_vm14 = vcmask 1043459  }
 0x485   :  { %v804_v17 = vsub.f32 1.0, %v803_v48  ;;  %v801_v50 = vmul.f32 %v7883_v62, %v800_v49 }
 0x487   :  { %v805_v52 = vmul.f32 %v7283_v45, %v804_v17  ;;  %7169 = vmatmul.msk.f32.vlgmr.msra.gmra.mxu2 %vm180_vm0, %v801_v50 }
 0x489   :  { %v806_v21 = vadd.f32 %v7283_v45, %v805_v52 }
 0x48b   :  { %v810_v55 = vsel %vm809_vm15, %v7283_v45, %v806_v21  ;;  %vm1021_vm15 = vcmask 1041409  }
 0x48c   :  { %v815_v1 = vsel %vm812_vm1, %v814_v54, %v810_v55  ;;  %vm1024_vm1 = vcmask 58368  }
 0x48d   :  { %v816_v56 = vmul.f32 %v7887_v3, %v815_v1 }
 0x48f   :  { %7170 = vmatmul.msk.f32.gmra.mxu2 %vm180_vm0, %v816_v56 }
 0x4a7   :  { %v899_v57 = vpop.f32.mrf.mxu3 }
 0x4a8   :  { %v915_v2 = vsel %vm905_vm2, %v899_v57, -inf }
 0x4af   :  { %v902_v58 = vpop.f32.mrf.mxu3 }
 0x4b0   :  { %v916_v59 = vsel %vm905_vm2, %v902_v58, -inf }
 0x4b1   :  { %v917_v60 = vmax.f32 %v915_v2, %v916_v59 }
 0x4b3   :  { %v918_v61 = vrot.slane %v917_v60, 4 }
 0x4b5   :  { %v919_v62 = vmax.f32 %v917_v60, %v918_v61  ;;  %v7911_v60 = vld [vmem:[%s10896_s14] ss:$0 sm:$0xff]  ;;  %s10917_s14 = sld [smem:[#allocation34_spill]] }
 0x4b7   :  { %v920_v63 = vrot.slane %v919_v62, 2 }
 0x4b9   :  { %v921_v0 = vmax.f32 %v919_v62, %v920_v63  ;;  %v514_v62 = vadd.f32 %v7911_v60, %v7873_v43 }
 0x4bb   :  { %v922_v4 = vrot.slane %v921_v0, 1  ;;  %vm521_vm6 = vcmp.ge.f32.partialorder %v514_v62, 0.0 }
 0x4bd   :  { %v923_v5 = vmax.f32 %v921_v0, %v922_v4  ;;  %v525_v0 = vmul.f32 0.2, %v514_v62  ;;  %v536_v4 = vpop.permute.xlu0 %535 }
 0x4bf   :  { %v926_v7 = vsub.f32 %v899_v57, %v923_v5  ;;  %v927_v8 = vsub.f32 %v902_v58, %v923_v5 }
 0x4c1   :  { %v932_v9 = vmul.f32 1.442695, %v926_v7  ;;  %v934_v3 = vmul.f32 1.442695, %v927_v8  ;;  %v529_v7 = vsel %vm521_vm6, %v514_v62, %v525_v0  ;;  %v1165_v62 = vld [vmem:[%s10897_s2 + $0xf8] sm:$0xff] }
 0x4c2   :  { %v545_v8 = vmul.f32 %v536_v4, %v529_v7  ;;  %1192 = vmatpush.msrb.mxu1 %v1165_v62  ;;  %v1161_v0 = vld [vmem:[%s10897_s2 + $0xd8] sm:$0xff]  ;;  %v1155_v7 = vld [vmem:[%s10897_s2 + $0xa8] sm:$0xff]  ;;  %v1230_v62 = vld [vmem:[%s10898_s18 + $0x60] sm:$0xff] }
 0x4c3   :  { %7284 = vpow2.f32 %v932_v9 }
 0x4c4   :  { %7286 = vpow2.f32 %v934_v3 }
 0x4c9   :  { %v7285_v10 = vpop.eup %7284 }
 0x4ca   :  { %v7287_v11 = vpop.eup %7286  ;;  %v945_v6 = vsel %vm905_vm2, %v7285_v10, 0.0 }
 0x4cb   :  { %v946_v13 = vsel %vm905_vm2, %v7287_v11, 0.0 }
 0x4cc   :  { %v947_v14 = vadd.f32 %v946_v13, %v945_v6 }
 0x4ce   :  { %v948_v16 = vrot.slane %v947_v14, 4 }
 0x4d0   :  { %v949_v18 = vadd.f32 %v948_v16, %v947_v14 }
 0x4d2   :  { %v950_v19 = vrot.slane %v949_v18, 2 }
 0x4d4   :  { %v951_v20 = vadd.f32 %v950_v19, %v949_v18 }
 0x4d6   :  { %v952_v22 = vrot.slane %v951_v20, 1 }
 0x4d8   :  { %v953_v23 = vadd.f32 %v952_v22, %v951_v20 }
 0x4da   :  { %7288 = vrcp.f32 %v953_v23  ;;  %v981_v27 = vand.u32 2147483648, %v953_v23  ;;  %v979_v29 = vand.u32 2147483647, %v953_v23  ;;  %vm975_vm3 = vweird.f32 %v953_v23 }
 0x4dc   :  { %v982_v31 = vor.u32 1.1754944e-38, %v981_v27  ;;  %vm980_vm5 = vcmp.eq.f32.partialorder %v979_v29, 8.507059e+37  ;;  %v508_v29 = vadd.f32 %v7911_v60, %v7869_v41 }
 0x4de   :  { %vm519_vm12 = vcmp.ge.f32.partialorder %v508_v29, 0.0 }
 0x4e0   :  { %v7289_v24 = vpop.eup %7288 }
 0x4e1   :  { %v971_v25 = vmul.f32 %v7289_v24, %v953_v23  ;;  %vm976_vm0 = vweird.f32 %v7289_v24 }
 0x4e2   :  { %vm977_vm4 = vmor %vm975_vm3, %vm976_vm0  ;;  %vm1061_vm0 = vcmask 1047559   ;;  %vm1054_vm3 = vcmask 1046534  }
 0x4e3   :  { %v972_v26 = vsub.f32 1.0, %v971_v25 }
 0x4e5   :  { %v973_v28 = vmul.f32 %v7289_v24, %v972_v26 }
 0x4e7   :  { %v974_v30 = vadd.f32 %v7289_v24, %v973_v28  ;;  %v548_v28 = vld [vmem:[%s10894_s3 + $0x8] sm:$0xff]  ;;  %s10907_s3 = sld [smem:[#allocation32_spill]] }
 0x4e9   :  { %v978_v32 = vsel %vm977_vm4, %v7289_v24, %v974_v30  ;;  %v523_v30 = vmul.f32 0.2, %v508_v29 }
 0x4ea   :  { %v983_v33 = vsel %vm980_vm5, %v982_v31, %v978_v32  ;;  %vm1047_vm5 = vcmask 1045509  }
 0x4eb   :  { %v985_v34 = vmul.f32 %v7287_v11, %v983_v33  ;;  %v984_v35 = vmul.f32 %v7285_v10, %v983_v33  ;;  %v552_v10 = vpop.permute.xlu1 %551  ;;  %v527_v31 = vsel %vm519_vm12, %v508_v29, %v523_v30  ;;  %v1344_v29 = vld [vmem:[%s7674_s22 + $0x70] sm:$0xff]  ;;  %vm1059_vm12 = vcmask 391493  }
 0x4ec   :  { %v561_v6 = vadd.f32 %v552_v10, %v545_v8  ;;  %v543_v32 = vmul.f32 %v536_v4, %v527_v31  ;;  %v1159_v4 = vld [vmem:[%s10897_s2 + $0xc8] sm:$0xff]  ;;  %v1153_v8 = vld [vmem:[%s10897_s2 + $0x98] sm:$0xff]  ;;  %v1152_v30 = vld [vmem:[%s10897_s2 + $0x90] sm:$0xff] }
 0x4ed   :  { %v989_v36 = vmul.f32 16.0, %v985_v34  ;;  %v988_v37 = vmul.f32 16.0, %v984_v35  ;;  %v1343_v31 = vld [vmem:[%s7674_s22 + $0x68] sm:$0xff] }
 0x4ee   :  { %v559_v33 = vadd.f32 %v552_v10, %v543_v32  ;;  %v1149_v10 = vld [vmem:[%s10897_s2 + $0x78] sm:$0xff] }
 0x4ef   :  { %1011 = vperm.xlu1 %7249, %v989_v36   ;;  %993 = vst.msk [vmem:[%s7729_s15 + $0x18] sm:$0xff] %vm905_vm2, %v989_v36  ;;  %1006 = vperm.xlu2 %7250, %v988_v37  }
 0x4f0   :  { %992 = vst.msk [vmem:[%s7729_s15 + $0x10] sm:$0xff] %vm905_vm2, %v988_v37 }
 0x50a   :  { %v870_v38 = vpop.f32.mrf.mxu2 }
 0x50b   :  { %v906_v39 = vsel %vm905_vm2, %v870_v38, -inf }
 0x512   :  { %v873_v12 = vpop.f32.mrf.mxu2 }
 0x513   :  { %v907_v40 = vsel %vm905_vm2, %v873_v12, -inf }
 0x514   :  { %v908_v15 = vmax.f32 %v906_v39, %v907_v40 }
 0x516   :  { %v909_v45 = vrot.slane %v908_v15, 4 }
 0x518   :  { %v910_v46 = vmax.f32 %v908_v15, %v909_v45  ;;  %v511_v45 = vadd.f32 %v7911_v60, %v7871_v42 }
 0x51a   :  { %v911_v47 = vrot.slane %v910_v46, 2  ;;  %vm520_vm6 = vcmp.ge.f32.partialorder %v511_v45, 0.0 }
 0x51c   :  { %v912_v48 = vmax.f32 %v910_v46, %v911_v47  ;;  %v541_v46 = vpop.permute.xlu1 %540 }
 0x51e   :  { %v913_v49 = vrot.slane %v912_v48, 1 }
 0x520   :  { %v914_v17 = vmax.f32 %v912_v48, %v913_v49  ;;  %v524_v49 = vmul.f32 0.2, %v511_v45 }
 0x522   :  { %v924_v50 = vsub.f32 %v870_v38, %v914_v17  ;;  %v925_v51 = vsub.f32 %v873_v12, %v914_v17  ;;  %v517_v38 = vadd.f32 %v7911_v60, %v7875_v44 }
 0x524   :  { %v928_v52 = vmul.f32 1.442695, %v924_v50  ;;  %v930_v53 = vmul.f32 1.442695, %v925_v51  ;;  %v526_v12 = vmul.f32 0.2, %v517_v38  ;;  %v528_v51 = vsel %vm520_vm6, %v511_v45, %v524_v49 }
 0x525   :  { %vm522_vm4 = vcmp.ge.f32.partialorder %v517_v38, 0.0  ;;  %v1138_v49 = vld [vmem:[%s10897_s2 + $0x20] sm:$0xff]  ;;  %vm1121_vm6 = vcmask 982918  }
 0x526   :  { %7290 = vpow2.f32 %v928_v52  ;;  %v530_v44 = vsel %vm522_vm4, %v517_v38, %v526_v12  ;;  %v1146_v38 = vld [vmem:[%s10897_s2 + $0x60] sm:$0xff]  ;;  %v1340_v12 = vld [vmem:[%s7674_s22 + $0x50] sm:$0xff]  ;;  %vm1109_vm4 = vcmask 849668  }
 0x527   :  { %7292 = vpow2.f32 %v930_v53  ;;  %v546_v48 = vmul.f32 %v541_v46, %v530_v44  ;;  %v544_v53 = vmul.f32 %v541_v46, %v528_v51  ;;  %v1142_v46 = vld [vmem:[%s10897_s2 + $0x40] sm:$0xff]  ;;  %v1335_v51 = vld [vmem:[%s7674_s22 + $0x28] sm:$0xff] }
 0x528   :  { %v1338_v44 = vld [vmem:[%s7674_s22 + $0x40] sm:$0xff] }
 0x52c   :  { %v7291_v21 = vpop.eup %7290 }
 0x52d   :  { %v7293_v54 = vpop.eup %7292  ;;  %v936_v55 = vsel %vm905_vm2, %v7291_v21, 0.0 }
 0x52e   :  { %v937_v1 = vsel %vm905_vm2, %v7293_v54, 0.0 }
 0x52f   :  { %v938_v56 = vadd.f32 %v937_v1, %v936_v55 }
 0x531   :  { %v939_v57 = vrot.slane %v938_v56, 4 }
 0x533   :  { %v940_v58 = vadd.f32 %v939_v57, %v938_v56 }
 0x535   :  { %v941_v2 = vrot.slane %v940_v58, 2 }
 0x537   :  { %v942_v59 = vadd.f32 %v941_v2, %v940_v58 }
 0x539   :  { %v943_v61 = vrot.slane %v942_v59, 1 }
 0x53b   :  { %v944_v63 = vadd.f32 %v943_v61, %v942_v59 }
 0x53d   :  { %7294 = vrcp.f32 %v944_v63  ;;  %v965_v11 = vand.u32 2147483648, %v944_v63  ;;  %v963_v14 = vand.u32 2147483647, %v944_v63  ;;  %vm959_vm8 = vweird.f32 %v944_v63 }
 0x53f   :  { %v966_v19 = vor.u32 1.1754944e-38, %v965_v11  ;;  %vm964_vm11 = vcmp.eq.f32.partialorder %v963_v14, 8.507059e+37  ;;  %v1147_v11 = vld [vmem:[%s10897_s2 + $0x68] sm:$0xff] }
 0x540   :  { %v1143_v14 = vld [vmem:[%s10897_s2 + $0x48] sm:$0xff] }
 0x543   :  { %v7295_v5 = vpop.eup %7294 }
 0x544   :  { %v955_v9 = vmul.f32 %v7295_v5, %v944_v63  ;;  %vm960_vm7 = vweird.f32 %v7295_v5  ;;  %v1163_v63 = vld [vmem:[%s10897_s2 + $0xe8] sm:$0xff] }
 0x545   :  { %vm961_vm10 = vmor %vm959_vm8, %vm960_vm7  ;;  %1193 = vmatpush.msrb.mxu1 %v1163_v63  ;;  %vm1031_vm7 = vcmask 124993   ;;  %vm1038_vm8 = vcmask 191618   ;;  %v1249_v63 = vld [vmem:[%s10898_s18 + $0xf8] sm:$0xff] }
 0x546   :  { %v956_v3 = vsub.f32 1.0, %v955_v9  ;;  %1274 = vmatpush.msra.mxu3 %v1249_v63  ;;  %v1166_v63 = vld [vmem:[%s10903_s17] sm:$0x3] }
 0x547   :  { %1194 = vmatpush.msrb.mxu1 %v1161_v0  ;;  %v1248_v0 = vld [vmem:[%s10898_s18 + $0xf0] sm:$0xff] }
 0x548   :  { %v957_v13 = vmul.f32 %v7295_v5, %v956_v3  ;;  %v1151_v3 = vld [vmem:[%s10897_s2 + $0x88] sm:$0xff]  ;;  %1275 = vmatpush.msra.mxu3 %v1248_v0  ;;  %v1806_v0 = vld [vmem:[%s10902_s9 + $0xb00] sm:$0xff] }
 0x549   :  { %v1007_v16 = vpop.permute.xlu2 %1006  ;;  %1195 = vmatpush.msrb.mxu1 %v1159_v4 }
 0x54a   :  { %v1016_v18 = vmul.f32 %v1007_v16, %v561_v6  ;;  %v958_v43 = vadd.f32 %v7295_v5, %v957_v13  ;;  %v1145_v6 = vld [vmem:[%s10897_s2 + $0x58] sm:$0xff]  ;;  %v1164_v16 = vld [vmem:[%s10897_s2 + $0xf0] sm:$0xff] }
 0x54b   :  { %1172 = vmatpush.msrb.mxu0 %v1164_v16 }
 0x54c   :  { %v1020_v20 = vrot.slane %v1016_v18, 7  ;;  %v962_v22 = vsel %vm961_vm10, %v7295_v5, %v958_v43  ;;  %v1157_v5 = vld [vmem:[%s10897_s2 + $0xb8] sm:$0xff]  ;;  %v1162_v43 = vld [vmem:[%s10897_s2 + $0xe0] sm:$0xff]  ;;  %vm1045_vm10 = vcmask 258243  }
 0x54d   :  { %v967_v23 = vsel %vm964_vm11, %v966_v19, %v962_v22  ;;  %1196 = vmatpush.msrb.mxu1 %v1157_v5  ;;  %v1141_v18 = vld [vmem:[%s10897_s2 + $0x38] sm:$0xff]  ;;  %v1160_v19 = vld [vmem:[%s10897_s2 + $0xd0] sm:$0xff]  ;;  %1173 = vmatpush.msrb.mxu0 %v1162_v43  ;;  %vm1052_vm11 = vcmask 324868   ;;  %v1243_v43 = vld [vmem:[%s10898_s18 + $0xc8] sm:$0xff] }
 0x54e   :  { %1070 = vrot.lane.b32.xlu1 %v1020_v20, %s7494_s19  ;;  %v969_v24 = vmul.f32 %v7293_v54, %v967_v23  ;;  %v968_v25 = vmul.f32 %v7291_v21, %v967_v23  ;;  %v1137_v22 = vld [vmem:[%s10897_s2 + $0x18] sm:$0xff] }
 0x54f   :  { %1197 = vmatpush.msrb.mxu1 %v1155_v7  ;;  %1174 = vmatpush.msrb.mxu0 %v1160_v19  ;;  %v1229_v5 = vld [vmem:[%s10898_s18 + $0x58] sm:$0xff]  ;;  %v1247_v7 = vld [vmem:[%s10898_s18 + $0xe8] sm:$0xff]  ;;  %v1224_v19 = vld [vmem:[%s10898_s18 + $0x30] sm:$0xff] }
 0x550   :  { %v987_v26 = vmul.f32 16.0, %v969_v24  ;;  %v986_v27 = vmul.f32 16.0, %v968_v25  ;;  %v1158_v24 = vld [vmem:[%s10897_s2 + $0xc0] sm:$0xff]  ;;  %v1135_v25 = vld [vmem:[%s10897_s2 + $0x8] sm:$0xff]  ;;  %1276 = vmatpush.msra.mxu3 %v1247_v7  ;;  %v1168_v7 = vperm.slane %v1166_v63, 0 }
 0x551   :  { %1198 = vmatpush.msrb.mxu1 %v1153_v8  ;;  %1175 = vmatpush.msrb.mxu0 %v1158_v24  ;;  %v1228_v8 = vld [vmem:[%s10898_s18 + $0x50] sm:$0xff]  ;;  %v1222_v24 = vld [vmem:[%s10898_s18 + $0x20] sm:$0xff] }
 0x552   :  { %1001 = vperm.xlu0 %7248, %v987_v26   ;;  %991 = vst.msk [vmem:[%s7729_s15 + $0x8] sm:$0xff] %vm905_vm2, %v987_v26  ;;  %996 = vperm.xlu2 %7250, %v986_v27   ;;  %v1156_v26 = vld [vmem:[%s10897_s2 + $0xb0] sm:$0xff] }
 0x553   :  { %990 = vst.msk [vmem:[%s7729_s15] sm:$0xff] %vm905_vm2, %v986_v27  ;;  %vm1026_vm2 = vcmask 1042434   ;;  %s7498_s15 = smov 48   ;;  %1199 = vmatpush.msrb.mxu1 %v1151_v3  ;;  %v1345_v27 = vld [vmem:[%s7674_s22 + $0x78] sm:$0xff]  ;;  %1176 = vmatpush.msrb.mxu0 %v1156_v26  ;;  %v1227_v3 = vld [vmem:[%s10898_s18 + $0x48] sm:$0xff] }
 0x554   :  { %v1221_v26 = vld [vmem:[%s10898_s18 + $0x18] sm:$0xff] }
 0x555   :  { %1200 = vmatpush.msrb.mxu1 %v1149_v10  ;;  %v1245_v10 = vld [vmem:[%s10898_s18 + $0xd8] sm:$0xff] }
 0x557   :  { %1201 = vmatpush.msrb.mxu1 %v1147_v11  ;;  %v1226_v11 = vld [vmem:[%s10898_s18 + $0x40] sm:$0xff] }
 0x559   :  { %1202 = vmatpush.msrb.mxu1 %v1145_v6  ;;  %v1244_v6 = vld [vmem:[%s10898_s18 + $0xd0] sm:$0xff] }
 0x55a   :  { %556 = vperm.xlu2 %7250, %v548_v28   ;;  %v1154_v28 = vld [vmem:[%s10897_s2 + $0xa0] sm:$0xff] }
 0x55b   :  { %1203 = vmatpush.msrb.mxu1 %v1143_v14  ;;  %1177 = vmatpush.msrb.mxu0 %v1154_v28 }
 0x55d   :  { %1204 = vmatpush.msrb.mxu1 %v1141_v18  ;;  %1178 = vmatpush.msrb.mxu0 %v1152_v30  ;;  %v1225_v18 = vld [vmem:[%s10898_s18 + $0x38] sm:$0xff]  ;;  %v1238_v30 = vld [vmem:[%s10898_s18 + $0xa0] sm:$0xff] }
 0x561   :  { %v1012_v52 = vpop.permute.xlu1 %1011 }
 0x5ac   :  { %v997_v34 = vpop.permute.xlu2 %996 }
 0x5ad   :  { %v1014_v35 = vmul.f32 %v997_v34, %v559_v33  ;;  %v1150_v34 = vld [vmem:[%s10897_s2 + $0x80] sm:$0xff] }
 0x5ae   :  { %1179 = vmatpush.msrb.mxu0 %v1150_v34 }
 0x5af   :  { %1068 = vrot.lane.b32.xlu2 %v1014_v35, %s7494_s19  ;;  %v1041_v36 = vsel %vm1040_vm13, %v1020_v20, %v1014_v35  ;;  %v1034_v37 = vsel %vm1033_vm14, %v1020_v20, %v1014_v35  ;;  %v1022_v41 = vsel %vm1021_vm15, %v1020_v20, %v1014_v35  ;;  %v1027_v39 = vsel %vm1026_vm2, %v1020_v20, %v1014_v35  ;;  %s10931_s19 = sld [smem:[#allocation36_spill]] }
 0x5b0   :  { %1042 = vrot.lane.b32.xlu0 %v1041_v36, %s7495_s6  ;;  %1035 = vrot.lane.b32.xlu1 %v1034_v37, %s7496_s12  ;;  %1025 = vst.msk [vmem:[#allocation3] sm:$0x3] %vm1024_vm1, %v1022_v41  ;;  %v1062_v40 = vsel %vm1061_vm0, %v1020_v20, %v1014_v35  ;;  %v1055_v15 = vsel %vm1054_vm3, %v1020_v20, %v1014_v35  ;;  %v1148_v37 = vld [vmem:[%s10897_s2 + $0x70] sm:$0xff]  ;;  %v1341_v41 = vld [vmem:[%s7674_s22 + $0x58] sm:$0xff]  ;;  %vm1085_vm1 = vcmask 583168   ;;  %s7509_s6 = smov [#allocation5]  }
 0x5b1   :  { %v1048_v50 = vsel %vm1047_vm5, %v1020_v20, %v1014_v35  ;;  %v1139_v20 = vld [vmem:[%s10897_s2 + $0x28] sm:$0xff]  ;;  %v1342_v35 = vld [vmem:[%s7674_s22 + $0x60] sm:$0xff]  ;;  %1180 = vmatpush.msrb.mxu0 %v1148_v37  ;;  %s7035_s12 = sshll.u32 %s7509_s6, 4  ;;  %s7036_s12 = int_to_ptr.vmem [resolvable:$true] %s7035_s12 }
 0x5b2   :  { %1205 = vmatpush.msrb.mxu1 %v1139_v20  ;;  %v1242_v20 = vld [vmem:[%s10898_s18 + $0xc0] sm:$0xff] }
 0x5b3   :  { %1181 = vmatpush.msrb.mxu0 %v1146_v38 }
 0x5b4   :  { %v557_v47 = vpop.permute.xlu2 %556  ;;  %1206 = vmatpush.msrb.mxu1 %v1137_v22  ;;  %v1223_v22 = vld [vmem:[%s10898_s18 + $0x28] sm:$0xff] }
 0x5b5   :  { %v562_v17 = vadd.f32 %v557_v47, %v546_v48  ;;  %v560_v21 = vadd.f32 %v557_v47, %v544_v53  ;;  %v1140_v47 = vld [vmem:[%s10897_s2 + $0x30] sm:$0xff]  ;;  %v1337_v48 = vld [vmem:[%s7674_s22 + $0x38] sm:$0xff]  ;;  %v1334_v53 = vld [vmem:[%s7674_s22 + $0x20] sm:$0xff] }
 0x5b6   :  { %1207 = vmatpush.msrb.mxu1 %v1135_v25  ;;  %v1240_v25 = vld [vmem:[%s10898_s18 + $0xb0] sm:$0xff] }
 0x5b7   :  { %1028 = vrot.lane.b32.xlu2 %v1027_v39, %s7497_s4  ;;  %v1017_v42 = vmul.f32 %v1012_v52, %v562_v17  ;;  %v1144_v39 = vld [vmem:[%s10897_s2 + $0x50] sm:$0xff]  ;;  %v1134_v52 = vld [vmem:[%s10897_s2] sm:$0xff]  ;;  %s7037_s4 = sshll.u32 %s7719_s1, 4  ;;  %s7038_s4 = int_to_ptr.hbm [resolvable:$true] %s7037_s4 }
 0x5b8   :  { %1063 = vrot.lane.b32.xlu0 %v1062_v40, %s7498_s15  ;;  %1056 = vrot.lane.b32.xlu1 %v1055_v15, %s7499_s24  ;;  %v1339_v40 = vld [vmem:[%s7674_s22 + $0x48] sm:$0xff]  ;;  %v1336_v17 = vld [vmem:[%s7674_s22 + $0x30] sm:$0xff]  ;;  %s7360_s15 = sshra.s32 %s7038_s4, 4  ;;  %s7361_s15 = int_to_ptr.hbm [resolvable:$true] %s7360_s15 }
 0x5b9   :  { %v1080_v55 = vrot.slane %v1017_v42, 7  ;;  %1350 = vmatpush.msra.mxu1 %v1345_v27  ;;  %1182 = vmatpush.msrb.mxu0 %v1144_v39  ;;  %v1333_v42 = vld [vmem:[%s7674_s22 + $0x18] sm:$0xff]  ;;  %v1239_v27 = vld [vmem:[%s10898_s18 + $0xa8] sm:$0xff]  ;;  %s7362_s24 = scalar_lea.hbm %s7361_s15, 2  ;;  %p7365_p1 = scmp.lt.s32.totalorder %s7361_s15, %s7719_s1 }
 0x5ba   :  { %p7363_p0 = scmp.ne.s32.totalorder %s7361_s15, %s7362_s24 }
 0x5bb   :  { %1351 = vmatpush.msra.mxu1 %v1344_v29  ;;  %1183 = vmatpush.msrb.mxu0 %v1142_v46  ;;  %v1220_v29 = vld [vmem:[%s10898_s18 + $0x10] sm:$0xff]  ;;  %v1235_v46 = vld [vmem:[%s10898_s18 + $0x88] sm:$0xff] }
 0x5bd   :  { %1352 = vmatpush.msra.mxu1 %v1343_v31  ;;  %1184 = vmatpush.msrb.mxu0 %v1140_v47  ;;  %v1219_v31 = vld [vmem:[%s10898_s18 + $0x8] sm:$0xff]  ;;  %v1234_v47 = vld [vmem:[%s10898_s18 + $0x80] sm:$0xff] }
 0x5bf   :  { %1049 = vrot.lane.b32.xlu2 %v1048_v50, %s7500_s23  ;;  %1353 = vmatpush.msra.mxu1 %v1342_v35  ;;  %v1136_v50 = vld [vmem:[%s10897_s2 + $0x10] sm:$0xff]  ;;  %s7364_s23 = scalar_lea.hbm %s7719_s1, 2 }
 0x5c0   :  { %v1071_v23 = vpop.permute.xlu1 %1070  ;;  %1185 = vmatpush.msrb.mxu0 %v1138_v49  ;;  %p7366_p2 = scmp.lt.s32.totalorder %s7364_s23, %s7362_s24 }
 0x5c1   :  { %1354 = vmatpush.msra.mxu1 %v1341_v41 }
 0x5c2   :  { %1186 = vmatpush.msrb.mxu0 %v1136_v50  ;;  %p7367_p3 = por %p7366_p2, %p7365_p1 }
 0x5c3   :  { %1355 = vmatpush.msra.mxu1 %v1340_v12 }
 0x5c4   :  { %v1002_v54 = vpop.permute.xlu0 %1001  ;;  %1187 = vmatpush.msrb.mxu0 %v1134_v52  ;;  %v1300_v52 = vld [vmem:[%s10900_s0 + $0x18] sm:$0xff]  ;;  %p7368_p4 = pnand %p7367_p3, %p7363_p0 }
 0x5c5   :  { %v1015_v1 = vmul.f32 %v1002_v54, %v560_v21  ;;  %1356 = vmatpush.msra.mxu1 %v1339_v40  ;;  %v1332_v21 = vld [vmem:[%s7674_s22 + $0x10] sm:$0xff] }
 0x5c6   :  { %1320 = vmatpush.msra.mxu0 %v1300_v52  ;;  %v1878_v52 = vld [vmem:[%s10902_s9 + $0xd40] sm:$0xff] }
 0x5c7   :  { %v1093_v56 = vsel %vm1033_vm14, %v1080_v55, %v1015_v1  ;;  %v1087_v57 = vsel %vm1026_vm2, %v1080_v55, %v1015_v1  ;;  %v1081_v58 = vsel %vm1021_vm15, %v1080_v55, %v1015_v1  ;;  %v1111_v2 = vsel %vm1054_vm3, %v1080_v55, %v1015_v1  ;;  %1357 = vmatpush.msra.mxu1 %v1338_v44 }
 0x5c8   :  { %1094 = vrot.lane.b32.xlu1 %v1093_v56, %s7501_s26  ;;  %1088 = vrot.lane.b32.xlu2 %v1087_v57, %s7502_s30  ;;  %v1105_v59 = vsel %vm1047_vm5, %v1080_v55, %v1015_v1  ;;  %v1099_v60 = vsel %vm1040_vm13, %v1080_v55, %v1015_v1  ;;  %v1117_v61 = vsel %vm1061_vm0, %v1080_v55, %v1015_v1  ;;  %vm1066_vm13 = vcmask 458118   ;;  %v1330_v56 = vld [vmem:[%s7674_s22] sm:$0xff] }
 0x5c9   :  { %1082 = vrot.lane.b32.xlu0 %v1081_v58, %s7503_s28  ;;  %vm1074_vm14 = vcmask 523719   ;;  %vm1076_vm15 = vcmask 516544   ;;  %1358 = vmatpush.msra.mxu1 %v1337_v48  ;;  %vm1091_vm2 = vcmask 649793   ;;  %vm1097_vm0 = vcmask 716418   ;;  %v1233_v58 = vld [vmem:[%s10898_s18 + $0x78] sm:$0xff] }
 0x5ca   :  { %1254 = vmatpush.msrb.mxu2 %v1233_v58  ;;  %vm1103_vm3 = vcmask 783043   ;;  %vm1115_vm5 = vcmask 916293   ;;  %v1566_v58 = vld [vmem:[%s10902_s9 + $0x380] sm:$0xff] }
 0x5cb   :  { %1359 = vmatpush.msra.mxu1 %v1336_v17 }
 0x5cd   :  { %1360 = vmatpush.msra.mxu1 %v1335_v51 }
 0x5cf   :  { %1361 = vmatpush.msra.mxu1 %v1334_v53  ;;  %v1299_v53 = vld [vmem:[%s10900_s0 + $0x10] sm:$0xff] }
 0x5d0   :  { %1112 = vrot.lane.b32.xlu1 %v1111_v2, %s7504_s27  ;;  %1106 = vrot.lane.b32.xlu2 %v1105_v59, %s7505_s7  ;;  %v1232_v2 = vld [vmem:[%s10898_s18 + $0x70] sm:$0xff]  ;;  %v1231_v59 = vld [vmem:[%s10898_s18 + $0x68] sm:$0xff] }
 0x5d1   :  { %1100 = vrot.lane.b32.xlu0 %v1099_v60, %s7506_s11  ;;  %1362 = vmatpush.msra.mxu1 %v1333_v42  ;;  %v1419_v42 = vld [vmem:[%s10901_s5 + $0x18] sm:$0xff] }
 0x5d2   :  { %1255 = vmatpush.msrb.mxu2 %v1232_v2  ;;  %1321 = vmatpush.msra.mxu0 %v1299_v53  ;;  %v1830_v2 = vld [vmem:[%s10902_s9 + $0xbc0] sm:$0xff] }
 0x5d3   :  { %1363 = vmatpush.msra.mxu1 %v1332_v21  ;;  %v1298_v21 = vld [vmem:[%s10900_s0 + $0x8] sm:$0xff]  ;;  %v1470_v53 = vld [vmem:[%s10902_s9 + $0x80] sm:$0xff] }
 0x5d4   :  { %1256 = vmatpush.msrb.mxu2 %v1231_v59  ;;  %1322 = vmatpush.msra.mxu0 %v1298_v21  ;;  %v1558_v59 = vld [vmem:[%s10902_s9 + $0x340] sm:$0xff] }
 0x5d5   :  { %v1774_v21 = vld [vmem:[%s10902_s9 + $0xa00] sm:$0xff] }
 0x5d6   :  { %1257 = vmatpush.msrb.mxu2 %v1230_v62  ;;  %v1550_v62 = vld [vmem:[%s10902_s9 + $0x300] sm:$0xff] }
 0x5d8   :  { %1125 = vrot.lane.b32.xlu1 %v1080_v55, %s7507_s13  ;;  %1123 = vrot.lane.b32.xlu2 %v1015_v1, %s7507_s13  ;;  %v1331_v55 = vld [vmem:[%s7674_s22 + $0x8] sm:$0xff]  ;;  %s10899_s22 = sld [smem:[#allocation31_spill]] }
 0x5d9   :  { %1118 = vrot.lane.b32.xlu0 %v1117_v61, %s7508_s16  ;;  %1364 = vmatpush.msra.mxu1 %v1331_v55  ;;  %v1417_v55 = vld [vmem:[%s10901_s5 + $0x8] sm:$0xff] }
 0x5da   :  { %1258 = vmatpush.msrb.mxu2 %v1229_v5  ;;  %v1798_v5 = vld [vmem:[%s10902_s9 + $0xac0] sm:$0xff] }
 0x5db   :  { %1365 = vmatpush.msra.mxu1 %v1330_v56  ;;  %v1574_v56 = vld [vmem:[%s10902_s9 + $0x3c0] sm:$0xff] }
 0x5dc   :  { %1259 = vmatpush.msrb.mxu2 %v1228_v8  ;;  %v1169_v8 = vperm.slane %v1166_v63, 1  ;;  %v1846_v63 = vld [vmem:[%s10902_s9 + $0xc40] sm:$0xff] }
 0x5de   :  { %1260 = vmatpush.msrb.mxu2 %v1227_v3  ;;  %v1388_v34 = vld [vmem:[%s10899_s22 + $0x78] sm:$0xff]  ;;  %v1387_v35 = vld [vmem:[%s10899_s22 + $0x70] sm:$0xff]  ;;  %v1385_v37 = vld [vmem:[%s10899_s22 + $0x60] sm:$0xff] }
 0x5df   :  { %v1384_v41 = vld [vmem:[%s10899_s22 + $0x58] sm:$0xff]  ;;  %v1383_v38 = vld [vmem:[%s10899_s22 + $0x50] sm:$0xff]  ;;  %v1382_v12 = vld [vmem:[%s10899_s22 + $0x48] sm:$0xff] }
 0x5e0   :  { %1261 = vmatpush.msrb.mxu2 %v1226_v11  ;;  %v1381_v39 = vld [vmem:[%s10899_s22 + $0x40] sm:$0xff]  ;;  %v1380_v40 = vld [vmem:[%s10899_s22 + $0x38] sm:$0xff]  ;;  %v1378_v44 = vld [vmem:[%s10899_s22 + $0x28] sm:$0xff] }
 0x5e1   :  { %v1377_v48 = vld [vmem:[%s10899_s22 + $0x20] sm:$0xff]  ;;  %v1376_v49 = vld [vmem:[%s10899_s22 + $0x18] sm:$0xff]  ;;  %v1375_v17 = vld [vmem:[%s10899_s22 + $0x10] sm:$0xff] }
 0x5e2   :  { %1262 = vmatpush.msrb.mxu2 %v1225_v18  ;;  %v1374_v50 = vld [vmem:[%s10899_s22 + $0x8] sm:$0xff]  ;;  %v1373_v51 = vld [vmem:[%s10899_s22] sm:$0xff] }
 0x5e3   :  { %v1790_v3 = vld [vmem:[%s10902_s9 + $0xa80] sm:$0xff] }
 0x5e4   :  { %1263 = vmatpush.msrb.mxu2 %v1224_v19  ;;  %v1958_v19 = vld [vmem:[%s10902_s9 + $0xfc0] sm:$0xff] }
 0x5e6   :  { %1264 = vmatpush.msrb.mxu2 %v1223_v22 }
 0x5e8   :  { %1265 = vmatpush.msrb.mxu2 %v1222_v24  ;;  %v7263_v24 = vld [vmem:[%s10904_s21] ss:$0 sm:$0xff] }
 0x5ea   :  { %1266 = vmatpush.msrb.mxu2 %v1221_v26  ;;  %v1950_v26 = vld [vmem:[%s10902_s9 + $0xf80] sm:$0xff] }
 0x5ec   :  { %1267 = vmatpush.msrb.mxu2 %v1220_v29 }
 0x5ee   :  { %1268 = vmatpush.msrb.mxu2 %v1219_v31  ;;  %v1686_v31 = vld [vmem:[%s10902_s9 + $0x740] sm:$0xff] }
 0x609   :  { %v7947_v9 = vpop.permute.xlu2 %1068 }
 0x611   :  { %v1029_v13 = vpop.permute.xlu2 %1028 }
 0x612   :  { %1032 = vst.msk [vmem:[#allocation3 - $0x1] sm:$0x6] %vm1031_vm7, %v1029_v13  ;;  %vm1129_vm7 = vcmask 1048519  }
 0x619   :  { %v1050_v36 = vpop.permute.xlu2 %1049 }
 0x622   :  { %v1043_v32 = vpop.permute.xlu0 %1042  ;;  %v1036_v33 = vpop.permute.xlu1 %1035 }
 0x623   :  { %1039 = vst.msk [vmem:[#allocation3 - $0x2] sm:$0xc] %vm1038_vm8, %v1036_v33  ;;  %v1089_v54 = vpop.permute.xlu2 %1088  ;;  %vm1131_vm8 = vcmask 1041344   ;;  %v1218_v33 = vld [vmem:[%s10898_s18] sm:$0xff] }
 0x624   :  { %1046 = vst.msk [vmem:[#allocation3 - $0x3] sm:$0x18] %vm1045_vm10, %v1043_v32  ;;  %v1237_v32 = vld [vmem:[%s10898_s18 + $0x98] sm:$0xff]  ;;  %1269 = vmatpush.msrb.mxu2 %v1218_v33  ;;  %v1494_v33 = vld [vmem:[%s10902_s9 + $0x140] sm:$0xff] }
 0x625   :  { %1053 = vst.msk [vmem:[#allocation3 - $0x4] sm:$0x30] %vm1052_vm11, %v1050_v36  ;;  %v1386_v36 = vld [vmem:[%s10899_s22 + $0x68] sm:$0xff] }
 0x626   :  { %1393 = vmatpush.msra.mxu2 %v1388_v34  ;;  %v1934_v34 = vld [vmem:[%s10902_s9 + $0xf00] sm:$0xff] }
 0x628   :  { %1394 = vmatpush.msra.mxu2 %v1387_v35  ;;  %v1678_v35 = vld [vmem:[%s10902_s9 + $0x700] sm:$0xff] }
 0x62a   :  { %v1064_v15 = vpop.permute.xlu0 %1063  ;;  %v1057_v45 = vpop.permute.xlu1 %1056  ;;  %1395 = vmatpush.msra.mxu2 %v1386_v36 }
 0x62b   :  { %1060 = vst.msk [vmem:[#allocation3 - $0x5] sm:$0x60] %vm1059_vm12, %v1057_v45  ;;  %v1107_v60 = vpop.permute.xlu2 %1106  ;;  %v1379_v45 = vld [vmem:[%s10899_s22 + $0x30] sm:$0xff] }
 0x62c   :  { %1067 = vst.msk [vmem:[#allocation3 - $0x6] sm:$0xc0] %vm1066_vm13, %v1064_v15  ;;  %1396 = vmatpush.msra.mxu2 %v1385_v37  ;;  %v1236_v15 = vld [vmem:[%s10898_s18 + $0x90] sm:$0xff]  ;;  %v1486_v37 = vld [vmem:[%s10902_s9 + $0x100] sm:$0xff] }
 0x62d   :  { %1075 = vst.msk [vmem:[#allocation3 - $0x7] sm:$0x80] %vm1074_vm14, %v7947_v9  ;;  %v1246_v9 = vld [vmem:[%s10898_s18 + $0xe0] sm:$0xff] }
 0x62e   :  { %1077 = vst.msk [vmem:[#allocation3 + $0x1] sm:$0x1] %vm1076_vm15, %v1071_v23  ;;  %1277 = vmatpush.msra.mxu3 %v1246_v9  ;;  %v1241_v23 = vld [vmem:[%s10898_s18 + $0xb8] sm:$0xff]  ;;  %1397 = vmatpush.msra.mxu2 %v1384_v41  ;;  %v1534_v9 = vld [vmem:[%s10902_s9 + $0x280] sm:$0xff]  ;;  %vm1328_vm15 = vcmask 9216  }
 0x62f   :  { %v1926_v41 = vld [vmem:[%s10902_s9 + $0xec0] sm:$0xff] }
 0x630   :  { %1278 = vmatpush.msra.mxu3 %v1245_v10  ;;  %1398 = vmatpush.msra.mxu2 %v1383_v38  ;;  %v1526_v10 = vld [vmem:[%s10902_s9 + $0x240] sm:$0xff] }
 0x631   :  { %v1670_v38 = vld [vmem:[%s10902_s9 + $0x6c0] sm:$0xff] }
 0x632   :  { %1279 = vmatpush.msra.mxu3 %v1244_v6  ;;  %1399 = vmatpush.msra.mxu2 %v1382_v12 }
 0x633   :  { %v1124_v16 = vpop.permute.xlu2 %1123 }
 0x634   :  { %1280 = vmatpush.msra.mxu3 %v1243_v43  ;;  %1400 = vmatpush.msra.mxu2 %v1381_v39  ;;  %v1918_v39 = vld [vmem:[%s10902_s9 + $0xe80] sm:$0xff] }
 0x636   :  { %1281 = vmatpush.msra.mxu3 %v1242_v20  ;;  %1401 = vmatpush.msra.mxu2 %v1380_v40  ;;  %v1702_v20 = vld [vmem:[%s10902_s9 + $0x7c0] sm:$0xff] }
 0x637   :  { %v1662_v40 = vld [vmem:[%s10902_s9 + $0x680] sm:$0xff] }
 0x638   :  { %1282 = vmatpush.msra.mxu3 %v1241_v23  ;;  %1402 = vmatpush.msra.mxu2 %v1379_v45  ;;  %v1654_v45 = vld [vmem:[%s10902_s9 + $0x640] sm:$0xff] }
 0x63a   :  { %v1095_v1 = vpop.permute.xlu1 %1094  ;;  %1283 = vmatpush.msra.mxu3 %v1240_v25  ;;  %1403 = vmatpush.msra.mxu2 %v1378_v44  ;;  %v1510_v25 = vld [vmem:[%s10902_s9 + $0x1c0] sm:$0xff] }
 0x63b   :  { %v1083_v57 = vpop.permute.xlu0 %1082  ;;  %v1646_v44 = vld [vmem:[%s10902_s9 + $0x600] sm:$0xff] }
 0x63c   :  { %1086 = vst.msk [vmem:[#allocation3] sm:$0x3] %vm1085_vm1, %v1083_v57  ;;  %1284 = vmatpush.msra.mxu3 %v1239_v27  ;;  %1404 = vmatpush.msra.mxu2 %v1377_v48  ;;  %v1416_v57 = vld [vmem:[%s10901_s5] sm:$0xff]  ;;  %vm1447_vm1 = vcmask 25600  }
 0x63d   :  { %1092 = vst.msk [vmem:[#allocation3 - $0x1] sm:$0x6] %vm1091_vm2, %v1089_v54  ;;  %v1418_v54 = vld [vmem:[%s10901_s5 + $0x10] sm:$0xff]  ;;  %v1694_v27 = vld [vmem:[%s10902_s9 + $0x780] sm:$0xff]  ;;  %vm7003_vm2 = vcmask 1045508  }
 0x63e   :  { %1098 = vst.msk [vmem:[#allocation3 - $0x2] sm:$0xc] %vm1097_vm0, %v1095_v1  ;;  %1285 = vmatpush.msra.mxu3 %v1238_v30  ;;  %1405 = vmatpush.msra.mxu2 %v1376_v49  ;;  %v1297_v1 = vld [vmem:[%s10900_s0] sm:$0xff]  ;;  %vm7001_vm0 = vcmask 1041408  }
 0x63f   :  { %1323 = vmatpush.msra.mxu0 %v1297_v1  ;;  %v1942_v30 = vld [vmem:[%s10902_s9 + $0xf40] sm:$0xff] }
 0x640   :  { %1286 = vmatpush.msra.mxu3 %v1237_v32  ;;  %1406 = vmatpush.msra.mxu2 %v1375_v17  ;;  %v1638_v48 = vld [vmem:[%s10902_s9 + $0x5c0] sm:$0xff] }
 0x641   :  { %v1886_v49 = vld [vmem:[%s10902_s9 + $0xd80] sm:$0xff] }
 0x642   :  { %v1113_v61 = vpop.permute.xlu1 %1112  ;;  %1287 = vmatpush.msra.mxu3 %v1236_v15  ;;  %1407 = vmatpush.msra.mxu2 %v1374_v50  ;;  %v1910_v15 = vld [vmem:[%s10902_s9 + $0xe40] sm:$0xff] }
 0x643   :  { %v1101_v4 = vpop.permute.xlu0 %1100  ;;  %v1478_v17 = vld [vmem:[%s10902_s9 + $0xc0] sm:$0xff] }
 0x644   :  { %1104 = vst.msk [vmem:[#allocation3 - $0x3] sm:$0x18] %vm1103_vm3, %v1101_v4  ;;  %1288 = vmatpush.msra.mxu3 %v1235_v46  ;;  %1408 = vmatpush.msra.mxu2 %v1373_v51  ;;  %v1542_v4 = vld [vmem:[%s10902_s9 + $0x2c0] sm:$0xff]  ;;  %vm7005_vm3 = vcmask 1043456  }
 0x645   :  { %1110 = vst.msk [vmem:[#allocation3 - $0x4] sm:$0x30] %vm1109_vm4, %v1107_v60  ;;  %v1822_v60 = vld [vmem:[%s10902_s9 + $0xb80] sm:$0xff] }
 0x646   :  { %1116 = vst.msk [vmem:[#allocation3 - $0x5] sm:$0x60] %vm1115_vm5, %v1113_v61  ;;  %1289 = vmatpush.msra.mxu3 %v1234_v47  ;;  %v1814_v61 = vld [vmem:[%s10902_s9 + $0xb40] sm:$0xff] }
 0x647   :  { %v1902_v46 = vld [vmem:[%s10902_s9 + $0xe00] sm:$0xff] }
 0x648   :  { %1439 = vmatpush.msrb.mxu3 %v1419_v42  ;;  %v1894_v47 = vld [vmem:[%s10902_s9 + $0xdc0] sm:$0xff] }
 0x649   :  { %v1630_v50 = vld [vmem:[%s10902_s9 + $0x580] sm:$0xff] }
 0x64a   :  { %v1126_v13 = vpop.permute.xlu1 %1125  ;;  %1440 = vmatpush.msrb.mxu3 %v1418_v54  ;;  %v1782_v51 = vld [vmem:[%s10902_s9 + $0xa40] sm:$0xff] }
 0x64b   :  { %v1119_v14 = vpop.permute.xlu0 %1118  ;;  %v1622_v42 = vld [vmem:[%s10902_s9 + $0x540] sm:$0xff] }
 0x64c   :  { %1122 = vst.msk [vmem:[#allocation3 - $0x6] sm:$0xc0] %vm1121_vm6, %v1119_v14  ;;  %1441 = vmatpush.msrb.mxu3 %v1417_v55  ;;  %v1870_v54 = vld [vmem:[%s10902_s9 + $0xd00] sm:$0xff] }
 0x64d   :  { %1130 = vst.msk [vmem:[#allocation3 - $0x7] sm:$0x80] %vm1129_vm7, %v1124_v16  ;;  %v1518_v16 = vld [vmem:[%s10902_s9 + $0x200] sm:$0xff] }
 0x64e   :  { %1132 = vst.msk [vmem:[#allocation3 + $0x1] sm:$0x1] %vm1131_vm8, %v1126_v13  ;;  %1442 = vmatpush.msrb.mxu3 %v1416_v57  ;;  %v1462_v55 = vld [vmem:[%s10902_s9 + $0x40] sm:$0xff] }
 0x64f   :  { %v1614_v1 = vld [vmem:[%s10902_s9 + $0x500] sm:$0xff] }
 0x650   :  { %v1862_v57 = vld [vmem:[%s10902_s9 + $0xcc0] sm:$0xff] }
 0x655   :  { %v1133_v28 = vld [vmem:[#allocation3] sm:$0x3] }
 0x656   :  { %1188 = vmatmul.f32.vlgmr.msrb.gmra.mxu0 %v1133_v28  ;;  %1208 = vmatmul.f32.vlgmr.msrb.gmra.mxu1 %v1133_v28 }
 0x657   :  { %3939 = vmatpush.msrb.mxu0 %v1574_v56  ;;  %3979 = vmatpush.msrb.mxu1 %v1830_v2  ;;  %v1766_v56 = vld [vmem:[%s10902_s9 + $0x9c0] sm:$0xff] }
 0x658   :  { %v1606_v2 = vld [vmem:[%s10902_s9 + $0x4c0] sm:$0xff] }
 0x659   :  { %3940 = vmatpush.msrb.mxu0 %v1566_v58  ;;  %3980 = vmatpush.msrb.mxu1 %v1822_v60  ;;  %v1454_v58 = vld [vmem:[%s10902_s9] sm:$0xff] }
 0x65a   :  { %v1854_v60 = vld [vmem:[%s10902_s9 + $0xc80] sm:$0xff] }
 0x65b   :  { %3941 = vmatpush.msrb.mxu0 %v1558_v59  ;;  %3981 = vmatpush.msrb.mxu1 %v1814_v61  ;;  %v1758_v59 = vld [vmem:[%s10902_s9 + $0x980] sm:$0xff] }
 0x65c   :  { %v1598_v61 = vld [vmem:[%s10902_s9 + $0x480] sm:$0xff] }
 0x65d   :  { %3942 = vmatpush.msrb.mxu0 %v1550_v62  ;;  %3982 = vmatpush.msrb.mxu1 %v1806_v0  ;;  %v1750_v62 = vld [vmem:[%s10902_s9 + $0x940] sm:$0xff] }
 0x65e   :  { %1366 = vmatmul.f32.vlgmr.msra.gmra.mxu1 %v1133_v28  ;;  %v1502_v28 = vld [vmem:[%s10902_s9 + $0x180] sm:$0xff] }
 0x65f   :  { %3943 = vmatpush.msrb.mxu0 %v1542_v4  ;;  %3983 = vmatpush.msrb.mxu1 %v1798_v5  ;;  %v1590_v0 = vld [vmem:[%s10902_s9 + $0x440] sm:$0xff] }
 0x660   :  { %v1742_v4 = vld [vmem:[%s10902_s9 + $0x900] sm:$0xff] }
 0x661   :  { %3944 = vmatpush.msrb.mxu0 %v1534_v9  ;;  %3984 = vmatpush.msrb.mxu1 %v1790_v3  ;;  %v1838_v5 = vld [vmem:[%s10902_s9 + $0xc00] sm:$0xff] }
 0x662   :  { %v1734_v9 = vld [vmem:[%s10902_s9 + $0x8c0] sm:$0xff] }
 0x663   :  { %3945 = vmatpush.msrb.mxu0 %v1526_v10  ;;  %3985 = vmatpush.msrb.mxu1 %v1782_v51  ;;  %v2462_v3 = vld [vmem:[%s10902_s9 + $0x1f80] sm:$0xff]  ;;  %v1450_v51 = vld [vmem:[%s10906_s29 + $0x8] sm:$0xff] }
 0x664   :  { %v1726_v10 = vld [vmem:[%s10902_s9 + $0x880] sm:$0xff]  ;;  %3895 = vst [vmem:[#allocation1 + $0x20] ss:$4 sm:$0xff] %v1450_v51 }
 0x665   :  { %3946 = vmatpush.msrb.mxu0 %v1518_v16  ;;  %3986 = vmatpush.msrb.mxu1 %v1774_v21  ;;  %v2342_v16 = vld [vmem:[%s10902_s9 + $0x1bc0] sm:$0xff] }
 0x666   :  { %v2110_v51 = vld [vmem:[%s10902_s9 + $0x1480] sm:$0xff] }
 0x667   :  { %3947 = vmatpush.msrb.mxu0 %v1510_v25  ;;  %3987 = vmatpush.msrb.mxu1 %v1766_v56  ;;  %v2310_v25 = vld [vmem:[%s10902_s9 + $0x1ac0] sm:$0xff] }
 0x668   :  { %v2982_v56 = vld [vmem:[%s10902_s9 + $0x2fc0] sm:$0xff] }
 0x669   :  { %3948 = vmatpush.msrb.mxu0 %v1502_v28  ;;  %3988 = vmatpush.msrb.mxu1 %v1758_v59  ;;  %v2302_v28 = vld [vmem:[%s10902_s9 + $0x1a80] sm:$0xff] }
 0x66a   :  { %v2054_v59 = vld [vmem:[%s10902_s9 + $0x12c0] sm:$0xff] }
 0x66b   :  { %3949 = vmatpush.msrb.mxu0 %v1494_v33  ;;  %3989 = vmatpush.msrb.mxu1 %v1750_v62  ;;  %v2390_v33 = vld [vmem:[%s10902_s9 + $0x1d40] sm:$0xff] }
 0x66d   :  { %3950 = vmatpush.msrb.mxu0 %v1486_v37  ;;  %3990 = vmatpush.msrb.mxu1 %v1742_v4  ;;  %v2382_v37 = vld [vmem:[%s10902_s9 + $0x1d00] sm:$0xff] }
 0x66e   :  { %v2198_v4 = vld [vmem:[%s10902_s9 + $0x1740] sm:$0xff] }
 0x66f   :  { %3951 = vmatpush.msrb.mxu0 %v1478_v17  ;;  %3991 = vmatpush.msrb.mxu1 %v1734_v9  ;;  %v2358_v17 = vld [vmem:[%s10902_s9 + $0x1c40] sm:$0xff] }
 0x670   :  { %v2230_v9 = vld [vmem:[%s10902_s9 + $0x1840] sm:$0xff] }
 0x671   :  { %3952 = vmatpush.msrb.mxu0 %v1470_v53  ;;  %3992 = vmatpush.msrb.mxu1 %v1726_v10  ;;  %v2254_v53 = vld [vmem:[%s10902_s9 + $0x1900] sm:$0xff] }
 0x672   :  { %v2190_v10 = vld [vmem:[%s10902_s9 + $0x1700] sm:$0xff] }
 0x673   :  { %3953 = vmatpush.msrb.mxu0 %v1462_v55  ;;  %v2062_v55 = vld [vmem:[%s10902_s9 + $0x1300] sm:$0xff] }
 0x675   :  { %3954 = vmatpush.msrb.mxu0 %v1454_v58 }
 0x6d3   :  { %v1189_v11 = vpop.f32.mrf.mxu0  ;;  %v1209_v6 = vpop.f32.mrf.mxu1 }
 0x6d4   :  { %v1190_v13 = vadd.f32 %v1189_v11, %v1168_v7  ;;  %v1210_v14 = vadd.f32 %v1209_v6, %v1169_v8  ;;  %v2470_v7 = vld [vmem:[%s10902_s9 + $0x1fc0] sm:$0xff] }
 0x6d5   :  { %v1582_v8 = vld [vmem:[%s10902_s9 + $0x400] sm:$0xff] }
 0x6d6   :  { %v1214_v18 = vmul.f32 0.2, %v1190_v13  ;;  %v1215_v43 = vmul.f32 0.2, %v1210_v14  ;;  %vm1212_vm10 = vcmp.ge.f32.partialorder %v1190_v13, 0.0  ;;  %vm1213_vm11 = vcmp.ge.f32.partialorder %v1210_v14, 0.0 }
 0x6d7   :  { %v2454_v11 = vld [vmem:[%s10902_s9 + $0x1f40] sm:$0xff] }
 0x6d8   :  { %v1216_v22 = vsel %vm1212_vm10, %v1190_v13, %v1214_v18  ;;  %v1217_v23 = vsel %vm1213_vm11, %v1210_v14, %v1215_v43  ;;  %v1718_v6 = vld [vmem:[%s10902_s9 + $0x840] sm:$0xff] }
 0x6d9   :  { %1270 = vmatmul.f32.vlgmr.msrb.gmra.mxu2 %v1216_v22  ;;  %1290 = vmatmul.f32.vlgmr.msra.gmra.mxu3 %v1217_v23  ;;  %v2446_v13 = vld [vmem:[%s10902_s9 + $0x1f00] sm:$0xff] }
 0x6da   :  { %3999 = vmatpush.msrb.mxu2 %v1958_v19  ;;  %3959 = vmatpush.msra.mxu3 %v1702_v20  ;;  %v1710_v14 = vld [vmem:[%s10902_s9 + $0x800] sm:$0xff] }
 0x6db   :  { %v1367_v29 = vpop.f32.mrf.mxu1  ;;  %3993 = vmatpush.msrb.mxu1 %v1718_v6  ;;  %v2438_v18 = vld [vmem:[%s10902_s9 + $0x1ec0] sm:$0xff] }
 0x6dc   :  { %v1368_v32 = vadd.f32 %v7263_v24, %v1367_v29  ;;  %4000 = vmatpush.msrb.mxu2 %v1950_v26  ;;  %3960 = vmatpush.msra.mxu3 %v1694_v27  ;;  %v2334_v43 = vld [vmem:[%s10902_s9 + $0x1b80] sm:$0xff] }
 0x6dd   :  { %3994 = vmatpush.msrb.mxu1 %v1710_v14  ;;  %v2430_v19 = vld [vmem:[%s10902_s9 + $0x1e80] sm:$0xff] }
 0x6de   :  { %v1371_v36 = vmul.f32 0.2, %v1368_v32  ;;  %vm1370_vm12 = vcmp.ge.f32.partialorder %v1368_v32, 0.0  ;;  %4001 = vmatpush.msrb.mxu2 %v1942_v30  ;;  %3961 = vmatpush.msra.mxu3 %v1686_v31  ;;  %v2326_v20 = vld [vmem:[%s10902_s9 + $0x1b40] sm:$0xff] }
 0x6df   :  { %4059 = vmatpush.msra.mxu1 %v2342_v16  ;;  %v2422_v22 = vld [vmem:[%s10902_s9 + $0x1e40] sm:$0xff] }
 0x6e0   :  { %v1372_v12 = vsel %vm1370_vm12, %v1368_v32, %v1371_v36  ;;  %4002 = vmatpush.msrb.mxu2 %v1934_v34  ;;  %3962 = vmatpush.msra.mxu3 %v1678_v35  ;;  %v2318_v23 = vld [vmem:[%s10902_s9 + $0x1b00] sm:$0xff] }
 0x6e1   :  { %1409 = vmatmul.f32.vlgmr.msra.gmra.mxu2 %v1372_v12  ;;  %4060 = vmatpush.msra.mxu1 %v2334_v43  ;;  %v2414_v24 = vld [vmem:[%s10902_s9 + $0x1e00] sm:$0xff] }
 0x6e2   :  { %4003 = vmatpush.msrb.mxu2 %v1926_v41  ;;  %3963 = vmatpush.msra.mxu3 %v1670_v38  ;;  %v2406_v26 = vld [vmem:[%s10902_s9 + $0x1dc0] sm:$0xff] }
 0x6e3   :  { %4061 = vmatpush.msra.mxu1 %v2326_v20  ;;  %v7264_v27 = vld [vmem:[%s10905_s25] ss:$0 sm:$0xff] }
 0x6e4   :  { %4004 = vmatpush.msrb.mxu2 %v1918_v39  ;;  %3964 = vmatpush.msra.mxu3 %v1662_v40  ;;  %v2398_v29 = vld [vmem:[%s10902_s9 + $0x1d80] sm:$0xff] }
 0x6e5   :  { %4062 = vmatpush.msra.mxu1 %v2318_v23  ;;  %v1449_v30 = vld [vmem:[%s10906_s29] sm:$0xff] }
 0x6e6   :  { %4005 = vmatpush.msrb.mxu2 %v1910_v15  ;;  %3965 = vmatpush.msra.mxu3 %v1654_v45  ;;  %v2294_v32 = vld [vmem:[%s10902_s9 + $0x1a40] sm:$0xff]  ;;  %3893 = vst [vmem:[#allocation1] ss:$4 sm:$0xff] %v1449_v30 }
 0x6e7   :  { %4063 = vmatpush.msra.mxu1 %v2310_v25  ;;  %v2286_v36 = vld [vmem:[%s10902_s9 + $0x1a00] sm:$0xff] }
 0x6e8   :  { %4006 = vmatpush.msrb.mxu2 %v1902_v46  ;;  %3966 = vmatpush.msra.mxu3 %v1646_v44  ;;  %v2278_v38 = vld [vmem:[%s10902_s9 + $0x19c0] sm:$0xff] }
 0x6e9   :  { %4064 = vmatpush.msra.mxu1 %v2302_v28  ;;  %v2374_v12 = vld [vmem:[%s10902_s9 + $0x1cc0] sm:$0xff] }
 0x6ea   :  { %4007 = vmatpush.msrb.mxu2 %v1894_v47  ;;  %3967 = vmatpush.msra.mxu3 %v1638_v48  ;;  %v7265_v40 = vld [vmem:[%s10907_s3] ss:$0 sm:$0xff] }
 0x6eb   :  { %4065 = vmatpush.msra.mxu1 %v2294_v32  ;;  %v2086_v15 = vld [vmem:[%s10902_s9 + $0x13c0] sm:$0xff] }
 0x6ec   :  { %4008 = vmatpush.msrb.mxu2 %v1886_v49  ;;  %3968 = vmatpush.msra.mxu3 %v1630_v50  ;;  %v2270_v45 = vld [vmem:[%s10902_s9 + $0x1980] sm:$0xff] }
 0x6ed   :  { %4066 = vmatpush.msra.mxu1 %v2286_v36  ;;  %v2366_v46 = vld [vmem:[%s10902_s9 + $0x1c80] sm:$0xff]  ;;  %v8162_v62 = vld.sshfl [vmem:[#allocation1 + $0x8] sm:$0xff pattern:$0x73625140] }
 0x6ee   :  { %4009 = vmatpush.msrb.mxu2 %v1878_v52  ;;  %3969 = vmatpush.msra.mxu3 %v1622_v42  ;;  %v2078_v48 = vld [vmem:[%s10902_s9 + $0x1380] sm:$0xff]  ;;  %10910 = vst [vmem:[#allocation40_spill] sm:$0xff] %v8162_v62 }
 0x6ef   :  { %4067 = vmatpush.msra.mxu1 %v2278_v38  ;;  %v2262_v49 = vld [vmem:[%s10902_s9 + $0x1940] sm:$0xff] }
 0x6f0   :  { %4010 = vmatpush.msrb.mxu2 %v1870_v54  ;;  %3970 = vmatpush.msra.mxu3 %v1614_v1  ;;  %v2070_v52 = vld [vmem:[%s10902_s9 + $0x1340] sm:$0xff]  ;;  %v8149_v54 = vld.sshfl [vmem:[#allocation1 + $0x18] sm:$0xff pattern:$0x73625140] }
 0x6f1   :  { %4068 = vmatpush.msra.mxu1 %v2270_v45  ;;  %v2350_v42 = vld [vmem:[%s10902_s9 + $0x1c00] sm:$0xff]  ;;  %10908 = vst [vmem:[#allocation38_spill] sm:$0xff] %v8149_v54 }
 0x6f2   :  { %4011 = vmatpush.msrb.mxu2 %v1862_v57  ;;  %3971 = vmatpush.msra.mxu3 %v1606_v2  ;;  %v2214_v1 = vld [vmem:[%s10902_s9 + $0x17c0] sm:$0xff] }
 0x6f3   :  { %4069 = vmatpush.msra.mxu1 %v2262_v49  ;;  %v8155_v58 = vld.sshfl [vmem:[#allocation1] sm:$0xff pattern:$0x73625140] }
 0x6f4   :  { %4012 = vmatpush.msrb.mxu2 %v1854_v60  ;;  %3972 = vmatpush.msra.mxu3 %v1598_v61  ;;  %10909 = vst [vmem:[#allocation39_spill] sm:$0xff] %v8155_v58  ;;  %v2246_v2 = vld [vmem:[%s10902_s9 + $0x18c0] sm:$0xff] }
 0x6f5   :  { %4070 = vmatpush.msra.mxu1 %v2254_v53  ;;  %v2206_v60 = vld [vmem:[%s10902_s9 + $0x1780] sm:$0xff] }
 0x6f6   :  { %4013 = vmatpush.msrb.mxu2 %v1846_v63  ;;  %3973 = vmatpush.msra.mxu3 %v1590_v0  ;;  %v2046_v61 = vld [vmem:[%s10902_s9 + $0x1280] sm:$0xff] }
 0x6f7   :  { %v2974_v63 = vld [vmem:[%s10902_s9 + $0x2f80] sm:$0xff]  ;;  %4071 = vmatpush.msra.mxu1 %v2246_v2 }
 0x6f8   :  { %4014 = vmatpush.msrb.mxu2 %v1838_v5  ;;  %3974 = vmatpush.msra.mxu3 %v1582_v8  ;;  %v2238_v0 = vld [vmem:[%s10902_s9 + $0x1880] sm:$0xff]  ;;  %v1451_v5 = vld [vmem:[%s10906_s29 + $0x10] sm:$0xff] }
 0x6f9   :  { %4015 = vmatmul.f32.vlgmr.msrb.gmra.mxu2 %v8149_v54  ;;  %v2966_v8 = vld [vmem:[%s10902_s9 + $0x2f40] sm:$0xff]  ;;  %4072 = vmatpush.msra.mxu1 %v2238_v0 }
 0x6fa   :  { %4079 = vmatpush.msra.mxu2 %v2470_v7  ;;  %v8169_v7 = vld.sshfl [vmem:[#allocation1 + $0x10] sm:$0xff pattern:$0x73625140]  ;;  %v2182_v6 = vld [vmem:[%s10902_s9 + $0x16c0] sm:$0xff] }
 0x6fb   :  { %10911 = vst [vmem:[#allocation41_spill] sm:$0xff] %v8169_v7  ;;  %4073 = vmatpush.msra.mxu1 %v2230_v9  ;;  %v2174_v14 = vld [vmem:[%s10902_s9 + $0x1680] sm:$0xff] }
 0x6fc   :  { %4080 = vmatpush.msra.mxu2 %v2462_v3  ;;  %3904 = vst [vmem:[#allocation1] ss:$4 sm:$0xff] %v1451_v5  ;;  %v2038_v3 = vld [vmem:[%s10902_s9 + $0x1240] sm:$0xff]  ;;  %3995 = vmatmul.f32.vlgmr.msrb.gmra.mxu1 %v8169_v7 }
 0x6fd   :  { %v2958_v16 = vld [vmem:[%s10902_s9 + $0x2f00] sm:$0xff] }
 0x6fe   :  { %4081 = vmatpush.msra.mxu2 %v2454_v11  ;;  %v2030_v11 = vld [vmem:[%s10902_s9 + $0x1200] sm:$0xff] }
 0x6ff   :  { %v2014_v43 = vld [vmem:[%s10902_s9 + $0x1180] sm:$0xff] }
 0x700   :  { %4082 = vmatpush.msra.mxu2 %v2446_v13  ;;  %v2022_v13 = vld [vmem:[%s10902_s9 + $0x11c0] sm:$0xff] }
 0x701   :  { %v2854_v20 = vld [vmem:[%s10902_s9 + $0x2bc0] sm:$0xff] }
 0x702   :  { %4083 = vmatpush.msra.mxu2 %v2438_v18  ;;  %v2222_v18 = vld [vmem:[%s10902_s9 + $0x1800] sm:$0xff] }
 0x703   :  { %v8188_v23 = vld.sshfl [vmem:[#allocation1 + $0x20] sm:$0xff pattern:$0x73625140]  ;;  %4074 = vmatpush.msra.mxu1 %v2222_v18 }
 0x704   :  { %4084 = vmatpush.msra.mxu2 %v2430_v19  ;;  %v8184_v19 = vld.sshfl [vmem:[#allocation1 + $0x28] sm:$0xff pattern:$0x73625140]  ;;  %10913 = vst [vmem:[#allocation43_spill] sm:$0xff] %v8188_v23  ;;  %v2166_v25 = vld [vmem:[%s10902_s9 + $0x1640] sm:$0xff] }
 0x705   :  { %10912 = vst [vmem:[#allocation42_spill] sm:$0xff] %v8184_v19  ;;  %v2846_v28 = vld [vmem:[%s10902_s9 + $0x2b80] sm:$0xff]  ;;  %4139 = vmatpush.msrb.mxu1 %v2854_v20  ;;  %v8253_v20 = vld.sshfl [vmem:[#allocation1 + $0x8] sm:$0xff pattern:$0x73625140] }
 0x706   :  { %4085 = vmatpush.msra.mxu2 %v2422_v22  ;;  %v2950_v22 = vld [vmem:[%s10902_s9 + $0x2ec0] sm:$0xff] }
 0x707   :  { %v2158_v30 = vld [vmem:[%s10902_s9 + $0x1600] sm:$0xff]  ;;  %4140 = vmatpush.msrb.mxu1 %v2846_v28  ;;  %v8259_v28 = vld.sshfl [vmem:[#allocation1 + $0x10] sm:$0xff pattern:$0x73625140] }
 0x708   :  { %4086 = vmatpush.msra.mxu2 %v2414_v24  ;;  %v8190_v24 = vld.sshfl [vmem:[#allocation1 + $0x38] sm:$0xff pattern:$0x73625140]  ;;  %v2838_v32 = vld [vmem:[%s10902_s9 + $0x2b40] sm:$0xff] }
 0x709   :  { %10914 = vst [vmem:[#allocation44_spill] sm:$0xff] %v8190_v24  ;;  %v1990_v36 = vld [vmem:[%s10902_s9 + $0x10c0] sm:$0xff]  ;;  %4141 = vmatpush.msrb.mxu1 %v2838_v32 }
 0x70a   :  { %4087 = vmatpush.msra.mxu2 %v2406_v26  ;;  %v1452_v26 = vld [vmem:[%s10906_s29 + $0x18] sm:$0xff]  ;;  %v2926_v38 = vld [vmem:[%s10902_s9 + $0x2e00] sm:$0xff] }
 0x70b   :  { %v1974_v45 = vld [vmem:[%s10902_s9 + $0x1040] sm:$0xff] }
 0x70c   :  { %4088 = vmatpush.msra.mxu2 %v2398_v29  ;;  %v2006_v29 = vld [vmem:[%s10902_s9 + $0x1140] sm:$0xff] }
 0x70d   :  { %v2118_v49 = vld [vmem:[%s10902_s9 + $0x14c0] sm:$0xff] }
 0x70e   :  { %4089 = vmatpush.msra.mxu2 %v2390_v33  ;;  %v1998_v33 = vld [vmem:[%s10902_s9 + $0x1100] sm:$0xff] }
 0x70f   :  { %v2902_v53 = vld [vmem:[%s10902_s9 + $0x2d40] sm:$0xff] }
 0x710   :  { %4090 = vmatpush.msra.mxu2 %v2382_v37  ;;  %v2142_v37 = vld [vmem:[%s10902_s9 + $0x1580] sm:$0xff] }
 0x711   :  { %v2574_v2 = vld [vmem:[%s10902_s9 + $0x2300] sm:$0xff] }
 0x712   :  { %4091 = vmatpush.msra.mxu2 %v2374_v12  ;;  %v1982_v12 = vld [vmem:[%s10902_s9 + $0x1080] sm:$0xff] }
 0x713   :  { %v2782_v0 = vld [vmem:[%s10902_s9 + $0x2980] sm:$0xff] }
 0x714   :  { %4092 = vmatpush.msra.mxu2 %v2366_v46  ;;  %v2126_v46 = vld [vmem:[%s10902_s9 + $0x1500] sm:$0xff] }
 0x715   :  { %v2558_v5 = vld [vmem:[%s10902_s9 + $0x2280] sm:$0xff] }
 0x716   :  { %4093 = vmatpush.msra.mxu2 %v2358_v17  ;;  %v2598_v17 = vld [vmem:[%s10902_s9 + $0x23c0] sm:$0xff] }
 0x717   :  { %v2550_v9 = vld [vmem:[%s10902_s9 + $0x2240] sm:$0xff] }
 0x718   :  { %4094 = vmatpush.msra.mxu2 %v2350_v42  ;;  %v2102_v42 = vld [vmem:[%s10902_s9 + $0x1440] sm:$0xff] }
 0x719   :  { %4095 = vmatmul.f32.vlgmr.msra.gmra.mxu2 %v8190_v24  ;;  %v2862_v18 = vld [vmem:[%s10902_s9 + $0x2c00] sm:$0xff] }
 0x71a   :  { %4159 = vmatpush.msrb.mxu2 %v2982_v56  ;;  %v2094_v56 = vld [vmem:[%s10902_s9 + $0x1400] sm:$0xff] }
 0x71b   :  { %v2750_v32 = vld [vmem:[%s10902_s9 + $0x2880] sm:$0xff] }
 0x71c   :  { %4160 = vmatpush.msrb.mxu2 %v2974_v63  ;;  %v2718_v63 = vld [vmem:[%s10902_s9 + $0x2780] sm:$0xff] }
 0x71e   :  { %4161 = vmatpush.msrb.mxu2 %v2966_v8  ;;  %v2710_v8 = vld [vmem:[%s10902_s9 + $0x2740] sm:$0xff] }
 0x720   :  { %4162 = vmatpush.msrb.mxu2 %v2958_v16  ;;  %v2766_v16 = vld [vmem:[%s10902_s9 + $0x2900] sm:$0xff] }
 0x722   :  { %4163 = vmatpush.msrb.mxu2 %v2950_v22  ;;  %v8255_v22 = vld.sshfl [vmem:[#allocation1 + $0x18] sm:$0xff pattern:$0x73625140] }
 0x75c   :  { %v1271_v31 = vpop.f32.mrf.mxu2  ;;  %v1291_v35 = vpop.f32.mrf.mxu3 }
 0x75d   :  { %v1272_v34 = vadd.f32 %v7264_v27, %v1271_v31  ;;  %v8194_v27 = vld.sshfl [vmem:[#allocation1 + $0x30] sm:$0xff pattern:$0x73625140]  ;;  %v2942_v31 = vld [vmem:[%s10902_s9 + $0x2e80] sm:$0xff] }
 0x75e   :  { %10915 = vst [vmem:[#allocation45_spill] sm:$0xff] %v8194_v27  ;;  %4164 = vmatpush.msrb.mxu2 %v2942_v31  ;;  %4075 = vmatmul.f32.vlgmr.msra.gmra.mxu1 %v8194_v27  ;;  %v3486_v31 = vld [vmem:[%s10902_s9 + $0x3f80] sm:$0xff] }
 0x75f   :  { %v1292_v41 = vadd.f32 %v1291_v35, %v1272_v34  ;;  %3905 = vst [vmem:[#allocation1 + $0x20] ss:$4 sm:$0xff] %v1452_v26  ;;  %v2150_v34 = vld [vmem:[%s10902_s9 + $0x15c0] sm:$0xff] }
 0x760   :  { %v2934_v35 = vld [vmem:[%s10902_s9 + $0x2e40] sm:$0xff] }
 0x761   :  { %vm1294_vm13 = vcmp.ge.f32.partialorder %v1292_v41, 0.0  ;;  %v1295_v39 = vmul.f32 0.2, %v1292_v41  ;;  %4165 = vmatpush.msrb.mxu2 %v2934_v35  ;;  %v1453_v26 = vld [vmem:[%s10906_s29 + $0x20] sm:$0x3f] }
 0x762   :  { %v3478_v35 = vld [vmem:[%s10902_s9 + $0x3f40] sm:$0xff] }
 0x763   :  { %v1296_v44 = vsel %vm1294_vm13, %v1292_v41, %v1295_v39  ;;  %v2830_v41 = vld [vmem:[%s10902_s9 + $0x2b00] sm:$0xff]  ;;  %4166 = vmatpush.msrb.mxu2 %v2926_v38 }
 0x764   :  { %7173 = vmatmul.msk.f32.vlgmr.msra.gmra.mxu0 %vm680_vm9, %v1296_v44  ;;  %v1410_v47 = vpop.f32.mrf.mxu2  ;;  %v2134_v39 = vld [vmem:[%s10902_s9 + $0x1540] sm:$0xff]  ;;  %4142 = vmatpush.msrb.mxu1 %v2830_v41 }
 0x765   :  { %v1411_v50 = vadd.f32 %v7265_v40, %v1410_v47  ;;  %4019 = vmatpush.msra.mxu0 %v2086_v15  ;;  %v2822_v40 = vld [vmem:[%s10902_s9 + $0x2ac0] sm:$0xff] }
 0x766   :  { %v2918_v15 = vld [vmem:[%s10902_s9 + $0x2dc0] sm:$0xff]  ;;  %4143 = vmatpush.msrb.mxu1 %v2822_v40 }
 0x767   :  { %vm1413_vm14 = vcmp.ge.f32.partialorder %v1411_v50, 0.0  ;;  %v1414_v21 = vmul.f32 0.2, %v1411_v50  ;;  %4020 = vmatpush.msra.mxu0 %v2078_v48  ;;  %v2814_v44 = vld [vmem:[%s10902_s9 + $0x2a80] sm:$0xff]  ;;  %4167 = vmatpush.msrb.mxu2 %v2918_v15 }
 0x768   :  { %v2910_v47 = vld [vmem:[%s10902_s9 + $0x2d80] sm:$0xff]  ;;  %4144 = vmatpush.msrb.mxu1 %v2814_v44 }
 0x769   :  { %4021 = vmatpush.msra.mxu0 %v2070_v52  ;;  %v1415_v57 = vsel %vm1413_vm14, %v1411_v50, %v1414_v21  ;;  %v1966_v48 = vld [vmem:[%s10902_s9 + $0x1000] sm:$0xff]  ;;  %4168 = vmatpush.msrb.mxu2 %v2910_v47 }
 0x76a   :  { %7174 = vmatmul.msk.f32.vlgmr.msrb.gmra.mxu3 %vm680_vm9, %v1415_v57  ;;  %v2806_v50 = vld [vmem:[%s10902_s9 + $0x2a40] sm:$0xff]  ;;  %vm3936_vm9 = vcmask 916480  }
 0x76b   :  { %4022 = vmatpush.msra.mxu0 %v2062_v55  ;;  %4039 = vmatpush.msrb.mxu3 %v2214_v1  ;;  %v2590_v52 = vld [vmem:[%s10902_s9 + $0x2380] sm:$0xff] }
 0x76c   :  { %3955 = vmatmul.f32.vlgmr.msrb.gmra.mxu0 %v8155_v58  ;;  %4145 = vmatpush.msrb.mxu1 %v2806_v50  ;;  %v2798_v21 = vld [vmem:[%s10902_s9 + $0x2a00] sm:$0xff] }
 0x76d   :  { %4023 = vmatpush.msra.mxu0 %v2054_v59  ;;  %4040 = vmatpush.msrb.mxu3 %v2206_v60  ;;  %v2582_v55 = vld [vmem:[%s10902_s9 + $0x2340] sm:$0xff] }
 0x76e   :  { %v2894_v1 = vld [vmem:[%s10902_s9 + $0x2d00] sm:$0xff]  ;;  %4169 = vmatpush.msrb.mxu2 %v2902_v53  ;;  %4146 = vmatpush.msrb.mxu1 %v2798_v21 }
 0x76f   :  { %4024 = vmatpush.msra.mxu0 %v2046_v61  ;;  %4041 = vmatpush.msrb.mxu3 %v2198_v4  ;;  %v2790_v57 = vld [vmem:[%s10902_s9 + $0x29c0] sm:$0xff] }
 0x770   :  { %v2726_v59 = vld [vmem:[%s10902_s9 + $0x27c0] sm:$0xff]  ;;  %4170 = vmatpush.msrb.mxu2 %v2894_v1  ;;  %4147 = vmatpush.msrb.mxu1 %v2790_v57 }
 0x771   :  { %4025 = vmatpush.msra.mxu0 %v2038_v3  ;;  %4042 = vmatpush.msrb.mxu3 %v2190_v10  ;;  %v2886_v60 = vld [vmem:[%s10902_s9 + $0x2cc0] sm:$0xff] }
 0x772   :  { %3975 = vmatmul.f32.vlgmr.msra.gmra.mxu3 %v8162_v62  ;;  %v2566_v61 = vld [vmem:[%s10902_s9 + $0x22c0] sm:$0xff]  ;;  %4171 = vmatpush.msrb.mxu2 %v2886_v60 }
 0x773   :  { %4026 = vmatpush.msra.mxu0 %v2030_v11  ;;  %4043 = vmatpush.msrb.mxu3 %v2182_v6  ;;  %v2878_v4 = vld [vmem:[%s10902_s9 + $0x2c80] sm:$0xff] }
 0x774   :  { %v2774_v3 = vld [vmem:[%s10902_s9 + $0x2940] sm:$0xff]  ;;  %4148 = vmatpush.msrb.mxu1 %v2782_v0  ;;  %4172 = vmatpush.msrb.mxu2 %v2878_v4 }
 0x775   :  { %4027 = vmatpush.msra.mxu0 %v2022_v13  ;;  %4044 = vmatpush.msrb.mxu3 %v2174_v14  ;;  %v2870_v10 = vld [vmem:[%s10902_s9 + $0x2c40] sm:$0xff] }
 0x776   :  { %v2702_v11 = vld [vmem:[%s10902_s9 + $0x2700] sm:$0xff]  ;;  %4149 = vmatpush.msrb.mxu1 %v2774_v3  ;;  %4173 = vmatpush.msrb.mxu2 %v2870_v10 }
 0x777   :  { %4028 = vmatpush.msra.mxu0 %v2014_v43  ;;  %4045 = vmatpush.msrb.mxu3 %v2166_v25  ;;  %v2542_v6 = vld [vmem:[%s10902_s9 + $0x2200] sm:$0xff] }
 0x778   :  { %v2694_v13 = vld [vmem:[%s10902_s9 + $0x26c0] sm:$0xff]  ;;  %4150 = vmatpush.msrb.mxu1 %v2766_v16  ;;  %4174 = vmatpush.msrb.mxu2 %v2862_v18 }
 0x779   :  { %4029 = vmatpush.msra.mxu0 %v2006_v29  ;;  %4046 = vmatpush.msrb.mxu3 %v2158_v30  ;;  %v8248_v14 = vld.sshfl [vmem:[#allocation1] sm:$0xff pattern:$0x73625140] }
 0x77a   :  { %v3494_v43 = vld [vmem:[%s10902_s9 + $0x3fc0] sm:$0xff]  ;;  %3914 = vst [vmem:[#allocation1] ss:$4 sm:$0xff] %v1453_v26  ;;  %4175 = vmatmul.f32.vlgmr.msrb.gmra.mxu2 %v8255_v22 }
 0x77b   :  { %4030 = vmatpush.msra.mxu0 %v1998_v33  ;;  %4047 = vmatpush.msrb.mxu3 %v2150_v34  ;;  %v2758_v25 = vld [vmem:[%s10902_s9 + $0x28c0] sm:$0xff] }
 0x77c   :  { %v2534_v29 = vld [vmem:[%s10902_s9 + $0x21c0] sm:$0xff]  ;;  %4239 = vmatpush.msra.mxu2 %v3494_v43  ;;  %4151 = vmatpush.msrb.mxu1 %v2758_v25 }
 0x77d   :  { %4031 = vmatpush.msra.mxu0 %v1990_v36  ;;  %4048 = vmatpush.msrb.mxu3 %v2142_v37  ;;  %v2686_v30 = vld [vmem:[%s10902_s9 + $0x2680] sm:$0xff] }
 0x77e   :  { %v2526_v33 = vld [vmem:[%s10902_s9 + $0x2180] sm:$0xff]  ;;  %4240 = vmatpush.msra.mxu2 %v3486_v31  ;;  %4152 = vmatpush.msrb.mxu1 %v2750_v32 }
 0x77f   :  { %4032 = vmatpush.msra.mxu0 %v1982_v12  ;;  %4049 = vmatpush.msrb.mxu3 %v2134_v39  ;;  %v2678_v34 = vld [vmem:[%s10902_s9 + $0x2640] sm:$0xff] }
 0x780   :  { %v2742_v36 = vld [vmem:[%s10902_s9 + $0x2840] sm:$0xff]  ;;  %4241 = vmatpush.msra.mxu2 %v3478_v35 }
 0x781   :  { %4033 = vmatpush.msra.mxu0 %v1974_v45  ;;  %4050 = vmatpush.msrb.mxu3 %v2126_v46  ;;  %v2518_v37 = vld [vmem:[%s10902_s9 + $0x2140] sm:$0xff] }
 0x782   :  { %v2670_v41 = vld [vmem:[%s10902_s9 + $0x2600] sm:$0xff]  ;;  %4153 = vmatpush.msrb.mxu1 %v2742_v36 }
 0x783   :  { %4034 = vmatpush.msra.mxu0 %v1966_v48  ;;  %4051 = vmatpush.msrb.mxu3 %v2118_v49  ;;  %v2734_v38 = vld [vmem:[%s10902_s9 + $0x2800] sm:$0xff] }
 0x784   :  { %4035 = vmatmul.f32.vlgmr.msra.gmra.mxu0 %v8188_v23  ;;  %v2510_v12 = vld [vmem:[%s10902_s9 + $0x2100] sm:$0xff]  ;;  %4154 = vmatpush.msrb.mxu1 %v2734_v38 }
 0x785   :  { %4099 = vmatpush.msrb.mxu0 %v2598_v17  ;;  %4052 = vmatpush.msrb.mxu3 %v2110_v51  ;;  %v2662_v39 = vld [vmem:[%s10902_s9 + $0x25c0] sm:$0xff] }
 0x786   :  { %v3470_v40 = vld [vmem:[%s10902_s9 + $0x3f00] sm:$0xff]  ;;  %4155 = vmatmul.f32.vlgmr.msrb.gmra.mxu1 %v8259_v28 }
 0x787   :  { %4100 = vmatpush.msrb.mxu0 %v2590_v52  ;;  %4053 = vmatpush.msrb.mxu3 %v2102_v42  ;;  %v3366_v15 = vld [vmem:[%s10902_s9 + $0x3bc0] sm:$0xff] }
 0x788   :  { %v2502_v45 = vld [vmem:[%s10902_s9 + $0x20c0] sm:$0xff]  ;;  %4242 = vmatpush.msra.mxu2 %v3470_v40  ;;  %4219 = vmatpush.msra.mxu1 %v3366_v15  ;;  %v1575_v15 = vld [vmem:[%s10902_s9 + $0x3c8] sm:$0xff] }
 0x789   :  { %4101 = vmatpush.msrb.mxu0 %v2582_v55  ;;  %4054 = vmatpush.msrb.mxu3 %v2094_v56  ;;  %v2654_v46 = vld [vmem:[%s10902_s9 + $0x2580] sm:$0xff] }
 0x78a   :  { %4055 = vmatmul.f32.vlgmr.msrb.gmra.mxu3 %v8184_v19  ;;  %v3462_v44 = vld [vmem:[%s10902_s9 + $0x3ec0] sm:$0xff] }
 0x78b   :  { %4102 = vmatpush.msrb.mxu0 %v2574_v2  ;;  %4119 = vmatpush.msra.mxu3 %v2726_v59  ;;  %v2494_v47 = vld [vmem:[%s10902_s9 + $0x2080] sm:$0xff] }
 0x78c   :  { %v2646_v48 = vld [vmem:[%s10902_s9 + $0x2540] sm:$0xff]  ;;  %4243 = vmatpush.msra.mxu2 %v3462_v44 }
 0x78d   :  { %4103 = vmatpush.msrb.mxu0 %v2566_v61  ;;  %4120 = vmatpush.msra.mxu3 %v2718_v63  ;;  %v3358_v49 = vld [vmem:[%s10902_s9 + $0x3b80] sm:$0xff] }
 0x78e   :  { %v3454_v17 = vld [vmem:[%s10902_s9 + $0x3e80] sm:$0xff]  ;;  %4220 = vmatpush.msra.mxu1 %v3358_v49 }
 0x78f   :  { %4104 = vmatpush.msrb.mxu0 %v2558_v5  ;;  %4121 = vmatpush.msra.mxu3 %v2710_v8  ;;  %v2486_v50 = vld [vmem:[%s10902_s9 + $0x2040] sm:$0xff] }
 0x790   :  { %v2638_v51 = vld [vmem:[%s10902_s9 + $0x2500] sm:$0xff]  ;;  %4244 = vmatpush.msra.mxu2 %v3454_v17 }
 0x791   :  { %4105 = vmatpush.msrb.mxu0 %v2550_v9  ;;  %4122 = vmatpush.msra.mxu3 %v2702_v11  ;;  %v3350_v52 = vld [vmem:[%s10902_s9 + $0x3b40] sm:$0xff] }
 0x792   :  { %v3446_v53 = vld [vmem:[%s10902_s9 + $0x3e40] sm:$0xff]  ;;  %4221 = vmatpush.msra.mxu1 %v3350_v52 }
 0x793   :  { %4106 = vmatpush.msrb.mxu0 %v2542_v6  ;;  %4123 = vmatpush.msra.mxu3 %v2694_v13  ;;  %v2478_v42 = vld [vmem:[%s10902_s9 + $0x2000] sm:$0xff] }
 0x794   :  { %v2630_v21 = vld [vmem:[%s10902_s9 + $0x24c0] sm:$0xff]  ;;  %4245 = vmatpush.msra.mxu2 %v3446_v53 }
 0x795   :  { %4107 = vmatpush.msrb.mxu0 %v2534_v29  ;;  %4124 = vmatpush.msra.mxu3 %v2686_v30  ;;  %v3342_v55 = vld [vmem:[%s10902_s9 + $0x3b00] sm:$0xff] }
 0x796   :  { %v3110_v1 = vld [vmem:[%s10902_s9 + $0x33c0] sm:$0xff]  ;;  %4222 = vmatpush.msra.mxu1 %v3342_v55 }
 0x797   :  { %4108 = vmatpush.msrb.mxu0 %v2526_v33  ;;  %4125 = vmatpush.msra.mxu3 %v2678_v34  ;;  %v2622_v56 = vld [vmem:[%s10902_s9 + $0x2480] sm:$0xff] }
 0x798   :  { %v3438_v57 = vld [vmem:[%s10902_s9 + $0x3e00] sm:$0xff] }
 0x799   :  { %4109 = vmatpush.msrb.mxu0 %v2518_v37  ;;  %4126 = vmatpush.msra.mxu3 %v2670_v41  ;;  %v3334_v2 = vld [vmem:[%s10902_s9 + $0x3ac0] sm:$0xff] }
 0x79a   :  { %v3102_v59 = vld [vmem:[%s10902_s9 + $0x3380] sm:$0xff]  ;;  %4246 = vmatpush.msra.mxu2 %v3438_v57  ;;  %4223 = vmatpush.msra.mxu1 %v3334_v2 }
 0x79b   :  { %4110 = vmatpush.msrb.mxu0 %v2510_v12  ;;  %4127 = vmatpush.msra.mxu3 %v2662_v39  ;;  %v2614_v60 = vld [vmem:[%s10902_s9 + $0x2440] sm:$0xff] }
 0x79c   :  { %v3430_v61 = vld [vmem:[%s10902_s9 + $0x3dc0] sm:$0xff] }
 0x79d   :  { %4111 = vmatpush.msrb.mxu0 %v2502_v45  ;;  %4128 = vmatpush.msra.mxu3 %v2654_v46  ;;  %v3326_v63 = vld [vmem:[%s10902_s9 + $0x3a80] sm:$0xff] }
 0x79e   :  { %v3094_v0 = vld [vmem:[%s10902_s9 + $0x3340] sm:$0xff]  ;;  %4247 = vmatpush.msra.mxu2 %v3430_v61  ;;  %4224 = vmatpush.msra.mxu1 %v3326_v63  ;;  %v3912_v61 = vld.sshfl [vmem:[#allocation1 + $0x30] sm:$0xff pattern:$0x73625140] }
 0x79f   :  { %4112 = vmatpush.msrb.mxu0 %v2494_v47  ;;  %4129 = vmatpush.msra.mxu3 %v2646_v48  ;;  %v2606_v4 = vld [vmem:[%s10902_s9 + $0x2400] sm:$0xff]  ;;  %v1567_v47 = vld [vmem:[%s10902_s9 + $0x388] sm:$0xff] }
 0x7a0   :  { %v3422_v5 = vld [vmem:[%s10902_s9 + $0x3d80] sm:$0xff] }
 0x7a1   :  { %4113 = vmatpush.msrb.mxu0 %v2486_v50  ;;  %4130 = vmatpush.msra.mxu3 %v2638_v51  ;;  %v3086_v8 = vld [vmem:[%s10902_s9 + $0x3300] sm:$0xff]  ;;  %v1559_v50 = vld [vmem:[%s10902_s9 + $0x348] sm:$0xff] }
 0x7a2   :  { %v3238_v9 = vld [vmem:[%s10902_s9 + $0x37c0] sm:$0xff]  ;;  %4248 = vmatpush.msra.mxu2 %v3422_v5 }
 0x7a3   :  { %4114 = vmatpush.msrb.mxu0 %v2478_v42  ;;  %4131 = vmatpush.msra.mxu3 %v2630_v21  ;;  %v3318_v3 = vld [vmem:[%s10902_s9 + $0x3a40] sm:$0xff]  ;;  %v3913_v42 = vld.sshfl [vmem:[#allocation1 + $0x38] sm:$0xff pattern:$0x73625140] }
 0x7a4   :  { %4115 = vmatmul.f32.vlgmr.msrb.gmra.mxu0 %v8248_v14  ;;  %v3414_v10 = vld [vmem:[%s10902_s9 + $0x3d40] sm:$0xff]  ;;  %4225 = vmatpush.msra.mxu1 %v3318_v3  ;;  %v1535_v3 = vld [vmem:[%s10902_s9 + $0x288] sm:$0xff] }
 0x7a5   :  { %4179 = vmatpush.msra.mxu0 %v3110_v1  ;;  %4132 = vmatpush.msra.mxu3 %v2622_v56  ;;  %v3078_v11 = vld [vmem:[%s10902_s9 + $0x32c0] sm:$0xff]  ;;  %v1551_v56 = vld [vmem:[%s10902_s9 + $0x308] sm:$0xff] }
 0x7a6   :  { %v3230_v6 = vld [vmem:[%s10902_s9 + $0x3780] sm:$0xff]  ;;  %4249 = vmatpush.msra.mxu2 %v3414_v10 }
 0x7a7   :  { %4180 = vmatpush.msra.mxu0 %v3102_v59  ;;  %4133 = vmatpush.msra.mxu3 %v2614_v60  ;;  %v3310_v13 = vld [vmem:[%s10902_s9 + $0x3a00] sm:$0xff]  ;;  %v1543_v60 = vld [vmem:[%s10902_s9 + $0x2c8] sm:$0xff] }
 0x7a8   :  { %v3406_v16 = vld [vmem:[%s10902_s9 + $0x3d00] sm:$0xff]  ;;  %4226 = vmatpush.msra.mxu1 %v3310_v13  ;;  %v1527_v13 = vld [vmem:[%s10902_s9 + $0x248] sm:$0xff] }
 0x7a9   :  { %4181 = vmatpush.msra.mxu0 %v3094_v0  ;;  %4134 = vmatpush.msra.mxu3 %v2606_v4  ;;  %v3070_v18 = vld [vmem:[%s10902_s9 + $0x3280] sm:$0xff] }
 0x7aa   :  { %4135 = vmatmul.f32.vlgmr.msra.gmra.mxu3 %v8253_v20  ;;  %v3222_v43 = vld [vmem:[%s10902_s9 + $0x3740] sm:$0xff]  ;;  %4250 = vmatpush.msra.mxu2 %v3406_v16 }
 0x7ab   :  { %4182 = vmatpush.msra.mxu0 %v3086_v8  ;;  %4199 = vmatpush.msrb.mxu3 %v3238_v9  ;;  %v3302_v25 = vld [vmem:[%s10902_s9 + $0x39c0] sm:$0xff] }
 0x7ac   :  { %v3398_v26 = vld [vmem:[%s10902_s9 + $0x3cc0] sm:$0xff]  ;;  %4227 = vmatpush.msra.mxu1 %v3302_v25  ;;  %v3911_v25 = vld.sshfl [vmem:[#allocation1 + $0x28] sm:$0xff pattern:$0x73625140] }
 0x7ad   :  { %4183 = vmatpush.msra.mxu0 %v3078_v11  ;;  %4200 = vmatpush.msrb.mxu3 %v3230_v6  ;;  %v3062_v29 = vld [vmem:[%s10902_s9 + $0x3240] sm:$0xff] }
 0x7ae   :  { %v3214_v30 = vld [vmem:[%s10902_s9 + $0x3700] sm:$0xff]  ;;  %4251 = vmatpush.msra.mxu2 %v3398_v26  ;;  %v1519_v26 = vld [vmem:[%s10902_s9 + $0x208] sm:$0xff] }
 0x7af   :  { %4184 = vmatpush.msra.mxu0 %v3070_v18  ;;  %4201 = vmatpush.msrb.mxu3 %v3222_v43  ;;  %v3294_v31 = vld [vmem:[%s10902_s9 + $0x3980] sm:$0xff] }
 0x7b0   :  { %v3390_v32 = vld [vmem:[%s10902_s9 + $0x3c80] sm:$0xff]  ;;  %4228 = vmatpush.msra.mxu1 %v3294_v31 }
 0x7b1   :  { %v3054_v33 = vld [vmem:[%s10902_s9 + $0x3200] sm:$0xff]  ;;  %4185 = vmatpush.msra.mxu0 %v3062_v29  ;;  %4202 = vmatpush.msrb.mxu3 %v3214_v30 }
 0x7b2   :  { %v3206_v34 = vld [vmem:[%s10902_s9 + $0x36c0] sm:$0xff]  ;;  %4252 = vmatpush.msra.mxu2 %v3390_v32  ;;  %v1511_v32 = vld [vmem:[%s10902_s9 + $0x1c8] sm:$0xff] }
 0x7b3   :  { %v3286_v35 = vld [vmem:[%s10902_s9 + $0x3940] sm:$0xff]  ;;  %4186 = vmatpush.msra.mxu0 %v3054_v33  ;;  %4203 = vmatpush.msrb.mxu3 %v3206_v34 }
 0x7b4   :  { %v3382_v36 = vld [vmem:[%s10902_s9 + $0x3c40] sm:$0xff]  ;;  %4229 = vmatpush.msra.mxu1 %v3286_v35 }
 0x7b5   :  { %v3046_v37 = vld [vmem:[%s10902_s9 + $0x31c0] sm:$0xff]  ;;  %4253 = vmatpush.msra.mxu2 %v3382_v36  ;;  %v1503_v36 = vld [vmem:[%s10902_s9 + $0x188] sm:$0xff] }
 0x7b6   :  { %v3198_v41 = vld [vmem:[%s10902_s9 + $0x3680] sm:$0xff]  ;;  %4187 = vmatpush.msra.mxu0 %v3046_v37 }
 0x7b7   :  { %v3278_v38 = vld [vmem:[%s10902_s9 + $0x3900] sm:$0xff]  ;;  %4204 = vmatpush.msrb.mxu3 %v3198_v41 }
 0x7b8   :  { %v3374_v12 = vld [vmem:[%s10902_s9 + $0x3c00] sm:$0xff]  ;;  %4230 = vmatpush.msra.mxu1 %v3278_v38 }
 0x7b9   :  { %v3038_v39 = vld [vmem:[%s10902_s9 + $0x3180] sm:$0xff]  ;;  %4254 = vmatpush.msra.mxu2 %v3374_v12  ;;  %v1495_v12 = vld [vmem:[%s10902_s9 + $0x148] sm:$0xff] }
 0x7ba   :  { %v3190_v40 = vld [vmem:[%s10902_s9 + $0x3640] sm:$0xff]  ;;  %4188 = vmatpush.msra.mxu0 %v3038_v39  ;;  %4255 = vmatmul.f32.vlgmr.msra.gmra.mxu2 %v3913_v42 }
 0x7bb   :  { %v3270_v45 = vld [vmem:[%s10902_s9 + $0x38c0] sm:$0xff]  ;;  %4205 = vmatpush.msrb.mxu3 %v3190_v40  ;;  %4319 = vmatpush.msrb.mxu2 %v1575_v15 }
 0x7bc   :  { %v3030_v46 = vld [vmem:[%s10902_s9 + $0x3140] sm:$0xff]  ;;  %4231 = vmatpush.msra.mxu1 %v3270_v45  ;;  %v1487_v45 = vld [vmem:[%s10902_s9 + $0x108] sm:$0xff] }
 0x7bd   :  { %v3182_v44 = vld [vmem:[%s10902_s9 + $0x3600] sm:$0xff]  ;;  %4189 = vmatpush.msra.mxu0 %v3030_v46  ;;  %4320 = vmatpush.msrb.mxu2 %v1567_v47 }
 0x7be   :  { %v3262_v48 = vld [vmem:[%s10902_s9 + $0x3880] sm:$0xff]  ;;  %4206 = vmatpush.msrb.mxu3 %v3182_v44 }
 0x7bf   :  { %v3022_v49 = vld [vmem:[%s10902_s9 + $0x3100] sm:$0xff]  ;;  %4232 = vmatpush.msra.mxu1 %v3262_v48  ;;  %4321 = vmatpush.msrb.mxu2 %v1559_v50  ;;  %v1479_v48 = vld [vmem:[%s10902_s9 + $0xc8] sm:$0xff] }
 0x7c0   :  { %v3174_v17 = vld [vmem:[%s10902_s9 + $0x35c0] sm:$0xff]  ;;  %4190 = vmatpush.msra.mxu0 %v3022_v49 }
 0x7c1   :  { %v3254_v51 = vld [vmem:[%s10902_s9 + $0x3840] sm:$0xff]  ;;  %4207 = vmatpush.msrb.mxu3 %v3174_v17  ;;  %4322 = vmatpush.msrb.mxu2 %v1551_v56 }
 0x7c2   :  { %v3014_v52 = vld [vmem:[%s10902_s9 + $0x30c0] sm:$0xff]  ;;  %4233 = vmatpush.msra.mxu1 %v3254_v51  ;;  %v1471_v51 = vld [vmem:[%s10902_s9 + $0x88] sm:$0xff] }
 0x7c3   :  { %v3166_v53 = vld [vmem:[%s10902_s9 + $0x3580] sm:$0xff]  ;;  %4191 = vmatpush.msra.mxu0 %v3014_v52  ;;  %4323 = vmatpush.msrb.mxu2 %v1543_v60  ;;  %v2087_v60 = vld [vmem:[%s10902_s9 + $0x13c8] sm:$0xff] }
 0x7c4   :  { %v3246_v21 = vld [vmem:[%s10902_s9 + $0x3800] sm:$0xff]  ;;  %4208 = vmatpush.msrb.mxu3 %v3166_v53 }
 0x7c5   :  { %v3006_v55 = vld [vmem:[%s10902_s9 + $0x3080] sm:$0xff]  ;;  %4234 = vmatpush.msra.mxu1 %v3246_v21  ;;  %4324 = vmatpush.msrb.mxu2 %v1535_v3  ;;  %v1463_v21 = vld [vmem:[%s10902_s9 + $0x48] sm:$0xff] }
 0x7c6   :  { %v3158_v1 = vld [vmem:[%s10902_s9 + $0x3540] sm:$0xff]  ;;  %4192 = vmatpush.msra.mxu0 %v3006_v55  ;;  %4235 = vmatmul.f32.vlgmr.msra.gmra.mxu1 %v3912_v61  ;;  %v1959_v3 = vld [vmem:[%s10902_s9 + $0xfc8] sm:$0xff] }
 0x7c7   :  { %v3862_v57 = vld [vmem:[%s10902_s9 + $0x4b40] sm:$0xff]  ;;  %4209 = vmatpush.msrb.mxu3 %v3158_v1  ;;  %4325 = vmatpush.msrb.mxu2 %v1527_v13  ;;  %v1951_v13 = vld [vmem:[%s10902_s9 + $0xf88] sm:$0xff] }
 0x7c8   :  { %v2998_v2 = vld [vmem:[%s10902_s9 + $0x3040] sm:$0xff]  ;;  %4301 = vmatpush.msrb.mxu1 %v3862_v57  ;;  %v1455_v57 = vld [vmem:[%s10902_s9 + $0x8] sm:$0xff] }
 0x7c9   :  { %v3150_v59 = vld [vmem:[%s10902_s9 + $0x3500] sm:$0xff]  ;;  %4193 = vmatpush.msra.mxu0 %v2998_v2  ;;  %4326 = vmatpush.msrb.mxu2 %v1519_v26  ;;  %v1943_v26 = vld [vmem:[%s10902_s9 + $0xf48] sm:$0xff] }
 0x7ca   :  { %v2990_v63 = vld [vmem:[%s10902_s9 + $0x3000] sm:$0xff]  ;;  %4210 = vmatpush.msrb.mxu3 %v3150_v59 }
 0x7cb   :  { %v3142_v0 = vld [vmem:[%s10902_s9 + $0x34c0] sm:$0xff]  ;;  %4194 = vmatpush.msra.mxu0 %v2990_v63  ;;  %4327 = vmatpush.msrb.mxu2 %v1511_v32  ;;  %v3917_v32 = vld.sshfl [vmem:[#allocation1 + $0x10] sm:$0xff pattern:$0x73625140] }
 0x7cc   :  { %v3910_v4 = vld.sshfl [vmem:[#allocation1 + $0x20] sm:$0xff pattern:$0x73625140]  ;;  %4211 = vmatpush.msrb.mxu3 %v3142_v0 }
 0x7cd   :  { %v3854_v5 = vld [vmem:[%s10902_s9 + $0x4b00] sm:$0xff]  ;;  %4195 = vmatmul.f32.vlgmr.msra.gmra.mxu0 %v3910_v4  ;;  %4328 = vmatpush.msrb.mxu2 %v1503_v36  ;;  %v2079_v4 = vld [vmem:[%s10902_s9 + $0x1388] sm:$0xff] }
 0x7ce   :  { %v3622_v8 = vld [vmem:[%s10902_s9 + $0x43c0] sm:$0xff]  ;;  %4302 = vmatpush.msrb.mxu1 %v3854_v5  ;;  %v2047_v36 = vld [vmem:[%s10902_s9 + $0x1288] sm:$0xff] }
 0x7cf   :  { %v3134_v9 = vld [vmem:[%s10902_s9 + $0x3480] sm:$0xff]  ;;  %4259 = vmatpush.msrb.mxu0 %v3622_v8  ;;  %4329 = vmatpush.msrb.mxu2 %v1495_v12  ;;  %v1927_v12 = vld [vmem:[%s10902_s9 + $0xec8] sm:$0xff] }
 0x7d0   :  { %v3846_v10 = vld [vmem:[%s10902_s9 + $0x4ac0] sm:$0xff]  ;;  %4212 = vmatpush.msrb.mxu3 %v3134_v9 }
 0x7d1   :  { %v3614_v11 = vld [vmem:[%s10902_s9 + $0x4380] sm:$0xff]  ;;  %4303 = vmatpush.msrb.mxu1 %v3846_v10  ;;  %4330 = vmatpush.msrb.mxu2 %v1487_v45  ;;  %v2071_v10 = vld [vmem:[%s10902_s9 + $0x1348] sm:$0xff] }
 0x7d2   :  { %v3126_v6 = vld [vmem:[%s10902_s9 + $0x3440] sm:$0xff]  ;;  %4260 = vmatpush.msrb.mxu0 %v3614_v11  ;;  %v1919_v45 = vld [vmem:[%s10902_s9 + $0xe88] sm:$0xff] }
 0x7d3   :  { %v3838_v16 = vld [vmem:[%s10902_s9 + $0x4a80] sm:$0xff]  ;;  %4213 = vmatpush.msrb.mxu3 %v3126_v6  ;;  %4331 = vmatpush.msrb.mxu2 %v1479_v48  ;;  %v1911_v48 = vld [vmem:[%s10902_s9 + $0xe48] sm:$0xff] }
 0x7d4   :  { %v3606_v18 = vld [vmem:[%s10902_s9 + $0x4340] sm:$0xff]  ;;  %4304 = vmatpush.msrb.mxu1 %v3838_v16  ;;  %v2063_v16 = vld [vmem:[%s10902_s9 + $0x1308] sm:$0xff] }
 0x7d5   :  { %v3118_v43 = vld [vmem:[%s10902_s9 + $0x3400] sm:$0xff]  ;;  %4261 = vmatpush.msrb.mxu0 %v3606_v18  ;;  %4332 = vmatpush.msrb.mxu2 %v1471_v51  ;;  %v1903_v51 = vld [vmem:[%s10902_s9 + $0xe08] sm:$0xff] }
 0x7d6   :  { %v3598_v29 = vld [vmem:[%s10902_s9 + $0x4300] sm:$0xff]  ;;  %4214 = vmatpush.msrb.mxu3 %v3118_v43 }
 0x7d7   :  { %v3750_v30 = vld [vmem:[%s10902_s9 + $0x47c0] sm:$0xff]  ;;  %4215 = vmatmul.f32.vlgmr.msrb.gmra.mxu3 %v3911_v25  ;;  %4262 = vmatpush.msrb.mxu0 %v3598_v29  ;;  %v1703_v29 = vld [vmem:[%s10902_s9 + $0x7c8] sm:$0xff] }
 0x7d8   :  { %v3830_v31 = vld [vmem:[%s10902_s9 + $0x4a40] sm:$0xff]  ;;  %4279 = vmatpush.msra.mxu3 %v3750_v30  ;;  %4333 = vmatpush.msrb.mxu2 %v1463_v21  ;;  %v1895_v21 = vld [vmem:[%s10902_s9 + $0xdc8] sm:$0xff] }
 0x7d9   :  { %v3590_v33 = vld [vmem:[%s10902_s9 + $0x42c0] sm:$0xff]  ;;  %4305 = vmatpush.msrb.mxu1 %v3830_v31  ;;  %v2055_v31 = vld [vmem:[%s10902_s9 + $0x12c8] sm:$0xff] }
 0x7da   :  { %v3742_v34 = vld [vmem:[%s10902_s9 + $0x4780] sm:$0xff]  ;;  %4263 = vmatpush.msrb.mxu0 %v3590_v33  ;;  %4334 = vmatpush.msrb.mxu2 %v1455_v57  ;;  %v1695_v33 = vld [vmem:[%s10902_s9 + $0x788] sm:$0xff] }
 0x7db   :  { %v3822_v35 = vld [vmem:[%s10902_s9 + $0x4a00] sm:$0xff]  ;;  %4280 = vmatpush.msra.mxu3 %v3742_v34  ;;  %v1887_v57 = vld [vmem:[%s10902_s9 + $0xd88] sm:$0xff]  ;;  %4335 = vmatmul.f32.vlgmr.msrb.gmra.mxu2 %v8155_v58 }
 0x7dc   :  { %v3582_v37 = vld [vmem:[%s10902_s9 + $0x4280] sm:$0xff]  ;;  %4306 = vmatpush.msrb.mxu1 %v3822_v35  ;;  %4399 = vmatpush.msra.mxu2 %v2087_v60  ;;  %v1935_v35 = vld [vmem:[%s10902_s9 + $0xf08] sm:$0xff] }
 0x7dd   :  { %v3734_v41 = vld [vmem:[%s10902_s9 + $0x4740] sm:$0xff]  ;;  %4264 = vmatpush.msrb.mxu0 %v3582_v37  ;;  %v1687_v37 = vld [vmem:[%s10902_s9 + $0x748] sm:$0xff] }
 0x7de   :  { %v3814_v38 = vld [vmem:[%s10902_s9 + $0x49c0] sm:$0xff]  ;;  %4281 = vmatpush.msra.mxu3 %v3734_v41  ;;  %4400 = vmatpush.msra.mxu2 %v2079_v4  ;;  %v1999_v60 = vld [vmem:[%s10902_s9 + $0x1108] sm:$0xff] }
 0x7df   :  { %v3574_v39 = vld [vmem:[%s10902_s9 + $0x4240] sm:$0xff]  ;;  %4307 = vmatpush.msrb.mxu1 %v3814_v38  ;;  %v3916_v38 = vld.sshfl [vmem:[#allocation1 + $0x8] sm:$0xff pattern:$0x73625140] }
 0x7e0   :  { %v3726_v40 = vld [vmem:[%s10902_s9 + $0x4700] sm:$0xff]  ;;  %4265 = vmatpush.msrb.mxu0 %v3574_v39  ;;  %4401 = vmatpush.msra.mxu2 %v2071_v10  ;;  %v1679_v39 = vld [vmem:[%s10902_s9 + $0x708] sm:$0xff] }
 0x7e1   :  { %v3806_v15 = vld [vmem:[%s10902_s9 + $0x4980] sm:$0xff]  ;;  %4282 = vmatpush.msra.mxu3 %v3726_v40  ;;  %v1831_v40 = vld [vmem:[%s10902_s9 + $0xbc8] sm:$0xff] }
 0x7e2   :  { %v3566_v46 = vld [vmem:[%s10902_s9 + $0x4200] sm:$0xff]  ;;  %4308 = vmatpush.msrb.mxu1 %v3806_v15  ;;  %4402 = vmatpush.msra.mxu2 %v2063_v16  ;;  %v2039_v15 = vld [vmem:[%s10902_s9 + $0x1248] sm:$0xff] }
 0x7e3   :  { %v3718_v44 = vld [vmem:[%s10902_s9 + $0x46c0] sm:$0xff]  ;;  %4266 = vmatpush.msrb.mxu0 %v3566_v46  ;;  %v1671_v46 = vld [vmem:[%s10902_s9 + $0x6c8] sm:$0xff] }
 0x7e4   :  { %v3798_v47 = vld [vmem:[%s10902_s9 + $0x4940] sm:$0xff]  ;;  %4283 = vmatpush.msra.mxu3 %v3718_v44  ;;  %4403 = vmatpush.msra.mxu2 %v2055_v31  ;;  %v1823_v44 = vld [vmem:[%s10902_s9 + $0xb88] sm:$0xff] }
 0x7e5   :  { %v3558_v49 = vld [vmem:[%s10902_s9 + $0x41c0] sm:$0xff]  ;;  %4309 = vmatpush.msrb.mxu1 %v3798_v47  ;;  %v2031_v47 = vld [vmem:[%s10902_s9 + $0x1208] sm:$0xff] }
 0x7e6   :  { %v3710_v17 = vld [vmem:[%s10902_s9 + $0x4680] sm:$0xff]  ;;  %4267 = vmatpush.msrb.mxu0 %v3558_v49  ;;  %4404 = vmatpush.msra.mxu2 %v2047_v36  ;;  %v1663_v49 = vld [vmem:[%s10902_s9 + $0x688] sm:$0xff] }
 0x7e7   :  { %v3790_v50 = vld [vmem:[%s10902_s9 + $0x4900] sm:$0xff]  ;;  %4284 = vmatpush.msra.mxu3 %v3710_v17  ;;  %v1815_v17 = vld [vmem:[%s10902_s9 + $0xb48] sm:$0xff] }
 0x7e8   :  { %v3550_v52 = vld [vmem:[%s10902_s9 + $0x4180] sm:$0xff]  ;;  %4310 = vmatpush.msrb.mxu1 %v3790_v50  ;;  %4405 = vmatpush.msra.mxu2 %v2039_v15  ;;  %v2023_v50 = vld [vmem:[%s10902_s9 + $0x11c8] sm:$0xff] }
 0x7e9   :  { %v3702_v53 = vld [vmem:[%s10902_s9 + $0x4640] sm:$0xff]  ;;  %4268 = vmatpush.msrb.mxu0 %v3550_v52  ;;  %v1655_v52 = vld [vmem:[%s10902_s9 + $0x648] sm:$0xff] }
 0x7ea   :  { %v3782_v42 = vld [vmem:[%s10902_s9 + $0x48c0] sm:$0xff]  ;;  %4285 = vmatpush.msra.mxu3 %v3702_v53  ;;  %v1807_v53 = vld [vmem:[%s10902_s9 + $0xb08] sm:$0xff]  ;;  %4406 = vmatpush.msra.mxu2 %v2031_v47 }
 0x7eb   :  { %v3542_v55 = vld [vmem:[%s10902_s9 + $0x4140] sm:$0xff]  ;;  %4311 = vmatpush.msrb.mxu1 %v3782_v42  ;;  %v2015_v42 = vld [vmem:[%s10902_s9 + $0x1188] sm:$0xff] }
 0x7ec   :  { %v3694_v1 = vld [vmem:[%s10902_s9 + $0x4600] sm:$0xff]  ;;  %4269 = vmatpush.msrb.mxu0 %v3542_v55  ;;  %v1647_v55 = vld [vmem:[%s10902_s9 + $0x608] sm:$0xff]  ;;  %4407 = vmatpush.msra.mxu2 %v2023_v50 }
 0x7ed   :  { %v3774_v56 = vld [vmem:[%s10902_s9 + $0x4880] sm:$0xff]  ;;  %4286 = vmatpush.msra.mxu3 %v3694_v1  ;;  %v1799_v1 = vld [vmem:[%s10902_s9 + $0xac8] sm:$0xff] }
 0x7ee   :  { %v3534_v2 = vld [vmem:[%s10902_s9 + $0x4100] sm:$0xff]  ;;  %4312 = vmatpush.msrb.mxu1 %v3774_v56  ;;  %v2007_v56 = vld [vmem:[%s10902_s9 + $0x1148] sm:$0xff]  ;;  %4408 = vmatpush.msra.mxu2 %v2015_v42 }
 0x7ef   :  { %v3686_v59 = vld [vmem:[%s10902_s9 + $0x45c0] sm:$0xff]  ;;  %4270 = vmatpush.msrb.mxu0 %v3534_v2  ;;  %v1639_v2 = vld [vmem:[%s10902_s9 + $0x5c8] sm:$0xff] }
 0x7f0   :  { %v3766_v61 = vld [vmem:[%s10902_s9 + $0x4840] sm:$0xff]  ;;  %4287 = vmatpush.msra.mxu3 %v3686_v59  ;;  %v1791_v59 = vld [vmem:[%s10902_s9 + $0xa88] sm:$0xff]  ;;  %4409 = vmatpush.msra.mxu2 %v2007_v56 }
 0x7f1   :  { %v3526_v63 = vld [vmem:[%s10902_s9 + $0x40c0] sm:$0xff]  ;;  %4313 = vmatpush.msrb.mxu1 %v3766_v61  ;;  %v1879_v61 = vld [vmem:[%s10902_s9 + $0xd48] sm:$0xff] }
 0x7f2   :  { %v3678_v0 = vld [vmem:[%s10902_s9 + $0x4580] sm:$0xff]  ;;  %4271 = vmatpush.msrb.mxu0 %v3526_v63  ;;  %v1631_v63 = vld [vmem:[%s10902_s9 + $0x588] sm:$0xff]  ;;  %4410 = vmatpush.msra.mxu2 %v1999_v60 }
 0x7f3   :  { %v3758_v5 = vld [vmem:[%s10902_s9 + $0x4800] sm:$0xff]  ;;  %4288 = vmatpush.msra.mxu3 %v3678_v0  ;;  %v1783_v0 = vld [vmem:[%s10902_s9 + $0xa48] sm:$0xff] }
 0x7f4   :  { %v3518_v8 = vld [vmem:[%s10902_s9 + $0x4080] sm:$0xff]  ;;  %4314 = vmatpush.msrb.mxu1 %v3758_v5  ;;  %v1991_v4 = vld [vmem:[%s10902_s9 + $0x10c8] sm:$0xff] }
 0x7f5   :  { %v3670_v9 = vld [vmem:[%s10902_s9 + $0x4540] sm:$0xff]  ;;  %4272 = vmatpush.msrb.mxu0 %v3518_v8  ;;  %7175 = vmatmul.msk.f32.vlgmr.msrb.gmra.mxu1 %vm3936_vm9, %v3917_v32  ;;  %v1871_v5 = vld [vmem:[%s10902_s9 + $0xd08] sm:$0xff] }
 0x7f6   :  { %v3510_v11 = vld [vmem:[%s10902_s9 + $0x4040] sm:$0xff]  ;;  %4289 = vmatpush.msra.mxu3 %v3670_v9  ;;  %4379 = vmatpush.msra.mxu1 %v1959_v3  ;;  %v1623_v8 = vld [vmem:[%s10902_s9 + $0x548] sm:$0xff] }
 0x7f7   :  { %v3662_v6 = vld [vmem:[%s10902_s9 + $0x4500] sm:$0xff]  ;;  %4273 = vmatpush.msrb.mxu0 %v3510_v11  ;;  %v1775_v9 = vld [vmem:[%s10902_s9 + $0xa08] sm:$0xff]  ;;  %4411 = vmatpush.msra.mxu2 %v1991_v4 }
 0x7f8   :  { %v3502_v18 = vld [vmem:[%s10902_s9 + $0x4000] sm:$0xff]  ;;  %4290 = vmatpush.msra.mxu3 %v3662_v6  ;;  %4380 = vmatpush.msra.mxu1 %v1951_v13  ;;  %v1983_v3 = vld [vmem:[%s10902_s9 + $0x1088] sm:$0xff] }
 0x7f9   :  { %v3654_v43 = vld [vmem:[%s10902_s9 + $0x44c0] sm:$0xff]  ;;  %4274 = vmatpush.msrb.mxu0 %v3502_v18  ;;  %v1863_v10 = vld [vmem:[%s10902_s9 + $0xcc8] sm:$0xff]  ;;  %4412 = vmatpush.msra.mxu2 %v1983_v3 }
 0x7fa   :  { %v3915_v25 = vld.sshfl [vmem:[#allocation1] sm:$0xff pattern:$0x73625140]  ;;  %4291 = vmatpush.msra.mxu3 %v3654_v43  ;;  %4381 = vmatpush.msra.mxu1 %v1943_v26  ;;  %v1615_v11 = vld [vmem:[%s10902_s9 + $0x508] sm:$0xff] }
 0x7fb   :  { %v3646_v30 = vld [vmem:[%s10902_s9 + $0x4480] sm:$0xff]  ;;  %4275 = vmatmul.f32.vlgmr.msrb.gmra.mxu0 %v3915_v25  ;;  %v1767_v6 = vld [vmem:[%s10902_s9 + $0x9c8] sm:$0xff] }
 0x7fc   :  { %v3638_v34 = vld [vmem:[%s10902_s9 + $0x4440] sm:$0xff]  ;;  %4339 = vmatpush.msra.mxu0 %v1703_v29  ;;  %4292 = vmatpush.msra.mxu3 %v3646_v30  ;;  %v1975_v13 = vld [vmem:[%s10902_s9 + $0x1048] sm:$0xff] }
 0x7fd   :  { %v3630_v41 = vld [vmem:[%s10902_s9 + $0x4400] sm:$0xff]  ;;  %4382 = vmatpush.msra.mxu1 %v1935_v35  ;;  %v1855_v16 = vld [vmem:[%s10902_s9 + $0xc88] sm:$0xff]  ;;  %4413 = vmatpush.msra.mxu2 %v1975_v13 }
 0x7fe   :  { %4340 = vmatpush.msra.mxu0 %v1695_v33  ;;  %4293 = vmatpush.msra.mxu3 %v3638_v34  ;;  %v1607_v18 = vld [vmem:[%s10902_s9 + $0x4c8] sm:$0xff] }
 0x7ff   :  { %4383 = vmatpush.msra.mxu1 %v1927_v12  ;;  %v1759_v43 = vld [vmem:[%s10902_s9 + $0x988] sm:$0xff] }
 0x800   :  { %4341 = vmatpush.msra.mxu0 %v1687_v37  ;;  %4294 = vmatpush.msra.mxu3 %v3630_v41  ;;  %v1967_v25 = vld [vmem:[%s10902_s9 + $0x1008] sm:$0xff] }
 0x801   :  { %4295 = vmatmul.f32.vlgmr.msra.gmra.mxu3 %v3916_v38  ;;  %4384 = vmatpush.msra.mxu1 %v1919_v45  ;;  %v1847_v26 = vld [vmem:[%s10902_s9 + $0xc48] sm:$0xff] }
 0x802   :  { %4342 = vmatpush.msra.mxu0 %v1679_v39  ;;  %4359 = vmatpush.msrb.mxu3 %v1831_v40  ;;  %v1599_v29 = vld [vmem:[%s10902_s9 + $0x488] sm:$0xff] }
 0x803   :  { %4385 = vmatpush.msra.mxu1 %v1911_v48  ;;  %v1751_v30 = vld [vmem:[%s10902_s9 + $0x948] sm:$0xff]  ;;  %4414 = vmatpush.msra.mxu2 %v1967_v25 }
 0x804   :  { %4343 = vmatpush.msra.mxu0 %v1671_v46  ;;  %4360 = vmatpush.msrb.mxu3 %v1823_v44  ;;  %v1839_v31 = vld [vmem:[%s10902_s9 + $0xc08] sm:$0xff] }
 0x805   :  { %4386 = vmatpush.msra.mxu1 %v1903_v51  ;;  %v1591_v32 = vld [vmem:[%s10902_s9 + $0x448] sm:$0xff]  ;;  %4415 = vmatmul.f32.vlgmr.msra.gmra.mxu2 %v8188_v23 }
 0x806   :  { %4344 = vmatpush.msra.mxu0 %v1663_v49  ;;  %4361 = vmatpush.msrb.mxu3 %v1815_v17  ;;  %v1743_v33 = vld [vmem:[%s10902_s9 + $0x908] sm:$0xff] }
 0x807   :  { %4387 = vmatpush.msra.mxu1 %v1895_v21  ;;  %v2599_v34 = vld [vmem:[%s10902_s9 + $0x23c8] sm:$0xff] }
 0x808   :  { %4345 = vmatpush.msra.mxu0 %v1655_v52  ;;  %4362 = vmatpush.msrb.mxu3 %v1807_v53  ;;  %v2471_v35 = vld [vmem:[%s10902_s9 + $0x1fc8] sm:$0xff] }
 0x809   :  { %4388 = vmatpush.msra.mxu1 %v1887_v57  ;;  %v1583_v36 = vld [vmem:[%s10902_s9 + $0x408] sm:$0xff]  ;;  %4479 = vmatpush.msrb.mxu2 %v2599_v34  ;;  %v7266_v34 = vld [vmem:[%s10916_s8] ss:$0 sm:$0xff] }
 0x80a   :  { %4346 = vmatpush.msra.mxu0 %v1647_v55  ;;  %4363 = vmatpush.msrb.mxu3 %v1799_v1  ;;  %v1735_v37 = vld [vmem:[%s10902_s9 + $0x8c8] sm:$0xff] }
 0x80b   :  { %4389 = vmatpush.msra.mxu1 %v1879_v61  ;;  %v2215_v41 = vld [vmem:[%s10902_s9 + $0x17c8] sm:$0xff] }
 0x80c   :  { %4347 = vmatpush.msra.mxu0 %v1639_v2  ;;  %4364 = vmatpush.msrb.mxu3 %v1791_v59  ;;  %v2591_v38 = vld [vmem:[%s10902_s9 + $0x2388] sm:$0xff] }
 0x80d   :  { %4390 = vmatpush.msra.mxu1 %v1871_v5  ;;  %v1727_v12 = vld [vmem:[%s10902_s9 + $0x888] sm:$0xff]  ;;  %4480 = vmatpush.msrb.mxu2 %v2591_v38 }
 0x80e   :  { %4348 = vmatpush.msra.mxu0 %v1631_v63  ;;  %4365 = vmatpush.msrb.mxu3 %v1783_v0  ;;  %v2463_v39 = vld [vmem:[%s10902_s9 + $0x1f88] sm:$0xff] }
 0x80f   :  { %4391 = vmatpush.msra.mxu1 %v1863_v10  ;;  %v2207_v40 = vld [vmem:[%s10902_s9 + $0x1788] sm:$0xff] }
 0x810   :  { %4349 = vmatpush.msra.mxu0 %v1623_v8  ;;  %4366 = vmatpush.msrb.mxu3 %v1775_v9  ;;  %v2583_v15 = vld [vmem:[%s10902_s9 + $0x2348] sm:$0xff] }
 0x811   :  { %4392 = vmatpush.msra.mxu1 %v1855_v16  ;;  %v1719_v45 = vld [vmem:[%s10902_s9 + $0x848] sm:$0xff]  ;;  %4481 = vmatpush.msrb.mxu2 %v2583_v15 }
 0x812   :  { %4350 = vmatpush.msra.mxu0 %v1615_v11  ;;  %4367 = vmatpush.msrb.mxu3 %v1767_v6  ;;  %v2455_v46 = vld [vmem:[%s10902_s9 + $0x1f48] sm:$0xff] }
 0x813   :  { %4393 = vmatpush.msra.mxu1 %v1847_v26  ;;  %v2199_v44 = vld [vmem:[%s10902_s9 + $0x1748] sm:$0xff] }
 0x814   :  { %4351 = vmatpush.msra.mxu0 %v1607_v18  ;;  %4368 = vmatpush.msrb.mxu3 %v1759_v43  ;;  %v2575_v47 = vld [vmem:[%s10902_s9 + $0x2308] sm:$0xff] }
 0x815   :  { %4394 = vmatpush.msra.mxu1 %v1839_v31  ;;  %v1711_v48 = vld [vmem:[%s10902_s9 + $0x808] sm:$0xff]  ;;  %4482 = vmatpush.msrb.mxu2 %v2575_v47 }
 0x816   :  { %4352 = vmatpush.msra.mxu0 %v1599_v29  ;;  %4369 = vmatpush.msrb.mxu3 %v1751_v30  ;;  %v2447_v49 = vld [vmem:[%s10902_s9 + $0x1f08] sm:$0xff] }
 0x817   :  { %4459 = vmatpush.msrb.mxu1 %v2471_v35  ;;  %v2191_v17 = vld [vmem:[%s10902_s9 + $0x1708] sm:$0xff] }
 0x818   :  { %4353 = vmatpush.msra.mxu0 %v1591_v32  ;;  %4370 = vmatpush.msrb.mxu3 %v1743_v33  ;;  %v2343_v50 = vld [vmem:[%s10902_s9 + $0x1bc8] sm:$0xff] }
 0x819   :  { %4460 = vmatpush.msrb.mxu1 %v2463_v39  ;;  %v2567_v51 = vld [vmem:[%s10902_s9 + $0x22c8] sm:$0xff] }
 0x81a   :  { %4354 = vmatpush.msra.mxu0 %v1583_v36  ;;  %4371 = vmatpush.msrb.mxu3 %v1735_v37  ;;  %v2183_v52 = vld [vmem:[%s10902_s9 + $0x16c8] sm:$0xff]  ;;  %v1325_v37 = vpop.f32.mrf.mxu0 }
 0x81b   :  { %4461 = vmatpush.msrb.mxu1 %v2455_v46  ;;  %v2335_v53 = vld [vmem:[%s10902_s9 + $0x1b88] sm:$0xff]  ;;  %4483 = vmatpush.msrb.mxu2 %v2567_v51 }
 0x81c   :  { %4419 = vmatpush.msrb.mxu0 %v2215_v41  ;;  %4372 = vmatpush.msrb.mxu3 %v1727_v12  ;;  %v2559_v42 = vld [vmem:[%s10902_s9 + $0x2288] sm:$0xff] }
 0x81d   :  { %4462 = vmatpush.msrb.mxu1 %v2447_v49  ;;  %v2175_v21 = vld [vmem:[%s10902_s9 + $0x1688] sm:$0xff]  ;;  %4484 = vmatpush.msrb.mxu2 %v2559_v42 }
 0x81e   :  { %4420 = vmatpush.msrb.mxu0 %v2207_v40  ;;  %4373 = vmatpush.msrb.mxu3 %v1719_v45  ;;  %v2327_v55 = vld [vmem:[%s10902_s9 + $0x1b48] sm:$0xff]  ;;  %v1326_v45 = vadd.f32 %v7266_v34, %v1325_v37 }
 0x81f   :  { %v2439_v1 = vld [vmem:[%s10902_s9 + $0x1ec8] sm:$0xff]  ;;  %4355 = vmatmul.f32.vlgmr.msra.gmra.mxu0 %v8162_v62  ;;  %4395 = vmatmul.f32.vlgmr.msra.gmra.mxu1 %v8149_v54 }
 0x820   :  { %4421 = vmatpush.msrb.mxu0 %v2199_v44  ;;  %4374 = vmatpush.msrb.mxu3 %v1711_v48  ;;  %v2167_v56 = vld [vmem:[%s10902_s9 + $0x1648] sm:$0xff]  ;;  %1329 = vst.msk [vmem:[#allocation5] sm:$0x3] %vm1328_vm15, %v1326_v45 }
 0x821   :  { %4375 = vmatmul.f32.vlgmr.msrb.gmra.mxu3 %v8169_v7  ;;  %v2319_v57 = vld [vmem:[%s10902_s9 + $0x1b08] sm:$0xff]  ;;  %4463 = vmatpush.msrb.mxu1 %v2439_v1 }
 0x822   :  { %4422 = vmatpush.msrb.mxu0 %v2191_v17  ;;  %4439 = vmatpush.msra.mxu3 %v2343_v50  ;;  %v2551_v2 = vld [vmem:[%s10902_s9 + $0x2248] sm:$0xff] }
 0x823   :  { %v2431_v59 = vld [vmem:[%s10902_s9 + $0x1e88] sm:$0xff]  ;;  %4485 = vmatpush.msrb.mxu2 %v2551_v2 }
 0x824   :  { %4423 = vmatpush.msrb.mxu0 %v2183_v52  ;;  %4440 = vmatpush.msra.mxu3 %v2335_v53  ;;  %v2159_v60 = vld [vmem:[%s10902_s9 + $0x1608] sm:$0xff] }
 0x825   :  { %v2311_v61 = vld [vmem:[%s10902_s9 + $0x1ac8] sm:$0xff]  ;;  %4464 = vmatpush.msrb.mxu1 %v2431_v59  ;;  %v1444_v59 = vpop.f32.mrf.mxu3 }
 0x826   :  { %4424 = vmatpush.msrb.mxu0 %v2175_v21  ;;  %4441 = vmatpush.msra.mxu3 %v2327_v55  ;;  %v2543_v63 = vld [vmem:[%s10902_s9 + $0x2208] sm:$0xff] }
 0x827   :  { %v2151_v0 = vld [vmem:[%s10902_s9 + $0x15c8] sm:$0xff]  ;;  %4486 = vmatpush.msrb.mxu2 %v2543_v63 }
 0x828   :  { %4425 = vmatpush.msrb.mxu0 %v2167_v56  ;;  %4442 = vmatpush.msra.mxu3 %v2319_v57  ;;  %v2303_v4 = vld [vmem:[%s10902_s9 + $0x1a88] sm:$0xff]  ;;  %v7267_v56 = vld [vmem:[%s10917_s14] ss:$0 sm:$0xff] }
 0x829   :  { %v2423_v5 = vld [vmem:[%s10902_s9 + $0x1e48] sm:$0xff] }
 0x82a   :  { %4426 = vmatpush.msrb.mxu0 %v2159_v60  ;;  %4443 = vmatpush.msra.mxu3 %v2311_v61  ;;  %v2535_v8 = vld [vmem:[%s10902_s9 + $0x21c8] sm:$0xff] }
 0x82b   :  { %v2143_v9 = vld [vmem:[%s10902_s9 + $0x1588] sm:$0xff]  ;;  %4465 = vmatpush.msrb.mxu1 %v2423_v5  ;;  %4487 = vmatpush.msrb.mxu2 %v2535_v8  ;;  %v1445_v5 = vadd.f32 %v7267_v56, %v1444_v59 }
 0x82c   :  { %v2295_v3 = vld [vmem:[%s10902_s9 + $0x1a48] sm:$0xff]  ;;  %4427 = vmatpush.msrb.mxu0 %v2151_v0  ;;  %4444 = vmatpush.msra.mxu3 %v2303_v4 }
 0x82d   :  { %v2415_v10 = vld [vmem:[%s10902_s9 + $0x1e08] sm:$0xff]  ;;  %1448 = vst.msk [vmem:[#allocation7] sm:$0x3] %vm1447_vm1, %v1445_v5 }
 0x82e   :  { %v2527_v11 = vld [vmem:[%s10902_s9 + $0x2188] sm:$0xff]  ;;  %4428 = vmatpush.msrb.mxu0 %v2143_v9  ;;  %4445 = vmatpush.msra.mxu3 %v2295_v3 }
 0x82f   :  { %v2135_v6 = vld [vmem:[%s10902_s9 + $0x1548] sm:$0xff]  ;;  %4466 = vmatpush.msrb.mxu1 %v2415_v10  ;;  %4488 = vmatpush.msrb.mxu2 %v2527_v11 }
 0x830   :  { %v2287_v13 = vld [vmem:[%s10902_s9 + $0x1a08] sm:$0xff]  ;;  %4429 = vmatpush.msrb.mxu0 %v2135_v6 }
 0x831   :  { %v2407_v16 = vld [vmem:[%s10902_s9 + $0x1dc8] sm:$0xff]  ;;  %4446 = vmatpush.msra.mxu3 %v2287_v13 }
 0x832   :  { %v2519_v18 = vld [vmem:[%s10902_s9 + $0x2148] sm:$0xff]  ;;  %4467 = vmatpush.msrb.mxu1 %v2407_v16 }
 0x833   :  { %v2127_v43 = vld [vmem:[%s10902_s9 + $0x1508] sm:$0xff]  ;;  %4489 = vmatpush.msrb.mxu2 %v2519_v18 }
 0x834   :  { %v2279_v25 = vld [vmem:[%s10902_s9 + $0x19c8] sm:$0xff]  ;;  %4430 = vmatpush.msrb.mxu0 %v2127_v43 }
 0x835   :  { %v2399_v26 = vld [vmem:[%s10902_s9 + $0x1d88] sm:$0xff]  ;;  %4447 = vmatpush.msra.mxu3 %v2279_v25 }
 0x836   :  { %v2511_v29 = vld [vmem:[%s10902_s9 + $0x2108] sm:$0xff]  ;;  %4468 = vmatpush.msrb.mxu1 %v2399_v26 }
 0x837   :  { %v2119_v30 = vld [vmem:[%s10902_s9 + $0x14c8] sm:$0xff]  ;;  %4490 = vmatpush.msrb.mxu2 %v2511_v29 }
 0x838   :  { %v2271_v31 = vld [vmem:[%s10902_s9 + $0x1988] sm:$0xff]  ;;  %4431 = vmatpush.msrb.mxu0 %v2119_v30 }
 0x839   :  { %v2391_v32 = vld [vmem:[%s10902_s9 + $0x1d48] sm:$0xff]  ;;  %4448 = vmatpush.msra.mxu3 %v2271_v31 }
 0x83a   :  { %v2503_v33 = vld [vmem:[%s10902_s9 + $0x20c8] sm:$0xff]  ;;  %4469 = vmatpush.msrb.mxu1 %v2391_v32 }
 0x83b   :  { %v2111_v35 = vld [vmem:[%s10902_s9 + $0x1488] sm:$0xff]  ;;  %4491 = vmatpush.msrb.mxu2 %v2503_v33 }
 0x83c   :  { %v2263_v36 = vld [vmem:[%s10902_s9 + $0x1948] sm:$0xff]  ;;  %4432 = vmatpush.msrb.mxu0 %v2111_v35 }
 0x83d   :  { %v2383_v41 = vld [vmem:[%s10902_s9 + $0x1d08] sm:$0xff]  ;;  %4449 = vmatpush.msra.mxu3 %v2263_v36 }
 0x83e   :  { %v2495_v38 = vld [vmem:[%s10902_s9 + $0x2088] sm:$0xff]  ;;  %4470 = vmatpush.msrb.mxu1 %v2383_v41 }
 0x83f   :  { %v2103_v12 = vld [vmem:[%s10902_s9 + $0x1448] sm:$0xff]  ;;  %4492 = vmatpush.msrb.mxu2 %v2495_v38 }
 0x840   :  { %v2255_v39 = vld [vmem:[%s10902_s9 + $0x1908] sm:$0xff]  ;;  %4433 = vmatpush.msrb.mxu0 %v2103_v12 }
 0x841   :  { %v2375_v40 = vld [vmem:[%s10902_s9 + $0x1cc8] sm:$0xff]  ;;  %4450 = vmatpush.msra.mxu3 %v2255_v39 }
 0x842   :  { %v2487_v15 = vld [vmem:[%s10902_s9 + $0x2048] sm:$0xff]  ;;  %4471 = vmatpush.msrb.mxu1 %v2375_v40 }
 0x843   :  { %v2095_v46 = vld [vmem:[%s10902_s9 + $0x1408] sm:$0xff]  ;;  %4493 = vmatpush.msrb.mxu2 %v2487_v15 }
 0x844   :  { %v2247_v44 = vld [vmem:[%s10902_s9 + $0x18c8] sm:$0xff]  ;;  %4434 = vmatpush.msrb.mxu0 %v2095_v46 }
 0x845   :  { %v2367_v47 = vld [vmem:[%s10902_s9 + $0x1c88] sm:$0xff]  ;;  %4451 = vmatpush.msra.mxu3 %v2247_v44  ;;  %4435 = vmatmul.f32.vlgmr.msrb.gmra.mxu0 %v8184_v19 }
 0x846   :  { %v2727_v48 = vld [vmem:[%s10902_s9 + $0x27c8] sm:$0xff]  ;;  %4472 = vmatpush.msrb.mxu1 %v2367_v47 }
 0x847   :  { %v2239_v49 = vld [vmem:[%s10902_s9 + $0x1888] sm:$0xff]  ;;  %4499 = vmatpush.msra.mxu0 %v2727_v48 }
 0x848   :  { %v2479_v17 = vld [vmem:[%s10902_s9 + $0x2008] sm:$0xff]  ;;  %4452 = vmatpush.msra.mxu3 %v2239_v49 }
 0x849   :  { %v2359_v50 = vld [vmem:[%s10902_s9 + $0x1c48] sm:$0xff]  ;;  %4494 = vmatpush.msrb.mxu2 %v2479_v17 }
 0x84a   :  { %v2719_v51 = vld [vmem:[%s10902_s9 + $0x2788] sm:$0xff]  ;;  %4473 = vmatpush.msrb.mxu1 %v2359_v50  ;;  %4495 = vmatmul.f32.vlgmr.msrb.gmra.mxu2 %v8248_v14 }
 0x84b   :  { %v2231_v52 = vld [vmem:[%s10902_s9 + $0x1848] sm:$0xff]  ;;  %4500 = vmatpush.msra.mxu0 %v2719_v51 }
 0x84c   :  { %v3111_v53 = vld [vmem:[%s10902_s9 + $0x33c8] sm:$0xff]  ;;  %4453 = vmatpush.msra.mxu3 %v2231_v52 }
 0x84d   :  { %v2351_v42 = vld [vmem:[%s10902_s9 + $0x1c08] sm:$0xff]  ;;  %4559 = vmatpush.msra.mxu2 %v3111_v53 }
 0x84e   :  { %v2711_v21 = vld [vmem:[%s10902_s9 + $0x2748] sm:$0xff]  ;;  %4474 = vmatpush.msrb.mxu1 %v2351_v42 }
 0x84f   :  { %v2223_v55 = vld [vmem:[%s10902_s9 + $0x1808] sm:$0xff]  ;;  %4501 = vmatpush.msra.mxu0 %v2711_v21  ;;  %4475 = vmatmul.f32.vlgmr.msrb.gmra.mxu1 %v8190_v24 }
 0x850   :  { %v3103_v1 = vld [vmem:[%s10902_s9 + $0x3388] sm:$0xff]  ;;  %4454 = vmatpush.msra.mxu3 %v2223_v55 }
 0x851   :  { %v2703_v57 = vld [vmem:[%s10902_s9 + $0x2708] sm:$0xff]  ;;  %4455 = vmatmul.f32.vlgmr.msra.gmra.mxu3 %v8194_v27  ;;  %4560 = vmatpush.msra.mxu2 %v3103_v1 }
 0x852   :  { %v2855_v2 = vld [vmem:[%s10902_s9 + $0x2bc8] sm:$0xff]  ;;  %4502 = vmatpush.msra.mxu0 %v2703_v57 }
 0x853   :  { %v2983_v60 = vld [vmem:[%s10902_s9 + $0x2fc8] sm:$0xff]  ;;  %4519 = vmatpush.msrb.mxu3 %v2855_v2 }
 0x854   :  { %v3095_v61 = vld [vmem:[%s10902_s9 + $0x3348] sm:$0xff]  ;;  %4539 = vmatpush.msra.mxu1 %v2983_v60 }
 0x855   :  { %v2695_v63 = vld [vmem:[%s10902_s9 + $0x26c8] sm:$0xff]  ;;  %4561 = vmatpush.msra.mxu2 %v3095_v61 }
 0x856   :  { %v2847_v0 = vld [vmem:[%s10902_s9 + $0x2b88] sm:$0xff]  ;;  %4503 = vmatpush.msra.mxu0 %v2695_v63 }
 0x857   :  { %v2975_v4 = vld [vmem:[%s10902_s9 + $0x2f88] sm:$0xff]  ;;  %4520 = vmatpush.msrb.mxu3 %v2847_v0 }
 0x858   :  { %v2687_v8 = vld [vmem:[%s10902_s9 + $0x2688] sm:$0xff]  ;;  %4540 = vmatpush.msra.mxu1 %v2975_v4 }
 0x859   :  { %v2839_v9 = vld [vmem:[%s10902_s9 + $0x2b48] sm:$0xff]  ;;  %4504 = vmatpush.msra.mxu0 %v2687_v8 }
 0x85a   :  { %v3087_v3 = vld [vmem:[%s10902_s9 + $0x3308] sm:$0xff]  ;;  %4521 = vmatpush.msrb.mxu3 %v2839_v9 }
 0x85b   :  { %v2967_v10 = vld [vmem:[%s10902_s9 + $0x2f48] sm:$0xff]  ;;  %4562 = vmatpush.msra.mxu2 %v3087_v3 }
 0x85c   :  { %v2679_v11 = vld [vmem:[%s10902_s9 + $0x2648] sm:$0xff]  ;;  %4541 = vmatpush.msra.mxu1 %v2967_v10 }
 0x85d   :  { %v2831_v6 = vld [vmem:[%s10902_s9 + $0x2b08] sm:$0xff]  ;;  %4505 = vmatpush.msra.mxu0 %v2679_v11 }
 0x85e   :  { %v3079_v13 = vld [vmem:[%s10902_s9 + $0x32c8] sm:$0xff]  ;;  %4522 = vmatpush.msrb.mxu3 %v2831_v6 }
 0x85f   :  { %v2671_v16 = vld [vmem:[%s10902_s9 + $0x2608] sm:$0xff]  ;;  %4563 = vmatpush.msra.mxu2 %v3079_v13 }
 0x860   :  { %v2823_v18 = vld [vmem:[%s10902_s9 + $0x2ac8] sm:$0xff]  ;;  %4506 = vmatpush.msra.mxu0 %v2671_v16 }
 0x861   :  { %v2959_v43 = vld [vmem:[%s10902_s9 + $0x2f08] sm:$0xff]  ;;  %4523 = vmatpush.msrb.mxu3 %v2823_v18 }
 0x862   :  { %v3071_v25 = vld [vmem:[%s10902_s9 + $0x3288] sm:$0xff]  ;;  %4542 = vmatpush.msra.mxu1 %v2959_v43 }
 0x863   :  { %v2663_v26 = vld [vmem:[%s10902_s9 + $0x25c8] sm:$0xff]  ;;  %4564 = vmatpush.msra.mxu2 %v3071_v25 }
 0x864   :  { %v2815_v29 = vld [vmem:[%s10902_s9 + $0x2a88] sm:$0xff]  ;;  %4507 = vmatpush.msra.mxu0 %v2663_v26 }
 0x865   :  { %v2951_v30 = vld [vmem:[%s10902_s9 + $0x2ec8] sm:$0xff]  ;;  %4524 = vmatpush.msrb.mxu3 %v2815_v29 }
 0x866   :  { %v3063_v31 = vld [vmem:[%s10902_s9 + $0x3248] sm:$0xff]  ;;  %4543 = vmatpush.msra.mxu1 %v2951_v30 }
 0x867   :  { %v2655_v32 = vld [vmem:[%s10902_s9 + $0x2588] sm:$0xff]  ;;  %4565 = vmatpush.msra.mxu2 %v3063_v31 }
 0x868   :  { %v2807_v33 = vld [vmem:[%s10902_s9 + $0x2a48] sm:$0xff]  ;;  %4508 = vmatpush.msra.mxu0 %v2655_v32 }
 0x869   :  { %v2943_v34 = vld [vmem:[%s10902_s9 + $0x2e88] sm:$0xff]  ;;  %4525 = vmatpush.msrb.mxu3 %v2807_v33  ;;  %v7296_v33 = vld.sshfl [vmem:[#allocation1 + $0x20] sm:$0xff pattern:$0x73625140] }
 0x86a   :  { %v3055_v35 = vld [vmem:[%s10902_s9 + $0x3208] sm:$0xff]  ;;  %4544 = vmatpush.msra.mxu1 %v2943_v34 }
 0x86b   :  { %v2647_v36 = vld [vmem:[%s10902_s9 + $0x2548] sm:$0xff]  ;;  %4566 = vmatpush.msra.mxu2 %v3055_v35 }
 0x86c   :  { %v2799_v37 = vld [vmem:[%s10902_s9 + $0x2a08] sm:$0xff]  ;;  %4509 = vmatpush.msra.mxu0 %v2647_v36 }
 0x86d   :  { %v2935_v41 = vld [vmem:[%s10902_s9 + $0x2e48] sm:$0xff]  ;;  %4526 = vmatpush.msrb.mxu3 %v2799_v37 }
 0x86e   :  { %v3047_v38 = vld [vmem:[%s10902_s9 + $0x31c8] sm:$0xff]  ;;  %4545 = vmatpush.msra.mxu1 %v2935_v41 }
 0x86f   :  { %v2639_v12 = vld [vmem:[%s10902_s9 + $0x2508] sm:$0xff]  ;;  %4567 = vmatpush.msra.mxu2 %v3047_v38 }
 0x870   :  { %v2791_v39 = vld [vmem:[%s10902_s9 + $0x29c8] sm:$0xff]  ;;  %4510 = vmatpush.msra.mxu0 %v2639_v12 }
 0x871   :  { %v2927_v40 = vld [vmem:[%s10902_s9 + $0x2e08] sm:$0xff]  ;;  %4527 = vmatpush.msrb.mxu3 %v2791_v39 }
 0x872   :  { %v3039_v15 = vld [vmem:[%s10902_s9 + $0x3188] sm:$0xff]  ;;  %4546 = vmatpush.msra.mxu1 %v2927_v40 }
 0x873   :  { %v2631_v45 = vld [vmem:[%s10902_s9 + $0x24c8] sm:$0xff]  ;;  %4568 = vmatpush.msra.mxu2 %v3039_v15 }
 0x874   :  { %v2783_v46 = vld [vmem:[%s10902_s9 + $0x2988] sm:$0xff]  ;;  %4511 = vmatpush.msra.mxu0 %v2631_v45 }
 0x875   :  { %v2919_v44 = vld [vmem:[%s10902_s9 + $0x2dc8] sm:$0xff]  ;;  %4528 = vmatpush.msrb.mxu3 %v2783_v46 }
 0x876   :  { %v3031_v47 = vld [vmem:[%s10902_s9 + $0x3148] sm:$0xff]  ;;  %4547 = vmatpush.msra.mxu1 %v2919_v44 }
 0x877   :  { %v2623_v48 = vld [vmem:[%s10902_s9 + $0x2488] sm:$0xff]  ;;  %4569 = vmatpush.msra.mxu2 %v3031_v47 }
 0x878   :  { %v2775_v49 = vld [vmem:[%s10902_s9 + $0x2948] sm:$0xff]  ;;  %4512 = vmatpush.msra.mxu0 %v2623_v48 }
 0x879   :  { %v2911_v17 = vld [vmem:[%s10902_s9 + $0x2d88] sm:$0xff]  ;;  %4529 = vmatpush.msrb.mxu3 %v2775_v49 }
 0x87a   :  { %v3023_v50 = vld [vmem:[%s10902_s9 + $0x3108] sm:$0xff]  ;;  %4548 = vmatpush.msra.mxu1 %v2911_v17 }
 0x87b   :  { %v2615_v51 = vld [vmem:[%s10902_s9 + $0x2448] sm:$0xff]  ;;  %4570 = vmatpush.msra.mxu2 %v3023_v50 }
 0x87c   :  { %v2767_v52 = vld [vmem:[%s10902_s9 + $0x2908] sm:$0xff]  ;;  %4513 = vmatpush.msra.mxu0 %v2615_v51 }
 0x87d   :  { %v2903_v53 = vld [vmem:[%s10902_s9 + $0x2d48] sm:$0xff]  ;;  %4530 = vmatpush.msrb.mxu3 %v2767_v52 }
 0x87e   :  { %v3015_v42 = vld [vmem:[%s10902_s9 + $0x30c8] sm:$0xff]  ;;  %4549 = vmatpush.msra.mxu1 %v2903_v53 }
 0x87f   :  { %v2607_v21 = vld [vmem:[%s10902_s9 + $0x2408] sm:$0xff]  ;;  %4571 = vmatpush.msra.mxu2 %v3015_v42 }
 0x880   :  { %v2759_v55 = vld [vmem:[%s10902_s9 + $0x28c8] sm:$0xff]  ;;  %4514 = vmatpush.msra.mxu0 %v2607_v21 }
 0x881   :  { %v2895_v1 = vld [vmem:[%s10902_s9 + $0x2d08] sm:$0xff]  ;;  %4531 = vmatpush.msrb.mxu3 %v2759_v55  ;;  %4515 = vmatmul.f32.vlgmr.msra.gmra.mxu0 %v8253_v20 }
 0x882   :  { %v3007_v56 = vld [vmem:[%s10902_s9 + $0x3088] sm:$0xff]  ;;  %4550 = vmatpush.msra.mxu1 %v2895_v1 }
 0x883   :  { %v2751_v57 = vld [vmem:[%s10902_s9 + $0x2888] sm:$0xff]  ;;  %4572 = vmatpush.msra.mxu2 %v3007_v56 }
 0x884   :  { %v3239_v2 = vld [vmem:[%s10902_s9 + $0x37c8] sm:$0xff]  ;;  %4532 = vmatpush.msrb.mxu3 %v2751_v57 }
 0x885   :  { %v2887_v59 = vld [vmem:[%s10902_s9 + $0x2cc8] sm:$0xff]  ;;  %4579 = vmatpush.msrb.mxu0 %v3239_v2 }
 0x886   :  { %v2999_v60 = vld [vmem:[%s10902_s9 + $0x3048] sm:$0xff]  ;;  %4551 = vmatpush.msra.mxu1 %v2887_v59 }
 0x887   :  { %v2743_v61 = vld [vmem:[%s10902_s9 + $0x2848] sm:$0xff]  ;;  %4573 = vmatpush.msra.mxu2 %v2999_v60 }
 0x888   :  { %v3231_v63 = vld [vmem:[%s10902_s9 + $0x3788] sm:$0xff]  ;;  %4533 = vmatpush.msrb.mxu3 %v2743_v61 }
 0x889   :  { %v2879_v0 = vld [vmem:[%s10902_s9 + $0x2c88] sm:$0xff]  ;;  %4580 = vmatpush.msrb.mxu0 %v3231_v63 }
 0x88a   :  { %v2991_v4 = vld [vmem:[%s10902_s9 + $0x3008] sm:$0xff]  ;;  %4552 = vmatpush.msra.mxu1 %v2879_v0 }
 0x88b   :  { %v2735_v5 = vld [vmem:[%s10902_s9 + $0x2808] sm:$0xff]  ;;  %4574 = vmatpush.msra.mxu2 %v2991_v4 }
 0x88c   :  { %v3223_v8 = vld [vmem:[%s10902_s9 + $0x3748] sm:$0xff]  ;;  %4534 = vmatpush.msrb.mxu3 %v2735_v5  ;;  %4575 = vmatmul.f32.vlgmr.msra.gmra.mxu2 %v7296_v33 }
 0x88d   :  { %v3623_v9 = vld [vmem:[%s10902_s9 + $0x43c8] sm:$0xff]  ;;  %4581 = vmatpush.msrb.mxu0 %v3223_v8  ;;  %4535 = vmatmul.f32.vlgmr.msrb.gmra.mxu3 %v8259_v28 }
 0x88e   :  { %v2871_v3 = vld [vmem:[%s10902_s9 + $0x2c48] sm:$0xff]  ;;  %4639 = vmatpush.msrb.mxu2 %v3623_v9 }
 0x88f   :  { %v3215_v10 = vld [vmem:[%s10902_s9 + $0x3708] sm:$0xff]  ;;  %4553 = vmatpush.msra.mxu1 %v2871_v3 }
 0x890   :  { %v3367_v11 = vld [vmem:[%s10902_s9 + $0x3bc8] sm:$0xff]  ;;  %4582 = vmatpush.msrb.mxu0 %v3215_v10 }
 0x891   :  { %v3615_v6 = vld [vmem:[%s10902_s9 + $0x4388] sm:$0xff]  ;;  %4599 = vmatpush.msra.mxu3 %v3367_v11 }
 0x892   :  { %v2863_v13 = vld [vmem:[%s10902_s9 + $0x2c08] sm:$0xff]  ;;  %4640 = vmatpush.msrb.mxu2 %v3615_v6 }
 0x893   :  { %v3207_v16 = vld [vmem:[%s10902_s9 + $0x36c8] sm:$0xff]  ;;  %4554 = vmatpush.msra.mxu1 %v2863_v13 }
 0x894   :  { %v3359_v18 = vld [vmem:[%s10902_s9 + $0x3b88] sm:$0xff]  ;;  %4583 = vmatpush.msrb.mxu0 %v3207_v16  ;;  %4555 = vmatmul.f32.vlgmr.msra.gmra.mxu1 %v8255_v22 }
 0x895   :  { %v3495_v43 = vld [vmem:[%s10902_s9 + $0x3fc8] sm:$0xff]  ;;  %4600 = vmatpush.msra.mxu3 %v3359_v18 }
 0x896   :  { %v3607_v25 = vld [vmem:[%s10902_s9 + $0x4348] sm:$0xff]  ;;  %4619 = vmatpush.msrb.mxu1 %v3495_v43 }
 0x897   :  { %v3199_v26 = vld [vmem:[%s10902_s9 + $0x3688] sm:$0xff]  ;;  %4641 = vmatpush.msrb.mxu2 %v3607_v25 }
 0x898   :  { %v3351_v29 = vld [vmem:[%s10902_s9 + $0x3b48] sm:$0xff]  ;;  %4584 = vmatpush.msrb.mxu0 %v3199_v26 }
 0x899   :  { %v3487_v30 = vld [vmem:[%s10902_s9 + $0x3f88] sm:$0xff]  ;;  %4601 = vmatpush.msra.mxu3 %v3351_v29 }
 0x89a   :  { %v3599_v31 = vld [vmem:[%s10902_s9 + $0x4308] sm:$0xff]  ;;  %4620 = vmatpush.msrb.mxu1 %v3487_v30 }
 0x89b   :  { %v3191_v32 = vld [vmem:[%s10902_s9 + $0x3648] sm:$0xff]  ;;  %4642 = vmatpush.msrb.mxu2 %v3599_v31 }
 0x89c   :  { %v3343_v34 = vld [vmem:[%s10902_s9 + $0x3b08] sm:$0xff]  ;;  %4585 = vmatpush.msrb.mxu0 %v3191_v32  ;;  %v1704_v32 = vld [vmem:[%s10902_s9 + $0x7d0] sm:$0xff] }
 0x89d   :  { %v3479_v35 = vld [vmem:[%s10902_s9 + $0x3f48] sm:$0xff]  ;;  %4602 = vmatpush.msra.mxu3 %v3343_v34 }
 0x89e   :  { %v3591_v36 = vld [vmem:[%s10902_s9 + $0x42c8] sm:$0xff]  ;;  %4621 = vmatpush.msrb.mxu1 %v3479_v35 }
 0x89f   :  { %v3183_v37 = vld [vmem:[%s10902_s9 + $0x3608] sm:$0xff]  ;;  %4643 = vmatpush.msrb.mxu2 %v3591_v36  ;;  %v1696_v36 = vld [vmem:[%s10902_s9 + $0x790] sm:$0xff] }
 0x8a0   :  { %v3335_v41 = vld [vmem:[%s10902_s9 + $0x3ac8] sm:$0xff]  ;;  %4586 = vmatpush.msrb.mxu0 %v3183_v37 }
 0x8a1   :  { %v3471_v38 = vld [vmem:[%s10902_s9 + $0x3f08] sm:$0xff]  ;;  %4603 = vmatpush.msra.mxu3 %v3335_v41  ;;  %v7298_v41 = vld.sshfl [vmem:[#allocation1 + $0x30] sm:$0xff pattern:$0x73625140] }
 0x8a2   :  { %v3583_v12 = vld [vmem:[%s10902_s9 + $0x4288] sm:$0xff]  ;;  %4622 = vmatpush.msrb.mxu1 %v3471_v38 }
 0x8a3   :  { %v3175_v39 = vld [vmem:[%s10902_s9 + $0x35c8] sm:$0xff]  ;;  %4644 = vmatpush.msrb.mxu2 %v3583_v12 }
 0x8a4   :  { %v3327_v40 = vld [vmem:[%s10902_s9 + $0x3a88] sm:$0xff]  ;;  %4587 = vmatpush.msrb.mxu0 %v3175_v39  ;;  %v1576_v39 = vld [vmem:[%s10902_s9 + $0x3d0] sm:$0xff] }
 0x8a5   :  { %v3463_v15 = vld [vmem:[%s10902_s9 + $0x3ec8] sm:$0xff]  ;;  %4604 = vmatpush.msra.mxu3 %v3327_v40  ;;  %v1688_v40 = vld [vmem:[%s10902_s9 + $0x750] sm:$0xff] }
 0x8a6   :  { %v3575_v45 = vld [vmem:[%s10902_s9 + $0x4248] sm:$0xff]  ;;  %4623 = vmatpush.msrb.mxu1 %v3463_v15 }
 0x8a7   :  { %v3167_v46 = vld [vmem:[%s10902_s9 + $0x3588] sm:$0xff]  ;;  %4645 = vmatpush.msrb.mxu2 %v3575_v45 }
 0x8a8   :  { %v3319_v44 = vld [vmem:[%s10902_s9 + $0x3a48] sm:$0xff]  ;;  %4588 = vmatpush.msrb.mxu0 %v3167_v46  ;;  %v1568_v46 = vld [vmem:[%s10902_s9 + $0x390] sm:$0xff] }
 0x8a9   :  { %v3455_v47 = vld [vmem:[%s10902_s9 + $0x3e88] sm:$0xff]  ;;  %4605 = vmatpush.msra.mxu3 %v3319_v44  ;;  %v1680_v44 = vld [vmem:[%s10902_s9 + $0x710] sm:$0xff] }
 0x8aa   :  { %v3567_v48 = vld [vmem:[%s10902_s9 + $0x4208] sm:$0xff]  ;;  %4624 = vmatpush.msrb.mxu1 %v3455_v47 }
 0x8ab   :  { %v3159_v49 = vld [vmem:[%s10902_s9 + $0x3548] sm:$0xff]  ;;  %4646 = vmatpush.msrb.mxu2 %v3567_v48  ;;  %v7299_v48 = vld.sshfl [vmem:[#allocation1] sm:$0xff pattern:$0x73625140] }
 0x8ac   :  { %v3311_v17 = vld [vmem:[%s10902_s9 + $0x3a08] sm:$0xff]  ;;  %4589 = vmatpush.msrb.mxu0 %v3159_v49 }
 0x8ad   :  { %v3447_v50 = vld [vmem:[%s10902_s9 + $0x3e48] sm:$0xff]  ;;  %4606 = vmatpush.msra.mxu3 %v3311_v17  ;;  %v1560_v17 = vld [vmem:[%s10902_s9 + $0x350] sm:$0xff] }
 0x8ae   :  { %v3559_v51 = vld [vmem:[%s10902_s9 + $0x41c8] sm:$0xff]  ;;  %4625 = vmatpush.msrb.mxu1 %v3447_v50  ;;  %v1672_v50 = vld [vmem:[%s10902_s9 + $0x6d0] sm:$0xff] }
 0x8af   :  { %v3151_v52 = vld [vmem:[%s10902_s9 + $0x3508] sm:$0xff]  ;;  %4647 = vmatpush.msrb.mxu2 %v3559_v51 }
 0x8b0   :  { %v3303_v53 = vld [vmem:[%s10902_s9 + $0x39c8] sm:$0xff]  ;;  %4590 = vmatpush.msrb.mxu0 %v3151_v52 }
 0x8b1   :  { %v3439_v42 = vld [vmem:[%s10902_s9 + $0x3e08] sm:$0xff]  ;;  %4607 = vmatpush.msra.mxu3 %v3303_v53  ;;  %v1552_v53 = vld [vmem:[%s10902_s9 + $0x310] sm:$0xff] }
 0x8b2   :  { %v3551_v21 = vld [vmem:[%s10902_s9 + $0x4188] sm:$0xff]  ;;  %4626 = vmatpush.msrb.mxu1 %v3439_v42  ;;  %v1664_v42 = vld [vmem:[%s10902_s9 + $0x690] sm:$0xff] }
 0x8b3   :  { %v3143_v55 = vld [vmem:[%s10902_s9 + $0x34c8] sm:$0xff]  ;;  %4648 = vmatpush.msrb.mxu2 %v3551_v21  ;;  %v7300_v21 = vld.sshfl [vmem:[#allocation1 + $0x38] sm:$0xff pattern:$0x73625140] }
 0x8b4   :  { %v3295_v1 = vld [vmem:[%s10902_s9 + $0x3988] sm:$0xff]  ;;  %4591 = vmatpush.msrb.mxu0 %v3143_v55 }
 0x8b5   :  { %v3431_v56 = vld [vmem:[%s10902_s9 + $0x3dc8] sm:$0xff]  ;;  %4608 = vmatpush.msra.mxu3 %v3295_v1 }
 0x8b6   :  { %v3543_v57 = vld [vmem:[%s10902_s9 + $0x4148] sm:$0xff]  ;;  %4627 = vmatpush.msrb.mxu1 %v3431_v56  ;;  %v1544_v56 = vld [vmem:[%s10902_s9 + $0x2d0] sm:$0xff] }
 0x8b7   :  { %v3135_v2 = vld [vmem:[%s10902_s9 + $0x3488] sm:$0xff]  ;;  %4649 = vmatpush.msrb.mxu2 %v3543_v57  ;;  %v1656_v57 = vld [vmem:[%s10902_s9 + $0x650] sm:$0xff] }
 0x8b8   :  { %v3287_v59 = vld [vmem:[%s10902_s9 + $0x3948] sm:$0xff]  ;;  %4592 = vmatpush.msrb.mxu0 %v3135_v2 }
 0x8b9   :  { %v3423_v60 = vld [vmem:[%s10902_s9 + $0x3d88] sm:$0xff]  ;;  %4609 = vmatpush.msra.mxu3 %v3287_v59 }
 0x8ba   :  { %v3535_v61 = vld [vmem:[%s10902_s9 + $0x4108] sm:$0xff]  ;;  %4628 = vmatpush.msrb.mxu1 %v3423_v60  ;;  %v1536_v60 = vld [vmem:[%s10902_s9 + $0x290] sm:$0xff] }
 0x8bb   :  { %v3127_v63 = vld [vmem:[%s10902_s9 + $0x3448] sm:$0xff]  ;;  %4650 = vmatpush.msrb.mxu2 %v3535_v61  ;;  %v1648_v61 = vld [vmem:[%s10902_s9 + $0x610] sm:$0xff] }
 0x8bc   :  { %v3279_v0 = vld [vmem:[%s10902_s9 + $0x3908] sm:$0xff]  ;;  %4593 = vmatpush.msrb.mxu0 %v3127_v63 }
 0x8bd   :  { %v3415_v4 = vld [vmem:[%s10902_s9 + $0x3d48] sm:$0xff]  ;;  %4610 = vmatpush.msra.mxu3 %v3279_v0 }
 0x8be   :  { %v3527_v5 = vld [vmem:[%s10902_s9 + $0x40c8] sm:$0xff]  ;;  %4629 = vmatpush.msrb.mxu1 %v3415_v4  ;;  %v1528_v4 = vld [vmem:[%s10902_s9 + $0x250] sm:$0xff] }
 0x8bf   :  { %v3119_v8 = vld [vmem:[%s10902_s9 + $0x3408] sm:$0xff]  ;;  %4651 = vmatpush.msrb.mxu2 %v3527_v5  ;;  %v1640_v5 = vld [vmem:[%s10902_s9 + $0x5d0] sm:$0xff] }
 0x8c0   :  { %v3271_v9 = vld [vmem:[%s10902_s9 + $0x38c8] sm:$0xff]  ;;  %4594 = vmatpush.msrb.mxu0 %v3119_v8 }
 0x8c1   :  { %v3407_v3 = vld [vmem:[%s10902_s9 + $0x3d08] sm:$0xff]  ;;  %4611 = vmatpush.msra.mxu3 %v3271_v9 }
 0x8c2   :  { %v3519_v10 = vld [vmem:[%s10902_s9 + $0x4088] sm:$0xff]  ;;  %4630 = vmatpush.msrb.mxu1 %v3407_v3  ;;  %v1520_v3 = vld [vmem:[%s10902_s9 + $0x210] sm:$0xff] }
 0x8c3   :  { %v3263_v11 = vld [vmem:[%s10902_s9 + $0x3888] sm:$0xff]  ;;  %4652 = vmatpush.msrb.mxu2 %v3519_v10  ;;  %v1632_v10 = vld [vmem:[%s10902_s9 + $0x590] sm:$0xff] }
 0x8c4   :  { %v3751_v6 = vld [vmem:[%s10902_s9 + $0x47c8] sm:$0xff]  ;;  %4612 = vmatpush.msra.mxu3 %v3263_v11 }
 0x8c5   :  { %v3399_v13 = vld [vmem:[%s10902_s9 + $0x3cc8] sm:$0xff]  ;;  %4659 = vmatpush.msra.mxu0 %v3751_v6 }
 0x8c6   :  { %v3511_v16 = vld [vmem:[%s10902_s9 + $0x4048] sm:$0xff]  ;;  %4631 = vmatpush.msrb.mxu1 %v3399_v13  ;;  %v1512_v13 = vld [vmem:[%s10902_s9 + $0x1d0] sm:$0xff] }
 0x8c7   :  { %v3255_v18 = vld [vmem:[%s10902_s9 + $0x3848] sm:$0xff]  ;;  %4653 = vmatpush.msrb.mxu2 %v3511_v16  ;;  %v1624_v16 = vld [vmem:[%s10902_s9 + $0x550] sm:$0xff] }
 0x8c8   :  { %v7297_v43 = vld.sshfl [vmem:[#allocation1 + $0x28] sm:$0xff pattern:$0x73625140]  ;;  %4613 = vmatpush.msra.mxu3 %v3255_v18 }
 0x8c9   :  { %4595 = vmatmul.f32.vlgmr.msrb.gmra.mxu0 %v7297_v43  ;;  %v3743_v25 = vld [vmem:[%s10902_s9 + $0x4788] sm:$0xff] }
 0x8ca   :  { %v3391_v26 = vld [vmem:[%s10902_s9 + $0x3c88] sm:$0xff]  ;;  %4660 = vmatpush.msra.mxu0 %v3743_v25  ;;  %v1504_v25 = vld [vmem:[%s10902_s9 + $0x190] sm:$0xff] }
 0x8cb   :  { %v3503_v29 = vld [vmem:[%s10902_s9 + $0x4008] sm:$0xff]  ;;  %4632 = vmatpush.msrb.mxu1 %v3391_v26  ;;  %v1616_v26 = vld [vmem:[%s10902_s9 + $0x510] sm:$0xff] }
 0x8cc   :  { %v3247_v30 = vld [vmem:[%s10902_s9 + $0x3808] sm:$0xff]  ;;  %4654 = vmatpush.msrb.mxu2 %v3503_v29 }
 0x8cd   :  { %v3735_v31 = vld [vmem:[%s10902_s9 + $0x4748] sm:$0xff]  ;;  %4614 = vmatpush.msra.mxu3 %v3247_v30  ;;  %4655 = vmatmul.f32.vlgmr.msrb.gmra.mxu2 %v7299_v48  ;;  %v2216_v48 = vld [vmem:[%s10902_s9 + $0x17d0] sm:$0xff] }
 0x8ce   :  { %v3383_v33 = vld [vmem:[%s10902_s9 + $0x3c48] sm:$0xff]  ;;  %4661 = vmatpush.msra.mxu0 %v3735_v31  ;;  %4719 = vmatpush.msra.mxu2 %v1704_v32  ;;  %v1496_v31 = vld [vmem:[%s10902_s9 + $0x150] sm:$0xff] }
 0x8cf   :  { %v3727_v34 = vld [vmem:[%s10902_s9 + $0x4708] sm:$0xff]  ;;  %4633 = vmatpush.msrb.mxu1 %v3383_v33  ;;  %4615 = vmatmul.f32.vlgmr.msra.gmra.mxu3 %v7298_v41  ;;  %v1608_v32 = vld [vmem:[%s10902_s9 + $0x4d0] sm:$0xff] }
 0x8d0   :  { %v3863_v35 = vld [vmem:[%s10902_s9 + $0x4b48] sm:$0xff]  ;;  %4662 = vmatpush.msra.mxu0 %v3727_v34  ;;  %4720 = vmatpush.msra.mxu2 %v1696_v36  ;;  %v1600_v36 = vld [vmem:[%s10902_s9 + $0x490] sm:$0xff] }
 0x8d1   :  { %v3375_v37 = vld [vmem:[%s10902_s9 + $0x3c08] sm:$0xff]  ;;  %4681 = vmatpush.msrb.mxu3 %v3863_v35  ;;  %v1488_v35 = vld [vmem:[%s10902_s9 + $0x110] sm:$0xff] }
 0x8d2   :  { %v3719_v38 = vld [vmem:[%s10902_s9 + $0x46c8] sm:$0xff]  ;;  %4634 = vmatpush.msrb.mxu1 %v3375_v37  ;;  %4721 = vmatpush.msra.mxu2 %v1688_v40  ;;  %v1480_v41 = vld [vmem:[%s10902_s9 + $0xd0] sm:$0xff] }
 0x8d3   :  { %v3855_v12 = vld [vmem:[%s10902_s9 + $0x4b08] sm:$0xff]  ;;  %4663 = vmatpush.msra.mxu0 %v3719_v38  ;;  %4635 = vmatmul.f32.vlgmr.msrb.gmra.mxu1 %v7300_v21  ;;  %v1592_v38 = vld [vmem:[%s10902_s9 + $0x450] sm:$0xff] }
 0x8d4   :  { %v3711_v15 = vld [vmem:[%s10902_s9 + $0x4688] sm:$0xff]  ;;  %4682 = vmatpush.msrb.mxu3 %v3855_v12  ;;  %4699 = vmatpush.msra.mxu1 %v1576_v39  ;;  %v1960_v12 = vld [vmem:[%s10902_s9 + $0xfd0] sm:$0xff] }
 0x8d5   :  { %v3847_v45 = vld [vmem:[%s10902_s9 + $0x4ac8] sm:$0xff]  ;;  %4664 = vmatpush.msra.mxu0 %v3711_v15  ;;  %4722 = vmatpush.msra.mxu2 %v1680_v44  ;;  %v1832_v40 = vld [vmem:[%s10902_s9 + $0xbd0] sm:$0xff] }
 0x8d6   :  { %v3703_v47 = vld [vmem:[%s10902_s9 + $0x4648] sm:$0xff]  ;;  %4683 = vmatpush.msrb.mxu3 %v3847_v45  ;;  %4700 = vmatpush.msra.mxu1 %v1568_v46  ;;  %v1472_v15 = vld [vmem:[%s10902_s9 + $0x90] sm:$0xff] }
 0x8d7   :  { %v3839_v49 = vld [vmem:[%s10902_s9 + $0x4a88] sm:$0xff]  ;;  %4665 = vmatpush.msra.mxu0 %v3703_v47  ;;  %4723 = vmatpush.msra.mxu2 %v1672_v50  ;;  %v1584_v45 = vld [vmem:[%s10902_s9 + $0x410] sm:$0xff] }
 0x8d8   :  { %v3695_v51 = vld [vmem:[%s10902_s9 + $0x4608] sm:$0xff]  ;;  %4684 = vmatpush.msrb.mxu3 %v3839_v49  ;;  %4701 = vmatpush.msra.mxu1 %v1560_v17  ;;  %v1952_v46 = vld [vmem:[%s10902_s9 + $0xf90] sm:$0xff] }
 0x8d9   :  { %v3831_v52 = vld [vmem:[%s10902_s9 + $0x4a48] sm:$0xff]  ;;  %4666 = vmatpush.msra.mxu0 %v3695_v51  ;;  %4724 = vmatpush.msra.mxu2 %v1664_v42  ;;  %v7302_v44 = vld.sshfl [vmem:[#allocation1 + $0x10] sm:$0xff pattern:$0x73625140] }
 0x8da   :  { %v3687_v55 = vld [vmem:[%s10902_s9 + $0x45c8] sm:$0xff]  ;;  %4685 = vmatpush.msrb.mxu3 %v3831_v52  ;;  %4702 = vmatpush.msra.mxu1 %v1552_v53  ;;  %v1824_v47 = vld [vmem:[%s10902_s9 + $0xb90] sm:$0xff] }
 0x8db   :  { %v3823_v1 = vld [vmem:[%s10902_s9 + $0x4a08] sm:$0xff]  ;;  %4667 = vmatpush.msra.mxu0 %v3687_v55  ;;  %4725 = vmatpush.msra.mxu2 %v1656_v57  ;;  %v1464_v49 = vld [vmem:[%s10902_s9 + $0x50] sm:$0xff] }
 0x8dc   :  { %v3679_v2 = vld [vmem:[%s10902_s9 + $0x4588] sm:$0xff]  ;;  %4686 = vmatpush.msrb.mxu3 %v3823_v1  ;;  %4703 = vmatpush.msra.mxu1 %v1544_v56  ;;  %v1944_v17 = vld [vmem:[%s10902_s9 + $0xf50] sm:$0xff] }
 0x8dd   :  { %v3815_v59 = vld [vmem:[%s10902_s9 + $0x49c8] sm:$0xff]  ;;  %4668 = vmatpush.msra.mxu0 %v3679_v2  ;;  %4726 = vmatpush.msra.mxu2 %v1648_v61  ;;  %v1816_v50 = vld [vmem:[%s10902_s9 + $0xb50] sm:$0xff] }
 0x8de   :  { %v3671_v63 = vld [vmem:[%s10902_s9 + $0x4548] sm:$0xff]  ;;  %4687 = vmatpush.msrb.mxu3 %v3815_v59  ;;  %4704 = vmatpush.msra.mxu1 %v1536_v60  ;;  %v2208_v51 = vld [vmem:[%s10902_s9 + $0x1790] sm:$0xff] }
 0x8df   :  { %v3807_v0 = vld [vmem:[%s10902_s9 + $0x4988] sm:$0xff]  ;;  %4669 = vmatpush.msra.mxu0 %v3671_v63  ;;  %4727 = vmatpush.msra.mxu2 %v1640_v5  ;;  %v1456_v52 = vld [vmem:[%s10902_s9 + $0x10] sm:$0xff] }
 0x8e0   :  { %v3663_v8 = vld [vmem:[%s10902_s9 + $0x4508] sm:$0xff]  ;;  %4688 = vmatpush.msrb.mxu3 %v3807_v0  ;;  %4705 = vmatpush.msra.mxu1 %v1528_v4  ;;  %v1936_v53 = vld [vmem:[%s10902_s9 + $0xf10] sm:$0xff] }
 0x8e1   :  { %v3799_v9 = vld [vmem:[%s10902_s9 + $0x4948] sm:$0xff]  ;;  %4670 = vmatpush.msra.mxu0 %v3663_v8  ;;  %4728 = vmatpush.msra.mxu2 %v1632_v10  ;;  %v1808_v42 = vld [vmem:[%s10902_s9 + $0xb10] sm:$0xff] }
 0x8e2   :  { %v3655_v11 = vld [vmem:[%s10902_s9 + $0x44c8] sm:$0xff]  ;;  %4689 = vmatpush.msrb.mxu3 %v3799_v9  ;;  %4706 = vmatpush.msra.mxu1 %v1520_v3  ;;  %v2088_v21 = vld [vmem:[%s10902_s9 + $0x13d0] sm:$0xff] }
 0x8e3   :  { %v3791_v6 = vld [vmem:[%s10902_s9 + $0x4908] sm:$0xff]  ;;  %4671 = vmatpush.msra.mxu0 %v3655_v11  ;;  %4729 = vmatpush.msra.mxu2 %v1624_v16  ;;  %v2200_v55 = vld [vmem:[%s10902_s9 + $0x1750] sm:$0xff] }
 0x8e4   :  { %v3647_v18 = vld [vmem:[%s10902_s9 + $0x4488] sm:$0xff]  ;;  %4690 = vmatpush.msrb.mxu3 %v3791_v6  ;;  %4707 = vmatpush.msra.mxu1 %v1512_v13  ;;  %v1928_v1 = vld [vmem:[%s10902_s9 + $0xed0] sm:$0xff] }
 0x8e5   :  { %v3783_v43 = vld [vmem:[%s10902_s9 + $0x48c8] sm:$0xff]  ;;  %4672 = vmatpush.msra.mxu0 %v3647_v18  ;;  %4730 = vmatpush.msra.mxu2 %v1616_v26  ;;  %v1800_v56 = vld [vmem:[%s10902_s9 + $0xad0] sm:$0xff] }
 0x8e6   :  { %v3639_v29 = vld [vmem:[%s10902_s9 + $0x4448] sm:$0xff]  ;;  %4691 = vmatpush.msrb.mxu3 %v3783_v43  ;;  %4708 = vmatpush.msra.mxu1 %v1504_v25  ;;  %v2080_v57 = vld [vmem:[%s10902_s9 + $0x1390] sm:$0xff] }
 0x8e7   :  { %v3775_v30 = vld [vmem:[%s10902_s9 + $0x4888] sm:$0xff]  ;;  %4673 = vmatpush.msra.mxu0 %v3639_v29  ;;  %4731 = vmatpush.msra.mxu2 %v1608_v32  ;;  %v2192_v2 = vld [vmem:[%s10902_s9 + $0x1710] sm:$0xff] }
 0x8e8   :  { %v3631_v33 = vld [vmem:[%s10902_s9 + $0x4408] sm:$0xff]  ;;  %4692 = vmatpush.msrb.mxu3 %v3775_v30  ;;  %4709 = vmatpush.msra.mxu1 %v1496_v31  ;;  %v1920_v59 = vld [vmem:[%s10902_s9 + $0xe90] sm:$0xff] }
 0x8e9   :  { %v3767_v34 = vld [vmem:[%s10902_s9 + $0x4848] sm:$0xff]  ;;  %4674 = vmatpush.msra.mxu0 %v3631_v33  ;;  %4732 = vmatpush.msra.mxu2 %v1600_v36  ;;  %v1792_v60 = vld [vmem:[%s10902_s9 + $0xa90] sm:$0xff] }
 0x8ea   :  { %v3759_v37 = vld [vmem:[%s10902_s9 + $0x4808] sm:$0xff]  ;;  %4693 = vmatpush.msrb.mxu3 %v3767_v34  ;;  %4710 = vmatpush.msra.mxu1 %v1488_v35  ;;  %v2072_v61 = vld [vmem:[%s10902_s9 + $0x1350] sm:$0xff] }
 0x8eb   :  { %v7301_v39 = vld.sshfl [vmem:[#allocation1 + $0x8] sm:$0xff pattern:$0x73625140]  ;;  %4733 = vmatpush.msra.mxu2 %v1592_v38  ;;  %4759 = vmatpush.msrb.mxu0 %v1960_v12  ;;  %v2184_v63 = vld [vmem:[%s10902_s9 + $0x16d0] sm:$0xff] }
 0x8ec   :  { %4675 = vmatmul.f32.vlgmr.msra.gmra.mxu0 %v7301_v39  ;;  %4694 = vmatpush.msrb.mxu3 %v3759_v37  ;;  %v1912_v0 = vld [vmem:[%s10902_s9 + $0xe50] sm:$0xff] }
 0x8ed   :  { %4711 = vmatpush.msra.mxu1 %v1480_v41  ;;  %7176 = vmatmul.msk.f32.vlgmr.msrb.gmra.mxu3 %vm3936_vm9, %v7302_v44  ;;  %v1784_v4 = vld [vmem:[%s10902_s9 + $0xa50] sm:$0xff] }
 0x8ee   :  { %4739 = vmatpush.msra.mxu3 %v1832_v40  ;;  %4734 = vmatpush.msra.mxu2 %v1584_v45  ;;  %v2064_v5 = vld [vmem:[%s10902_s9 + $0x1310] sm:$0xff] }
 0x8ef   :  { %4712 = vmatpush.msra.mxu1 %v1472_v15  ;;  %4760 = vmatpush.msrb.mxu0 %v1952_v46  ;;  %v2176_v8 = vld [vmem:[%s10902_s9 + $0x1690] sm:$0xff] }
 0x8f0   :  { %4740 = vmatpush.msra.mxu3 %v1824_v47  ;;  %4799 = vmatpush.msrb.mxu2 %v2216_v48  ;;  %v1904_v9 = vld [vmem:[%s10902_s9 + $0xe10] sm:$0xff] }
 0x8f1   :  { %4713 = vmatpush.msra.mxu1 %v1464_v49  ;;  %4761 = vmatpush.msrb.mxu0 %v1944_v17  ;;  %v1776_v3 = vld [vmem:[%s10902_s9 + $0xa10] sm:$0xff] }
 0x8f2   :  { %4741 = vmatpush.msra.mxu3 %v1816_v50  ;;  %4800 = vmatpush.msrb.mxu2 %v2208_v51  ;;  %v2056_v10 = vld [vmem:[%s10902_s9 + $0x12d0] sm:$0xff] }
 0x8f3   :  { %4714 = vmatpush.msra.mxu1 %v1456_v52  ;;  %4762 = vmatpush.msrb.mxu0 %v1936_v53  ;;  %v2168_v11 = vld [vmem:[%s10902_s9 + $0x1650] sm:$0xff] }
 0x8f4   :  { %4742 = vmatpush.msra.mxu3 %v1808_v42  ;;  %4801 = vmatpush.msrb.mxu2 %v2200_v55  ;;  %v1896_v6 = vld [vmem:[%s10902_s9 + $0xdd0] sm:$0xff] }
 0x8f5   :  { %4779 = vmatpush.msrb.mxu1 %v2088_v21  ;;  %4763 = vmatpush.msrb.mxu0 %v1928_v1  ;;  %v1768_v13 = vld [vmem:[%s10902_s9 + $0x9d0] sm:$0xff] }
 0x8f6   :  { %4743 = vmatpush.msra.mxu3 %v1800_v56  ;;  %4802 = vmatpush.msrb.mxu2 %v2192_v2  ;;  %v2048_v16 = vld [vmem:[%s10902_s9 + $0x1290] sm:$0xff] }
 0x8f7   :  { %4780 = vmatpush.msrb.mxu1 %v2080_v57  ;;  %4764 = vmatpush.msrb.mxu0 %v1920_v59  ;;  %v2160_v18 = vld [vmem:[%s10902_s9 + $0x1610] sm:$0xff] }
 0x8f8   :  { %4744 = vmatpush.msra.mxu3 %v1792_v60  ;;  %4803 = vmatpush.msrb.mxu2 %v2184_v63  ;;  %v1888_v43 = vld [vmem:[%s10902_s9 + $0xd90] sm:$0xff] }
 0x8f9   :  { %4781 = vmatpush.msrb.mxu1 %v2072_v61  ;;  %4765 = vmatpush.msrb.mxu0 %v1912_v0  ;;  %v1760_v25 = vld [vmem:[%s10902_s9 + $0x990] sm:$0xff] }
 0x8fa   :  { %4745 = vmatpush.msra.mxu3 %v1784_v4  ;;  %4804 = vmatpush.msrb.mxu2 %v2176_v8  ;;  %v2040_v26 = vld [vmem:[%s10902_s9 + $0x1250] sm:$0xff] }
 0x8fb   :  { %4782 = vmatpush.msrb.mxu1 %v2064_v5  ;;  %4766 = vmatpush.msrb.mxu0 %v1904_v9  ;;  %v2152_v29 = vld [vmem:[%s10902_s9 + $0x15d0] sm:$0xff] }
 0x8fc   :  { %4746 = vmatpush.msra.mxu3 %v1776_v3  ;;  %4805 = vmatpush.msrb.mxu2 %v2168_v11  ;;  %v1880_v30 = vld [vmem:[%s10902_s9 + $0xd50] sm:$0xff] }
 0x8fd   :  { %4783 = vmatpush.msrb.mxu1 %v2056_v10  ;;  %4767 = vmatpush.msrb.mxu0 %v1896_v6  ;;  %v1752_v31 = vld [vmem:[%s10902_s9 + $0x950] sm:$0xff] }
 0x8fe   :  { %4747 = vmatpush.msra.mxu3 %v1768_v13  ;;  %4806 = vmatpush.msrb.mxu2 %v2160_v18  ;;  %v2032_v32 = vld [vmem:[%s10902_s9 + $0x1210] sm:$0xff] }
 0x8ff   :  { %4784 = vmatpush.msrb.mxu1 %v2048_v16  ;;  %4768 = vmatpush.msrb.mxu0 %v1888_v43  ;;  %v2144_v33 = vld [vmem:[%s10902_s9 + $0x1590] sm:$0xff] }
 0x900   :  { %4748 = vmatpush.msra.mxu3 %v1760_v25  ;;  %v1872_v34 = vld [vmem:[%s10902_s9 + $0xd10] sm:$0xff]  ;;  %4807 = vmatpush.msrb.mxu2 %v2152_v29 }
 0x901   :  { %4785 = vmatpush.msrb.mxu1 %v2040_v26  ;;  %v1744_v35 = vld [vmem:[%s10902_s9 + $0x910] sm:$0xff]  ;;  %4769 = vmatpush.msrb.mxu0 %v1880_v30 }
 0x902   :  { %v2024_v36 = vld [vmem:[%s10902_s9 + $0x11d0] sm:$0xff]  ;;  %4749 = vmatpush.msra.mxu3 %v1752_v31  ;;  %4808 = vmatpush.msrb.mxu2 %v2144_v33 }
 0x903   :  { %4786 = vmatpush.msrb.mxu1 %v2032_v32  ;;  %v2136_v37 = vld [vmem:[%s10902_s9 + $0x1550] sm:$0xff]  ;;  %4770 = vmatpush.msrb.mxu0 %v1872_v34 }
 0x904   :  { %v1864_v41 = vld [vmem:[%s10902_s9 + $0xcd0] sm:$0xff]  ;;  %4750 = vmatpush.msra.mxu3 %v1744_v35  ;;  %4809 = vmatpush.msrb.mxu2 %v2136_v37 }
 0x905   :  { %v1736_v38 = vld [vmem:[%s10902_s9 + $0x8d0] sm:$0xff]  ;;  %4787 = vmatpush.msrb.mxu1 %v2024_v36  ;;  %4771 = vmatpush.msrb.mxu0 %v1864_v41 }
 0x906   :  { %v2016_v12 = vld [vmem:[%s10902_s9 + $0x1190] sm:$0xff]  ;;  %4751 = vmatpush.msra.mxu3 %v1736_v38  ;;  %4735 = vmatmul.f32.vlgmr.msra.gmra.mxu2 %v8162_v62 }
 0x907   :  { %v2128_v39 = vld [vmem:[%s10902_s9 + $0x1510] sm:$0xff]  ;;  %4788 = vmatpush.msrb.mxu1 %v2016_v12 }
 0x908   :  { %v1856_v40 = vld [vmem:[%s10902_s9 + $0xc90] sm:$0xff]  ;;  %4810 = vmatpush.msrb.mxu2 %v2128_v39  ;;  %4715 = vmatmul.f32.vlgmr.msra.gmra.mxu1 %v8155_v58 }
 0x909   :  { %v1728_v15 = vld [vmem:[%s10902_s9 + $0x890] sm:$0xff]  ;;  %4772 = vmatpush.msrb.mxu0 %v1856_v40 }
 0x90a   :  { %v2008_v45 = vld [vmem:[%s10902_s9 + $0x1150] sm:$0xff]  ;;  %4752 = vmatpush.msra.mxu3 %v1728_v15 }
 0x90b   :  { %v2120_v46 = vld [vmem:[%s10902_s9 + $0x14d0] sm:$0xff]  ;;  %4789 = vmatpush.msrb.mxu1 %v2008_v45 }
 0x90c   :  { %v1848_v44 = vld [vmem:[%s10902_s9 + $0xc50] sm:$0xff]  ;;  %4811 = vmatpush.msrb.mxu2 %v2120_v46 }
 0x90d   :  { %v1720_v47 = vld [vmem:[%s10902_s9 + $0x850] sm:$0xff]  ;;  %4773 = vmatpush.msrb.mxu0 %v1848_v44 }
 0x90e   :  { %v2000_v48 = vld [vmem:[%s10902_s9 + $0x1110] sm:$0xff]  ;;  %4753 = vmatpush.msra.mxu3 %v1720_v47 }
 0x90f   :  { %v2112_v49 = vld [vmem:[%s10902_s9 + $0x1490] sm:$0xff]  ;;  %4790 = vmatpush.msrb.mxu1 %v2000_v48 }
 0x910   :  { %v1840_v17 = vld [vmem:[%s10902_s9 + $0xc10] sm:$0xff]  ;;  %4812 = vmatpush.msrb.mxu2 %v2112_v49 }
 0x911   :  { %v1712_v50 = vld [vmem:[%s10902_s9 + $0x810] sm:$0xff]  ;;  %4774 = vmatpush.msrb.mxu0 %v1840_v17 }
 0x912   :  { %v1992_v51 = vld [vmem:[%s10902_s9 + $0x10d0] sm:$0xff]  ;;  %4754 = vmatpush.msra.mxu3 %v1712_v50  ;;  %4775 = vmatmul.f32.vlgmr.msrb.gmra.mxu0 %v8149_v54 }
 0x913   :  { %v2104_v52 = vld [vmem:[%s10902_s9 + $0x1450] sm:$0xff]  ;;  %4791 = vmatpush.msrb.mxu1 %v1992_v51  ;;  %4755 = vmatmul.f32.vlgmr.msra.gmra.mxu3 %v8169_v7 }
 0x914   :  { %v2344_v53 = vld [vmem:[%s10902_s9 + $0x1bd0] sm:$0xff]  ;;  %4813 = vmatpush.msrb.mxu2 %v2104_v52 }
 0x915   :  { %v1984_v42 = vld [vmem:[%s10902_s9 + $0x1090] sm:$0xff]  ;;  %4819 = vmatpush.msrb.mxu3 %v2344_v53 }
 0x916   :  { %v2096_v21 = vld [vmem:[%s10902_s9 + $0x1410] sm:$0xff]  ;;  %4792 = vmatpush.msrb.mxu1 %v1984_v42 }
 0x917   :  { %v2336_v55 = vld [vmem:[%s10902_s9 + $0x1b90] sm:$0xff]  ;;  %4814 = vmatpush.msrb.mxu2 %v2096_v21 }
 0x918   :  { %v2728_v1 = vld [vmem:[%s10902_s9 + $0x27d0] sm:$0xff]  ;;  %4820 = vmatpush.msrb.mxu3 %v2336_v55  ;;  %4815 = vmatmul.f32.vlgmr.msrb.gmra.mxu2 %v8184_v19 }
 0x919   :  { %v1976_v56 = vld [vmem:[%s10902_s9 + $0x1050] sm:$0xff]  ;;  %4879 = vmatpush.msra.mxu2 %v2728_v1 }
 0x91a   :  { %v2472_v57 = vld [vmem:[%s10902_s9 + $0x1fd0] sm:$0xff]  ;;  %4793 = vmatpush.msrb.mxu1 %v1976_v56 }
 0x91b   :  { %v2328_v2 = vld [vmem:[%s10902_s9 + $0x1b50] sm:$0xff]  ;;  %4839 = vmatpush.msra.mxu0 %v2472_v57 }
 0x91c   :  { %v2720_v59 = vld [vmem:[%s10902_s9 + $0x2790] sm:$0xff]  ;;  %4821 = vmatpush.msrb.mxu3 %v2328_v2 }
 0x91d   :  { %v1968_v60 = vld [vmem:[%s10902_s9 + $0x1010] sm:$0xff]  ;;  %4880 = vmatpush.msra.mxu2 %v2720_v59 }
 0x91e   :  { %v2464_v61 = vld [vmem:[%s10902_s9 + $0x1f90] sm:$0xff]  ;;  %4794 = vmatpush.msrb.mxu1 %v1968_v60 }
 0x91f   :  { %v2320_v63 = vld [vmem:[%s10902_s9 + $0x1b10] sm:$0xff]  ;;  %4840 = vmatpush.msra.mxu0 %v2464_v61  ;;  %4795 = vmatmul.f32.vlgmr.msrb.gmra.mxu1 %v8188_v23 }
 0x920   :  { %v2600_v0 = vld [vmem:[%s10902_s9 + $0x23d0] sm:$0xff]  ;;  %4822 = vmatpush.msrb.mxu3 %v2320_v63 }
 0x921   :  { %v2712_v4 = vld [vmem:[%s10902_s9 + $0x2750] sm:$0xff]  ;;  %4859 = vmatpush.msra.mxu1 %v2600_v0 }
 0x922   :  { %v2312_v5 = vld [vmem:[%s10902_s9 + $0x1ad0] sm:$0xff]  ;;  %4881 = vmatpush.msra.mxu2 %v2712_v4 }
 0x923   :  { %v2456_v8 = vld [vmem:[%s10902_s9 + $0x1f50] sm:$0xff]  ;;  %4823 = vmatpush.msrb.mxu3 %v2312_v5 }
 0x924   :  { %v2592_v9 = vld [vmem:[%s10902_s9 + $0x2390] sm:$0xff]  ;;  %4841 = vmatpush.msra.mxu0 %v2456_v8 }
 0x925   :  { %v2704_v3 = vld [vmem:[%s10902_s9 + $0x2710] sm:$0xff]  ;;  %4860 = vmatpush.msra.mxu1 %v2592_v9 }
 0x926   :  { %v2304_v10 = vld [vmem:[%s10902_s9 + $0x1a90] sm:$0xff]  ;;  %4882 = vmatpush.msra.mxu2 %v2704_v3 }
 0x927   :  { %v2448_v11 = vld [vmem:[%s10902_s9 + $0x1f10] sm:$0xff]  ;;  %4824 = vmatpush.msrb.mxu3 %v2304_v10 }
 0x928   :  { %v2584_v6 = vld [vmem:[%s10902_s9 + $0x2350] sm:$0xff]  ;;  %4842 = vmatpush.msra.mxu0 %v2448_v11 }
 0x929   :  { %v2696_v13 = vld [vmem:[%s10902_s9 + $0x26d0] sm:$0xff]  ;;  %4861 = vmatpush.msra.mxu1 %v2584_v6 }
 0x92a   :  { %v2296_v16 = vld [vmem:[%s10902_s9 + $0x1a50] sm:$0xff]  ;;  %4883 = vmatpush.msra.mxu2 %v2696_v13 }
 0x92b   :  { %v2440_v18 = vld [vmem:[%s10902_s9 + $0x1ed0] sm:$0xff]  ;;  %4825 = vmatpush.msrb.mxu3 %v2296_v16 }
 0x92c   :  { %v2576_v43 = vld [vmem:[%s10902_s9 + $0x2310] sm:$0xff]  ;;  %4843 = vmatpush.msra.mxu0 %v2440_v18 }
 0x92d   :  { %v2688_v25 = vld [vmem:[%s10902_s9 + $0x2690] sm:$0xff]  ;;  %4862 = vmatpush.msra.mxu1 %v2576_v43 }
 0x92e   :  { %v2288_v26 = vld [vmem:[%s10902_s9 + $0x1a10] sm:$0xff]  ;;  %4884 = vmatpush.msra.mxu2 %v2688_v25 }
 0x92f   :  { %v2432_v29 = vld [vmem:[%s10902_s9 + $0x1e90] sm:$0xff]  ;;  %4826 = vmatpush.msrb.mxu3 %v2288_v26 }
 0x930   :  { %v2568_v30 = vld [vmem:[%s10902_s9 + $0x22d0] sm:$0xff]  ;;  %4844 = vmatpush.msra.mxu0 %v2432_v29 }
 0x931   :  { %v2680_v31 = vld [vmem:[%s10902_s9 + $0x2650] sm:$0xff]  ;;  %4863 = vmatpush.msra.mxu1 %v2568_v30 }
 0x932   :  { %v2280_v32 = vld [vmem:[%s10902_s9 + $0x19d0] sm:$0xff]  ;;  %4885 = vmatpush.msra.mxu2 %v2680_v31 }
 0x933   :  { %v2424_v33 = vld [vmem:[%s10902_s9 + $0x1e50] sm:$0xff]  ;;  %4827 = vmatpush.msrb.mxu3 %v2280_v32 }
 0x934   :  { %v2560_v34 = vld [vmem:[%s10902_s9 + $0x2290] sm:$0xff]  ;;  %4845 = vmatpush.msra.mxu0 %v2424_v33 }
 0x935   :  { %v2672_v35 = vld [vmem:[%s10902_s9 + $0x2610] sm:$0xff]  ;;  %4864 = vmatpush.msra.mxu1 %v2560_v34 }
 0x936   :  { %v2272_v36 = vld [vmem:[%s10902_s9 + $0x1990] sm:$0xff]  ;;  %4886 = vmatpush.msra.mxu2 %v2672_v35 }
 0x937   :  { %v2416_v37 = vld [vmem:[%s10902_s9 + $0x1e10] sm:$0xff]  ;;  %4828 = vmatpush.msrb.mxu3 %v2272_v36 }
 0x938   :  { %v2552_v41 = vld [vmem:[%s10902_s9 + $0x2250] sm:$0xff]  ;;  %4846 = vmatpush.msra.mxu0 %v2416_v37 }
 0x939   :  { %v2664_v38 = vld [vmem:[%s10902_s9 + $0x25d0] sm:$0xff]  ;;  %4865 = vmatpush.msra.mxu1 %v2552_v41 }
 0x93a   :  { %v2264_v12 = vld [vmem:[%s10902_s9 + $0x1950] sm:$0xff]  ;;  %4887 = vmatpush.msra.mxu2 %v2664_v38 }
 0x93b   :  { %v2408_v39 = vld [vmem:[%s10902_s9 + $0x1dd0] sm:$0xff]  ;;  %4829 = vmatpush.msrb.mxu3 %v2264_v12 }
 0x93c   :  { %v2544_v40 = vld [vmem:[%s10902_s9 + $0x2210] sm:$0xff]  ;;  %4847 = vmatpush.msra.mxu0 %v2408_v39 }
 0x93d   :  { %v2656_v15 = vld [vmem:[%s10902_s9 + $0x2590] sm:$0xff]  ;;  %4866 = vmatpush.msra.mxu1 %v2544_v40 }
 0x93e   :  { %v2256_v45 = vld [vmem:[%s10902_s9 + $0x1910] sm:$0xff]  ;;  %4888 = vmatpush.msra.mxu2 %v2656_v15 }
 0x93f   :  { %v2400_v46 = vld [vmem:[%s10902_s9 + $0x1d90] sm:$0xff]  ;;  %4830 = vmatpush.msrb.mxu3 %v2256_v45 }
 0x940   :  { %v2536_v44 = vld [vmem:[%s10902_s9 + $0x21d0] sm:$0xff]  ;;  %4848 = vmatpush.msra.mxu0 %v2400_v46 }
 0x941   :  { %v2648_v47 = vld [vmem:[%s10902_s9 + $0x2550] sm:$0xff]  ;;  %4867 = vmatpush.msra.mxu1 %v2536_v44 }
 0x942   :  { %v2248_v48 = vld [vmem:[%s10902_s9 + $0x18d0] sm:$0xff]  ;;  %4889 = vmatpush.msra.mxu2 %v2648_v47 }
 0x943   :  { %v2392_v49 = vld [vmem:[%s10902_s9 + $0x1d50] sm:$0xff]  ;;  %4831 = vmatpush.msrb.mxu3 %v2248_v48 }
 0x944   :  { %v2528_v17 = vld [vmem:[%s10902_s9 + $0x2190] sm:$0xff]  ;;  %4849 = vmatpush.msra.mxu0 %v2392_v49 }
 0x945   :  { %v2640_v50 = vld [vmem:[%s10902_s9 + $0x2510] sm:$0xff]  ;;  %4868 = vmatpush.msra.mxu1 %v2528_v17 }
 0x946   :  { %v2240_v51 = vld [vmem:[%s10902_s9 + $0x1890] sm:$0xff]  ;;  %4890 = vmatpush.msra.mxu2 %v2640_v50 }
 0x947   :  { %v2384_v52 = vld [vmem:[%s10902_s9 + $0x1d10] sm:$0xff]  ;;  %4832 = vmatpush.msrb.mxu3 %v2240_v51 }
 0x948   :  { %v2520_v53 = vld [vmem:[%s10902_s9 + $0x2150] sm:$0xff]  ;;  %4850 = vmatpush.msra.mxu0 %v2384_v52 }
 0x949   :  { %v2632_v42 = vld [vmem:[%s10902_s9 + $0x24d0] sm:$0xff]  ;;  %4869 = vmatpush.msra.mxu1 %v2520_v53 }
 0x94a   :  { %v2232_v21 = vld [vmem:[%s10902_s9 + $0x1850] sm:$0xff]  ;;  %4891 = vmatpush.msra.mxu2 %v2632_v42 }
 0x94b   :  { %v2376_v55 = vld [vmem:[%s10902_s9 + $0x1cd0] sm:$0xff]  ;;  %4833 = vmatpush.msrb.mxu3 %v2232_v21 }
 0x94c   :  { %v2512_v1 = vld [vmem:[%s10902_s9 + $0x2110] sm:$0xff]  ;;  %4851 = vmatpush.msra.mxu0 %v2376_v55 }
 0x94d   :  { %v2624_v56 = vld [vmem:[%s10902_s9 + $0x2490] sm:$0xff]  ;;  %4870 = vmatpush.msra.mxu1 %v2512_v1 }
 0x94e   :  { %v2224_v57 = vld [vmem:[%s10902_s9 + $0x1810] sm:$0xff]  ;;  %4892 = vmatpush.msra.mxu2 %v2624_v56 }
 0x94f   :  { %v2368_v2 = vld [vmem:[%s10902_s9 + $0x1c90] sm:$0xff]  ;;  %4834 = vmatpush.msrb.mxu3 %v2224_v57 }
 0x950   :  { %v2504_v59 = vld [vmem:[%s10902_s9 + $0x20d0] sm:$0xff]  ;;  %4852 = vmatpush.msra.mxu0 %v2368_v2  ;;  %4835 = vmatmul.f32.vlgmr.msrb.gmra.mxu3 %v8194_v27 }
 0x951   :  { %v2616_v60 = vld [vmem:[%s10902_s9 + $0x2450] sm:$0xff]  ;;  %4871 = vmatpush.msra.mxu1 %v2504_v59 }
 0x952   :  { %v2856_v61 = vld [vmem:[%s10902_s9 + $0x2bd0] sm:$0xff]  ;;  %4893 = vmatpush.msra.mxu2 %v2616_v60 }
 0x953   :  { %v2360_v63 = vld [vmem:[%s10902_s9 + $0x1c50] sm:$0xff]  ;;  %4899 = vmatpush.msra.mxu3 %v2856_v61 }
 0x954   :  { %v2496_v0 = vld [vmem:[%s10902_s9 + $0x2090] sm:$0xff]  ;;  %4853 = vmatpush.msra.mxu0 %v2360_v63 }
 0x955   :  { %v2608_v4 = vld [vmem:[%s10902_s9 + $0x2410] sm:$0xff]  ;;  %4872 = vmatpush.msra.mxu1 %v2496_v0 }
 0x956   :  { %v2848_v5 = vld [vmem:[%s10902_s9 + $0x2b90] sm:$0xff]  ;;  %4894 = vmatpush.msra.mxu2 %v2608_v4 }
 0x957   :  { %v3240_v8 = vld [vmem:[%s10902_s9 + $0x37d0] sm:$0xff]  ;;  %4900 = vmatpush.msra.mxu3 %v2848_v5  ;;  %4895 = vmatmul.f32.vlgmr.msra.gmra.mxu2 %v8253_v20 }
 0x958   :  { %v2352_v9 = vld [vmem:[%s10902_s9 + $0x1c10] sm:$0xff]  ;;  %4959 = vmatpush.msrb.mxu2 %v3240_v8 }
 0x959   :  { %v2488_v3 = vld [vmem:[%s10902_s9 + $0x2050] sm:$0xff]  ;;  %4854 = vmatpush.msra.mxu0 %v2352_v9 }
 0x95a   :  { %v2840_v10 = vld [vmem:[%s10902_s9 + $0x2b50] sm:$0xff]  ;;  %4873 = vmatpush.msra.mxu1 %v2488_v3  ;;  %4855 = vmatmul.f32.vlgmr.msra.gmra.mxu0 %v8190_v24 }
 0x95b   :  { %v2984_v11 = vld [vmem:[%s10902_s9 + $0x2fd0] sm:$0xff]  ;;  %4901 = vmatpush.msra.mxu3 %v2840_v10 }
 0x95c   :  { %v3232_v6 = vld [vmem:[%s10902_s9 + $0x3790] sm:$0xff]  ;;  %4919 = vmatpush.msrb.mxu0 %v2984_v11 }
 0x95d   :  { %v2480_v13 = vld [vmem:[%s10902_s9 + $0x2010] sm:$0xff]  ;;  %4960 = vmatpush.msrb.mxu2 %v3232_v6 }
 0x95e   :  { %v2832_v16 = vld [vmem:[%s10902_s9 + $0x2b10] sm:$0xff]  ;;  %4874 = vmatpush.msra.mxu1 %v2480_v13 }
 0x95f   :  { %v2976_v18 = vld [vmem:[%s10902_s9 + $0x2f90] sm:$0xff]  ;;  %4902 = vmatpush.msra.mxu3 %v2832_v16  ;;  %4875 = vmatmul.f32.vlgmr.msra.gmra.mxu1 %v8248_v14 }
 0x960   :  { %v3112_v43 = vld [vmem:[%s10902_s9 + $0x33d0] sm:$0xff]  ;;  %4920 = vmatpush.msrb.mxu0 %v2976_v18 }
 0x961   :  { %v3224_v25 = vld [vmem:[%s10902_s9 + $0x3750] sm:$0xff]  ;;  %4939 = vmatpush.msrb.mxu1 %v3112_v43 }
 0x962   :  { %v2824_v26 = vld [vmem:[%s10902_s9 + $0x2ad0] sm:$0xff]  ;;  %4961 = vmatpush.msrb.mxu2 %v3224_v25 }
 0x963   :  { %v2968_v29 = vld [vmem:[%s10902_s9 + $0x2f50] sm:$0xff]  ;;  %4903 = vmatpush.msra.mxu3 %v2824_v26 }
 0x964   :  { %v3104_v30 = vld [vmem:[%s10902_s9 + $0x3390] sm:$0xff]  ;;  %4921 = vmatpush.msrb.mxu0 %v2968_v29 }
 0x965   :  { %v3216_v31 = vld [vmem:[%s10902_s9 + $0x3710] sm:$0xff]  ;;  %4940 = vmatpush.msrb.mxu1 %v3104_v30 }
 0x966   :  { %v2816_v32 = vld [vmem:[%s10902_s9 + $0x2a90] sm:$0xff]  ;;  %4962 = vmatpush.msrb.mxu2 %v3216_v31 }
 0x967   :  { %v2960_v33 = vld [vmem:[%s10902_s9 + $0x2f10] sm:$0xff]  ;;  %4904 = vmatpush.msra.mxu3 %v2816_v32 }
 0x968   :  { %v3096_v34 = vld [vmem:[%s10902_s9 + $0x3350] sm:$0xff]  ;;  %4922 = vmatpush.msrb.mxu0 %v2960_v33 }
 0x969   :  { %v3208_v35 = vld [vmem:[%s10902_s9 + $0x36d0] sm:$0xff]  ;;  %4941 = vmatpush.msrb.mxu1 %v3096_v34 }
 0x96a   :  { %v2808_v36 = vld [vmem:[%s10902_s9 + $0x2a50] sm:$0xff]  ;;  %4963 = vmatpush.msrb.mxu2 %v3208_v35 }
 0x96b   :  { %v2952_v37 = vld [vmem:[%s10902_s9 + $0x2ed0] sm:$0xff]  ;;  %4905 = vmatpush.msra.mxu3 %v2808_v36 }
 0x96c   :  { %v3088_v41 = vld [vmem:[%s10902_s9 + $0x3310] sm:$0xff]  ;;  %4923 = vmatpush.msrb.mxu0 %v2952_v37 }
 0x96d   :  { %v3200_v38 = vld [vmem:[%s10902_s9 + $0x3690] sm:$0xff]  ;;  %4942 = vmatpush.msrb.mxu1 %v3088_v41 }
 0x96e   :  { %v2800_v12 = vld [vmem:[%s10902_s9 + $0x2a10] sm:$0xff]  ;;  %4964 = vmatpush.msrb.mxu2 %v3200_v38 }
 0x96f   :  { %v2944_v39 = vld [vmem:[%s10902_s9 + $0x2e90] sm:$0xff]  ;;  %4906 = vmatpush.msra.mxu3 %v2800_v12  ;;  %v7303_v12 = vld.sshfl [vmem:[#allocation1 + $0x28] sm:$0xff pattern:$0x73625140] }
 0x970   :  { %v3080_v40 = vld [vmem:[%s10902_s9 + $0x32d0] sm:$0xff]  ;;  %4924 = vmatpush.msrb.mxu0 %v2944_v39 }
 0x971   :  { %v3192_v15 = vld [vmem:[%s10902_s9 + $0x3650] sm:$0xff]  ;;  %4943 = vmatpush.msrb.mxu1 %v3080_v40 }
 0x972   :  { %v2792_v45 = vld [vmem:[%s10902_s9 + $0x29d0] sm:$0xff]  ;;  %4965 = vmatpush.msrb.mxu2 %v3192_v15 }
 0x973   :  { %v2936_v46 = vld [vmem:[%s10902_s9 + $0x2e50] sm:$0xff]  ;;  %4907 = vmatpush.msra.mxu3 %v2792_v45 }
 0x974   :  { %v3072_v44 = vld [vmem:[%s10902_s9 + $0x3290] sm:$0xff]  ;;  %4925 = vmatpush.msrb.mxu0 %v2936_v46 }
 0x975   :  { %v3184_v47 = vld [vmem:[%s10902_s9 + $0x3610] sm:$0xff]  ;;  %4944 = vmatpush.msrb.mxu1 %v3072_v44 }
 0x976   :  { %v2784_v48 = vld [vmem:[%s10902_s9 + $0x2990] sm:$0xff]  ;;  %4966 = vmatpush.msrb.mxu2 %v3184_v47 }
 0x977   :  { %v2928_v49 = vld [vmem:[%s10902_s9 + $0x2e10] sm:$0xff]  ;;  %4908 = vmatpush.msra.mxu3 %v2784_v48 }
 0x978   :  { %v3064_v17 = vld [vmem:[%s10902_s9 + $0x3250] sm:$0xff]  ;;  %4926 = vmatpush.msrb.mxu0 %v2928_v49 }
 0x979   :  { %v3176_v50 = vld [vmem:[%s10902_s9 + $0x35d0] sm:$0xff]  ;;  %4945 = vmatpush.msrb.mxu1 %v3064_v17  ;;  %v7304_v17 = vld.sshfl [vmem:[#allocation1 + $0x20] sm:$0xff pattern:$0x73625140] }
 0x97a   :  { %v2776_v51 = vld [vmem:[%s10902_s9 + $0x2950] sm:$0xff]  ;;  %4967 = vmatpush.msrb.mxu2 %v3176_v50 }
 0x97b   :  { %v2920_v52 = vld [vmem:[%s10902_s9 + $0x2dd0] sm:$0xff]  ;;  %4909 = vmatpush.msra.mxu3 %v2776_v51 }
 0x97c   :  { %v3056_v53 = vld [vmem:[%s10902_s9 + $0x3210] sm:$0xff]  ;;  %4927 = vmatpush.msrb.mxu0 %v2920_v52 }
 0x97d   :  { %v3168_v42 = vld [vmem:[%s10902_s9 + $0x3590] sm:$0xff]  ;;  %4946 = vmatpush.msrb.mxu1 %v3056_v53 }
 0x97e   :  { %v2768_v21 = vld [vmem:[%s10902_s9 + $0x2910] sm:$0xff]  ;;  %4968 = vmatpush.msrb.mxu2 %v3168_v42 }
 0x97f   :  { %v2912_v55 = vld [vmem:[%s10902_s9 + $0x2d90] sm:$0xff]  ;;  %4910 = vmatpush.msra.mxu3 %v2768_v21 }
 0x980   :  { %v3048_v1 = vld [vmem:[%s10902_s9 + $0x31d0] sm:$0xff]  ;;  %4928 = vmatpush.msrb.mxu0 %v2912_v55 }
 0x981   :  { %v3160_v56 = vld [vmem:[%s10902_s9 + $0x3550] sm:$0xff]  ;;  %4947 = vmatpush.msrb.mxu1 %v3048_v1 }
 0x982   :  { %v2760_v57 = vld [vmem:[%s10902_s9 + $0x28d0] sm:$0xff]  ;;  %4969 = vmatpush.msrb.mxu2 %v3160_v56 }
 0x983   :  { %v2904_v2 = vld [vmem:[%s10902_s9 + $0x2d50] sm:$0xff]  ;;  %4911 = vmatpush.msra.mxu3 %v2760_v57 }
 0x984   :  { %v3040_v59 = vld [vmem:[%s10902_s9 + $0x3190] sm:$0xff]  ;;  %4929 = vmatpush.msrb.mxu0 %v2904_v2 }
 0x985   :  { %v3152_v60 = vld [vmem:[%s10902_s9 + $0x3510] sm:$0xff]  ;;  %4948 = vmatpush.msrb.mxu1 %v3040_v59 }
 0x986   :  { %v2752_v61 = vld [vmem:[%s10902_s9 + $0x2890] sm:$0xff]  ;;  %4970 = vmatpush.msrb.mxu2 %v3152_v60 }
 0x987   :  { %v2896_v63 = vld [vmem:[%s10902_s9 + $0x2d10] sm:$0xff]  ;;  %4912 = vmatpush.msra.mxu3 %v2752_v61 }
 0x988   :  { %v3032_v0 = vld [vmem:[%s10902_s9 + $0x3150] sm:$0xff]  ;;  %4930 = vmatpush.msrb.mxu0 %v2896_v63 }
 0x989   :  { %v3144_v4 = vld [vmem:[%s10902_s9 + $0x34d0] sm:$0xff]  ;;  %4949 = vmatpush.msrb.mxu1 %v3032_v0 }
 0x98a   :  { %v2744_v5 = vld [vmem:[%s10902_s9 + $0x2850] sm:$0xff]  ;;  %4971 = vmatpush.msrb.mxu2 %v3144_v4 }
 0x98b   :  { %v2888_v8 = vld [vmem:[%s10902_s9 + $0x2cd0] sm:$0xff]  ;;  %4913 = vmatpush.msra.mxu3 %v2744_v5 }
 0x98c   :  { %v3024_v9 = vld [vmem:[%s10902_s9 + $0x3110] sm:$0xff]  ;;  %4931 = vmatpush.msrb.mxu0 %v2888_v8 }
 0x98d   :  { %v3136_v3 = vld [vmem:[%s10902_s9 + $0x3490] sm:$0xff]  ;;  %4950 = vmatpush.msrb.mxu1 %v3024_v9 }
 0x98e   :  { %v2736_v10 = vld [vmem:[%s10902_s9 + $0x2810] sm:$0xff]  ;;  %4972 = vmatpush.msrb.mxu2 %v3136_v3 }
 0x98f   :  { %v2880_v11 = vld [vmem:[%s10902_s9 + $0x2c90] sm:$0xff]  ;;  %4914 = vmatpush.msra.mxu3 %v2736_v10 }
 0x990   :  { %v3016_v6 = vld [vmem:[%s10902_s9 + $0x30d0] sm:$0xff]  ;;  %4932 = vmatpush.msrb.mxu0 %v2880_v11  ;;  %4915 = vmatmul.f32.vlgmr.msra.gmra.mxu3 %v8259_v28 }
 0x991   :  { %v3128_v13 = vld [vmem:[%s10902_s9 + $0x3450] sm:$0xff]  ;;  %4951 = vmatpush.msrb.mxu1 %v3016_v6 }
 0x992   :  { %v3368_v16 = vld [vmem:[%s10902_s9 + $0x3bd0] sm:$0xff]  ;;  %4973 = vmatpush.msrb.mxu2 %v3128_v13 }
 0x993   :  { %v2872_v18 = vld [vmem:[%s10902_s9 + $0x2c50] sm:$0xff]  ;;  %4979 = vmatpush.msrb.mxu3 %v3368_v16 }
 0x994   :  { %v3008_v43 = vld [vmem:[%s10902_s9 + $0x3090] sm:$0xff]  ;;  %4933 = vmatpush.msrb.mxu0 %v2872_v18 }
 0x995   :  { %v3120_v25 = vld [vmem:[%s10902_s9 + $0x3410] sm:$0xff]  ;;  %4952 = vmatpush.msrb.mxu1 %v3008_v43 }
 0x996   :  { %v3360_v26 = vld [vmem:[%s10902_s9 + $0x3b90] sm:$0xff]  ;;  %4974 = vmatpush.msrb.mxu2 %v3120_v25 }
 0x997   :  { %v3752_v29 = vld [vmem:[%s10902_s9 + $0x47d0] sm:$0xff]  ;;  %4980 = vmatpush.msrb.mxu3 %v3360_v26  ;;  %4975 = vmatmul.f32.vlgmr.msrb.gmra.mxu2 %v7303_v12 }
 0x998   :  { %v2864_v30 = vld [vmem:[%s10902_s9 + $0x2c10] sm:$0xff]  ;;  %5039 = vmatpush.msra.mxu2 %v3752_v29 }
 0x999   :  { %v3000_v31 = vld [vmem:[%s10902_s9 + $0x3050] sm:$0xff]  ;;  %4934 = vmatpush.msrb.mxu0 %v2864_v30 }
 0x99a   :  { %v3352_v32 = vld [vmem:[%s10902_s9 + $0x3b50] sm:$0xff]  ;;  %4953 = vmatpush.msrb.mxu1 %v3000_v31  ;;  %4935 = vmatmul.f32.vlgmr.msrb.gmra.mxu0 %v8255_v22 }
 0x99b   :  { %v3496_v33 = vld [vmem:[%s10902_s9 + $0x3fd0] sm:$0xff]  ;;  %4981 = vmatpush.msrb.mxu3 %v3352_v32 }
 0x99c   :  { %v3744_v34 = vld [vmem:[%s10902_s9 + $0x4790] sm:$0xff]  ;;  %4999 = vmatpush.msra.mxu0 %v3496_v33 }
 0x99d   :  { %v2992_v35 = vld [vmem:[%s10902_s9 + $0x3010] sm:$0xff]  ;;  %5040 = vmatpush.msra.mxu2 %v3744_v34 }
 0x99e   :  { %v3344_v36 = vld [vmem:[%s10902_s9 + $0x3b10] sm:$0xff]  ;;  %4954 = vmatpush.msrb.mxu1 %v2992_v35 }
 0x99f   :  { %v3488_v37 = vld [vmem:[%s10902_s9 + $0x3f90] sm:$0xff]  ;;  %4982 = vmatpush.msrb.mxu3 %v3344_v36  ;;  %4955 = vmatmul.f32.vlgmr.msrb.gmra.mxu1 %v7304_v17 }
 0x9a0   :  { %v3624_v41 = vld [vmem:[%s10902_s9 + $0x43d0] sm:$0xff]  ;;  %5000 = vmatpush.msra.mxu0 %v3488_v37 }
 0x9a1   :  { %v3736_v38 = vld [vmem:[%s10902_s9 + $0x4750] sm:$0xff]  ;;  %5019 = vmatpush.msra.mxu1 %v3624_v41 }
 0x9a2   :  { %v3336_v39 = vld [vmem:[%s10902_s9 + $0x3ad0] sm:$0xff]  ;;  %5041 = vmatpush.msra.mxu2 %v3736_v38 }
 0x9a3   :  { %v3480_v40 = vld [vmem:[%s10902_s9 + $0x3f50] sm:$0xff]  ;;  %4983 = vmatpush.msrb.mxu3 %v3336_v39 }
 0x9a4   :  { %v3616_v15 = vld [vmem:[%s10902_s9 + $0x4390] sm:$0xff]  ;;  %5001 = vmatpush.msra.mxu0 %v3480_v40 }
 0x9a5   :  { %v3728_v45 = vld [vmem:[%s10902_s9 + $0x4710] sm:$0xff]  ;;  %5020 = vmatpush.msra.mxu1 %v3616_v15 }
 0x9a6   :  { %v3328_v46 = vld [vmem:[%s10902_s9 + $0x3a90] sm:$0xff]  ;;  %5042 = vmatpush.msra.mxu2 %v3728_v45  ;;  %v1833_v45 = vld [vmem:[%s10902_s9 + $0xbd8] sm:$0xff] }
 0x9a7   :  { %v3472_v44 = vld [vmem:[%s10902_s9 + $0x3f10] sm:$0xff]  ;;  %4984 = vmatpush.msrb.mxu3 %v3328_v46 }
 0x9a8   :  { %v3608_v47 = vld [vmem:[%s10902_s9 + $0x4350] sm:$0xff]  ;;  %5002 = vmatpush.msra.mxu0 %v3472_v44 }
 0x9a9   :  { %v3720_v48 = vld [vmem:[%s10902_s9 + $0x46d0] sm:$0xff]  ;;  %5021 = vmatpush.msra.mxu1 %v3608_v47 }
 0x9aa   :  { %v3320_v49 = vld [vmem:[%s10902_s9 + $0x3a50] sm:$0xff]  ;;  %5043 = vmatpush.msra.mxu2 %v3720_v48  ;;  %v1577_v48 = vld [vmem:[%s10902_s9 + $0x3d8] sm:$0xff] }
 0x9ab   :  { %v3464_v50 = vld [vmem:[%s10902_s9 + $0x3ed0] sm:$0xff]  ;;  %4985 = vmatpush.msrb.mxu3 %v3320_v49  ;;  %v1825_v49 = vld [vmem:[%s10902_s9 + $0xb98] sm:$0xff] }
 0x9ac   :  { %v3600_v51 = vld [vmem:[%s10902_s9 + $0x4310] sm:$0xff]  ;;  %5003 = vmatpush.msra.mxu0 %v3464_v50 }
 0x9ad   :  { %v3712_v52 = vld [vmem:[%s10902_s9 + $0x4690] sm:$0xff]  ;;  %5022 = vmatpush.msra.mxu1 %v3600_v51  ;;  %v1569_v51 = vld [vmem:[%s10902_s9 + $0x398] sm:$0xff] }
 0x9ae   :  { %v3312_v53 = vld [vmem:[%s10902_s9 + $0x3a10] sm:$0xff]  ;;  %5044 = vmatpush.msra.mxu2 %v3712_v52  ;;  %v1705_v52 = vld [vmem:[%s10902_s9 + $0x7d8] sm:$0xff] }
 0x9af   :  { %v3456_v42 = vld [vmem:[%s10902_s9 + $0x3e90] sm:$0xff]  ;;  %4986 = vmatpush.msrb.mxu3 %v3312_v53  ;;  %v1817_v53 = vld [vmem:[%s10902_s9 + $0xb58] sm:$0xff] }
 0x9b0   :  { %v3592_v21 = vld [vmem:[%s10902_s9 + $0x42d0] sm:$0xff]  ;;  %5004 = vmatpush.msra.mxu0 %v3456_v42  ;;  %v7306_v42 = vld.sshfl [vmem:[#allocation1 + $0x8] sm:$0xff pattern:$0x73625140] }
 0x9b1   :  { %v3704_v55 = vld [vmem:[%s10902_s9 + $0x4650] sm:$0xff]  ;;  %5023 = vmatpush.msra.mxu1 %v3592_v21 }
 0x9b2   :  { %v3304_v1 = vld [vmem:[%s10902_s9 + $0x39d0] sm:$0xff]  ;;  %5045 = vmatpush.msra.mxu2 %v3704_v55  ;;  %v1561_v55 = vld [vmem:[%s10902_s9 + $0x358] sm:$0xff] }
 0x9b3   :  { %v3448_v56 = vld [vmem:[%s10902_s9 + $0x3e50] sm:$0xff]  ;;  %4987 = vmatpush.msrb.mxu3 %v3304_v1  ;;  %v1697_v1 = vld [vmem:[%s10902_s9 + $0x798] sm:$0xff] }
 0x9b4   :  { %v3584_v57 = vld [vmem:[%s10902_s9 + $0x4290] sm:$0xff]  ;;  %5005 = vmatpush.msra.mxu0 %v3448_v56  ;;  %v1809_v56 = vld [vmem:[%s10902_s9 + $0xb18] sm:$0xff] }
 0x9b5   :  { %v3696_v2 = vld [vmem:[%s10902_s9 + $0x4610] sm:$0xff]  ;;  %5024 = vmatpush.msra.mxu1 %v3584_v57  ;;  %v7307_v57 = vld.sshfl [vmem:[#allocation1 + $0x38] sm:$0xff pattern:$0x73625140] }
 0x9b6   :  { %v3296_v59 = vld [vmem:[%s10902_s9 + $0x3990] sm:$0xff]  ;;  %5046 = vmatpush.msra.mxu2 %v3696_v2 }
 0x9b7   :  { %v3440_v60 = vld [vmem:[%s10902_s9 + $0x3e10] sm:$0xff]  ;;  %4988 = vmatpush.msrb.mxu3 %v3296_v59  ;;  %v1553_v59 = vld [vmem:[%s10902_s9 + $0x318] sm:$0xff] }
 0x9b8   :  { %v3576_v61 = vld [vmem:[%s10902_s9 + $0x4250] sm:$0xff]  ;;  %5006 = vmatpush.msra.mxu0 %v3440_v60  ;;  %v1689_v60 = vld [vmem:[%s10902_s9 + $0x758] sm:$0xff] }
 0x9b9   :  { %v3688_v63 = vld [vmem:[%s10902_s9 + $0x45d0] sm:$0xff]  ;;  %5025 = vmatpush.msra.mxu1 %v3576_v61  ;;  %v1801_v61 = vld [vmem:[%s10902_s9 + $0xad8] sm:$0xff] }
 0x9ba   :  { %v3288_v0 = vld [vmem:[%s10902_s9 + $0x3950] sm:$0xff]  ;;  %5047 = vmatpush.msra.mxu2 %v3688_v63 }
 0x9bb   :  { %v3432_v4 = vld [vmem:[%s10902_s9 + $0x3dd0] sm:$0xff]  ;;  %4989 = vmatpush.msrb.mxu3 %v3288_v0  ;;  %v7308_v0 = vld.sshfl [vmem:[#allocation1] sm:$0xff pattern:$0x73625140] }
 0x9bc   :  { %v3568_v5 = vld [vmem:[%s10902_s9 + $0x4210] sm:$0xff]  ;;  %5007 = vmatpush.msra.mxu0 %v3432_v4  ;;  %v1545_v4 = vld [vmem:[%s10902_s9 + $0x2d8] sm:$0xff] }
 0x9bd   :  { %v3680_v8 = vld [vmem:[%s10902_s9 + $0x4590] sm:$0xff]  ;;  %5026 = vmatpush.msra.mxu1 %v3568_v5  ;;  %v1681_v5 = vld [vmem:[%s10902_s9 + $0x718] sm:$0xff] }
 0x9be   :  { %v3280_v9 = vld [vmem:[%s10902_s9 + $0x3910] sm:$0xff]  ;;  %5048 = vmatpush.msra.mxu2 %v3680_v8  ;;  %v1793_v8 = vld [vmem:[%s10902_s9 + $0xa98] sm:$0xff] }
 0x9bf   :  { %v3424_v3 = vld [vmem:[%s10902_s9 + $0x3d90] sm:$0xff]  ;;  %4990 = vmatpush.msrb.mxu3 %v3280_v9 }
 0x9c0   :  { %v3560_v10 = vld [vmem:[%s10902_s9 + $0x41d0] sm:$0xff]  ;;  %5008 = vmatpush.msra.mxu0 %v3424_v3  ;;  %v1537_v3 = vld [vmem:[%s10902_s9 + $0x298] sm:$0xff] }
 0x9c1   :  { %v3672_v11 = vld [vmem:[%s10902_s9 + $0x4550] sm:$0xff]  ;;  %5027 = vmatpush.msra.mxu1 %v3560_v10  ;;  %v1673_v10 = vld [vmem:[%s10902_s9 + $0x6d8] sm:$0xff] }
 0x9c2   :  { %v3272_v6 = vld [vmem:[%s10902_s9 + $0x38d0] sm:$0xff]  ;;  %5049 = vmatpush.msra.mxu2 %v3672_v11  ;;  %v1785_v11 = vld [vmem:[%s10902_s9 + $0xa58] sm:$0xff] }
 0x9c3   :  { %v3416_v13 = vld [vmem:[%s10902_s9 + $0x3d50] sm:$0xff]  ;;  %4991 = vmatpush.msrb.mxu3 %v3272_v6 }
 0x9c4   :  { %v3552_v16 = vld [vmem:[%s10902_s9 + $0x4190] sm:$0xff]  ;;  %5009 = vmatpush.msra.mxu0 %v3416_v13  ;;  %v1529_v13 = vld [vmem:[%s10902_s9 + $0x258] sm:$0xff] }
 0x9c5   :  { %v3664_v18 = vld [vmem:[%s10902_s9 + $0x4510] sm:$0xff]  ;;  %5028 = vmatpush.msra.mxu1 %v3552_v16  ;;  %v1665_v16 = vld [vmem:[%s10902_s9 + $0x698] sm:$0xff] }
 0x9c6   :  { %v3264_v43 = vld [vmem:[%s10902_s9 + $0x3890] sm:$0xff]  ;;  %5050 = vmatpush.msra.mxu2 %v3664_v18  ;;  %v1777_v18 = vld [vmem:[%s10902_s9 + $0xa18] sm:$0xff] }
 0x9c7   :  { %v3408_v25 = vld [vmem:[%s10902_s9 + $0x3d10] sm:$0xff]  ;;  %4992 = vmatpush.msrb.mxu3 %v3264_v43 }
 0x9c8   :  { %v3544_v26 = vld [vmem:[%s10902_s9 + $0x4150] sm:$0xff]  ;;  %5010 = vmatpush.msra.mxu0 %v3408_v25  ;;  %v1521_v25 = vld [vmem:[%s10902_s9 + $0x218] sm:$0xff] }
 0x9c9   :  { %v3656_v29 = vld [vmem:[%s10902_s9 + $0x44d0] sm:$0xff]  ;;  %5029 = vmatpush.msra.mxu1 %v3544_v26  ;;  %v1657_v26 = vld [vmem:[%s10902_s9 + $0x658] sm:$0xff] }
 0x9ca   :  { %v3256_v30 = vld [vmem:[%s10902_s9 + $0x3850] sm:$0xff]  ;;  %5051 = vmatpush.msra.mxu2 %v3656_v29  ;;  %v1769_v29 = vld [vmem:[%s10902_s9 + $0x9d8] sm:$0xff] }
 0x9cb   :  { %v3400_v31 = vld [vmem:[%s10902_s9 + $0x3cd0] sm:$0xff]  ;;  %4993 = vmatpush.msrb.mxu3 %v3256_v30 }
 0x9cc   :  { %v3536_v32 = vld [vmem:[%s10902_s9 + $0x4110] sm:$0xff]  ;;  %5011 = vmatpush.msra.mxu0 %v3400_v31  ;;  %v1513_v31 = vld [vmem:[%s10902_s9 + $0x1d8] sm:$0xff] }
 0x9cd   :  { %v3648_v33 = vld [vmem:[%s10902_s9 + $0x4490] sm:$0xff]  ;;  %5030 = vmatpush.msra.mxu1 %v3536_v32  ;;  %v1649_v32 = vld [vmem:[%s10902_s9 + $0x618] sm:$0xff] }
 0x9ce   :  { %v3248_v34 = vld [vmem:[%s10902_s9 + $0x3810] sm:$0xff]  ;;  %5052 = vmatpush.msra.mxu2 %v3648_v33  ;;  %v1761_v33 = vld [vmem:[%s10902_s9 + $0x998] sm:$0xff] }
 0x9cf   :  { %v3392_v35 = vld [vmem:[%s10902_s9 + $0x3c90] sm:$0xff]  ;;  %4994 = vmatpush.msrb.mxu3 %v3248_v34 }
 0x9d0   :  { %v3528_v36 = vld [vmem:[%s10902_s9 + $0x40d0] sm:$0xff]  ;;  %5012 = vmatpush.msra.mxu0 %v3392_v35  ;;  %v1505_v35 = vld [vmem:[%s10902_s9 + $0x198] sm:$0xff] }
 0x9d1   :  { %v3640_v37 = vld [vmem:[%s10902_s9 + $0x4450] sm:$0xff]  ;;  %5031 = vmatpush.msra.mxu1 %v3528_v36  ;;  %v1641_v36 = vld [vmem:[%s10902_s9 + $0x5d8] sm:$0xff] }
 0x9d2   :  { %v3864_v41 = vld [vmem:[%s10902_s9 + $0x4b50] sm:$0xff]  ;;  %5053 = vmatpush.msra.mxu2 %v3640_v37  ;;  %v1753_v37 = vld [vmem:[%s10902_s9 + $0x958] sm:$0xff] }
 0x9d3   :  { %v3384_v38 = vld [vmem:[%s10902_s9 + $0x3c50] sm:$0xff]  ;;  %5061 = vmatpush.msra.mxu3 %v3864_v41 }
 0x9d4   :  { %v3520_v12 = vld [vmem:[%s10902_s9 + $0x4090] sm:$0xff]  ;;  %5013 = vmatpush.msra.mxu0 %v3384_v38  ;;  %v1497_v38 = vld [vmem:[%s10902_s9 + $0x158] sm:$0xff] }
 0x9d5   :  { %v3632_v39 = vld [vmem:[%s10902_s9 + $0x4410] sm:$0xff]  ;;  %5032 = vmatpush.msra.mxu1 %v3520_v12  ;;  %v1633_v12 = vld [vmem:[%s10902_s9 + $0x598] sm:$0xff] }
 0x9d6   :  { %v7305_v40 = vld.sshfl [vmem:[#allocation1 + $0x30] sm:$0xff pattern:$0x73625140]  ;;  %5054 = vmatpush.msra.mxu2 %v3632_v39  ;;  %v1745_v39 = vld [vmem:[%s10902_s9 + $0x918] sm:$0xff] }
 0x9d7   :  { %4995 = vmatmul.f32.vlgmr.msrb.gmra.mxu3 %v7305_v40  ;;  %v3856_v15 = vld [vmem:[%s10902_s9 + $0x4b10] sm:$0xff]  ;;  %5055 = vmatmul.f32.vlgmr.msra.gmra.mxu2 %v7306_v42  ;;  %v1945_v42 = vld [vmem:[%s10902_s9 + $0xf58] sm:$0xff] }
 0x9d8   :  { %v3376_v46 = vld [vmem:[%s10902_s9 + $0x3c10] sm:$0xff]  ;;  %5062 = vmatpush.msra.mxu3 %v3856_v15  ;;  %5119 = vmatpush.msrb.mxu2 %v1833_v45  ;;  %v1489_v15 = vld [vmem:[%s10902_s9 + $0x118] sm:$0xff] }
 0x9d9   :  { %v3512_v44 = vld [vmem:[%s10902_s9 + $0x4050] sm:$0xff]  ;;  %5014 = vmatpush.msra.mxu0 %v3376_v46  ;;  %v1625_v45 = vld [vmem:[%s10902_s9 + $0x558] sm:$0xff] }
 0x9da   :  { %v3848_v47 = vld [vmem:[%s10902_s9 + $0x4ad0] sm:$0xff]  ;;  %5033 = vmatpush.msra.mxu1 %v3512_v44  ;;  %5120 = vmatpush.msrb.mxu2 %v1825_v49  ;;  %v1737_v46 = vld [vmem:[%s10902_s9 + $0x8d8] sm:$0xff] }
 0x9db   :  { %v3504_v17 = vld [vmem:[%s10902_s9 + $0x4010] sm:$0xff]  ;;  %5063 = vmatpush.msra.mxu3 %v3848_v47  ;;  %5079 = vmatpush.msrb.mxu0 %v1577_v48  ;;  %v1961_v44 = vld [vmem:[%s10902_s9 + $0xfd8] sm:$0xff] }
 0x9dc   :  { %v3840_v50 = vld [vmem:[%s10902_s9 + $0x4a90] sm:$0xff]  ;;  %5034 = vmatpush.msra.mxu1 %v3504_v17  ;;  %5121 = vmatpush.msrb.mxu2 %v1817_v53  ;;  %v1481_v47 = vld [vmem:[%s10902_s9 + $0xd8] sm:$0xff] }
 0x9dd   :  { %5064 = vmatpush.msra.mxu3 %v3840_v50  ;;  %v3832_v21 = vld [vmem:[%s10902_s9 + $0x4a50] sm:$0xff]  ;;  %5080 = vmatpush.msrb.mxu0 %v1569_v51  ;;  %v1617_v48 = vld [vmem:[%s10902_s9 + $0x518] sm:$0xff] }
 0x9de   :  { %5099 = vmatpush.msrb.mxu1 %v1705_v52  ;;  %5015 = vmatmul.f32.vlgmr.msra.gmra.mxu0 %v7307_v57  ;;  %v3824_v2 = vld [vmem:[%s10902_s9 + $0x4a10] sm:$0xff]  ;;  %v1729_v49 = vld [vmem:[%s10902_s9 + $0x898] sm:$0xff] }
 0x9df   :  { %5065 = vmatpush.msra.mxu3 %v3832_v21  ;;  %5081 = vmatpush.msrb.mxu0 %v1561_v55  ;;  %v3816_v63 = vld [vmem:[%s10902_s9 + $0x49d0] sm:$0xff]  ;;  %v1953_v50 = vld [vmem:[%s10902_s9 + $0xf98] sm:$0xff] }
 0x9e0   :  { %5100 = vmatpush.msrb.mxu1 %v1697_v1  ;;  %5122 = vmatpush.msrb.mxu2 %v1809_v56  ;;  %v3808_v9 = vld [vmem:[%s10902_s9 + $0x4990] sm:$0xff]  ;;  %v1473_v51 = vld [vmem:[%s10902_s9 + $0x98] sm:$0xff] }
 0x9e1   :  { %5035 = vmatmul.f32.vlgmr.msra.gmra.mxu1 %v7308_v0  ;;  %5066 = vmatpush.msra.mxu3 %v3824_v2  ;;  %v3800_v6 = vld [vmem:[%s10902_s9 + $0x4950] sm:$0xff]  ;;  %v1609_v52 = vld [vmem:[%s10902_s9 + $0x4d8] sm:$0xff] }
 0x9e2   :  { %5082 = vmatpush.msrb.mxu0 %v1553_v59  ;;  %5101 = vmatpush.msrb.mxu1 %v1689_v60  ;;  %v3792_v43 = vld [vmem:[%s10902_s9 + $0x4910] sm:$0xff]  ;;  %v1721_v53 = vld [vmem:[%s10902_s9 + $0x858] sm:$0xff] }
 0x9e3   :  { %5123 = vmatpush.msrb.mxu2 %v1801_v61  ;;  %5067 = vmatpush.msra.mxu3 %v3816_v63  ;;  %v3784_v30 = vld [vmem:[%s10902_s9 + $0x48d0] sm:$0xff]  ;;  %v1465_v21 = vld [vmem:[%s10902_s9 + $0x58] sm:$0xff] }
 0x9e4   :  { %5083 = vmatpush.msrb.mxu0 %v1545_v4  ;;  %5102 = vmatpush.msrb.mxu1 %v1681_v5  ;;  %v3776_v34 = vld [vmem:[%s10902_s9 + $0x4890] sm:$0xff]  ;;  %v1601_v55 = vld [vmem:[%s10902_s9 + $0x498] sm:$0xff] }
 0x9e5   :  { %5124 = vmatpush.msrb.mxu2 %v1793_v8  ;;  %5068 = vmatpush.msra.mxu3 %v3808_v9  ;;  %v3768_v41 = vld [vmem:[%s10902_s9 + $0x4850] sm:$0xff]  ;;  %v1713_v1 = vld [vmem:[%s10902_s9 + $0x818] sm:$0xff] }
 0x9e6   :  { %5084 = vmatpush.msrb.mxu0 %v1537_v3  ;;  %5103 = vmatpush.msrb.mxu1 %v1673_v10  ;;  %v3760_v40 = vld [vmem:[%s10902_s9 + $0x4810] sm:$0xff]  ;;  %v1937_v56 = vld [vmem:[%s10902_s9 + $0xf18] sm:$0xff] }
 0x9e7   :  { %5125 = vmatpush.msrb.mxu2 %v1785_v11  ;;  %5069 = vmatpush.msra.mxu3 %v3800_v6  ;;  %v7309_v17 = vld.sshfl [vmem:[#allocation1 + $0x10] sm:$0xff pattern:$0x73625140]  ;;  %v2345_v57 = vld [vmem:[%s10902_s9 + $0x1bd8] sm:$0xff] }
 0x9e8   :  { %5085 = vmatpush.msrb.mxu0 %v1529_v13  ;;  %5104 = vmatpush.msrb.mxu1 %v1665_v16  ;;  %v1457_v2 = vld [vmem:[%s10902_s9 + $0x18] sm:$0xff] }
 0x9e9   :  { %5126 = vmatpush.msrb.mxu2 %v1777_v18  ;;  %5070 = vmatpush.msra.mxu3 %v3792_v43  ;;  %v1593_v59 = vld [vmem:[%s10902_s9 + $0x458] sm:$0xff] }
 0x9ea   :  { %5086 = vmatpush.msrb.mxu0 %v1521_v25  ;;  %5105 = vmatpush.msrb.mxu1 %v1657_v26  ;;  %v1929_v60 = vld [vmem:[%s10902_s9 + $0xed8] sm:$0xff] }
 0x9eb   :  { %5127 = vmatpush.msrb.mxu2 %v1769_v29  ;;  %5071 = vmatpush.msra.mxu3 %v3784_v30  ;;  %v2089_v61 = vld [vmem:[%s10902_s9 + $0x13d8] sm:$0xff] }
 0x9ec   :  { %5087 = vmatpush.msrb.mxu0 %v1513_v31  ;;  %5106 = vmatpush.msrb.mxu1 %v1649_v32  ;;  %v2337_v63 = vld [vmem:[%s10902_s9 + $0x1b98] sm:$0xff] }
 0x9ed   :  { %5128 = vmatpush.msrb.mxu2 %v1761_v33  ;;  %5072 = vmatpush.msra.mxu3 %v3776_v34  ;;  %v1585_v0 = vld [vmem:[%s10902_s9 + $0x418] sm:$0xff] }
 0x9ee   :  { %5088 = vmatpush.msrb.mxu0 %v1505_v35  ;;  %5107 = vmatpush.msrb.mxu1 %v1641_v36  ;;  %v1921_v4 = vld [vmem:[%s10902_s9 + $0xe98] sm:$0xff] }
 0x9ef   :  { %5129 = vmatpush.msrb.mxu2 %v1753_v37  ;;  %5073 = vmatpush.msra.mxu3 %v3768_v41  ;;  %v2081_v5 = vld [vmem:[%s10902_s9 + $0x1398] sm:$0xff] }
 0x9f0   :  { %5089 = vmatpush.msrb.mxu0 %v1497_v38  ;;  %5108 = vmatpush.msrb.mxu1 %v1633_v12  ;;  %v2217_v8 = vld [vmem:[%s10902_s9 + $0x17d8] sm:$0xff] }
 0x9f1   :  { %5130 = vmatpush.msrb.mxu2 %v1745_v39  ;;  %5074 = vmatpush.msra.mxu3 %v3760_v40  ;;  %v2329_v9 = vld [vmem:[%s10902_s9 + $0x1b58] sm:$0xff] }
 0x9f2   :  { %5090 = vmatpush.msrb.mxu0 %v1489_v15  ;;  %5109 = vmatpush.msrb.mxu1 %v1625_v45  ;;  %v1913_v3 = vld [vmem:[%s10902_s9 + $0xe58] sm:$0xff] }
 0x9f3   :  { %5131 = vmatpush.msrb.mxu2 %v1737_v46  ;;  %7177 = vmatmul.msk.f32.vlgmr.msra.gmra.mxu3 %vm3936_vm9, %v7309_v17  ;;  %v2073_v10 = vld [vmem:[%s10902_s9 + $0x1358] sm:$0xff] }
 0x9f4   :  { %5139 = vmatpush.msrb.mxu3 %v1961_v44  ;;  %5091 = vmatpush.msrb.mxu0 %v1481_v47  ;;  %v2209_v11 = vld [vmem:[%s10902_s9 + $0x1798] sm:$0xff] }
 0x9f5   :  { %5110 = vmatpush.msrb.mxu1 %v1617_v48  ;;  %5132 = vmatpush.msrb.mxu2 %v1729_v49  ;;  %v2321_v6 = vld [vmem:[%s10902_s9 + $0x1b18] sm:$0xff] }
 0x9f6   :  { %5140 = vmatpush.msrb.mxu3 %v1953_v50  ;;  %5092 = vmatpush.msrb.mxu0 %v1473_v51  ;;  %v1905_v13 = vld [vmem:[%s10902_s9 + $0xe18] sm:$0xff] }
 0x9f7   :  { %5111 = vmatpush.msrb.mxu1 %v1609_v52  ;;  %5133 = vmatpush.msrb.mxu2 %v1721_v53  ;;  %v2065_v16 = vld [vmem:[%s10902_s9 + $0x1318] sm:$0xff] }
 0x9f8   :  { %5141 = vmatpush.msrb.mxu3 %v1945_v42  ;;  %5093 = vmatpush.msrb.mxu0 %v1465_v21  ;;  %v2201_v18 = vld [vmem:[%s10902_s9 + $0x1758] sm:$0xff] }
 0x9f9   :  { %5112 = vmatpush.msrb.mxu1 %v1601_v55  ;;  %5134 = vmatpush.msrb.mxu2 %v1713_v1  ;;  %v2313_v43 = vld [vmem:[%s10902_s9 + $0x1ad8] sm:$0xff] }
 0x9fa   :  { %5142 = vmatpush.msrb.mxu3 %v1937_v56  ;;  %5094 = vmatpush.msrb.mxu0 %v1457_v2  ;;  %v1897_v25 = vld [vmem:[%s10902_s9 + $0xdd8] sm:$0xff] }
 0x9fb   :  { %5199 = vmatpush.msra.mxu2 %v2345_v57  ;;  %5113 = vmatpush.msrb.mxu1 %v1593_v59  ;;  %v2057_v26 = vld [vmem:[%s10902_s9 + $0x12d8] sm:$0xff] }
 0x9fc   :  { %5143 = vmatpush.msrb.mxu3 %v1929_v60  ;;  %5159 = vmatpush.msra.mxu0 %v2089_v61  ;;  %v2193_v29 = vld [vmem:[%s10902_s9 + $0x1718] sm:$0xff] }
 0x9fd   :  { %5200 = vmatpush.msra.mxu2 %v2337_v63  ;;  %5114 = vmatpush.msrb.mxu1 %v1585_v0  ;;  %v2305_v30 = vld [vmem:[%s10902_s9 + $0x1a98] sm:$0xff] }
 0x9fe   :  { %5144 = vmatpush.msrb.mxu3 %v1921_v4  ;;  %5160 = vmatpush.msra.mxu0 %v2081_v5  ;;  %v1889_v31 = vld [vmem:[%s10902_s9 + $0xd98] sm:$0xff] }
 0x9ff   :  { %5179 = vmatpush.msra.mxu1 %v2217_v8  ;;  %5201 = vmatpush.msra.mxu2 %v2329_v9  ;;  %v2049_v32 = vld [vmem:[%s10902_s9 + $0x1298] sm:$0xff] }
 0xa00   :  { %5145 = vmatpush.msrb.mxu3 %v1913_v3  ;;  %5161 = vmatpush.msra.mxu0 %v2073_v10  ;;  %v2185_v33 = vld [vmem:[%s10902_s9 + $0x16d8] sm:$0xff] }
 0xa01   :  { %5180 = vmatpush.msra.mxu1 %v2209_v11  ;;  %5202 = vmatpush.msra.mxu2 %v2321_v6  ;;  %v2297_v34 = vld [vmem:[%s10902_s9 + $0x1a58] sm:$0xff] }
 0xa02   :  { %5146 = vmatpush.msrb.mxu3 %v1905_v13  ;;  %5162 = vmatpush.msra.mxu0 %v2065_v16  ;;  %v1881_v35 = vld [vmem:[%s10902_s9 + $0xd58] sm:$0xff] }
 0xa03   :  { %5181 = vmatpush.msra.mxu1 %v2201_v18  ;;  %5203 = vmatpush.msra.mxu2 %v2313_v43  ;;  %v2041_v36 = vld [vmem:[%s10902_s9 + $0x1258] sm:$0xff] }
 0xa04   :  { %5147 = vmatpush.msrb.mxu3 %v1897_v25  ;;  %5163 = vmatpush.msra.mxu0 %v2057_v26  ;;  %v2177_v37 = vld [vmem:[%s10902_s9 + $0x1698] sm:$0xff] }
 0xa05   :  { %5182 = vmatpush.msra.mxu1 %v2193_v29  ;;  %5204 = vmatpush.msra.mxu2 %v2305_v30  ;;  %v2289_v41 = vld [vmem:[%s10902_s9 + $0x1a18] sm:$0xff] }
 0xa06   :  { %5148 = vmatpush.msrb.mxu3 %v1889_v31  ;;  %5164 = vmatpush.msra.mxu0 %v2049_v32  ;;  %v1873_v38 = vld [vmem:[%s10902_s9 + $0xd18] sm:$0xff] }
 0xa07   :  { %5183 = vmatpush.msra.mxu1 %v2185_v33  ;;  %5205 = vmatpush.msra.mxu2 %v2297_v34  ;;  %v2033_v12 = vld [vmem:[%s10902_s9 + $0x1218] sm:$0xff] }
 0xa08   :  { %5149 = vmatpush.msrb.mxu3 %v1881_v35  ;;  %5165 = vmatpush.msra.mxu0 %v2041_v36  ;;  %v2169_v39 = vld [vmem:[%s10902_s9 + $0x1658] sm:$0xff] }
 0xa09   :  { %v2281_v40 = vld [vmem:[%s10902_s9 + $0x19d8] sm:$0xff]  ;;  %5184 = vmatpush.msra.mxu1 %v2177_v37  ;;  %5206 = vmatpush.msra.mxu2 %v2289_v41 }
 0xa0a   :  { %v1865_v15 = vld [vmem:[%s10902_s9 + $0xcd8] sm:$0xff]  ;;  %5150 = vmatpush.msrb.mxu3 %v1873_v38  ;;  %5166 = vmatpush.msra.mxu0 %v2033_v12 }
 0xa0b   :  { %v2025_v45 = vld [vmem:[%s10902_s9 + $0x11d8] sm:$0xff]  ;;  %5185 = vmatpush.msra.mxu1 %v2169_v39  ;;  %5207 = vmatpush.msra.mxu2 %v2281_v40 }
 0xa0c   :  { %v2161_v46 = vld [vmem:[%s10902_s9 + $0x1618] sm:$0xff]  ;;  %5151 = vmatpush.msrb.mxu3 %v1865_v15  ;;  %5167 = vmatpush.msra.mxu0 %v2025_v45 }
 0xa0d   :  { %v2273_v44 = vld [vmem:[%s10902_s9 + $0x1998] sm:$0xff]  ;;  %5186 = vmatpush.msra.mxu1 %v2161_v46  ;;  %5135 = vmatmul.f32.vlgmr.msrb.gmra.mxu2 %v8169_v7 }
 0xa0e   :  { %v1857_v47 = vld [vmem:[%s10902_s9 + $0xc98] sm:$0xff]  ;;  %5208 = vmatpush.msra.mxu2 %v2273_v44  ;;  %5095 = vmatmul.f32.vlgmr.msrb.gmra.mxu0 %v8155_v58 }
 0xa0f   :  { %v2017_v48 = vld [vmem:[%s10902_s9 + $0x1198] sm:$0xff]  ;;  %5152 = vmatpush.msrb.mxu3 %v1857_v47  ;;  %5115 = vmatmul.f32.vlgmr.msrb.gmra.mxu1 %v8162_v62 }
 0xa10   :  { %v2153_v49 = vld [vmem:[%s10902_s9 + $0x15d8] sm:$0xff]  ;;  %5168 = vmatpush.msra.mxu0 %v2017_v48 }
 0xa11   :  { %v2265_v17 = vld [vmem:[%s10902_s9 + $0x1958] sm:$0xff]  ;;  %5187 = vmatpush.msra.mxu1 %v2153_v49 }
 0xa12   :  { %v1849_v50 = vld [vmem:[%s10902_s9 + $0xc58] sm:$0xff]  ;;  %5209 = vmatpush.msra.mxu2 %v2265_v17 }
 0xa13   :  { %v2009_v51 = vld [vmem:[%s10902_s9 + $0x1158] sm:$0xff]  ;;  %5153 = vmatpush.msrb.mxu3 %v1849_v50 }
 0xa14   :  { %v2145_v52 = vld [vmem:[%s10902_s9 + $0x1598] sm:$0xff]  ;;  %5169 = vmatpush.msra.mxu0 %v2009_v51 }
 0xa15   :  { %v2257_v53 = vld [vmem:[%s10902_s9 + $0x1918] sm:$0xff]  ;;  %5188 = vmatpush.msra.mxu1 %v2145_v52 }
 0xa16   :  { %v1841_v42 = vld [vmem:[%s10902_s9 + $0xc18] sm:$0xff]  ;;  %5210 = vmatpush.msra.mxu2 %v2257_v53 }
 0xa17   :  { %v2001_v21 = vld [vmem:[%s10902_s9 + $0x1118] sm:$0xff]  ;;  %5154 = vmatpush.msrb.mxu3 %v1841_v42 }
 0xa18   :  { %v2137_v55 = vld [vmem:[%s10902_s9 + $0x1558] sm:$0xff]  ;;  %5170 = vmatpush.msra.mxu0 %v2001_v21  ;;  %5155 = vmatmul.f32.vlgmr.msrb.gmra.mxu3 %v8149_v54 }
 0xa19   :  { %v2249_v1 = vld [vmem:[%s10902_s9 + $0x18d8] sm:$0xff]  ;;  %5189 = vmatpush.msra.mxu1 %v2137_v55 }
 0xa1a   :  { %v2473_v56 = vld [vmem:[%s10902_s9 + $0x1fd8] sm:$0xff]  ;;  %5211 = vmatpush.msra.mxu2 %v2249_v1 }
 0xa1b   :  { %v1993_v57 = vld [vmem:[%s10902_s9 + $0x10d8] sm:$0xff]  ;;  %5219 = vmatpush.msra.mxu3 %v2473_v56 }
 0xa1c   :  { %v2129_v2 = vld [vmem:[%s10902_s9 + $0x1518] sm:$0xff]  ;;  %5171 = vmatpush.msra.mxu0 %v1993_v57 }
 0xa1d   :  { %v2241_v59 = vld [vmem:[%s10902_s9 + $0x1898] sm:$0xff]  ;;  %5190 = vmatpush.msra.mxu1 %v2129_v2 }
 0xa1e   :  { %v2465_v60 = vld [vmem:[%s10902_s9 + $0x1f98] sm:$0xff]  ;;  %5212 = vmatpush.msra.mxu2 %v2241_v59 }
 0xa1f   :  { %v1985_v61 = vld [vmem:[%s10902_s9 + $0x1098] sm:$0xff]  ;;  %5220 = vmatpush.msra.mxu3 %v2465_v60 }
 0xa20   :  { %v2121_v63 = vld [vmem:[%s10902_s9 + $0x14d8] sm:$0xff]  ;;  %5172 = vmatpush.msra.mxu0 %v1985_v61 }
 0xa21   :  { %v2233_v0 = vld [vmem:[%s10902_s9 + $0x1858] sm:$0xff]  ;;  %5191 = vmatpush.msra.mxu1 %v2121_v63 }
 0xa22   :  { %v2457_v4 = vld [vmem:[%s10902_s9 + $0x1f58] sm:$0xff]  ;;  %5213 = vmatpush.msra.mxu2 %v2233_v0 }
 0xa23   :  { %v1977_v5 = vld [vmem:[%s10902_s9 + $0x1058] sm:$0xff]  ;;  %5221 = vmatpush.msra.mxu3 %v2457_v4 }
 0xa24   :  { %v2113_v8 = vld [vmem:[%s10902_s9 + $0x1498] sm:$0xff]  ;;  %5173 = vmatpush.msra.mxu0 %v1977_v5 }
 0xa25   :  { %v2225_v9 = vld [vmem:[%s10902_s9 + $0x1818] sm:$0xff]  ;;  %5192 = vmatpush.msra.mxu1 %v2113_v8 }
 0xa26   :  { %v2449_v3 = vld [vmem:[%s10902_s9 + $0x1f18] sm:$0xff]  ;;  %5214 = vmatpush.msra.mxu2 %v2225_v9 }
 0xa27   :  { %v2857_v10 = vld [vmem:[%s10902_s9 + $0x2bd8] sm:$0xff]  ;;  %5222 = vmatpush.msra.mxu3 %v2449_v3  ;;  %5215 = vmatmul.f32.vlgmr.msra.gmra.mxu2 %v8194_v27 }
 0xa28   :  { %v1969_v11 = vld [vmem:[%s10902_s9 + $0x1018] sm:$0xff]  ;;  %5279 = vmatpush.msrb.mxu2 %v2857_v10 }
 0xa29   :  { %v2105_v6 = vld [vmem:[%s10902_s9 + $0x1458] sm:$0xff]  ;;  %5174 = vmatpush.msra.mxu0 %v1969_v11 }
 0xa2a   :  { %v2601_v13 = vld [vmem:[%s10902_s9 + $0x23d8] sm:$0xff]  ;;  %5193 = vmatpush.msra.mxu1 %v2105_v6  ;;  %5175 = vmatmul.f32.vlgmr.msra.gmra.mxu0 %v8188_v23 }
 0xa2b   :  { %v2441_v16 = vld [vmem:[%s10902_s9 + $0x1ed8] sm:$0xff]  ;;  %5239 = vmatpush.msrb.mxu0 %v2601_v13 }
 0xa2c   :  { %v2849_v18 = vld [vmem:[%s10902_s9 + $0x2b98] sm:$0xff]  ;;  %5223 = vmatpush.msra.mxu3 %v2441_v16 }
 0xa2d   :  { %v2097_v43 = vld [vmem:[%s10902_s9 + $0x1418] sm:$0xff]  ;;  %5280 = vmatpush.msrb.mxu2 %v2849_v18 }
 0xa2e   :  { %v2593_v25 = vld [vmem:[%s10902_s9 + $0x2398] sm:$0xff]  ;;  %5194 = vmatpush.msra.mxu1 %v2097_v43 }
 0xa2f   :  { %v2433_v26 = vld [vmem:[%s10902_s9 + $0x1e98] sm:$0xff]  ;;  %5240 = vmatpush.msrb.mxu0 %v2593_v25  ;;  %5195 = vmatmul.f32.vlgmr.msra.gmra.mxu1 %v8184_v19 }
 0xa30   :  { %v2729_v29 = vld [vmem:[%s10902_s9 + $0x27d8] sm:$0xff]  ;;  %5224 = vmatpush.msra.mxu3 %v2433_v26 }
 0xa31   :  { %v2841_v30 = vld [vmem:[%s10902_s9 + $0x2b58] sm:$0xff]  ;;  %5259 = vmatpush.msrb.mxu1 %v2729_v29 }
 0xa32   :  { %v2425_v31 = vld [vmem:[%s10902_s9 + $0x1e58] sm:$0xff]  ;;  %5281 = vmatpush.msrb.mxu2 %v2841_v30 }
 0xa33   :  { %v2585_v32 = vld [vmem:[%s10902_s9 + $0x2358] sm:$0xff]  ;;  %5225 = vmatpush.msra.mxu3 %v2425_v31 }
 0xa34   :  { %v2721_v33 = vld [vmem:[%s10902_s9 + $0x2798] sm:$0xff]  ;;  %5241 = vmatpush.msrb.mxu0 %v2585_v32 }
 0xa35   :  { %v2833_v34 = vld [vmem:[%s10902_s9 + $0x2b18] sm:$0xff]  ;;  %5260 = vmatpush.msrb.mxu1 %v2721_v33 }
 0xa36   :  { %v2417_v35 = vld [vmem:[%s10902_s9 + $0x1e18] sm:$0xff]  ;;  %5282 = vmatpush.msrb.mxu2 %v2833_v34 }
 0xa37   :  { %v2577_v36 = vld [vmem:[%s10902_s9 + $0x2318] sm:$0xff]  ;;  %5226 = vmatpush.msra.mxu3 %v2417_v35 }
 0xa38   :  { %v2713_v37 = vld [vmem:[%s10902_s9 + $0x2758] sm:$0xff]  ;;  %5242 = vmatpush.msrb.mxu0 %v2577_v36 }
 0xa39   :  { %v2825_v41 = vld [vmem:[%s10902_s9 + $0x2ad8] sm:$0xff]  ;;  %5261 = vmatpush.msrb.mxu1 %v2713_v37 }
 0xa3a   :  { %v2409_v38 = vld [vmem:[%s10902_s9 + $0x1dd8] sm:$0xff]  ;;  %5283 = vmatpush.msrb.mxu2 %v2825_v41 }
 0xa3b   :  { %v2569_v12 = vld [vmem:[%s10902_s9 + $0x22d8] sm:$0xff]  ;;  %5227 = vmatpush.msra.mxu3 %v2409_v38 }
 0xa3c   :  { %v2705_v39 = vld [vmem:[%s10902_s9 + $0x2718] sm:$0xff]  ;;  %5243 = vmatpush.msrb.mxu0 %v2569_v12 }
 0xa3d   :  { %v2817_v40 = vld [vmem:[%s10902_s9 + $0x2a98] sm:$0xff]  ;;  %5262 = vmatpush.msrb.mxu1 %v2705_v39 }
 0xa3e   :  { %v2401_v15 = vld [vmem:[%s10902_s9 + $0x1d98] sm:$0xff]  ;;  %5284 = vmatpush.msrb.mxu2 %v2817_v40 }
 0xa3f   :  { %v2561_v45 = vld [vmem:[%s10902_s9 + $0x2298] sm:$0xff]  ;;  %5228 = vmatpush.msra.mxu3 %v2401_v15 }
 0xa40   :  { %v2697_v46 = vld [vmem:[%s10902_s9 + $0x26d8] sm:$0xff]  ;;  %5244 = vmatpush.msrb.mxu0 %v2561_v45 }
 0xa41   :  { %v2809_v44 = vld [vmem:[%s10902_s9 + $0x2a58] sm:$0xff]  ;;  %5263 = vmatpush.msrb.mxu1 %v2697_v46 }
 0xa42   :  { %v2393_v47 = vld [vmem:[%s10902_s9 + $0x1d58] sm:$0xff]  ;;  %5285 = vmatpush.msrb.mxu2 %v2809_v44 }
 0xa43   :  { %v2553_v48 = vld [vmem:[%s10902_s9 + $0x2258] sm:$0xff]  ;;  %5229 = vmatpush.msra.mxu3 %v2393_v47 }
 0xa44   :  { %v2689_v49 = vld [vmem:[%s10902_s9 + $0x2698] sm:$0xff]  ;;  %5245 = vmatpush.msrb.mxu0 %v2553_v48 }
 0xa45   :  { %v2801_v17 = vld [vmem:[%s10902_s9 + $0x2a18] sm:$0xff]  ;;  %5264 = vmatpush.msrb.mxu1 %v2689_v49 }
 0xa46   :  { %v2385_v50 = vld [vmem:[%s10902_s9 + $0x1d18] sm:$0xff]  ;;  %5286 = vmatpush.msrb.mxu2 %v2801_v17 }
 0xa47   :  { %v2545_v51 = vld [vmem:[%s10902_s9 + $0x2218] sm:$0xff]  ;;  %5230 = vmatpush.msra.mxu3 %v2385_v50 }
 0xa48   :  { %v2681_v52 = vld [vmem:[%s10902_s9 + $0x2658] sm:$0xff]  ;;  %5246 = vmatpush.msrb.mxu0 %v2545_v51 }
 0xa49   :  { %v2793_v53 = vld [vmem:[%s10902_s9 + $0x29d8] sm:$0xff]  ;;  %5265 = vmatpush.msrb.mxu1 %v2681_v52 }
 0xa4a   :  { %v2377_v42 = vld [vmem:[%s10902_s9 + $0x1cd8] sm:$0xff]  ;;  %5287 = vmatpush.msrb.mxu2 %v2793_v53 }
 0xa4b   :  { %v2537_v21 = vld [vmem:[%s10902_s9 + $0x21d8] sm:$0xff]  ;;  %5231 = vmatpush.msra.mxu3 %v2377_v42 }
 0xa4c   :  { %v2673_v55 = vld [vmem:[%s10902_s9 + $0x2618] sm:$0xff]  ;;  %5247 = vmatpush.msrb.mxu0 %v2537_v21 }
 0xa4d   :  { %v2785_v1 = vld [vmem:[%s10902_s9 + $0x2998] sm:$0xff]  ;;  %5266 = vmatpush.msrb.mxu1 %v2673_v55 }
 0xa4e   :  { %v2369_v56 = vld [vmem:[%s10902_s9 + $0x1c98] sm:$0xff]  ;;  %5288 = vmatpush.msrb.mxu2 %v2785_v1 }
 0xa4f   :  { %v2529_v57 = vld [vmem:[%s10902_s9 + $0x2198] sm:$0xff]  ;;  %5232 = vmatpush.msra.mxu3 %v2369_v56 }
 0xa50   :  { %v2665_v2 = vld [vmem:[%s10902_s9 + $0x25d8] sm:$0xff]  ;;  %5248 = vmatpush.msrb.mxu0 %v2529_v57 }
 0xa51   :  { %v2777_v59 = vld [vmem:[%s10902_s9 + $0x2958] sm:$0xff]  ;;  %5267 = vmatpush.msrb.mxu1 %v2665_v2 }
 0xa52   :  { %v2361_v60 = vld [vmem:[%s10902_s9 + $0x1c58] sm:$0xff]  ;;  %5289 = vmatpush.msrb.mxu2 %v2777_v59 }
 0xa53   :  { %v2521_v61 = vld [vmem:[%s10902_s9 + $0x2158] sm:$0xff]  ;;  %5233 = vmatpush.msra.mxu3 %v2361_v60 }
 0xa54   :  { %v2657_v63 = vld [vmem:[%s10902_s9 + $0x2598] sm:$0xff]  ;;  %5249 = vmatpush.msrb.mxu0 %v2521_v61 }
 0xa55   :  { %v2769_v0 = vld [vmem:[%s10902_s9 + $0x2918] sm:$0xff]  ;;  %5268 = vmatpush.msrb.mxu1 %v2657_v63 }
 0xa56   :  { %v2353_v4 = vld [vmem:[%s10902_s9 + $0x1c18] sm:$0xff]  ;;  %5290 = vmatpush.msrb.mxu2 %v2769_v0 }
 0xa57   :  { %v2513_v5 = vld [vmem:[%s10902_s9 + $0x2118] sm:$0xff]  ;;  %5234 = vmatpush.msra.mxu3 %v2353_v4 }
 0xa58   :  { %v2649_v8 = vld [vmem:[%s10902_s9 + $0x2558] sm:$0xff]  ;;  %5250 = vmatpush.msrb.mxu0 %v2513_v5  ;;  %5235 = vmatmul.f32.vlgmr.msra.gmra.mxu3 %v8190_v24 }
 0xa59   :  { %v2761_v9 = vld [vmem:[%s10902_s9 + $0x28d8] sm:$0xff]  ;;  %5269 = vmatpush.msrb.mxu1 %v2649_v8 }
 0xa5a   :  { %v2985_v3 = vld [vmem:[%s10902_s9 + $0x2fd8] sm:$0xff]  ;;  %5291 = vmatpush.msrb.mxu2 %v2761_v9 }
 0xa5b   :  { %v2505_v10 = vld [vmem:[%s10902_s9 + $0x20d8] sm:$0xff]  ;;  %5299 = vmatpush.msrb.mxu3 %v2985_v3 }
 0xa5c   :  { %v2641_v11 = vld [vmem:[%s10902_s9 + $0x2518] sm:$0xff]  ;;  %5251 = vmatpush.msrb.mxu0 %v2505_v10 }
 0xa5d   :  { %v2753_v6 = vld [vmem:[%s10902_s9 + $0x2898] sm:$0xff]  ;;  %5270 = vmatpush.msrb.mxu1 %v2641_v11 }
 0xa5e   :  { %v2977_v13 = vld [vmem:[%s10902_s9 + $0x2f98] sm:$0xff]  ;;  %5292 = vmatpush.msrb.mxu2 %v2753_v6 }
 0xa5f   :  { %v2497_v16 = vld [vmem:[%s10902_s9 + $0x2098] sm:$0xff]  ;;  %5300 = vmatpush.msrb.mxu3 %v2977_v13 }
 0xa60   :  { %v2633_v18 = vld [vmem:[%s10902_s9 + $0x24d8] sm:$0xff]  ;;  %5252 = vmatpush.msrb.mxu0 %v2497_v16 }
 0xa61   :  { %v2745_v43 = vld [vmem:[%s10902_s9 + $0x2858] sm:$0xff]  ;;  %5271 = vmatpush.msrb.mxu1 %v2633_v18 }
 0xa62   :  { %v2969_v25 = vld [vmem:[%s10902_s9 + $0x2f58] sm:$0xff]  ;;  %5293 = vmatpush.msrb.mxu2 %v2745_v43 }
 0xa63   :  { %v2489_v26 = vld [vmem:[%s10902_s9 + $0x2058] sm:$0xff]  ;;  %5301 = vmatpush.msrb.mxu3 %v2969_v25 }
 0xa64   :  { %v2625_v29 = vld [vmem:[%s10902_s9 + $0x2498] sm:$0xff]  ;;  %5253 = vmatpush.msrb.mxu0 %v2489_v26 }
 0xa65   :  { %v2737_v30 = vld [vmem:[%s10902_s9 + $0x2818] sm:$0xff]  ;;  %5272 = vmatpush.msrb.mxu1 %v2625_v29 }
 0xa66   :  { %v2961_v31 = vld [vmem:[%s10902_s9 + $0x2f18] sm:$0xff]  ;;  %5294 = vmatpush.msrb.mxu2 %v2737_v30 }
 0xa67   :  { %v3369_v32 = vld [vmem:[%s10902_s9 + $0x3bd8] sm:$0xff]  ;;  %5295 = vmatmul.f32.vlgmr.msrb.gmra.mxu2 %v8259_v28  ;;  %5302 = vmatpush.msrb.mxu3 %v2961_v31 }
 0xa68   :  { %v2481_v33 = vld [vmem:[%s10902_s9 + $0x2018] sm:$0xff]  ;;  %5359 = vmatpush.msra.mxu2 %v3369_v32 }
 0xa69   :  { %v2617_v34 = vld [vmem:[%s10902_s9 + $0x2458] sm:$0xff]  ;;  %5254 = vmatpush.msrb.mxu0 %v2481_v33 }
 0xa6a   :  { %v2953_v35 = vld [vmem:[%s10902_s9 + $0x2ed8] sm:$0xff]  ;;  %5273 = vmatpush.msrb.mxu1 %v2617_v34  ;;  %5255 = vmatmul.f32.vlgmr.msrb.gmra.mxu0 %v8248_v14 }
 0xa6b   :  { %v3113_v36 = vld [vmem:[%s10902_s9 + $0x33d8] sm:$0xff]  ;;  %5303 = vmatpush.msrb.mxu3 %v2953_v35 }
 0xa6c   :  { %v3361_v37 = vld [vmem:[%s10902_s9 + $0x3b98] sm:$0xff]  ;;  %5319 = vmatpush.msra.mxu0 %v3113_v36 }
 0xa6d   :  { %v2609_v41 = vld [vmem:[%s10902_s9 + $0x2418] sm:$0xff]  ;;  %5360 = vmatpush.msra.mxu2 %v3361_v37 }
 0xa6e   :  { %v2945_v38 = vld [vmem:[%s10902_s9 + $0x2e98] sm:$0xff]  ;;  %5274 = vmatpush.msrb.mxu1 %v2609_v41 }
 0xa6f   :  { %v3105_v12 = vld [vmem:[%s10902_s9 + $0x3398] sm:$0xff]  ;;  %5275 = vmatmul.f32.vlgmr.msrb.gmra.mxu1 %v8253_v20  ;;  %5304 = vmatpush.msrb.mxu3 %v2945_v38 }
 0xa70   :  { %v3241_v39 = vld [vmem:[%s10902_s9 + $0x37d8] sm:$0xff]  ;;  %5320 = vmatpush.msra.mxu0 %v3105_v12 }
 0xa71   :  { %v3353_v40 = vld [vmem:[%s10902_s9 + $0x3b58] sm:$0xff]  ;;  %5339 = vmatpush.msra.mxu1 %v3241_v39 }
 0xa72   :  { %v2937_v15 = vld [vmem:[%s10902_s9 + $0x2e58] sm:$0xff]  ;;  %5361 = vmatpush.msra.mxu2 %v3353_v40 }
 0xa73   :  { %v3097_v45 = vld [vmem:[%s10902_s9 + $0x3358] sm:$0xff]  ;;  %5305 = vmatpush.msrb.mxu3 %v2937_v15 }
 0xa74   :  { %v3233_v46 = vld [vmem:[%s10902_s9 + $0x3798] sm:$0xff]  ;;  %5321 = vmatpush.msra.mxu0 %v3097_v45 }
 0xa75   :  { %v3345_v44 = vld [vmem:[%s10902_s9 + $0x3b18] sm:$0xff]  ;;  %5340 = vmatpush.msra.mxu1 %v3233_v46 }
 0xa76   :  { %v2929_v47 = vld [vmem:[%s10902_s9 + $0x2e18] sm:$0xff]  ;;  %5362 = vmatpush.msra.mxu2 %v3345_v44  ;;  %v9284_v44 = vpop.f32.mrf.mxu0 }
 0xa77   :  { %v3089_v48 = vld [vmem:[%s10902_s9 + $0x3318] sm:$0xff]  ;;  %5306 = vmatpush.msrb.mxu3 %v2929_v47 }
 0xa78   :  { %v3225_v49 = vld [vmem:[%s10902_s9 + $0x3758] sm:$0xff]  ;;  %5322 = vmatpush.msra.mxu0 %v3089_v48  ;;  %v7310_v48 = vld.sshfl [vmem:[#allocation1 + $0x30] sm:$0xff pattern:$0x73625140] }
 0xa79   :  { %v3337_v17 = vld [vmem:[%s10902_s9 + $0x3ad8] sm:$0xff]  ;;  %5341 = vmatpush.msra.mxu1 %v3225_v49 }
 0xa7a   :  { %v2921_v50 = vld [vmem:[%s10902_s9 + $0x2dd8] sm:$0xff]  ;;  %5363 = vmatpush.msra.mxu2 %v3337_v17 }
 0xa7b   :  { %v3081_v51 = vld [vmem:[%s10902_s9 + $0x32d8] sm:$0xff]  ;;  %5307 = vmatpush.msrb.mxu3 %v2921_v50  ;;  %v9289_v50 = vpop.f32.mrf.mxu1 }
 0xa7c   :  { %v3217_v52 = vld [vmem:[%s10902_s9 + $0x3718] sm:$0xff]  ;;  %5323 = vmatpush.msra.mxu0 %v3081_v51 }
 0xa7d   :  { %v3329_v53 = vld [vmem:[%s10902_s9 + $0x3a98] sm:$0xff]  ;;  %5342 = vmatpush.msra.mxu1 %v3217_v52 }
 0xa7e   :  { %v2913_v42 = vld [vmem:[%s10902_s9 + $0x2d98] sm:$0xff]  ;;  %5364 = vmatpush.msra.mxu2 %v3329_v53  ;;  %v7311_v53 = vld.sshfl [vmem:[#allocation1 + $0x20] sm:$0xff pattern:$0x73625140] }
 0xa7f   :  { %v3073_v21 = vld [vmem:[%s10902_s9 + $0x3298] sm:$0xff]  ;;  %5308 = vmatpush.msrb.mxu3 %v2913_v42 }
 0xa80   :  { %v3209_v55 = vld [vmem:[%s10902_s9 + $0x36d8] sm:$0xff]  ;;  %5324 = vmatpush.msra.mxu0 %v3073_v21  ;;  %v9294_v21 = vpop.f32.mrf.mxu3 }
 0xa81   :  { %v3321_v1 = vld [vmem:[%s10902_s9 + $0x3a58] sm:$0xff]  ;;  %5343 = vmatpush.msra.mxu1 %v3209_v55  ;;  %v9296_v55 = vpop.f32.mrf.mxu2 }
 0xa82   :  { %v2905_v56 = vld [vmem:[%s10902_s9 + $0x2d58] sm:$0xff]  ;;  %5365 = vmatpush.msra.mxu2 %v3321_v1 }
 0xa83   :  { %v3065_v57 = vld [vmem:[%s10902_s9 + $0x3258] sm:$0xff]  ;;  %5309 = vmatpush.msrb.mxu3 %v2905_v56 }
 0xa84   :  { %v3201_v2 = vld [vmem:[%s10902_s9 + $0x3698] sm:$0xff]  ;;  %5325 = vmatpush.msra.mxu0 %v3065_v57 }
 0xa85   :  { %v3313_v59 = vld [vmem:[%s10902_s9 + $0x3a18] sm:$0xff]  ;;  %5344 = vmatpush.msra.mxu1 %v3201_v2 }
 0xa86   :  { %v2897_v60 = vld [vmem:[%s10902_s9 + $0x2d18] sm:$0xff]  ;;  %5366 = vmatpush.msra.mxu2 %v3313_v59  ;;  %v7312_v59 = vld.sshfl [vmem:[#allocation1 + $0x28] sm:$0xff pattern:$0x73625140] }
 0xa87   :  { %v3057_v61 = vld [vmem:[%s10902_s9 + $0x3218] sm:$0xff]  ;;  %5310 = vmatpush.msrb.mxu3 %v2897_v60 }
 0xa88   :  { %v3193_v63 = vld [vmem:[%s10902_s9 + $0x3658] sm:$0xff]  ;;  %5326 = vmatpush.msra.mxu0 %v3057_v61 }
 0xa89   :  { %v3305_v0 = vld [vmem:[%s10902_s9 + $0x39d8] sm:$0xff]  ;;  %5345 = vmatpush.msra.mxu1 %v3193_v63 }
 0xa8a   :  { %v2889_v4 = vld [vmem:[%s10902_s9 + $0x2cd8] sm:$0xff]  ;;  %5367 = vmatpush.msra.mxu2 %v3305_v0 }
 0xa8b   :  { %v3049_v5 = vld [vmem:[%s10902_s9 + $0x31d8] sm:$0xff]  ;;  %5311 = vmatpush.msrb.mxu3 %v2889_v4 }
 0xa8c   :  { %v3185_v8 = vld [vmem:[%s10902_s9 + $0x3618] sm:$0xff]  ;;  %5327 = vmatpush.msra.mxu0 %v3049_v5 }
 0xa8d   :  { %v3297_v9 = vld [vmem:[%s10902_s9 + $0x3998] sm:$0xff]  ;;  %5346 = vmatpush.msra.mxu1 %v3185_v8 }
 0xa8e   :  { %v2881_v3 = vld [vmem:[%s10902_s9 + $0x2c98] sm:$0xff]  ;;  %5368 = vmatpush.msra.mxu2 %v3297_v9 }
 0xa8f   :  { %v3041_v10 = vld [vmem:[%s10902_s9 + $0x3198] sm:$0xff]  ;;  %5312 = vmatpush.msrb.mxu3 %v2881_v3  ;;  %v9310_v3 = vpop.f32.mrf.mxu0 }
 0xa90   :  { %v3177_v11 = vld [vmem:[%s10902_s9 + $0x35d8] sm:$0xff]  ;;  %5328 = vmatpush.msra.mxu0 %v3041_v10 }
 0xa91   :  { %v3289_v6 = vld [vmem:[%s10902_s9 + $0x3958] sm:$0xff]  ;;  %5347 = vmatpush.msra.mxu1 %v3177_v11 }
 0xa92   :  { %v2873_v13 = vld [vmem:[%s10902_s9 + $0x2c58] sm:$0xff]  ;;  %5369 = vmatpush.msra.mxu2 %v3289_v6 }
 0xa93   :  { %v3033_v16 = vld [vmem:[%s10902_s9 + $0x3158] sm:$0xff]  ;;  %5313 = vmatpush.msrb.mxu3 %v2873_v13 }
 0xa94   :  { %v3169_v18 = vld [vmem:[%s10902_s9 + $0x3598] sm:$0xff]  ;;  %5329 = vmatpush.msra.mxu0 %v3033_v16  ;;  %v9316_v16 = vpop.f32.mrf.mxu1 }
 0xa95   :  { %v3281_v43 = vld [vmem:[%s10902_s9 + $0x3918] sm:$0xff]  ;;  %5348 = vmatpush.msra.mxu1 %v3169_v18 }
 0xa96   :  { %v2865_v25 = vld [vmem:[%s10902_s9 + $0x2c18] sm:$0xff]  ;;  %5370 = vmatpush.msra.mxu2 %v3281_v43 }
 0xa97   :  { %v3025_v26 = vld [vmem:[%s10902_s9 + $0x3118] sm:$0xff]  ;;  %5314 = vmatpush.msrb.mxu3 %v2865_v25 }
 0xa98   :  { %v3161_v29 = vld [vmem:[%s10902_s9 + $0x3558] sm:$0xff]  ;;  %5330 = vmatpush.msra.mxu0 %v3025_v26  ;;  %5315 = vmatmul.f32.vlgmr.msrb.gmra.mxu3 %v8255_v22 }
 0xa99   :  { %v3273_v30 = vld [vmem:[%s10902_s9 + $0x38d8] sm:$0xff]  ;;  %5349 = vmatpush.msra.mxu1 %v3161_v29  ;;  %v9322_v29 = vpop.f32.mrf.mxu3 }
 0xa9a   :  { %v3497_v31 = vld [vmem:[%s10902_s9 + $0x3fd8] sm:$0xff]  ;;  %5371 = vmatpush.msra.mxu2 %v3273_v30  ;;  %v9324_v30 = vpop.f32.mrf.mxu2 }
 0xa9b   :  { %v3017_v32 = vld [vmem:[%s10902_s9 + $0x30d8] sm:$0xff]  ;;  %5379 = vmatpush.msra.mxu3 %v3497_v31 }
 0xa9c   :  { %v3153_v33 = vld [vmem:[%s10902_s9 + $0x3518] sm:$0xff]  ;;  %5331 = vmatpush.msra.mxu0 %v3017_v32 }
 0xa9d   :  { %v3265_v34 = vld [vmem:[%s10902_s9 + $0x3898] sm:$0xff]  ;;  %5350 = vmatpush.msra.mxu1 %v3153_v33 }
 0xa9e   :  { %v3489_v35 = vld [vmem:[%s10902_s9 + $0x3f98] sm:$0xff]  ;;  %5372 = vmatpush.msra.mxu2 %v3265_v34 }
 0xa9f   :  { %v3009_v36 = vld [vmem:[%s10902_s9 + $0x3098] sm:$0xff]  ;;  %5380 = vmatpush.msra.mxu3 %v3489_v35 }
 0xaa0   :  { %v3145_v37 = vld [vmem:[%s10902_s9 + $0x34d8] sm:$0xff]  ;;  %5332 = vmatpush.msra.mxu0 %v3009_v36 }
 0xaa1   :  { %v3257_v41 = vld [vmem:[%s10902_s9 + $0x3858] sm:$0xff]  ;;  %5351 = vmatpush.msra.mxu1 %v3145_v37 }
 0xaa2   :  { %v3481_v38 = vld [vmem:[%s10902_s9 + $0x3f58] sm:$0xff]  ;;  %5373 = vmatpush.msra.mxu2 %v3257_v41 }
 0xaa3   :  { %v3001_v12 = vld [vmem:[%s10902_s9 + $0x3058] sm:$0xff]  ;;  %5381 = vmatpush.msra.mxu3 %v3481_v38  ;;  %v9334_v38 = vpop.f32.mrf.mxu0 }
 0xaa4   :  { %v3137_v39 = vld [vmem:[%s10902_s9 + $0x3498] sm:$0xff]  ;;  %5333 = vmatpush.msra.mxu0 %v3001_v12 }
 0xaa5   :  { %v3249_v40 = vld [vmem:[%s10902_s9 + $0x3818] sm:$0xff]  ;;  %5352 = vmatpush.msra.mxu1 %v3137_v39 }
 0xaa6   :  { %v3473_v15 = vld [vmem:[%s10902_s9 + $0x3f18] sm:$0xff]  ;;  %5374 = vmatpush.msra.mxu2 %v3249_v40 }
 0xaa7   :  { %v3865_v45 = vld [vmem:[%s10902_s9 + $0x4b58] sm:$0xff]  ;;  %5375 = vmatmul.f32.vlgmr.msra.gmra.mxu2 %v7310_v48  ;;  %5382 = vmatpush.msra.mxu3 %v3473_v15 }
 0xaa8   :  { %v2993_v46 = vld [vmem:[%s10902_s9 + $0x3018] sm:$0xff]  ;;  %5441 = vmatpush.msrb.mxu2 %v3865_v45  ;;  %v9340_v45 = vpop.f32.mrf.mxu1 }
 0xaa9   :  { %v3129_v47 = vld [vmem:[%s10902_s9 + $0x3458] sm:$0xff]  ;;  %5334 = vmatpush.msra.mxu0 %v2993_v46 }
 0xaaa   :  { %v3465_v49 = vld [vmem:[%s10902_s9 + $0x3ed8] sm:$0xff]  ;;  %5353 = vmatpush.msra.mxu1 %v3129_v47  ;;  %5335 = vmatmul.f32.vlgmr.msra.gmra.mxu0 %v7311_v53 }
 0xaab   :  { %v3625_v17 = vld [vmem:[%s10902_s9 + $0x43d8] sm:$0xff]  ;;  %5383 = vmatpush.msra.mxu3 %v3465_v49 }
 0xaac   :  { %v3857_v51 = vld [vmem:[%s10902_s9 + $0x4b18] sm:$0xff]  ;;  %5399 = vmatpush.msrb.mxu0 %v3625_v17  ;;  %v9346_v17 = vpop.f32.mrf.mxu3 }
 0xaad   :  { %v3121_v52 = vld [vmem:[%s10902_s9 + $0x3418] sm:$0xff]  ;;  %5442 = vmatpush.msrb.mxu2 %v3857_v51  ;;  %v9348_v51 = vpop.f32.mrf.mxu2 }
 0xaae   :  { %v3457_v42 = vld [vmem:[%s10902_s9 + $0x3e98] sm:$0xff]  ;;  %5354 = vmatpush.msra.mxu1 %v3121_v52 }
 0xaaf   :  { %v3617_v1 = vld [vmem:[%s10902_s9 + $0x4398] sm:$0xff]  ;;  %5355 = vmatmul.f32.vlgmr.msra.gmra.mxu1 %v7312_v59  ;;  %5384 = vmatpush.msra.mxu3 %v3457_v42  ;;  %v9357_v59 = vpop.f32.mrf.mxu0 }
 0xab0   :  { %v3753_v56 = vld [vmem:[%s10902_s9 + $0x47d8] sm:$0xff]  ;;  %5400 = vmatpush.msrb.mxu0 %v3617_v1  ;;  %10918 = vst [vmem:[#allocation46_spill] sm:$0xff] %v9357_v59  ;;  %v2490_v59 = vld [vmem:[%s10902_s9 + $0x2060] sm:$0xff] }
 0xab1   :  { %v3849_v57 = vld [vmem:[%s10902_s9 + $0x4ad8] sm:$0xff]  ;;  %5419 = vmatpush.msrb.mxu1 %v3753_v56 }
 0xab2   :  { %v3449_v2 = vld [vmem:[%s10902_s9 + $0x3e58] sm:$0xff]  ;;  %5443 = vmatpush.msrb.mxu2 %v3849_v57 }
 0xab3   :  { %v3609_v60 = vld [vmem:[%s10902_s9 + $0x4358] sm:$0xff]  ;;  %5385 = vmatpush.msra.mxu3 %v3449_v2 }
 0xab4   :  { %v3745_v61 = vld [vmem:[%s10902_s9 + $0x4798] sm:$0xff]  ;;  %5401 = vmatpush.msrb.mxu0 %v3609_v60  ;;  %v1578_v60 = vld [vmem:[%s10902_s9 + $0x3e0] sm:$0xff] }
 0xab5   :  { %v3841_v63 = vld [vmem:[%s10902_s9 + $0x4a98] sm:$0xff]  ;;  %5420 = vmatpush.msrb.mxu1 %v3745_v61 }
 0xab6   :  { %v3441_v0 = vld [vmem:[%s10902_s9 + $0x3e18] sm:$0xff]  ;;  %5444 = vmatpush.msrb.mxu2 %v3841_v63 }
 0xab7   :  { %v3601_v4 = vld [vmem:[%s10902_s9 + $0x4318] sm:$0xff]  ;;  %5386 = vmatpush.msra.mxu3 %v3441_v0 }
 0xab8   :  { %v3737_v5 = vld [vmem:[%s10902_s9 + $0x4758] sm:$0xff]  ;;  %5402 = vmatpush.msrb.mxu0 %v3601_v4  ;;  %v9363_v4 = vpop.f32.mrf.mxu1 }
 0xab9   :  { %v3833_v8 = vld [vmem:[%s10902_s9 + $0x4a58] sm:$0xff]  ;;  %5421 = vmatpush.msrb.mxu1 %v3737_v5  ;;  %10919 = vst [vmem:[#allocation47_spill] sm:$0xff] %v9363_v4  ;;  %v2714_v4 = vld [vmem:[%s10902_s9 + $0x2760] sm:$0xff] }
 0xaba   :  { %v3433_v9 = vld [vmem:[%s10902_s9 + $0x3dd8] sm:$0xff]  ;;  %5445 = vmatpush.msrb.mxu2 %v3833_v8  ;;  %v1570_v8 = vld [vmem:[%s10902_s9 + $0x3a0] sm:$0xff] }
 0xabb   :  { %v3593_v10 = vld [vmem:[%s10902_s9 + $0x42d8] sm:$0xff]  ;;  %5387 = vmatpush.msra.mxu3 %v3433_v9  ;;  %v1962_v9 = vld [vmem:[%s10902_s9 + $0xfe0] sm:$0xff] }
 0xabc   :  { %v3729_v11 = vld [vmem:[%s10902_s9 + $0x4718] sm:$0xff]  ;;  %5403 = vmatpush.msrb.mxu0 %v3593_v10 }
 0xabd   :  { %v3825_v6 = vld [vmem:[%s10902_s9 + $0x4a18] sm:$0xff]  ;;  %5422 = vmatpush.msrb.mxu1 %v3729_v11 }
 0xabe   :  { %v3425_v13 = vld [vmem:[%s10902_s9 + $0x3d98] sm:$0xff]  ;;  %5446 = vmatpush.msrb.mxu2 %v3825_v6  ;;  %v9369_v6 = vpop.f32.mrf.mxu3 }
 0xabf   :  { %v3585_v18 = vld [vmem:[%s10902_s9 + $0x4298] sm:$0xff]  ;;  %5388 = vmatpush.msra.mxu3 %v3425_v13  ;;  %10920 = vst [vmem:[#allocation48_spill] sm:$0xff] %v9369_v6  ;;  %v9371_v13 = vpop.f32.mrf.mxu2 }
 0xac0   :  { %v3721_v43 = vld [vmem:[%s10902_s9 + $0x46d8] sm:$0xff]  ;;  %5404 = vmatpush.msrb.mxu0 %v3585_v18  ;;  %10921 = vst [vmem:[#allocation49_spill] sm:$0xff] %v9371_v13  ;;  %v1562_v18 = vld [vmem:[%s10902_s9 + $0x360] sm:$0xff] }
 0xac1   :  { %v3817_v25 = vld [vmem:[%s10902_s9 + $0x49d8] sm:$0xff]  ;;  %5423 = vmatpush.msrb.mxu1 %v3721_v43  ;;  %v1954_v43 = vld [vmem:[%s10902_s9 + $0xfa0] sm:$0xff] }
 0xac2   :  { %v3417_v26 = vld [vmem:[%s10902_s9 + $0x3d58] sm:$0xff]  ;;  %5447 = vmatpush.msrb.mxu2 %v3817_v25  ;;  %v2354_v13 = vld [vmem:[%s10902_s9 + $0x1c20] sm:$0xff] }
 0xac3   :  { %v3577_v31 = vld [vmem:[%s10902_s9 + $0x4258] sm:$0xff]  ;;  %5389 = vmatpush.msra.mxu3 %v3417_v26 }
 0xac4   :  { %v3713_v32 = vld [vmem:[%s10902_s9 + $0x4698] sm:$0xff]  ;;  %5405 = vmatpush.msrb.mxu0 %v3577_v31  ;;  %v1554_v31 = vld [vmem:[%s10902_s9 + $0x320] sm:$0xff] }
 0xac5   :  { %v3809_v33 = vld [vmem:[%s10902_s9 + $0x4998] sm:$0xff]  ;;  %5424 = vmatpush.msrb.mxu1 %v3713_v32  ;;  %v1946_v32 = vld [vmem:[%s10902_s9 + $0xf60] sm:$0xff] }
 0xac6   :  { %v3409_v34 = vld [vmem:[%s10902_s9 + $0x3d18] sm:$0xff]  ;;  %5448 = vmatpush.msrb.mxu2 %v3809_v33 }
 0xac7   :  { %v3569_v35 = vld [vmem:[%s10902_s9 + $0x4218] sm:$0xff]  ;;  %5390 = vmatpush.msra.mxu3 %v3409_v34  ;;  %v9380_v34 = vpop.f32.mrf.mxu0 }
 0xac8   :  { %v3705_v36 = vld [vmem:[%s10902_s9 + $0x4658] sm:$0xff]  ;;  %5406 = vmatpush.msrb.mxu0 %v3569_v35  ;;  %10922 = vst [vmem:[#allocation50_spill] sm:$0xff] %v9380_v34  ;;  %v2370_v34 = vld [vmem:[%s10902_s9 + $0x1ca0] sm:$0xff] }
 0xac9   :  { %v3801_v37 = vld [vmem:[%s10902_s9 + $0x4958] sm:$0xff]  ;;  %5425 = vmatpush.msrb.mxu1 %v3705_v36  ;;  %v7314_v36 = vld.sshfl [vmem:[#allocation1 + $0x10] sm:$0xff pattern:$0x73625140] }
 0xaca   :  { %v3401_v41 = vld [vmem:[%s10902_s9 + $0x3cd8] sm:$0xff]  ;;  %5449 = vmatpush.msrb.mxu2 %v3801_v37  ;;  %v1546_v37 = vld [vmem:[%s10902_s9 + $0x2e0] sm:$0xff] }
 0xacb   :  { %v3561_v12 = vld [vmem:[%s10902_s9 + $0x41d8] sm:$0xff]  ;;  %5391 = vmatpush.msra.mxu3 %v3401_v41  ;;  %v1706_v41 = vld [vmem:[%s10902_s9 + $0x7e0] sm:$0xff] }
 0xacc   :  { %v3697_v39 = vld [vmem:[%s10902_s9 + $0x4618] sm:$0xff]  ;;  %5407 = vmatpush.msrb.mxu0 %v3561_v12  ;;  %v9386_v12 = vpop.f32.mrf.mxu1 }
 0xacd   :  { %v3793_v40 = vld [vmem:[%s10902_s9 + $0x4918] sm:$0xff]  ;;  %5426 = vmatpush.msrb.mxu1 %v3697_v39  ;;  %10923 = vst [vmem:[#allocation51_spill] sm:$0xff] %v9386_v12  ;;  %v1938_v39 = vld [vmem:[%s10902_s9 + $0xf20] sm:$0xff] }
 0xace   :  { %v3393_v15 = vld [vmem:[%s10902_s9 + $0x3c98] sm:$0xff]  ;;  %5450 = vmatpush.msrb.mxu2 %v3793_v40  ;;  %v2298_v12 = vld [vmem:[%s10902_s9 + $0x1a60] sm:$0xff] }
 0xacf   :  { %v3553_v46 = vld [vmem:[%s10902_s9 + $0x4198] sm:$0xff]  ;;  %5392 = vmatpush.msra.mxu3 %v3393_v15  ;;  %v7315_v15 = vld.sshfl [vmem:[#allocation1] sm:$0xff pattern:$0x73625140] }
 0xad0   :  { %v3689_v47 = vld [vmem:[%s10902_s9 + $0x45d8] sm:$0xff]  ;;  %5408 = vmatpush.msrb.mxu0 %v3553_v46  ;;  %v1538_v46 = vld [vmem:[%s10902_s9 + $0x2a0] sm:$0xff] }
 0xad1   :  { %v3785_v48 = vld [vmem:[%s10902_s9 + $0x48d8] sm:$0xff]  ;;  %5427 = vmatpush.msrb.mxu1 %v3689_v47  ;;  %v9391_v47 = vpop.f32.mrf.mxu3 }
 0xad2   :  { %v3385_v49 = vld [vmem:[%s10902_s9 + $0x3c58] sm:$0xff]  ;;  %5451 = vmatpush.msrb.mxu2 %v3785_v48  ;;  %10924 = vst [vmem:[#allocation52_spill] sm:$0xff] %v9391_v47  ;;  %v9393_v48 = vpop.f32.mrf.mxu2 }
 0xad3   :  { %v3545_v52 = vld [vmem:[%s10902_s9 + $0x4158] sm:$0xff]  ;;  %5393 = vmatpush.msra.mxu3 %v3385_v49  ;;  %v1698_v49 = vld [vmem:[%s10902_s9 + $0x7a0] sm:$0xff] }
 0xad4   :  { %v3681_v53 = vld [vmem:[%s10902_s9 + $0x4598] sm:$0xff]  ;;  %5409 = vmatpush.msrb.mxu0 %v3545_v52  ;;  %v1834_v52 = vld [vmem:[%s10902_s9 + $0xbe0] sm:$0xff] }
 0xad5   :  { %v3777_v42 = vld [vmem:[%s10902_s9 + $0x4898] sm:$0xff]  ;;  %5428 = vmatpush.msrb.mxu1 %v3681_v53  ;;  %v1930_v53 = vld [vmem:[%s10902_s9 + $0xee0] sm:$0xff] }
 0xad6   :  { %v3377_v1 = vld [vmem:[%s10902_s9 + $0x3c18] sm:$0xff]  ;;  %5452 = vmatpush.msrb.mxu2 %v3777_v42  ;;  %v1530_v42 = vld [vmem:[%s10902_s9 + $0x260] sm:$0xff] }
 0xad7   :  { %v3537_v56 = vld [vmem:[%s10902_s9 + $0x4118] sm:$0xff]  ;;  %5394 = vmatpush.msra.mxu3 %v3377_v1  ;;  %v7316_v1 = vld.sshfl [vmem:[#allocation1 + $0x8] sm:$0xff pattern:$0x73625140] }
 0xad8   :  { %v3673_v57 = vld [vmem:[%s10902_s9 + $0x4558] sm:$0xff]  ;;  %5410 = vmatpush.msrb.mxu0 %v3537_v56  ;;  %v1690_v56 = vld [vmem:[%s10902_s9 + $0x760] sm:$0xff] }
 0xad9   :  { %v3769_v2 = vld [vmem:[%s10902_s9 + $0x4858] sm:$0xff]  ;;  %5429 = vmatpush.msrb.mxu1 %v3673_v57  ;;  %5459 = vmatpush.msrb.mxu3 %v1578_v60  ;;  %v1826_v57 = vld [vmem:[%s10902_s9 + $0xba0] sm:$0xff] }
 0xada   :  { %v3529_v61 = vld [vmem:[%s10902_s9 + $0x40d8] sm:$0xff]  ;;  %5453 = vmatpush.msrb.mxu2 %v3769_v2  ;;  %v1922_v2 = vld [vmem:[%s10902_s9 + $0xea0] sm:$0xff] }
 0xadb   :  { %v3665_v63 = vld [vmem:[%s10902_s9 + $0x4518] sm:$0xff]  ;;  %5411 = vmatpush.msrb.mxu0 %v3529_v61  ;;  %5460 = vmatpush.msrb.mxu3 %v1570_v8  ;;  %v1522_v60 = vld [vmem:[%s10902_s9 + $0x220] sm:$0xff]  ;;  %v9403_v61 = vpop.f32.mrf.mxu0 }
 0xadc   :  { %v3761_v0 = vld [vmem:[%s10902_s9 + $0x4818] sm:$0xff]  ;;  %5430 = vmatpush.msrb.mxu1 %v3665_v63  ;;  %v1682_v63 = vld [vmem:[%s10902_s9 + $0x720] sm:$0xff] }
 0xadd   :  { %v7313_v5 = vld.sshfl [vmem:[#allocation1 + $0x38] sm:$0xff pattern:$0x73625140]  ;;  %5454 = vmatpush.msrb.mxu2 %v3761_v0  ;;  %5461 = vmatpush.msrb.mxu3 %v1562_v18  ;;  %v1818_v0 = vld [vmem:[%s10902_s9 + $0xb60] sm:$0xff] }
 0xade   :  { %5395 = vmatmul.f32.vlgmr.msra.gmra.mxu3 %v7313_v5  ;;  %v3521_v10 = vld [vmem:[%s10902_s9 + $0x4098] sm:$0xff]  ;;  %7178 = vmatmul.msk.f32.vlgmr.msrb.gmra.mxu2 %vm3936_vm9, %v7314_v36  ;;  %v1914_v5 = vld [vmem:[%s10902_s9 + $0xe60] sm:$0xff] }
 0xadf   :  { %v3657_v11 = vld [vmem:[%s10902_s9 + $0x44d8] sm:$0xff]  ;;  %5519 = vmatpush.msra.mxu2 %v1962_v9  ;;  %5412 = vmatpush.msrb.mxu0 %v3521_v10  ;;  %v1514_v8 = vld [vmem:[%s10902_s9 + $0x1e0] sm:$0xff]  ;;  %v9409_v9 = vpop.f32.mrf.mxu1 }
 0xae0   :  { %v3513_v25 = vld [vmem:[%s10902_s9 + $0x4058] sm:$0xff]  ;;  %5431 = vmatpush.msrb.mxu1 %v3657_v11  ;;  %5462 = vmatpush.msrb.mxu3 %v1554_v31  ;;  %v1674_v10 = vld [vmem:[%s10902_s9 + $0x6e0] sm:$0xff] }
 0xae1   :  { %v3649_v26 = vld [vmem:[%s10902_s9 + $0x4498] sm:$0xff]  ;;  %5520 = vmatpush.msra.mxu2 %v1954_v43  ;;  %5413 = vmatpush.msrb.mxu0 %v3513_v25  ;;  %v1810_v11 = vld [vmem:[%s10902_s9 + $0xb20] sm:$0xff]  ;;  %v9415_v25 = vpop.f32.mrf.mxu3 }
 0xae2   :  { %v3505_v33 = vld [vmem:[%s10902_s9 + $0x4018] sm:$0xff]  ;;  %5432 = vmatpush.msrb.mxu1 %v3649_v26  ;;  %5463 = vmatpush.msrb.mxu3 %v1546_v37  ;;  %v1906_v18 = vld [vmem:[%s10902_s9 + $0xe20] sm:$0xff] }
 0xae3   :  { %v3641_v35 = vld [vmem:[%s10902_s9 + $0x4458] sm:$0xff]  ;;  %5521 = vmatpush.msra.mxu2 %v1946_v32  ;;  %5414 = vmatpush.msrb.mxu0 %v3505_v33  ;;  %v1506_v43 = vld [vmem:[%s10902_s9 + $0x1a0] sm:$0xff] }
 0xae4   :  { %v3633_v40 = vld [vmem:[%s10902_s9 + $0x4418] sm:$0xff]  ;;  %5433 = vmatpush.msrb.mxu1 %v3641_v35  ;;  %5415 = vmatmul.f32.vlgmr.msrb.gmra.mxu0 %v7315_v15  ;;  %v1666_v26 = vld [vmem:[%s10902_s9 + $0x6a0] sm:$0xff]  ;;  %v9421_v35 = vpop.f32.mrf.mxu2 }
 0xae5   :  { %5479 = vmatpush.msra.mxu0 %v1706_v41  ;;  %5522 = vmatpush.msra.mxu2 %v1938_v39  ;;  %v1802_v31 = vld [vmem:[%s10902_s9 + $0xae0] sm:$0xff] }
 0xae6   :  { %5434 = vmatpush.msrb.mxu1 %v3633_v40  ;;  %5464 = vmatpush.msrb.mxu3 %v1538_v46  ;;  %v1898_v32 = vld [vmem:[%s10902_s9 + $0xde0] sm:$0xff]  ;;  %v9427_v40 = vpop.f32.mrf.mxu0 }
 0xae7   :  { %5435 = vmatmul.f32.vlgmr.msrb.gmra.mxu1 %v7316_v1  ;;  %5480 = vmatpush.msra.mxu0 %v1698_v49  ;;  %v1498_v33 = vld [vmem:[%s10902_s9 + $0x160] sm:$0xff] }
 0xae8   :  { %5499 = vmatpush.msra.mxu1 %v1834_v52  ;;  %5523 = vmatpush.msra.mxu2 %v1930_v53  ;;  %v1658_v36 = vld [vmem:[%s10902_s9 + $0x660] sm:$0xff]  ;;  %v9433_v53 = vpop.f32.mrf.mxu1 }
 0xae9   :  { %5465 = vmatpush.msrb.mxu3 %v1530_v42  ;;  %5481 = vmatpush.msra.mxu0 %v1690_v56  ;;  %v1794_v37 = vld [vmem:[%s10902_s9 + $0xaa0] sm:$0xff] }
 0xaea   :  { %5500 = vmatpush.msra.mxu1 %v1826_v57  ;;  %5524 = vmatpush.msra.mxu2 %v1922_v2  ;;  %v1890_v41 = vld [vmem:[%s10902_s9 + $0xda0] sm:$0xff]  ;;  %v9439_v2 = vpop.f32.mrf.mxu3 }
 0xaeb   :  { %5466 = vmatpush.msrb.mxu3 %v1522_v60  ;;  %5482 = vmatpush.msra.mxu0 %v1682_v63  ;;  %v1490_v39 = vld [vmem:[%s10902_s9 + $0x120] sm:$0xff] }
 0xaec   :  { %5501 = vmatpush.msra.mxu1 %v1818_v0  ;;  %5525 = vmatpush.msra.mxu2 %v1914_v5  ;;  %v1650_v15 = vld [vmem:[%s10902_s9 + $0x620] sm:$0xff] }
 0xaed   :  { %5467 = vmatpush.msrb.mxu3 %v1514_v8  ;;  %5483 = vmatpush.msra.mxu0 %v1674_v10  ;;  %v1786_v46 = vld [vmem:[%s10902_s9 + $0xa60] sm:$0xff]  ;;  %v9445_v8 = vpop.f32.mrf.mxu2 }
 0xaee   :  { %5502 = vmatpush.msra.mxu1 %v1810_v11  ;;  %5526 = vmatpush.msra.mxu2 %v1906_v18  ;;  %v1882_v49 = vld [vmem:[%s10902_s9 + $0xd60] sm:$0xff] }
 0xaef   :  { %5468 = vmatpush.msrb.mxu3 %v1506_v43  ;;  %5484 = vmatpush.msra.mxu0 %v1666_v26  ;;  %v1482_v52 = vld [vmem:[%s10902_s9 + $0xe0] sm:$0xff]  ;;  %v9451_v26 = vpop.f32.mrf.mxu0 }
 0xaf0   :  { %5503 = vmatpush.msra.mxu1 %v1802_v31  ;;  %5527 = vmatpush.msra.mxu2 %v1898_v32  ;;  %v1642_v42 = vld [vmem:[%s10902_s9 + $0x5e0] sm:$0xff] }
 0xaf1   :  { %5469 = vmatpush.msrb.mxu3 %v1498_v33  ;;  %5485 = vmatpush.msra.mxu0 %v1658_v36  ;;  %v1778_v1 = vld [vmem:[%s10902_s9 + $0xa20] sm:$0xff] }
 0xaf2   :  { %5504 = vmatpush.msra.mxu1 %v1794_v37  ;;  %5528 = vmatpush.msra.mxu2 %v1890_v41  ;;  %v1874_v56 = vld [vmem:[%s10902_s9 + $0xd20] sm:$0xff]  ;;  %v9457_v37 = vpop.f32.mrf.mxu1 }
 0xaf3   :  { %5470 = vmatpush.msrb.mxu3 %v1490_v39  ;;  %5486 = vmatpush.msra.mxu0 %v1650_v15  ;;  %v1474_v57 = vld [vmem:[%s10902_s9 + $0xa0] sm:$0xff] }
 0xaf4   :  { %5505 = vmatpush.msra.mxu1 %v1786_v46  ;;  %5529 = vmatpush.msra.mxu2 %v1882_v49  ;;  %v1634_v60 = vld [vmem:[%s10902_s9 + $0x5a0] sm:$0xff]  ;;  %v9463_v49 = vpop.f32.mrf.mxu3 }
 0xaf5   :  { %5471 = vmatpush.msrb.mxu3 %v1482_v52  ;;  %v1770_v63 = vld [vmem:[%s10902_s9 + $0x9e0] sm:$0xff]  ;;  %5487 = vmatpush.msra.mxu0 %v1642_v42 }
 0xaf6   :  { %5506 = vmatpush.msra.mxu1 %v1778_v1  ;;  %v1866_v0 = vld [vmem:[%s10902_s9 + $0xce0] sm:$0xff]  ;;  %5530 = vmatpush.msra.mxu2 %v1874_v56 }
 0xaf7   :  { %v1466_v5 = vld [vmem:[%s10902_s9 + $0x60] sm:$0xff]  ;;  %5472 = vmatpush.msrb.mxu3 %v1474_v57  ;;  %5488 = vmatpush.msra.mxu0 %v1634_v60  ;;  %v9469_v57 = vpop.f32.mrf.mxu2 }
 0xaf8   :  { %v1626_v10 = vld [vmem:[%s10902_s9 + $0x560] sm:$0xff]  ;;  %5507 = vmatpush.msra.mxu1 %v1770_v63  ;;  %5531 = vmatpush.msra.mxu2 %v1866_v0 }
 0xaf9   :  { %v1762_v11 = vld [vmem:[%s10902_s9 + $0x9a0] sm:$0xff]  ;;  %5473 = vmatpush.msrb.mxu3 %v1466_v5  ;;  %5489 = vmatpush.msra.mxu0 %v1626_v10  ;;  %v9475_v10 = vpop.f32.mrf.mxu0 }
 0xafa   :  { %v1858_v18 = vld [vmem:[%s10902_s9 + $0xca0] sm:$0xff]  ;;  %5508 = vmatpush.msra.mxu1 %v1762_v11 }
 0xafb   :  { %v1458_v43 = vld [vmem:[%s10902_s9 + $0x20] sm:$0xff]  ;;  %5532 = vmatpush.msra.mxu2 %v1858_v18 }
 0xafc   :  { %v1618_v31 = vld [vmem:[%s10902_s9 + $0x520] sm:$0xff]  ;;  %5474 = vmatpush.msrb.mxu3 %v1458_v43 }
 0xafd   :  { %v1754_v32 = vld [vmem:[%s10902_s9 + $0x960] sm:$0xff]  ;;  %5490 = vmatpush.msra.mxu0 %v1618_v31  ;;  %5475 = vmatmul.f32.vlgmr.msrb.gmra.mxu3 %v8155_v58 }
 0xafe   :  { %v1850_v33 = vld [vmem:[%s10902_s9 + $0xc60] sm:$0xff]  ;;  %5509 = vmatpush.msra.mxu1 %v1754_v32  ;;  %v9481_v32 = vpop.f32.mrf.mxu1 }
 0xaff   :  { %v2090_v36 = vld [vmem:[%s10902_s9 + $0x13e0] sm:$0xff]  ;;  %5533 = vmatpush.msra.mxu2 %v1850_v33  ;;  %10925 = vst [vmem:[#allocation53_spill] sm:$0xff] %v9481_v32 }
 0xb00   :  { %v1610_v41 = vld [vmem:[%s10902_s9 + $0x4e0] sm:$0xff]  ;;  %5539 = vmatpush.msra.mxu3 %v2090_v36 }
 0xb01   :  { %v1746_v39 = vld [vmem:[%s10902_s9 + $0x920] sm:$0xff]  ;;  %5491 = vmatpush.msra.mxu0 %v1610_v41 }
 0xb02   :  { %v1842_v15 = vld [vmem:[%s10902_s9 + $0xc20] sm:$0xff]  ;;  %5510 = vmatpush.msra.mxu1 %v1746_v39 }
 0xb03   :  { %v2082_v46 = vld [vmem:[%s10902_s9 + $0x13a0] sm:$0xff]  ;;  %5534 = vmatpush.msra.mxu2 %v1842_v15  ;;  %v9487_v15 = vpop.f32.mrf.mxu3 }
 0xb04   :  { %v2474_v52 = vld [vmem:[%s10902_s9 + $0x1fe0] sm:$0xff]  ;;  %5540 = vmatpush.msra.mxu3 %v2082_v46  ;;  %10926 = vst [vmem:[#allocation54_spill] sm:$0xff] %v9487_v15  ;;  %5535 = vmatmul.f32.vlgmr.msra.gmra.mxu2 %v8149_v54 }
 0xb05   :  { %v1602_v42 = vld [vmem:[%s10902_s9 + $0x4a0] sm:$0xff]  ;;  %5599 = vmatpush.msrb.mxu2 %v2474_v52 }
 0xb06   :  { %v1738_v1 = vld [vmem:[%s10902_s9 + $0x8e0] sm:$0xff]  ;;  %5492 = vmatpush.msra.mxu0 %v1602_v42 }
 0xb07   :  { %v2074_v56 = vld [vmem:[%s10902_s9 + $0x1360] sm:$0xff]  ;;  %5511 = vmatpush.msra.mxu1 %v1738_v1 }
 0xb08   :  { %v2466_v60 = vld [vmem:[%s10902_s9 + $0x1fa0] sm:$0xff]  ;;  %5541 = vmatpush.msra.mxu3 %v2074_v56  ;;  %v9493_v56 = vpop.f32.mrf.mxu2 }
 0xb09   :  { %v1594_v63 = vld [vmem:[%s10902_s9 + $0x460] sm:$0xff]  ;;  %5600 = vmatpush.msrb.mxu2 %v2466_v60  ;;  %10927 = vst [vmem:[#allocation55_spill] sm:$0xff] %v9493_v56 }
 0xb0a   :  { %v1730_v0 = vld [vmem:[%s10902_s9 + $0x8a0] sm:$0xff]  ;;  %5493 = vmatpush.msra.mxu0 %v1594_v63 }
 0xb0b   :  { %v2066_v5 = vld [vmem:[%s10902_s9 + $0x1320] sm:$0xff]  ;;  %5512 = vmatpush.msra.mxu1 %v1730_v0 }
 0xb0c   :  { %v2458_v11 = vld [vmem:[%s10902_s9 + $0x1f60] sm:$0xff]  ;;  %5542 = vmatpush.msra.mxu3 %v2066_v5 }
 0xb0d   :  { %v1586_v18 = vld [vmem:[%s10902_s9 + $0x420] sm:$0xff]  ;;  %5601 = vmatpush.msrb.mxu2 %v2458_v11  ;;  %v9499_v11 = vpop.f32.mrf.mxu0 }
 0xb0e   :  { %v1722_v43 = vld [vmem:[%s10902_s9 + $0x860] sm:$0xff]  ;;  %5494 = vmatpush.msra.mxu0 %v1586_v18  ;;  %10928 = vst [vmem:[#allocation56_spill] sm:$0xff] %v9499_v11 }
 0xb0f   :  { %v2058_v31 = vld [vmem:[%s10902_s9 + $0x12e0] sm:$0xff]  ;;  %5513 = vmatpush.msra.mxu1 %v1722_v43  ;;  %5495 = vmatmul.f32.vlgmr.msra.gmra.mxu0 %v8162_v62 }
 0xb10   :  { %v2218_v33 = vld [vmem:[%s10902_s9 + $0x17e0] sm:$0xff]  ;;  %5543 = vmatpush.msra.mxu3 %v2058_v31 }
 0xb11   :  { %v2450_v36 = vld [vmem:[%s10902_s9 + $0x1f20] sm:$0xff]  ;;  %5559 = vmatpush.msrb.mxu0 %v2218_v33 }
 0xb12   :  { %v1714_v41 = vld [vmem:[%s10902_s9 + $0x820] sm:$0xff]  ;;  %5602 = vmatpush.msrb.mxu2 %v2450_v36  ;;  %v9505_v36 = vpop.f32.mrf.mxu1 }
 0xb13   :  { %v2050_v39 = vld [vmem:[%s10902_s9 + $0x12a0] sm:$0xff]  ;;  %5514 = vmatpush.msra.mxu1 %v1714_v41 }
 0xb14   :  { %v2210_v46 = vld [vmem:[%s10902_s9 + $0x17a0] sm:$0xff]  ;;  %5544 = vmatpush.msra.mxu3 %v2050_v39  ;;  %5515 = vmatmul.f32.vlgmr.msra.gmra.mxu1 %v8169_v7 }
 0xb15   :  { %v2346_v52 = vld [vmem:[%s10902_s9 + $0x1be0] sm:$0xff]  ;;  %5560 = vmatpush.msrb.mxu0 %v2210_v46 }
 0xb16   :  { %v2442_v42 = vld [vmem:[%s10902_s9 + $0x1ee0] sm:$0xff]  ;;  %5579 = vmatpush.msrb.mxu1 %v2346_v52 }
 0xb17   :  { %v2042_v1 = vld [vmem:[%s10902_s9 + $0x1260] sm:$0xff]  ;;  %5603 = vmatpush.msrb.mxu2 %v2442_v42  ;;  %v9511_v42 = vpop.f32.mrf.mxu3 }
 0xb18   :  { %v2202_v60 = vld [vmem:[%s10902_s9 + $0x1760] sm:$0xff]  ;;  %5545 = vmatpush.msra.mxu3 %v2042_v1  ;;  %10929 = vst [vmem:[#allocation57_spill] sm:$0xff] %v9511_v42 }
 0xb19   :  { %v2338_v63 = vld [vmem:[%s10902_s9 + $0x1ba0] sm:$0xff]  ;;  %5561 = vmatpush.msrb.mxu0 %v2202_v60 }
 0xb1a   :  { %v2434_v0 = vld [vmem:[%s10902_s9 + $0x1ea0] sm:$0xff]  ;;  %5580 = vmatpush.msrb.mxu1 %v2338_v63 }
 0xb1b   :  { %v2034_v5 = vld [vmem:[%s10902_s9 + $0x1220] sm:$0xff]  ;;  %5604 = vmatpush.msrb.mxu2 %v2434_v0 }
 0xb1c   :  { %v2194_v18 = vld [vmem:[%s10902_s9 + $0x1720] sm:$0xff]  ;;  %5546 = vmatpush.msra.mxu3 %v2034_v5  ;;  %v9517_v5 = vpop.f32.mrf.mxu2 }
 0xb1d   :  { %v2330_v43 = vld [vmem:[%s10902_s9 + $0x1b60] sm:$0xff]  ;;  %5562 = vmatpush.msrb.mxu0 %v2194_v18 }
 0xb1e   :  { %v2426_v31 = vld [vmem:[%s10902_s9 + $0x1e60] sm:$0xff]  ;;  %5581 = vmatpush.msrb.mxu1 %v2330_v43 }
 0xb1f   :  { %v2026_v33 = vld [vmem:[%s10902_s9 + $0x11e0] sm:$0xff]  ;;  %5605 = vmatpush.msrb.mxu2 %v2426_v31  ;;  %v9533_v47 = vpop.f32.mrf.mxu3 }
 0xb20   :  { %v2186_v41 = vld [vmem:[%s10902_s9 + $0x16e0] sm:$0xff]  ;;  %5547 = vmatpush.msra.mxu3 %v2026_v33 }
 0xb21   :  { %v2322_v39 = vld [vmem:[%s10902_s9 + $0x1b20] sm:$0xff]  ;;  %5563 = vmatpush.msrb.mxu0 %v2186_v41  ;;  %v9523_v41 = vpop.f32.mrf.mxu0 }
 0xb22   :  { %v2418_v46 = vld [vmem:[%s10902_s9 + $0x1e20] sm:$0xff]  ;;  %5582 = vmatpush.msrb.mxu1 %v2322_v39 }
 0xb23   :  { %v2018_v52 = vld [vmem:[%s10902_s9 + $0x11a0] sm:$0xff]  ;;  %5606 = vmatpush.msrb.mxu2 %v2418_v46 }
 0xb24   :  { %v2178_v1 = vld [vmem:[%s10902_s9 + $0x16a0] sm:$0xff]  ;;  %5548 = vmatpush.msra.mxu3 %v2018_v52 }
 0xb25   :  { %v2314_v60 = vld [vmem:[%s10902_s9 + $0x1ae0] sm:$0xff]  ;;  %5564 = vmatpush.msrb.mxu0 %v2178_v1 }
 0xb26   :  { %v2410_v63 = vld [vmem:[%s10902_s9 + $0x1de0] sm:$0xff]  ;;  %5583 = vmatpush.msrb.mxu1 %v2314_v60 }
 0xb27   :  { %v2010_v0 = vld [vmem:[%s10902_s9 + $0x1160] sm:$0xff]  ;;  %5607 = vmatpush.msrb.mxu2 %v2410_v63 }
 0xb28   :  { %v2170_v18 = vld [vmem:[%s10902_s9 + $0x1660] sm:$0xff]  ;;  %5549 = vmatpush.msra.mxu3 %v2010_v0 }
 0xb29   :  { %v2306_v43 = vld [vmem:[%s10902_s9 + $0x1aa0] sm:$0xff]  ;;  %5565 = vmatpush.msrb.mxu0 %v2170_v18  ;;  %v9535_v18 = vpop.f32.mrf.mxu1 }
 0xb2a   :  { %v2402_v31 = vld [vmem:[%s10902_s9 + $0x1da0] sm:$0xff]  ;;  %5584 = vmatpush.msrb.mxu1 %v2306_v43 }
 0xb2b   :  { %v2002_v33 = vld [vmem:[%s10902_s9 + $0x1120] sm:$0xff]  ;;  %5608 = vmatpush.msrb.mxu2 %v2402_v31 }
 0xb2c   :  { %v2162_v39 = vld [vmem:[%s10902_s9 + $0x1620] sm:$0xff]  ;;  %5550 = vmatpush.msra.mxu3 %v2002_v33  ;;  %5585 = vmatpush.msrb.mxu1 %v2298_v12 }
 0xb2d   :  { %v2394_v46 = vld [vmem:[%s10902_s9 + $0x1d60] sm:$0xff]  ;;  %5566 = vmatpush.msrb.mxu0 %v2162_v39 }
 0xb2e   :  { %v1994_v52 = vld [vmem:[%s10902_s9 + $0x10e0] sm:$0xff]  ;;  %5609 = vmatpush.msrb.mxu2 %v2394_v46 }
 0xb2f   :  { %v2154_v1 = vld [vmem:[%s10902_s9 + $0x15e0] sm:$0xff]  ;;  %5551 = vmatpush.msra.mxu3 %v1994_v52  ;;  %v9545_v52 = vpop.f32.mrf.mxu2 }
 0xb30   :  { %v2290_v60 = vld [vmem:[%s10902_s9 + $0x1a20] sm:$0xff]  ;;  %5567 = vmatpush.msrb.mxu0 %v2154_v1  ;;  %v9547_v1 = vpop.f32.mrf.mxu0 }
 0xb31   :  { %v2386_v63 = vld [vmem:[%s10902_s9 + $0x1d20] sm:$0xff]  ;;  %5586 = vmatpush.msrb.mxu1 %v2290_v60 }
 0xb32   :  { %v1986_v0 = vld [vmem:[%s10902_s9 + $0x10a0] sm:$0xff]  ;;  %5610 = vmatpush.msrb.mxu2 %v2386_v63 }
 0xb33   :  { %v2146_v43 = vld [vmem:[%s10902_s9 + $0x15a0] sm:$0xff]  ;;  %5552 = vmatpush.msra.mxu3 %v1986_v0 }
 0xb34   :  { %v2282_v31 = vld [vmem:[%s10902_s9 + $0x19e0] sm:$0xff]  ;;  %5568 = vmatpush.msrb.mxu0 %v2146_v43 }
 0xb35   :  { %v2378_v33 = vld [vmem:[%s10902_s9 + $0x1ce0] sm:$0xff]  ;;  %5587 = vmatpush.msrb.mxu1 %v2282_v31 }
 0xb36   :  { %v1978_v39 = vld [vmem:[%s10902_s9 + $0x1060] sm:$0xff]  ;;  %5611 = vmatpush.msrb.mxu2 %v2378_v33  ;;  %v9556_v33 = vpop.f32.mrf.mxu3 }
 0xb37   :  { %v2138_v12 = vld [vmem:[%s10902_s9 + $0x1560] sm:$0xff]  ;;  %5553 = vmatpush.msra.mxu3 %v1978_v39  ;;  %v9558_v39 = vpop.f32.mrf.mxu1  ;;  %v9569_v58 = vpop.f32.mrf.mxu2 }
 0xb38   :  { %v2274_v42 = vld [vmem:[%s10902_s9 + $0x19a0] sm:$0xff]  ;;  %5569 = vmatpush.msrb.mxu0 %v2138_v12  ;;  %5612 = vmatpush.msrb.mxu2 %v2370_v34 }
 0xb39   :  { %v1970_v46 = vld [vmem:[%s10902_s9 + $0x1020] sm:$0xff]  ;;  %5588 = vmatpush.msrb.mxu1 %v2274_v42 }
 0xb3a   :  { %v2130_v60 = vld [vmem:[%s10902_s9 + $0x1520] sm:$0xff]  ;;  %5554 = vmatpush.msra.mxu3 %v1970_v46 }
 0xb3b   :  { %v2266_v63 = vld [vmem:[%s10902_s9 + $0x1960] sm:$0xff]  ;;  %5570 = vmatpush.msrb.mxu0 %v2130_v60  ;;  %5555 = vmatmul.f32.vlgmr.msra.gmra.mxu3 %v8188_v23 }
 0xb3c   :  { %v2362_v0 = vld [vmem:[%s10902_s9 + $0x1c60] sm:$0xff]  ;;  %5589 = vmatpush.msrb.mxu1 %v2266_v63 }
 0xb3d   :  { %v2602_v43 = vld [vmem:[%s10902_s9 + $0x23e0] sm:$0xff]  ;;  %5613 = vmatpush.msrb.mxu2 %v2362_v0 }
 0xb3e   :  { %v2122_v31 = vld [vmem:[%s10902_s9 + $0x14e0] sm:$0xff]  ;;  %5619 = vmatpush.msrb.mxu3 %v2602_v43  ;;  %v9571_v43 = vpop.f32.mrf.mxu0 }
 0xb3f   :  { %v2258_v11 = vld [vmem:[%s10902_s9 + $0x1920] sm:$0xff]  ;;  %5571 = vmatpush.msrb.mxu0 %v2122_v31  ;;  %5614 = vmatpush.msrb.mxu2 %v2354_v13 }
 0xb40   :  { %v2594_v34 = vld [vmem:[%s10902_s9 + $0x23a0] sm:$0xff]  ;;  %5590 = vmatpush.msrb.mxu1 %v2258_v11  ;;  %5615 = vmatmul.f32.vlgmr.msrb.gmra.mxu2 %v8190_v24 }
 0xb41   :  { %v2986_v42 = vld [vmem:[%s10902_s9 + $0x2fe0] sm:$0xff]  ;;  %5620 = vmatpush.msrb.mxu3 %v2594_v34 }
 0xb42   :  { %v2114_v12 = vld [vmem:[%s10902_s9 + $0x14a0] sm:$0xff]  ;;  %5679 = vmatpush.msra.mxu2 %v2986_v42  ;;  %v9579_v42 = vpop.f32.mrf.mxu3 }
 0xb43   :  { %v2250_v46 = vld [vmem:[%s10902_s9 + $0x18e0] sm:$0xff]  ;;  %5572 = vmatpush.msrb.mxu0 %v2114_v12  ;;  %v9581_v12 = vpop.f32.mrf.mxu1 }
 0xb44   :  { %v2586_v60 = vld [vmem:[%s10902_s9 + $0x2360] sm:$0xff]  ;;  %5591 = vmatpush.msrb.mxu1 %v2250_v46 }
 0xb45   :  { %v2978_v63 = vld [vmem:[%s10902_s9 + $0x2fa0] sm:$0xff]  ;;  %5621 = vmatpush.msrb.mxu3 %v2586_v60 }
 0xb46   :  { %v2106_v0 = vld [vmem:[%s10902_s9 + $0x1460] sm:$0xff]  ;;  %5680 = vmatpush.msra.mxu2 %v2978_v63 }
 0xb47   :  { %v2242_v31 = vld [vmem:[%s10902_s9 + $0x18a0] sm:$0xff]  ;;  %5573 = vmatpush.msrb.mxu0 %v2106_v0 }
 0xb48   :  { %v2578_v11 = vld [vmem:[%s10902_s9 + $0x2320] sm:$0xff]  ;;  %5592 = vmatpush.msrb.mxu1 %v2242_v31 }
 0xb49   :  { %v2970_v13 = vld [vmem:[%s10902_s9 + $0x2f60] sm:$0xff]  ;;  %5622 = vmatpush.msrb.mxu3 %v2578_v11 }
 0xb4a   :  { %v2098_v54 = vld [vmem:[%s10902_s9 + $0x1420] sm:$0xff]  ;;  %5681 = vmatpush.msra.mxu2 %v2970_v13  ;;  %v9592_v13 = vpop.f32.mrf.mxu2  ;;  %v9604_v23 = vpop.f32.mrf.mxu3 }
 0xb4b   :  { %v2234_v34 = vld [vmem:[%s10902_s9 + $0x1860] sm:$0xff]  ;;  %5574 = vmatpush.msrb.mxu0 %v2098_v54  ;;  %v9606_v32 = vpop.f32.mrf.mxu1 }
 0xb4c   :  { %v2730_v56 = vld [vmem:[%s10902_s9 + $0x27e0] sm:$0xff]  ;;  %5593 = vmatpush.msrb.mxu1 %v2234_v34  ;;  %v9594_v34 = vpop.f32.mrf.mxu0  ;;  %10932 = vst [vmem:[#allocation59_spill] sm:$0xff] %v9606_v32  ;;  %5575 = vmatmul.f32.vlgmr.msrb.gmra.mxu0 %v8184_v19 }
 0xb4d   :  { %v2570_v46 = vld [vmem:[%s10902_s9 + $0x22e0] sm:$0xff]  ;;  %5639 = vmatpush.msra.mxu0 %v2730_v56  ;;  %10930 = vst [vmem:[#allocation58_spill] sm:$0xff] %v9594_v34 }
 0xb4e   :  { %v2962_v60 = vld [vmem:[%s10902_s9 + $0x2f20] sm:$0xff]  ;;  %5623 = vmatpush.msrb.mxu3 %v2570_v46 }
 0xb4f   :  { %v2226_v63 = vld [vmem:[%s10902_s9 + $0x1820] sm:$0xff]  ;;  %5682 = vmatpush.msra.mxu2 %v2962_v60 }
 0xb50   :  { %v2722_v0 = vld [vmem:[%s10902_s9 + $0x27a0] sm:$0xff]  ;;  %5594 = vmatpush.msrb.mxu1 %v2226_v63 }
 0xb51   :  { %v2562_v31 = vld [vmem:[%s10902_s9 + $0x22a0] sm:$0xff]  ;;  %5640 = vmatpush.msra.mxu0 %v2722_v0  ;;  %5595 = vmatmul.f32.vlgmr.msrb.gmra.mxu1 %v8194_v27 }
 0xb52   :  { %v2858_v11 = vld [vmem:[%s10902_s9 + $0x2be0] sm:$0xff]  ;;  %5624 = vmatpush.msrb.mxu3 %v2562_v31 }
 0xb53   :  { %v2954_v54 = vld [vmem:[%s10902_s9 + $0x2ee0] sm:$0xff]  ;;  %5659 = vmatpush.msra.mxu1 %v2858_v11  ;;  %5641 = vmatpush.msra.mxu0 %v2714_v4  ;;  %v5116_v6 = vpop.f32.mrf.mxu1 }
 0xb54   :  { %v2554_v62 = vld [vmem:[%s10902_s9 + $0x2260] sm:$0xff]  ;;  %5683 = vmatpush.msra.mxu2 %v2954_v54 }
 0xb55   :  { %v2850_v56 = vld [vmem:[%s10902_s9 + $0x2ba0] sm:$0xff]  ;;  %5625 = vmatpush.msrb.mxu3 %v2554_v62 }
 0xb56   :  { %v2946_v46 = vld [vmem:[%s10902_s9 + $0x2ea0] sm:$0xff]  ;;  %5660 = vmatpush.msra.mxu1 %v2850_v56 }
 0xb57   :  { %v2546_v60 = vld [vmem:[%s10902_s9 + $0x2220] sm:$0xff]  ;;  %5684 = vmatpush.msra.mxu2 %v2946_v46  ;;  %v9620_v46 = vpop.f32.mrf.mxu2 }
 0xb58   :  { %v2706_v63 = vld [vmem:[%s10902_s9 + $0x2720] sm:$0xff]  ;;  %5626 = vmatpush.msrb.mxu3 %v2546_v60  ;;  %10933 = vst [vmem:[#allocation60_spill] sm:$0xff] %v9620_v46  ;;  %v5096_v60 = vpop.f32.mrf.mxu0 }
 0xb59   :  { %v2842_v0 = vld [vmem:[%s10902_s9 + $0x2b60] sm:$0xff]  ;;  %5642 = vmatpush.msra.mxu0 %v2706_v63 }
 0xb5a   :  { %v2938_v31 = vld [vmem:[%s10902_s9 + $0x2e60] sm:$0xff]  ;;  %5661 = vmatpush.msra.mxu1 %v2842_v0 }
 0xb5b   :  { %v2538_v11 = vld [vmem:[%s10902_s9 + $0x21e0] sm:$0xff]  ;;  %5685 = vmatpush.msra.mxu2 %v2938_v31 }
 0xb5c   :  { %v2698_v62 = vld [vmem:[%s10902_s9 + $0x26e0] sm:$0xff]  ;;  %5627 = vmatpush.msrb.mxu3 %v2538_v11 }
 0xb5d   :  { %v9613_v54 = vld [vmem:[%s10931_s19] sm:$0xff]  ;;  %5643 = vmatpush.msra.mxu0 %v2698_v62 }
 0xb5e   :  { %v2834_v4 = vld [vmem:[%s10902_s9 + $0x2b20] sm:$0xff]  ;;  %v3875_v32 = vperm.slane %v9613_v54, 3  ;;  %v3874_v11 = vperm.slane %v9613_v54, 2 }
 0xb5f   :  { %v2930_v7 = vld [vmem:[%s10902_s9 + $0x2e20] sm:$0xff]  ;;  %5662 = vmatpush.msra.mxu1 %v2834_v4  ;;  %v9632_v4 = vpop.f32.mrf.mxu3 }
 0xb60   :  { %v2530_v56 = vld [vmem:[%s10902_s9 + $0x21a0] sm:$0xff]  ;;  %5686 = vmatpush.msra.mxu2 %v2930_v7  ;;  %v5097_v46 = vadd.f32 %v5096_v60, %v3875_v32  ;;  %10934 = vst [vmem:[#allocation61_spill] sm:$0xff] %v9632_v4 }
 0xb61   :  { %v2690_v63 = vld [vmem:[%s10902_s9 + $0x26a0] sm:$0xff]  ;;  %5628 = vmatpush.msrb.mxu3 %v2530_v56 }
 0xb62   :  { %v2826_v0 = vld [vmem:[%s10902_s9 + $0x2ae0] sm:$0xff]  ;;  %5644 = vmatpush.msra.mxu0 %v2690_v63 }
 0xb63   :  { %v2922_v24 = vld [vmem:[%s10902_s9 + $0x2de0] sm:$0xff]  ;;  %5663 = vmatpush.msra.mxu1 %v2826_v0  ;;  %v4717_v0 = vadd.f32 %v9505_v36, %v3874_v11 }
 0xb64   :  { %v2522_v34 = vld [vmem:[%s10902_s9 + $0x2160] sm:$0xff]  ;;  %5687 = vmatpush.msra.mxu2 %v2922_v24  ;;  %v5117_v24 = vadd.f32 %v5116_v6, %v5097_v46 }
 0xb65   :  { %v2682_v31 = vld [vmem:[%s10902_s9 + $0x2660] sm:$0xff]  ;;  %5629 = vmatpush.msrb.mxu3 %v2522_v34 }
 0xb66   :  { %v2818_v19 = vld [vmem:[%s10902_s9 + $0x2aa0] sm:$0xff]  ;;  %5645 = vmatpush.msra.mxu0 %v2682_v31 }
 0xb67   :  { %v2914_v62 = vld [vmem:[%s10902_s9 + $0x2da0] sm:$0xff]  ;;  %5664 = vmatpush.msra.mxu1 %v2818_v19  ;;  %v5136_v19 = vpop.f32.mrf.mxu2 }
 0xb68   :  { %v2514_v7 = vld [vmem:[%s10902_s9 + $0x2120] sm:$0xff]  ;;  %5688 = vmatpush.msra.mxu2 %v2914_v62  ;;  %v5137_v46 = vadd.f32 %v5136_v19, %v5117_v24 }
 0xb69   :  { %v2674_v56 = vld [vmem:[%s10902_s9 + $0x2620] sm:$0xff]  ;;  %5630 = vmatpush.msrb.mxu3 %v2514_v7 }
 0xb6a   :  { %v2810_v27 = vld [vmem:[%s10902_s9 + $0x2a60] sm:$0xff]  ;;  %5646 = vmatpush.msra.mxu0 %v2674_v56 }
 0xb6b   :  { %v2906_v15 = vld [vmem:[%s10902_s9 + $0x2d60] sm:$0xff]  ;;  %5665 = vmatpush.msra.mxu1 %v2810_v27  ;;  %v3873_v27 = vperm.slane %v9613_v54, 1 }
 0xb6c   :  { %v2506_v32 = vld [vmem:[%s10902_s9 + $0x20e0] sm:$0xff]  ;;  %5689 = vmatpush.msra.mxu2 %v2906_v15  ;;  %v4737_v15 = vadd.f32 %v9517_v5, %v4717_v0 }
 0xb6d   :  { %v2666_v60 = vld [vmem:[%s10902_s9 + $0x25e0] sm:$0xff]  ;;  %5631 = vmatpush.msrb.mxu3 %v2506_v32  ;;  %v3872_v32 = vperm.slane %v9613_v54, 0  ;;  %v4337_v0 = vadd.f32 %v9393_v48, %v3873_v27 }
 0xb6e   :  { %v2802_v63 = vld [vmem:[%s10902_s9 + $0x2a20] sm:$0xff]  ;;  %5647 = vmatpush.msra.mxu0 %v2666_v60  ;;  %v5156_v60 = vpop.f32.mrf.mxu3  ;;  %v4757_v54 = vadd.f32 %v9533_v47, %v4737_v15 }
 0xb6f   :  { %v2898_v34 = vld [vmem:[%s10902_s9 + $0x2d20] sm:$0xff]  ;;  %5666 = vmatpush.msra.mxu1 %v2802_v63  ;;  %v5157_v24 = vadd.f32 %v5156_v60, %v5137_v46 }
 0xb70   :  { %v2498_v31 = vld [vmem:[%s10902_s9 + $0x20a0] sm:$0xff]  ;;  %5690 = vmatpush.msra.mxu2 %v2898_v34  ;;  %v4777_v46 = vadd.f32 %v9523_v41, %v4757_v54 }
 0xb71   :  { %v2658_v4 = vld [vmem:[%s10902_s9 + $0x25a0] sm:$0xff]  ;;  %5632 = vmatpush.msrb.mxu3 %v2498_v31 }
 0xb72   :  { %v2794_v62 = vld [vmem:[%s10902_s9 + $0x29e0] sm:$0xff]  ;;  %5648 = vmatpush.msra.mxu0 %v2658_v4 }
 0xb73   :  { %v2890_v7 = vld [vmem:[%s10902_s9 + $0x2ce0] sm:$0xff]  ;;  %5667 = vmatpush.msra.mxu1 %v2794_v62  ;;  %5633 = vmatpush.msrb.mxu3 %v2490_v59  ;;  %v3957_v62 = vadd.f32 %v9284_v44, %v3872_v32  ;;  %v4357_v44 = vadd.f32 %v9403_v61, %v4337_v0 }
 0xb74   :  { %v2650_v6 = vld [vmem:[%s10902_s9 + $0x2560] sm:$0xff]  ;;  %5691 = vmatpush.msra.mxu2 %v2890_v7  ;;  %v5176_v7 = vpop.f32.mrf.mxu0 }
 0xb75   :  { %v2786_v36 = vld [vmem:[%s10902_s9 + $0x29a0] sm:$0xff]  ;;  %5649 = vmatpush.msra.mxu0 %v2650_v6  ;;  %v3977_v60 = vadd.f32 %v9294_v21, %v3957_v62  ;;  %v4797_v21 = vadd.f32 %v9535_v18, %v4777_v46 }
 0xb76   :  { %v2882_v11 = vld [vmem:[%s10902_s9 + $0x2ca0] sm:$0xff]  ;;  %5668 = vmatpush.msra.mxu1 %v2786_v36  ;;  %v5236_v18 = vpop.f32.mrf.mxu3 }
 0xb77   :  { %v2482_v56 = vld [vmem:[%s10902_s9 + $0x2020] sm:$0xff]  ;;  %5692 = vmatpush.msra.mxu2 %v2882_v11  ;;  %v5177_v11 = vadd.f32 %v5176_v7, %v5157_v24  ;;  %v3997_v24 = vadd.f32 %v9289_v50, %v3977_v60 }
 0xb78   :  { %v2642_v63 = vld [vmem:[%s10902_s9 + $0x2520] sm:$0xff]  ;;  %5634 = vmatpush.msrb.mxu3 %v2482_v56 }
 0xb79   :  { %v2778_v34 = vld [vmem:[%s10902_s9 + $0x2960] sm:$0xff]  ;;  %5650 = vmatpush.msra.mxu0 %v2642_v63  ;;  %5635 = vmatmul.f32.vlgmr.msrb.gmra.mxu3 %v8248_v14  ;;  %v5196_v63 = vpop.f32.mrf.mxu1 }
 0xb7a   :  { %v2874_v31 = vld [vmem:[%s10902_s9 + $0x2c60] sm:$0xff]  ;;  %5669 = vmatpush.msra.mxu1 %v2778_v34 }
 0xb7b   :  { %v3114_v5 = vld [vmem:[%s10902_s9 + $0x33e0] sm:$0xff]  ;;  %5693 = vmatpush.msra.mxu2 %v2874_v31 }
 0xb7c   :  { %v2634_v4 = vld [vmem:[%s10902_s9 + $0x24e0] sm:$0xff]  ;;  %5699 = vmatpush.msra.mxu3 %v3114_v5  ;;  %v4377_v5 = vadd.f32 %v9415_v25, %v4357_v44 }
 0xb7d   :  { %v2770_v59 = vld [vmem:[%s10902_s9 + $0x2920] sm:$0xff]  ;;  %5651 = vmatpush.msra.mxu0 %v2634_v4  ;;  %v5197_v4 = vadd.f32 %v5196_v63, %v5177_v11 }
 0xb7e   :  { %v2866_v19 = vld [vmem:[%s10902_s9 + $0x2c20] sm:$0xff]  ;;  %5670 = vmatpush.msra.mxu1 %v2770_v59  ;;  %v5216_v59 = vpop.f32.mrf.mxu2  ;;  %v4397_v50 = vadd.f32 %v9409_v9, %v4377_v5 }
 0xb7f   :  { %v3106_v6 = vld [vmem:[%s10902_s9 + $0x33a0] sm:$0xff]  ;;  %5694 = vmatpush.msra.mxu2 %v2866_v19 }
 0xb80   :  { %v3498_v48 = vld [vmem:[%s10902_s9 + $0x3fe0] sm:$0xff]  ;;  %5700 = vmatpush.msra.mxu3 %v3106_v6  ;;  %5695 = vmatmul.f32.vlgmr.msra.gmra.mxu2 %v8255_v22  ;;  %v4417_v63 = vadd.f32 %v9421_v35, %v4397_v50 }
 0xb81   :  { %v2626_v47 = vld [vmem:[%s10902_s9 + $0x24a0] sm:$0xff]  ;;  %5759 = vmatpush.msrb.mxu2 %v3498_v48  ;;  %v4817_v48 = vadd.f32 %v9545_v52, %v4797_v21 }
 0xb82   :  { %v2762_v36 = vld [vmem:[%s10902_s9 + $0x28e0] sm:$0xff]  ;;  %5652 = vmatpush.msra.mxu0 %v2626_v47  ;;  %v5217_v47 = vadd.f32 %v5216_v59, %v5197_v4  ;;  %v4437_v5 = vadd.f32 %v9427_v40, %v4417_v63 }
 0xb83   :  { %v3098_v27 = vld [vmem:[%s10902_s9 + $0x3360] sm:$0xff]  ;;  %5671 = vmatpush.msra.mxu1 %v2762_v36  ;;  %v4837_v9 = vadd.f32 %v9556_v33, %v4817_v48 }
 0xb84   :  { %v3490_v15 = vld [vmem:[%s10902_s9 + $0x3fa0] sm:$0xff]  ;;  %5701 = vmatpush.msra.mxu3 %v3098_v27  ;;  %v5237_v52 = vadd.f32 %v5236_v18, %v5217_v47  ;;  %v4457_v59 = vadd.f32 %v9439_v2, %v4437_v5 }
 0xb85   :  { %v2618_v56 = vld [vmem:[%s10902_s9 + $0x2460] sm:$0xff]  ;;  %5760 = vmatpush.msrb.mxu2 %v3490_v15  ;;  %v4017_v15 = vadd.f32 %v9296_v55, %v3997_v24  ;;  %v4857_v21 = vadd.f32 %v9547_v1, %v4837_v9 }
 0xb86   :  { %v2754_v32 = vld [vmem:[%s10902_s9 + $0x28a0] sm:$0xff]  ;;  %5653 = vmatpush.msra.mxu0 %v2618_v56  ;;  %v5296_v50 = vpop.f32.mrf.mxu2  ;;  %v4477_v47 = vadd.f32 %v9433_v53, %v4457_v59 }
 0xb87   :  { %v3090_v34 = vld [vmem:[%s10902_s9 + $0x3320] sm:$0xff]  ;;  %5672 = vmatpush.msra.mxu1 %v2754_v32  ;;  %v5256_v32 = vpop.f32.mrf.mxu0  ;;  %v4877_v18 = vadd.f32 %v9558_v39, %v4857_v21 }
 0xb88   :  { %v3482_v31 = vld [vmem:[%s10902_s9 + $0x3f60] sm:$0xff]  ;;  %5702 = vmatpush.msra.mxu3 %v3090_v34  ;;  %v5257_v35 = vadd.f32 %v5256_v32, %v5237_v52  ;;  %v4497_v32 = vadd.f32 %v9445_v8, %v4477_v47 }
 0xb89   :  { %v2610_v61 = vld [vmem:[%s10902_s9 + $0x2420] sm:$0xff]  ;;  %5761 = vmatpush.msrb.mxu2 %v3482_v31  ;;  %v4037_v31 = vadd.f32 %v9310_v3, %v4017_v15  ;;  %v5316_v15 = vpop.f32.mrf.mxu3  ;;  %v4897_v9 = vadd.f32 %v9569_v58, %v4877_v18 }
 0xb8a   :  { %v2746_v41 = vld [vmem:[%s10902_s9 + $0x2860] sm:$0xff]  ;;  %5654 = vmatpush.msra.mxu0 %v2610_v61  ;;  %v4517_v8 = vadd.f32 %v9451_v26, %v4497_v32 }
 0xb8b   :  { %v3082_v0 = vld [vmem:[%s10902_s9 + $0x32e0] sm:$0xff]  ;;  %5673 = vmatpush.msra.mxu1 %v2746_v41  ;;  %5655 = vmatmul.f32.vlgmr.msra.gmra.mxu0 %v8253_v20 }
 0xb8c   :  { %v3242_v54 = vld [vmem:[%s10902_s9 + $0x37e0] sm:$0xff]  ;;  %5703 = vmatpush.msra.mxu3 %v3082_v0 }
 0xb8d   :  { %v3474_v19 = vld [vmem:[%s10902_s9 + $0x3f20] sm:$0xff]  ;;  %5719 = vmatpush.msrb.mxu0 %v3242_v54  ;;  %v5276_v54 = vpop.f32.mrf.mxu1 }
 0xb8e   :  { %v2738_v62 = vld [vmem:[%s10902_s9 + $0x2820] sm:$0xff]  ;;  %5762 = vmatpush.msrb.mxu2 %v3474_v19  ;;  %v4057_v19 = vadd.f32 %v9322_v29, %v4037_v31 }
 0xb8f   :  { %v3074_v25 = vld [vmem:[%s10902_s9 + $0x32a0] sm:$0xff]  ;;  %5674 = vmatpush.msra.mxu1 %v2738_v62 }
 0xb90   :  { %v3234_v7 = vld [vmem:[%s10902_s9 + $0x37a0] sm:$0xff]  ;;  %5675 = vmatmul.f32.vlgmr.msra.gmra.mxu1 %v8259_v28  ;;  %5704 = vmatpush.msra.mxu3 %v3074_v25 }
 0xb91   :  { %v3370_v6 = vld [vmem:[%s10902_s9 + $0x3be0] sm:$0xff]  ;;  %5720 = vmatpush.msrb.mxu0 %v3234_v7  ;;  %v5277_v7 = vadd.f32 %v5276_v54, %v5257_v35  ;;  %v4537_v35 = vadd.f32 %v9463_v49, %v4517_v8 }
 0xb92   :  { %v3466_v36 = vld [vmem:[%s10902_s9 + $0x3ee0] sm:$0xff]  ;;  %5739 = vmatpush.msrb.mxu1 %v3370_v6 }
 0xb93   :  { %v3066_v27 = vld [vmem:[%s10902_s9 + $0x3260] sm:$0xff]  ;;  %5763 = vmatpush.msrb.mxu2 %v3466_v36  ;;  %v5297_v52 = vadd.f32 %v5296_v50, %v5277_v7  ;;  %v1571_v50 = vld [vmem:[%s10902_s9 + $0x3a8] sm:$0xff] }
 0xb94   :  { %v3226_v44 = vld [vmem:[%s10902_s9 + $0x3760] sm:$0xff]  ;;  %5705 = vmatpush.msra.mxu3 %v3066_v27  ;;  %v4077_v27 = vadd.f32 %v9316_v16, %v4057_v19 }
 0xb95   :  { %v3362_v46 = vld [vmem:[%s10902_s9 + $0x3ba0] sm:$0xff]  ;;  %5721 = vmatpush.msrb.mxu0 %v3226_v44 }
 0xb96   :  { %v3458_v11 = vld [vmem:[%s10902_s9 + $0x3ea0] sm:$0xff]  ;;  %5740 = vmatpush.msrb.mxu1 %v3362_v46 }
 0xb97   :  { %v3058_v56 = vld [vmem:[%s10902_s9 + $0x3220] sm:$0xff]  ;;  %5764 = vmatpush.msrb.mxu2 %v3458_v11 }
 0xb98   :  { %v3218_v55 = vld [vmem:[%s10902_s9 + $0x3720] sm:$0xff]  ;;  %5706 = vmatpush.msra.mxu3 %v3058_v56 }
 0xb99   :  { %v3354_v60 = vld [vmem:[%s10902_s9 + $0x3b60] sm:$0xff]  ;;  %5722 = vmatpush.msrb.mxu0 %v3218_v55  ;;  %v4917_v55 = vadd.f32 %v9579_v42, %v4897_v9  ;;  %v7318_v9 = vld.sshfl [vmem:[#allocation1 + $0x38] sm:$0xff pattern:$0x73625140] }
 0xb9a   :  { %v3450_v34 = vld [vmem:[%s10902_s9 + $0x3e60] sm:$0xff]  ;;  %5741 = vmatpush.msrb.mxu1 %v3354_v60  ;;  %v5317_v60 = vadd.f32 %v5316_v15, %v5297_v52 }
 0xb9b   :  { %v3050_v33 = vld [vmem:[%s10902_s9 + $0x31e0] sm:$0xff]  ;;  %5765 = vmatpush.msrb.mxu2 %v3450_v34  ;;  %v4097_v34 = vadd.f32 %v9324_v30, %v4077_v27 }
 0xb9c   :  { %v3210_v61 = vld [vmem:[%s10902_s9 + $0x36e0] sm:$0xff]  ;;  %5707 = vmatpush.msra.mxu3 %v3050_v33  ;;  %v5336_v33 = vpop.f32.mrf.mxu0 }
 0xb9d   :  { %v3346_v41 = vld [vmem:[%s10902_s9 + $0x3b20] sm:$0xff]  ;;  %5723 = vmatpush.msrb.mxu0 %v3210_v61  ;;  %v4117_v5 = vadd.f32 %v9334_v38, %v4097_v34  ;;  %v5356_v38 = vpop.f32.mrf.mxu1 }
 0xb9e   :  { %v3442_v4 = vld [vmem:[%s10902_s9 + $0x3e20] sm:$0xff]  ;;  %5742 = vmatpush.msrb.mxu1 %v3346_v41 }
 0xb9f   :  { %v3042_v0 = vld [vmem:[%s10902_s9 + $0x31a0] sm:$0xff]  ;;  %5766 = vmatpush.msrb.mxu2 %v3442_v4  ;;  %v4937_v4 = vadd.f32 %v9571_v43, %v4917_v55  ;;  %v4137_v54 = vadd.f32 %v9346_v17, %v4117_v5  ;;  %v4557_v17 = vadd.f32 %v9457_v37, %v4537_v35  ;;  %v7319_v55 = vld.sshfl [vmem:[#allocation1 + $0x28] sm:$0xff pattern:$0x73625140] }
 0xba0   :  { %v3202_v3 = vld [vmem:[%s10902_s9 + $0x36a0] sm:$0xff]  ;;  %5708 = vmatpush.msra.mxu3 %v3042_v0  ;;  %v5337_v0 = vadd.f32 %v5336_v33, %v5317_v60  ;;  %v7320_v5 = vld.sshfl [vmem:[#allocation1 + $0x30] sm:$0xff pattern:$0x73625140] }
 0xba1   :  { %v3338_v24 = vld [vmem:[%s10902_s9 + $0x3ae0] sm:$0xff]  ;;  %5724 = vmatpush.msrb.mxu0 %v3202_v3  ;;  %v4957_v19 = vadd.f32 %v9581_v12, %v4937_v4  ;;  %v4157_v7 = vadd.f32 %v9340_v45, %v4137_v54  ;;  %v4577_v47 = vadd.f32 %v9469_v57, %v4557_v17  ;;  %v10939_v4 = vld [vmem:[#allocation53_spill] sm:$0xff] }
 0xba2   :  { %v3434_v40 = vld [vmem:[%s10902_s9 + $0x3de0] sm:$0xff]  ;;  %5743 = vmatpush.msrb.mxu1 %v3338_v24 }
 0xba3   :  { %v3034_v1 = vld [vmem:[%s10902_s9 + $0x3160] sm:$0xff]  ;;  %5767 = vmatpush.msrb.mxu2 %v3434_v40  ;;  %v4977_v45 = vadd.f32 %v9592_v13, %v4957_v19  ;;  %v4177_v15 = vadd.f32 %v9348_v51, %v4157_v7  ;;  %v1555_v51 = vld [vmem:[%s10902_s9 + $0x328] sm:$0xff] }
 0xba4   :  { %v3194_v62 = vld [vmem:[%s10902_s9 + $0x3660] sm:$0xff]  ;;  %5709 = vmatpush.msra.mxu3 %v3034_v1  ;;  %v1579_v1 = vld [vmem:[%s10902_s9 + $0x3e8] sm:$0xff] }
 0xba5   :  { %v3330_v25 = vld [vmem:[%s10902_s9 + $0x3aa0] sm:$0xff]  ;;  %5725 = vmatpush.msrb.mxu0 %v3194_v62  ;;  %v5357_v62 = vadd.f32 %v5356_v38, %v5337_v0  ;;  %v4997_v57 = vadd.f32 %v9604_v23, %v4977_v45  ;;  %v10945_v45 = vld [vmem:[#allocation60_spill] sm:$0xff] }
 0xba6   :  { %v3426_v2 = vld [vmem:[%s10902_s9 + $0x3da0] sm:$0xff]  ;;  %5744 = vmatpush.msrb.mxu1 %v3330_v25 }
 0xba7   :  { %v3026_v6 = vld [vmem:[%s10902_s9 + $0x3120] sm:$0xff]  ;;  %5768 = vmatpush.msrb.mxu2 %v3426_v2  ;;  %v5376_v2 = vpop.f32.mrf.mxu2 }
 0xba8   :  { %v3186_v48 = vld [vmem:[%s10902_s9 + $0x3620] sm:$0xff]  ;;  %5710 = vmatpush.msra.mxu3 %v3026_v6 }
 0xba9   :  { %v3322_v29 = vld [vmem:[%s10902_s9 + $0x3a60] sm:$0xff]  ;;  %5726 = vmatpush.msrb.mxu0 %v3186_v48 }
 0xbaa   :  { %v3418_v36 = vld [vmem:[%s10902_s9 + $0x3d60] sm:$0xff]  ;;  %5745 = vmatpush.msrb.mxu1 %v3322_v29  ;;  %v5396_v29 = vpop.f32.mrf.mxu3 }
 0xbab   :  { %v3018_v39 = vld [vmem:[%s10902_s9 + $0x30e0] sm:$0xff]  ;;  %5769 = vmatpush.msrb.mxu2 %v3418_v36  ;;  %v5377_v36 = vadd.f32 %v5376_v2, %v5357_v62  ;;  %v1523_v2 = vld [vmem:[%s10902_s9 + $0x228] sm:$0xff] }
 0xbac   :  { %v3178_v44 = vld [vmem:[%s10902_s9 + $0x35e0] sm:$0xff]  ;;  %5711 = vmatpush.msra.mxu3 %v3018_v39  ;;  %v1563_v39 = vld [vmem:[%s10902_s9 + $0x368] sm:$0xff] }
 0xbad   :  { %v3314_v46 = vld [vmem:[%s10902_s9 + $0x3a20] sm:$0xff]  ;;  %5727 = vmatpush.msrb.mxu0 %v3178_v44  ;;  %v5397_v13 = vadd.f32 %v5396_v29, %v5377_v36  ;;  %v10944_v29 = vld [vmem:[#allocation56_spill] sm:$0xff] }
 0xbae   :  { %v3410_v53 = vld [vmem:[%s10902_s9 + $0x3d20] sm:$0xff]  ;;  %5746 = vmatpush.msrb.mxu1 %v3314_v46  ;;  %v4597_v46 = vadd.f32 %v9475_v10, %v4577_v47 }
 0xbaf   :  { %v3010_v11 = vld [vmem:[%s10902_s9 + $0x30a0] sm:$0xff]  ;;  %5770 = vmatpush.msrb.mxu2 %v3410_v53  ;;  %v5456_v19 = vpop.f32.mrf.mxu2 }
 0xbb0   :  { %v3170_v56 = vld [vmem:[%s10902_s9 + $0x35a0] sm:$0xff]  ;;  %5712 = vmatpush.msra.mxu3 %v3010_v11 }
 0xbb1   :  { %v3306_v16 = vld [vmem:[%s10902_s9 + $0x39e0] sm:$0xff]  ;;  %5728 = vmatpush.msrb.mxu0 %v3170_v56 }
 0xbb2   :  { %v3402_v58 = vld [vmem:[%s10902_s9 + $0x3ce0] sm:$0xff]  ;;  %5747 = vmatpush.msrb.mxu1 %v3306_v16  ;;  %v5416_v16 = vpop.f32.mrf.mxu0 }
 0xbb3   :  { %v3002_v63 = vld [vmem:[%s10902_s9 + $0x3060] sm:$0xff]  ;;  %5771 = vmatpush.msrb.mxu2 %v3402_v58  ;;  %v10937_v58 = vld [vmem:[#allocation48_spill] sm:$0xff]  ;;  %v5417_v8 = vadd.f32 %v5416_v16, %v5397_v13  ;;  %v10947_v13 = vld [vmem:[#allocation57_spill] sm:$0xff] }
 0xbb4   :  { %v3162_v31 = vld [vmem:[%s10902_s9 + $0x3560] sm:$0xff]  ;;  %5713 = vmatpush.msra.mxu3 %v3002_v63 }
 0xbb5   :  { %v3298_v61 = vld [vmem:[%s10902_s9 + $0x39a0] sm:$0xff]  ;;  %5729 = vmatpush.msrb.mxu0 %v3162_v31 }
 0xbb6   :  { %v3394_v42 = vld [vmem:[%s10902_s9 + $0x3ca0] sm:$0xff]  ;;  %5748 = vmatpush.msrb.mxu1 %v3298_v61 }
 0xbb7   :  { %v2994_v41 = vld [vmem:[%s10902_s9 + $0x3020] sm:$0xff]  ;;  %5772 = vmatpush.msrb.mxu2 %v3394_v42  ;;  %v1547_v42 = vld [vmem:[%s10902_s9 + $0x2e8] sm:$0xff] }
 0xbb8   :  { %v3154_v21 = vld [vmem:[%s10902_s9 + $0x3520] sm:$0xff]  ;;  %5714 = vmatpush.msra.mxu3 %v2994_v41 }
 0xbb9   :  { %v3290_v30 = vld [vmem:[%s10902_s9 + $0x3960] sm:$0xff]  ;;  %5730 = vmatpush.msrb.mxu0 %v3154_v21  ;;  %v5436_v21 = vpop.f32.mrf.mxu1 }
 0xbba   :  { %v3386_v26 = vld [vmem:[%s10902_s9 + $0x3c60] sm:$0xff]  ;;  %5749 = vmatpush.msrb.mxu1 %v3290_v30 }
 0xbbb   :  { %v3626_v3 = vld [vmem:[%s10902_s9 + $0x43e0] sm:$0xff]  ;;  %5773 = vmatpush.msrb.mxu2 %v3386_v26  ;;  %v1539_v26 = vld [vmem:[%s10902_s9 + $0x2a8] sm:$0xff] }
 0xbbc   :  { %v3146_v24 = vld [vmem:[%s10902_s9 + $0x34e0] sm:$0xff]  ;;  %5779 = vmatpush.msrb.mxu3 %v3626_v3 }
 0xbbd   :  { %v3282_v49 = vld [vmem:[%s10902_s9 + $0x3920] sm:$0xff]  ;;  %5731 = vmatpush.msrb.mxu0 %v3146_v24 }
 0xbbe   :  { %v3378_v59 = vld [vmem:[%s10902_s9 + $0x3c20] sm:$0xff]  ;;  %5750 = vmatpush.msrb.mxu1 %v3282_v49 }
 0xbbf   :  { %v7317_v43 = vld.sshfl [vmem:[#allocation1 + $0x20] sm:$0xff pattern:$0x73625140]  ;;  %5774 = vmatpush.msrb.mxu2 %v3378_v59 }
 0xbc0   :  { %5715 = vmatmul.f32.vlgmr.msra.gmra.mxu3 %v7317_v43  ;;  %v3618_v40 = vld [vmem:[%s10902_s9 + $0x43a0] sm:$0xff]  ;;  %5775 = vmatmul.f32.vlgmr.msrb.gmra.mxu2 %v7318_v9 }
 0xbc1   :  { %v3138_v25 = vld [vmem:[%s10902_s9 + $0x34a0] sm:$0xff]  ;;  %5780 = vmatpush.msrb.mxu3 %v3618_v40  ;;  %5839 = vmatpush.msra.mxu2 %v1579_v1  ;;  %v5437_v40 = vadd.f32 %v5436_v21, %v5417_v8  ;;  %v1531_v1 = vld [vmem:[%s10902_s9 + $0x268] sm:$0xff] }
 0xbc2   :  { %v3274_v18 = vld [vmem:[%s10902_s9 + $0x38e0] sm:$0xff]  ;;  %5732 = vmatpush.msrb.mxu0 %v3138_v25 }
 0xbc3   :  { %v3610_v6 = vld [vmem:[%s10902_s9 + $0x4360] sm:$0xff]  ;;  %5751 = vmatpush.msrb.mxu1 %v3274_v18  ;;  %5840 = vmatpush.msra.mxu2 %v1571_v50  ;;  %v10943_v50 = vld [vmem:[#allocation49_spill] sm:$0xff] }
 0xbc4   :  { %v3130_v37 = vld [vmem:[%s10902_s9 + $0x3460] sm:$0xff]  ;;  %5781 = vmatpush.msrb.mxu3 %v3610_v6 }
 0xbc5   :  { %v3266_v12 = vld [vmem:[%s10902_s9 + $0x38a0] sm:$0xff]  ;;  %5733 = vmatpush.msrb.mxu0 %v3130_v37  ;;  %5841 = vmatpush.msra.mxu2 %v1563_v39  ;;  %v5457_v39 = vadd.f32 %v5456_v19, %v5437_v40 }
 0xbc6   :  { %v3602_v48 = vld [vmem:[%s10902_s9 + $0x4320] sm:$0xff]  ;;  %5752 = vmatpush.msrb.mxu1 %v3266_v12 }
 0xbc7   :  { %v3122_v27 = vld [vmem:[%s10902_s9 + $0x3420] sm:$0xff]  ;;  %5782 = vmatpush.msrb.mxu3 %v3602_v48  ;;  %5842 = vmatpush.msra.mxu2 %v1555_v51 }
 0xbc8   :  { %v3258_v44 = vld [vmem:[%s10902_s9 + $0x3860] sm:$0xff]  ;;  %5734 = vmatpush.msrb.mxu0 %v3122_v27  ;;  %v1515_v27 = vld [vmem:[%s10902_s9 + $0x1e8] sm:$0xff] }
 0xbc9   :  { %v3594_v52 = vld [vmem:[%s10902_s9 + $0x42e0] sm:$0xff]  ;;  %5753 = vmatpush.msrb.mxu1 %v3258_v44  ;;  %5735 = vmatmul.f32.vlgmr.msrb.gmra.mxu0 %v7319_v55  ;;  %v6982_v55 = vmax.f32 %v5457_v39, 0.0  ;;  %v1963_v39 = vld [vmem:[%s10902_s9 + $0xfe8] sm:$0xff] }
 0xbca   :  { %v3754_v53 = vld [vmem:[%s10902_s9 + $0x47e0] sm:$0xff]  ;;  %5783 = vmatpush.msrb.mxu3 %v3594_v52  ;;  %5843 = vmatpush.msra.mxu2 %v1547_v42 }
 0xbcb   :  { %v10935_v11 = vld [vmem:[#allocation46_spill] sm:$0xff]  ;;  %5799 = vmatpush.msra.mxu0 %v3754_v53  ;;  %v10940_v38 = vld [vmem:[#allocation47_spill] sm:$0xff]  ;;  %v10948_v53 = vld [vmem:[#allocation61_spill] sm:$0xff] }
 0xbcc   :  { %v4197_v56 = vadd.f32 %v10935_v11, %v4177_v15  ;;  %v3250_v32 = vld [vmem:[%s10902_s9 + $0x3820] sm:$0xff]  ;;  %5844 = vmatpush.msra.mxu2 %v1539_v26 }
 0xbcd   :  { %v10936_v10 = vld [vmem:[#allocation54_spill] sm:$0xff]  ;;  %5754 = vmatpush.msrb.mxu1 %v3250_v32  ;;  %v10941_v59 = vld [vmem:[#allocation59_spill] sm:$0xff] }
 0xbce   :  { %v4617_v23 = vadd.f32 %v10936_v10, %v4597_v46  ;;  %v3586_v60 = vld [vmem:[%s10902_s9 + $0x42a0] sm:$0xff]  ;;  %v4217_v63 = vadd.f32 %v10937_v58, %v4197_v56  ;;  %5755 = vmatmul.f32.vlgmr.msrb.gmra.mxu1 %v7320_v5  ;;  %5845 = vmatpush.msra.mxu2 %v1531_v1  ;;  %v1507_v56 = vld [vmem:[%s10902_s9 + $0x1a8] sm:$0xff] }
 0xbcf   :  { %v3746_v34 = vld [vmem:[%s10902_s9 + $0x47a0] sm:$0xff]  ;;  %5784 = vmatpush.msrb.mxu3 %v3586_v60  ;;  %v10949_v10 = vld [vmem:[#allocation52_spill] sm:$0xff] }
 0xbd0   :  { %v3866_v33 = vld [vmem:[%s10902_s9 + $0x4b60] sm:$0xff]  ;;  %v4637_v0 = vadd.f32 %v10939_v4, %v4617_v23  ;;  %5800 = vmatpush.msra.mxu0 %v3746_v34  ;;  %v4237_v3 = vadd.f32 %v10940_v38, %v4217_v63  ;;  %5846 = vmatpush.msra.mxu2 %v1523_v2  ;;  %v1499_v60 = vld [vmem:[%s10902_s9 + $0x168] sm:$0xff] }
 0xbd1   :  { %v10938_v31 = vld [vmem:[#allocation58_spill] sm:$0xff]  ;;  %5821 = vmatpush.msra.mxu1 %v3866_v33  ;;  %v10942_v18 = vld [vmem:[#allocation55_spill] sm:$0xff] }
 0xbd2   :  { %v5017_v61 = vadd.f32 %v10938_v31, %v4997_v57  ;;  %v3578_v41 = vld [vmem:[%s10902_s9 + $0x4260] sm:$0xff]  ;;  %v4657_v7 = vadd.f32 %v10942_v18, %v4637_v0  ;;  %v4257_v37 = vadd.f32 %v10943_v50, %v4237_v3  ;;  %5847 = vmatpush.msra.mxu2 %v1515_v27  ;;  %v1475_v3 = vld [vmem:[%s10902_s9 + $0xa8] sm:$0xff] }
 0xbd3   :  { %v3738_v30 = vld [vmem:[%s10902_s9 + $0x4760] sm:$0xff]  ;;  %5785 = vmatpush.msrb.mxu3 %v3578_v41  ;;  %v1467_v1 = vld [vmem:[%s10902_s9 + $0x68] sm:$0xff] }
 0xbd4   :  { %v3858_v35 = vld [vmem:[%s10902_s9 + $0x4b20] sm:$0xff]  ;;  %v5037_v43 = vadd.f32 %v10941_v59, %v5017_v61  ;;  %5801 = vmatpush.msra.mxu0 %v3738_v30  ;;  %v4677_v47 = vadd.f32 %v10944_v29, %v4657_v7  ;;  %5848 = vmatpush.msra.mxu2 %v1507_v56  ;;  %v1491_v61 = vld [vmem:[%s10902_s9 + $0x128] sm:$0xff]  ;;  %v6997_v30 = vrot.slane %v6982_v55, 2 }
 0xbd5   :  { %v3570_v54 = vld [vmem:[%s10902_s9 + $0x4220] sm:$0xff]  ;;  %5822 = vmatpush.msra.mxu1 %v3858_v35  ;;  %v1483_v35 = vld [vmem:[%s10902_s9 + $0xe8] sm:$0xff] }
 0xbd6   :  { %v3730_v24 = vld [vmem:[%s10902_s9 + $0x4720] sm:$0xff]  ;;  %5786 = vmatpush.msrb.mxu3 %v3570_v54  ;;  %v5057_v36 = vadd.f32 %v10945_v45, %v5037_v43  ;;  %v4697_v52 = vadd.f32 %v10947_v13, %v4677_v47  ;;  %5849 = vmatpush.msra.mxu2 %v1499_v60  ;;  %v1459_v18 = vld [vmem:[%s10902_s9 + $0x28] sm:$0xff] }
 0xbd7   :  { %v3850_v49 = vld [vmem:[%s10902_s9 + $0x4ae0] sm:$0xff]  ;;  %5802 = vmatpush.msra.mxu0 %v3730_v24  ;;  %v1699_v2 = vld [vmem:[%s10902_s9 + $0x7a8] sm:$0xff] }
 0xbd8   :  { %v3562_v17 = vld [vmem:[%s10902_s9 + $0x41e0] sm:$0xff]  ;;  %5823 = vmatpush.msra.mxu1 %v3850_v49  ;;  %v5077_v11 = vadd.f32 %v10948_v53, %v5057_v36  ;;  %v6980_v33 = vmax.f32 %v4697_v52, 0.0  ;;  %5850 = vmatpush.msra.mxu2 %v1491_v61  ;;  %v2083_v29 = vld [vmem:[%s10902_s9 + $0x13a8] sm:$0xff] }
 0xbd9   :  { %v3722_v62 = vld [vmem:[%s10902_s9 + $0x46e0] sm:$0xff]  ;;  %5787 = vmatpush.msrb.mxu3 %v3562_v17  ;;  %v1707_v17 = vld [vmem:[%s10902_s9 + $0x7e8] sm:$0xff] }
 0xbda   :  { %v3842_v25 = vld [vmem:[%s10902_s9 + $0x4aa0] sm:$0xff]  ;;  %5803 = vmatpush.msra.mxu0 %v3722_v62  ;;  %v6981_v31 = vmax.f32 %v5077_v11, 0.0  ;;  %v6995_v54 = vrot.slane %v6980_v33, 6  ;;  %5851 = vmatpush.msra.mxu2 %v1483_v35  ;;  %v1683_v36 = vld [vmem:[%s10902_s9 + $0x728] sm:$0xff] }
 0xbdb   :  { %v3554_v6 = vld [vmem:[%s10902_s9 + $0x41a0] sm:$0xff]  ;;  %5824 = vmatpush.msra.mxu1 %v3842_v25  ;;  %v2075_v27 = vld [vmem:[%s10902_s9 + $0x1368] sm:$0xff] }
 0xbdc   :  { %v3714_v12 = vld [vmem:[%s10902_s9 + $0x46a0] sm:$0xff]  ;;  %5788 = vmatpush.msrb.mxu3 %v3554_v6  ;;  %v6996_v38 = vrot.slane %v6981_v31, 4  ;;  %5852 = vmatpush.msra.mxu2 %v1475_v3  ;;  %v2091_v6 = vld [vmem:[%s10902_s9 + $0x13e8] sm:$0xff] }
 0xbdd   :  { %v3834_v48 = vld [vmem:[%s10902_s9 + $0x4a60] sm:$0xff]  ;;  %5804 = vmatpush.msra.mxu0 %v3714_v12  ;;  %v7322_v13 = vld.sshfl [vmem:[#allocation1 + $0x8] sm:$0xff pattern:$0x73625140] }
 0xbde   :  { %v3546_v15 = vld [vmem:[%s10902_s9 + $0x4160] sm:$0xff]  ;;  %5825 = vmatpush.msra.mxu1 %v3834_v48  ;;  %v7004_v40 = vsel %vm7003_vm2, %v6996_v38, %v6997_v30  ;;  %5853 = vmatpush.msra.mxu2 %v1467_v1  ;;  %v1691_v48 = vld [vmem:[%s10902_s9 + $0x768] sm:$0xff] }
 0xbdf   :  { %v3706_v44 = vld [vmem:[%s10902_s9 + $0x4660] sm:$0xff]  ;;  %5789 = vmatpush.msrb.mxu3 %v3546_v15  ;;  %v1667_v52 = vld [vmem:[%s10902_s9 + $0x6a8] sm:$0xff] }
 0xbe0   :  { %v3826_v46 = vld [vmem:[%s10902_s9 + $0x4a20] sm:$0xff]  ;;  %5805 = vmatpush.msra.mxu0 %v3706_v44  ;;  %5854 = vmatpush.msra.mxu2 %v1459_v18  ;;  %v1675_v44 = vld [vmem:[%s10902_s9 + $0x6e8] sm:$0xff] }
 0xbe1   :  { %v10946_v57 = vld [vmem:[#allocation50_spill] sm:$0xff]  ;;  %5826 = vmatpush.msra.mxu1 %v3826_v46  ;;  %v10950_v5 = vld [vmem:[#allocation51_spill] sm:$0xff] }
 0xbe2   :  { %v4277_v9 = vadd.f32 %v10946_v57, %v4257_v37  ;;  %v3538_v51 = vld [vmem:[%s10902_s9 + $0x4120] sm:$0xff]  ;;  %5919 = vmatpush.msrb.mxu2 %v2091_v6  ;;  %v1835_v46 = vld [vmem:[%s10902_s9 + $0xbe8] sm:$0xff] }
 0xbe3   :  { %v3698_v16 = vld [vmem:[%s10902_s9 + $0x4620] sm:$0xff]  ;;  %5790 = vmatpush.msrb.mxu3 %v3538_v51  ;;  %v1955_v57 = vld [vmem:[%s10902_s9 + $0xfa8] sm:$0xff]  ;;  %v7323_v51 = vld.sshfl [vmem:[#allocation1 + $0x10] sm:$0xff pattern:$0x73625140] }
 0xbe4   :  { %v3818_v32 = vld [vmem:[%s10902_s9 + $0x49e0] sm:$0xff]  ;;  %v4297_v23 = vadd.f32 %v10949_v10, %v4277_v9  ;;  %5806 = vmatpush.msra.mxu0 %v3698_v16  ;;  %5920 = vmatpush.msrb.mxu2 %v2083_v29  ;;  %v2067_v9 = vld [vmem:[%s10902_s9 + $0x1328] sm:$0xff] }
 0xbe5   :  { %v3530_v58 = vld [vmem:[%s10902_s9 + $0x40e0] sm:$0xff]  ;;  %5827 = vmatpush.msra.mxu1 %v3818_v32  ;;  %v1827_v53 = vld [vmem:[%s10902_s9 + $0xba8] sm:$0xff] }
 0xbe6   :  { %v3690_v63 = vld [vmem:[%s10902_s9 + $0x45e0] sm:$0xff]  ;;  %5791 = vmatpush.msrb.mxu3 %v3530_v58  ;;  %v4317_v21 = vadd.f32 %v10950_v5, %v4297_v23  ;;  %5921 = vmatpush.msrb.mxu2 %v2075_v27  ;;  %v1947_v11 = vld [vmem:[%s10902_s9 + $0xf68] sm:$0xff] }
 0xbe7   :  { %v3810_v34 = vld [vmem:[%s10902_s9 + $0x49a0] sm:$0xff]  ;;  %5807 = vmatpush.msra.mxu0 %v3690_v63  ;;  %v2059_v56 = vld [vmem:[%s10902_s9 + $0x12e8] sm:$0xff] }
 0xbe8   :  { %v3522_v8 = vld [vmem:[%s10902_s9 + $0x40a0] sm:$0xff]  ;;  %5828 = vmatpush.msra.mxu1 %v3810_v34  ;;  %v6979_v43 = vmax.f32 %v4317_v21, 0.0  ;;  %5922 = vmatpush.msrb.mxu2 %v2067_v9  ;;  %v1659_v16 = vld [vmem:[%s10902_s9 + $0x668] sm:$0xff]  ;;  %v5516_v9 = vpop.f32.mrf.mxu1 }
 0xbe9   :  { %v3682_v42 = vld [vmem:[%s10902_s9 + $0x45a0] sm:$0xff]  ;;  %5792 = vmatpush.msrb.mxu3 %v3522_v8  ;;  %v1819_v32 = vld [vmem:[%s10902_s9 + $0xb68] sm:$0xff] }
 0xbea   :  { %v3802_v41 = vld [vmem:[%s10902_s9 + $0x4960] sm:$0xff]  ;;  %5808 = vmatpush.msra.mxu0 %v3682_v42  ;;  %v7002_v62 = vsel %vm7001_vm0, %v6979_v43, %v6995_v54  ;;  %v1939_v10 = vld [vmem:[%s10902_s9 + $0xf28] sm:$0xff]  ;;  %5923 = vmatpush.msrb.mxu2 %v2059_v56 }
 0xbeb   :  { %v3514_v4 = vld [vmem:[%s10902_s9 + $0x4060] sm:$0xff]  ;;  %5829 = vmatpush.msra.mxu1 %v3802_v41  ;;  %v7006_v50 = vsel %vm7005_vm3, %v7002_v62, %v7004_v40  ;;  %v2051_v23 = vld [vmem:[%s10902_s9 + $0x12a8] sm:$0xff] }
 0xbec   :  { %v3674_v0 = vld [vmem:[%s10902_s9 + $0x4560] sm:$0xff]  ;;  %5793 = vmatpush.msrb.mxu3 %v3514_v4  ;;  %7012 = vst [vmem:[#allocation8] sm:$0xff] %v7006_v50  ;;  %v1651_v55 = vld [vmem:[%s10902_s9 + $0x628] sm:$0xff]  ;;  %5924 = vmatpush.msrb.mxu2 %v2051_v23 }
 0xbed   :  { %v3794_v26 = vld [vmem:[%s10902_s9 + $0x4920] sm:$0xff]  ;;  %5809 = vmatpush.msra.mxu0 %v3674_v0  ;;  %v1811_v60 = vld [vmem:[%s10902_s9 + $0xb28] sm:$0xff] }
 0xbee   :  { %v3506_v24 = vld [vmem:[%s10902_s9 + $0x4020] sm:$0xff]  ;;  %5830 = vmatpush.msra.mxu1 %v3794_v26  ;;  %v1931_v58 = vld [vmem:[%s10902_s9 + $0xee8] sm:$0xff] }
 0xbef   :  { %v3666_v49 = vld [vmem:[%s10902_s9 + $0x4520] sm:$0xff]  ;;  %5794 = vmatpush.msrb.mxu3 %v3506_v24  ;;  %v2043_v63 = vld [vmem:[%s10902_s9 + $0x1268] sm:$0xff] }
 0xbf0   :  { %v3786_v59 = vld [vmem:[%s10902_s9 + $0x48e0] sm:$0xff]  ;;  %5810 = vmatpush.msra.mxu0 %v3666_v49  ;;  %v1643_v34 = vld [vmem:[%s10902_s9 + $0x5e8] sm:$0xff]  ;;  %5925 = vmatpush.msrb.mxu2 %v2043_v63 }
 0xbf1   :  { %v3658_v19 = vld [vmem:[%s10902_s9 + $0x44e0] sm:$0xff]  ;;  %5831 = vmatpush.msra.mxu1 %v3786_v59  ;;  %5859 = vmatpush.msra.mxu3 %v1707_v17  ;;  %v1803_v33 = vld [vmem:[%s10902_s9 + $0xae8] sm:$0xff] }
 0xbf2   :  { %v3778_v25 = vld [vmem:[%s10902_s9 + $0x48a0] sm:$0xff]  ;;  %5811 = vmatpush.msra.mxu0 %v3658_v19  ;;  %v1923_v31 = vld [vmem:[%s10902_s9 + $0xea8] sm:$0xff] }
 0xbf3   :  { %v7321_v7 = vld.sshfl [vmem:[#allocation1] sm:$0xff pattern:$0x73625140]  ;;  %5832 = vmatpush.msra.mxu1 %v3778_v25  ;;  %5860 = vmatpush.msra.mxu3 %v1699_v2  ;;  %v2035_v61 = vld [vmem:[%s10902_s9 + $0x1228] sm:$0xff] }
 0xbf4   :  { %5795 = vmatmul.f32.vlgmr.msrb.gmra.mxu3 %v7321_v7  ;;  %v3650_v37 = vld [vmem:[%s10902_s9 + $0x44a0] sm:$0xff]  ;;  %v1635_v8 = vld [vmem:[%s10902_s9 + $0x5a8] sm:$0xff]  ;;  %5926 = vmatpush.msrb.mxu2 %v2035_v61  ;;  %v5476_v7 = vpop.f32.mrf.mxu3 }
 0xbf5   :  { %v3770_v12 = vld [vmem:[%s10902_s9 + $0x4860] sm:$0xff]  ;;  %5812 = vmatpush.msra.mxu0 %v3650_v37  ;;  %5861 = vmatpush.msra.mxu3 %v1691_v48  ;;  %v1795_v42 = vld [vmem:[%s10902_s9 + $0xaa8] sm:$0xff] }
 0xbf6   :  { %v3642_v47 = vld [vmem:[%s10902_s9 + $0x4460] sm:$0xff]  ;;  %5833 = vmatpush.msra.mxu1 %v3770_v12  ;;  %v1915_v41 = vld [vmem:[%s10902_s9 + $0xe68] sm:$0xff] }
 0xbf7   :  { %v3762_v45 = vld [vmem:[%s10902_s9 + $0x4820] sm:$0xff]  ;;  %5813 = vmatpush.msra.mxu0 %v3642_v47  ;;  %5862 = vmatpush.msra.mxu3 %v1683_v36  ;;  %v2027_v5 = vld [vmem:[%s10902_s9 + $0x11e8] sm:$0xff]  ;;  %v5496_v47 = vpop.f32.mrf.mxu0 }
 0xbf8   :  { %v3634_v15 = vld [vmem:[%s10902_s9 + $0x4420] sm:$0xff]  ;;  %5834 = vmatpush.msra.mxu1 %v3762_v45  ;;  %v1627_v21 = vld [vmem:[%s10902_s9 + $0x568] sm:$0xff]  ;;  %5927 = vmatpush.msrb.mxu2 %v2027_v5 }
 0xbf9   :  { %5814 = vmatpush.msra.mxu0 %v3634_v15  ;;  %5863 = vmatpush.msra.mxu3 %v1675_v44  ;;  %v1787_v30 = vld [vmem:[%s10902_s9 + $0xa68] sm:$0xff]  ;;  %v7324_v43 = vld [vmem:[%s10931_s19] sm:$0xff] }
 0xbfa   :  { %5899 = vmatpush.msrb.mxu1 %v1963_v39  ;;  %5815 = vmatmul.f32.vlgmr.msra.gmra.mxu0 %v7322_v13  ;;  %v1907_v35 = vld [vmem:[%s10902_s9 + $0xe28] sm:$0xff]  ;;  %v3876_v40 = vperm.slane %v7324_v43, 4  ;;  %v5536_v13 = vpop.f32.mrf.mxu2 }
 0xbfb   :  { %5879 = vmatpush.msrb.mxu0 %v1835_v46  ;;  %7179 = vmatmul.msk.f32.vlgmr.msra.gmra.mxu1 %vm3936_vm9, %v7323_v51  ;;  %v2019_v4 = vld [vmem:[%s10902_s9 + $0x11a8] sm:$0xff] }
 0xbfc   :  { %5900 = vmatpush.msrb.mxu1 %v1955_v57  ;;  %5864 = vmatpush.msra.mxu3 %v1667_v52  ;;  %v1619_v0 = vld [vmem:[%s10902_s9 + $0x528] sm:$0xff]  ;;  %v5477_v50 = vadd.f32 %v5476_v7, %v3876_v40 }
 0xbfd   :  { %5880 = vmatpush.msrb.mxu0 %v1827_v53  ;;  %v1779_v26 = vld [vmem:[%s10902_s9 + $0xa28] sm:$0xff]  ;;  %5928 = vmatpush.msrb.mxu2 %v2019_v4 }
 0xbfe   :  { %5901 = vmatpush.msrb.mxu1 %v1947_v11  ;;  %5865 = vmatpush.msra.mxu3 %v1659_v16  ;;  %v1899_v54 = vld [vmem:[%s10902_s9 + $0xde8] sm:$0xff]  ;;  %v5497_v39 = vadd.f32 %v5496_v47, %v5477_v50 }
 0xbff   :  { %5881 = vmatpush.msrb.mxu0 %v1819_v32  ;;  %v2011_v38 = vld [vmem:[%s10902_s9 + $0x1168] sm:$0xff]  ;;  %v5576_v61 = vpop.f32.mrf.mxu0 }
 0xc00   :  { %5902 = vmatpush.msrb.mxu1 %v1939_v10  ;;  %5866 = vmatpush.msra.mxu3 %v1651_v55  ;;  %v1611_v3 = vld [vmem:[%s10902_s9 + $0x4e8] sm:$0xff]  ;;  %v5517_v11 = vadd.f32 %v5516_v9, %v5497_v39  ;;  %v5556_v55 = vpop.f32.mrf.mxu3 }
 0xc01   :  { %5882 = vmatpush.msrb.mxu0 %v1811_v60  ;;  %v1771_v24 = vld [vmem:[%s10902_s9 + $0x9e8] sm:$0xff]  ;;  %5929 = vmatpush.msrb.mxu2 %v2011_v38 }
 0xc02   :  { %5903 = vmatpush.msrb.mxu1 %v1931_v58  ;;  %5867 = vmatpush.msra.mxu3 %v1643_v34  ;;  %v1891_v49 = vld [vmem:[%s10902_s9 + $0xda8] sm:$0xff]  ;;  %v5537_v23 = vadd.f32 %v5536_v13, %v5517_v11 }
 0xc03   :  { %5883 = vmatpush.msrb.mxu0 %v1803_v33  ;;  %v2003_v59 = vld [vmem:[%s10902_s9 + $0x1128] sm:$0xff] }
 0xc04   :  { %5904 = vmatpush.msrb.mxu1 %v1923_v31  ;;  %5868 = vmatpush.msra.mxu3 %v1635_v8  ;;  %v1603_v1 = vld [vmem:[%s10902_s9 + $0x4a8] sm:$0xff]  ;;  %v5557_v34 = vadd.f32 %v5556_v55, %v5537_v23 }
 0xc05   :  { %5884 = vmatpush.msrb.mxu0 %v1795_v42  ;;  %v1763_v17 = vld [vmem:[%s10902_s9 + $0x9a8] sm:$0xff]  ;;  %5930 = vmatpush.msrb.mxu2 %v2003_v59 }
 0xc06   :  { %5905 = vmatpush.msrb.mxu1 %v1915_v41  ;;  %5869 = vmatpush.msra.mxu3 %v1627_v21  ;;  %v1883_v19 = vld [vmem:[%s10902_s9 + $0xd68] sm:$0xff]  ;;  %v5577_v41 = vadd.f32 %v5576_v61, %v5557_v34 }
 0xc07   :  { %5885 = vmatpush.msrb.mxu0 %v1787_v30  ;;  %v1995_v62 = vld [vmem:[%s10902_s9 + $0x10e8] sm:$0xff] }
 0xc08   :  { %5906 = vmatpush.msrb.mxu1 %v1907_v35  ;;  %5870 = vmatpush.msra.mxu3 %v1619_v0  ;;  %v1595_v25 = vld [vmem:[%s10902_s9 + $0x468] sm:$0xff]  ;;  %v5596_v0 = vpop.f32.mrf.mxu1 }
 0xc09   :  { %5886 = vmatpush.msrb.mxu0 %v1779_v26  ;;  %v1755_v18 = vld [vmem:[%s10902_s9 + $0x968] sm:$0xff]  ;;  %5931 = vmatpush.msrb.mxu2 %v1995_v62  ;;  %v5597_v38 = vadd.f32 %v5596_v0, %v5577_v41 }
 0xc0a   :  { %5907 = vmatpush.msrb.mxu1 %v1899_v54  ;;  %5871 = vmatpush.msra.mxu3 %v1611_v3  ;;  %v1875_v2 = vld [vmem:[%s10902_s9 + $0xd28] sm:$0xff]  ;;  %v5616_v3 = vpop.f32.mrf.mxu2 }
 0xc0b   :  { %5887 = vmatpush.msrb.mxu0 %v1771_v24  ;;  %v1987_v6 = vld [vmem:[%s10902_s9 + $0x10a8] sm:$0xff]  ;;  %v9944_v43 = vadd.f32 %v5616_v3, %v5597_v38 }
 0xc0c   :  { %5908 = vmatpush.msrb.mxu1 %v1891_v49  ;;  %5872 = vmatpush.msra.mxu3 %v1603_v1  ;;  %v1587_v37 = vld [vmem:[%s10902_s9 + $0x428] sm:$0xff] }
 0xc0d   :  { %5888 = vmatpush.msrb.mxu0 %v1763_v17  ;;  %v1747_v12 = vld [vmem:[%s10902_s9 + $0x928] sm:$0xff]  ;;  %5932 = vmatpush.msrb.mxu2 %v1987_v6 }
 0xc0e   :  { %5909 = vmatpush.msrb.mxu1 %v1883_v19  ;;  %5873 = vmatpush.msra.mxu3 %v1595_v25  ;;  %v1867_v48 = vld [vmem:[%s10902_s9 + $0xce8] sm:$0xff] }
 0xc0f   :  { %5889 = vmatpush.msrb.mxu0 %v1755_v18  ;;  %v1979_v29 = vld [vmem:[%s10902_s9 + $0x1068] sm:$0xff] }
 0xc10   :  { %5910 = vmatpush.msrb.mxu1 %v1875_v2  ;;  %v2219_v45 = vld [vmem:[%s10902_s9 + $0x17e8] sm:$0xff]  ;;  %5874 = vmatpush.msra.mxu3 %v1587_v37  ;;  %v10954_v2 = vld [vmem:[#allocation41_spill] sm:$0xff] }
 0xc11   :  { %v1739_v36 = vld [vmem:[%s10902_s9 + $0x8e8] sm:$0xff]  ;;  %5890 = vmatpush.msrb.mxu0 %v1747_v12  ;;  %5933 = vmatpush.msrb.mxu2 %v1979_v29  ;;  %v10955_v29 = vld [vmem:[#allocation38_spill] sm:$0xff] }
 0xc12   :  { %v1859_v27 = vld [vmem:[%s10902_s9 + $0xca8] sm:$0xff]  ;;  %5911 = vmatpush.msrb.mxu1 %v1867_v48  ;;  %5939 = vmatpush.msrb.mxu3 %v2219_v45 }
 0xc13   :  { %v1971_v15 = vld [vmem:[%s10902_s9 + $0x1028] sm:$0xff]  ;;  %5891 = vmatpush.msrb.mxu0 %v1739_v36 }
 0xc14   :  { %v2211_v44 = vld [vmem:[%s10902_s9 + $0x17a8] sm:$0xff]  ;;  %5912 = vmatpush.msrb.mxu1 %v1859_v27  ;;  %5934 = vmatpush.msrb.mxu2 %v1971_v15 }
 0xc15   :  { %v2603_v46 = vld [vmem:[%s10902_s9 + $0x23e8] sm:$0xff]  ;;  %5940 = vmatpush.msrb.mxu3 %v2211_v44 }
 0xc16   :  { %v1731_v57 = vld [vmem:[%s10902_s9 + $0x8a8] sm:$0xff] }
 0xc17   :  { %v1851_v52 = vld [vmem:[%s10902_s9 + $0xc68] sm:$0xff]  ;;  %5892 = vmatpush.msrb.mxu0 %v1731_v57 }
 0xc18   :  { %v2203_v53 = vld [vmem:[%s10902_s9 + $0x1768] sm:$0xff]  ;;  %5913 = vmatpush.msrb.mxu1 %v1851_v52 }
 0xc19   :  { %v10951_v56 = vld [vmem:[#allocation39_spill] sm:$0xff]  ;;  %5941 = vmatpush.msrb.mxu3 %v2203_v53  ;;  %v10952_v5 = vld [vmem:[#allocation40_spill] sm:$0xff] }
 0xc1a   :  { %5855 = vmatmul.f32.vlgmr.msra.gmra.mxu2 %v10951_v56  ;;  %v2595_v51 = vld [vmem:[%s10902_s9 + $0x23a8] sm:$0xff]  ;;  %5875 = vmatmul.f32.vlgmr.msra.gmra.mxu3 %v10952_v5 }
 0xc1b   :  { %v1723_v16 = vld [vmem:[%s10902_s9 + $0x868] sm:$0xff]  ;;  %5999 = vmatpush.msra.mxu2 %v2603_v46 }
 0xc1c   :  { %v1843_v32 = vld [vmem:[%s10902_s9 + $0xc28] sm:$0xff]  ;;  %5893 = vmatpush.msrb.mxu0 %v1723_v16 }
 0xc1d   :  { %v2195_v10 = vld [vmem:[%s10902_s9 + $0x1728] sm:$0xff]  ;;  %6000 = vmatpush.msra.mxu2 %v2595_v51  ;;  %5914 = vmatpush.msrb.mxu1 %v1843_v32 }
 0xc1e   :  { %v2475_v60 = vld [vmem:[%s10902_s9 + $0x1fe8] sm:$0xff]  ;;  %5942 = vmatpush.msrb.mxu3 %v2195_v10  ;;  %5915 = vmatmul.f32.vlgmr.msrb.gmra.mxu1 %v10955_v29 }
 0xc1f   :  { %v2587_v58 = vld [vmem:[%s10902_s9 + $0x2368] sm:$0xff]  ;;  %5979 = vmatpush.msra.mxu1 %v2475_v60  ;;  %v5636_v60 = vpop.f32.mrf.mxu3 }
 0xc20   :  { %v1715_v63 = vld [vmem:[%s10902_s9 + $0x828] sm:$0xff]  ;;  %6001 = vmatpush.msra.mxu2 %v2587_v58  ;;  %v5637_v34 = vadd.f32 %v5636_v60, %v9944_v43 }
 0xc21   :  { %v2187_v33 = vld [vmem:[%s10902_s9 + $0x16e8] sm:$0xff]  ;;  %5894 = vmatpush.msrb.mxu0 %v1715_v63 }
 0xc22   :  { %v2347_v31 = vld [vmem:[%s10902_s9 + $0x1be8] sm:$0xff]  ;;  %5943 = vmatpush.msrb.mxu3 %v2187_v33  ;;  %5895 = vmatmul.f32.vlgmr.msrb.gmra.mxu0 %v10954_v2 }
 0xc23   :  { %v2467_v8 = vld [vmem:[%s10902_s9 + $0x1fa8] sm:$0xff]  ;;  %5959 = vmatpush.msra.mxu0 %v2347_v31 }
 0xc24   :  { %v2579_v42 = vld [vmem:[%s10902_s9 + $0x2328] sm:$0xff]  ;;  %5980 = vmatpush.msra.mxu1 %v2467_v8  ;;  %v5656_v8 = vpop.f32.mrf.mxu0 }
 0xc25   :  { %v2179_v21 = vld [vmem:[%s10902_s9 + $0x16a8] sm:$0xff]  ;;  %6002 = vmatpush.msra.mxu2 %v2579_v42 }
 0xc26   :  { %v2339_v30 = vld [vmem:[%s10902_s9 + $0x1ba8] sm:$0xff]  ;;  %5944 = vmatpush.msrb.mxu3 %v2179_v21  ;;  %v5657_v21 = vadd.f32 %v5656_v8, %v5637_v34 }
 0xc27   :  { %v2459_v35 = vld [vmem:[%s10902_s9 + $0x1f68] sm:$0xff]  ;;  %5960 = vmatpush.msra.mxu0 %v2339_v30  ;;  %v10956_v30 = vld [vmem:[#allocation42_spill] sm:$0xff] }
 0xc28   :  { %v2571_v4 = vld [vmem:[%s10902_s9 + $0x22e8] sm:$0xff]  ;;  %5981 = vmatpush.msra.mxu1 %v2459_v35 }
 0xc29   :  { %v2171_v26 = vld [vmem:[%s10902_s9 + $0x1668] sm:$0xff]  ;;  %6003 = vmatpush.msra.mxu2 %v2571_v4 }
 0xc2a   :  { %v2331_v54 = vld [vmem:[%s10902_s9 + $0x1b68] sm:$0xff]  ;;  %5945 = vmatpush.msrb.mxu3 %v2171_v26 }
 0xc2b   :  { %v2451_v24 = vld [vmem:[%s10902_s9 + $0x1f28] sm:$0xff]  ;;  %5961 = vmatpush.msra.mxu0 %v2331_v54  ;;  %v5676_v54 = vpop.f32.mrf.mxu1 }
 0xc2c   :  { %v2563_v49 = vld [vmem:[%s10902_s9 + $0x22a8] sm:$0xff]  ;;  %5982 = vmatpush.msra.mxu1 %v2451_v24  ;;  %v5677_v24 = vadd.f32 %v5676_v54, %v5657_v21 }
 0xc2d   :  { %v2163_v59 = vld [vmem:[%s10902_s9 + $0x1628] sm:$0xff]  ;;  %6004 = vmatpush.msra.mxu2 %v2563_v49  ;;  %v5696_v49 = vpop.f32.mrf.mxu2 }
 0xc2e   :  { %v2323_v40 = vld [vmem:[%s10902_s9 + $0x1b28] sm:$0xff]  ;;  %5946 = vmatpush.msrb.mxu3 %v2163_v59 }
 0xc2f   :  { %v2443_v1 = vld [vmem:[%s10902_s9 + $0x1ee8] sm:$0xff]  ;;  %5962 = vmatpush.msra.mxu0 %v2323_v40 }
 0xc30   :  { %v2555_v17 = vld [vmem:[%s10902_s9 + $0x2268] sm:$0xff]  ;;  %5983 = vmatpush.msra.mxu1 %v2443_v1  ;;  %v9999_v1 = vadd.f32 %v5696_v49, %v5677_v24 }
 0xc31   :  { %v10953_v19 = vld [vmem:[#allocation43_spill] sm:$0xff]  ;;  %6005 = vmatpush.msra.mxu2 %v2555_v17 }
 0xc32   :  { %5935 = vmatmul.f32.vlgmr.msrb.gmra.mxu2 %v10953_v19  ;;  %v2155_v62 = vld [vmem:[%s10902_s9 + $0x15e8] sm:$0xff] }
 0xc33   :  { %v2315_v25 = vld [vmem:[%s10902_s9 + $0x1ae8] sm:$0xff]  ;;  %5947 = vmatpush.msrb.mxu3 %v2155_v62 }
 0xc34   :  { %v2435_v18 = vld [vmem:[%s10902_s9 + $0x1ea8] sm:$0xff]  ;;  %5963 = vmatpush.msra.mxu0 %v2315_v25 }
 0xc35   :  { %v2547_v7 = vld [vmem:[%s10902_s9 + $0x2228] sm:$0xff]  ;;  %5984 = vmatpush.msra.mxu1 %v2435_v18 }
 0xc36   :  { %v2147_v6 = vld [vmem:[%s10902_s9 + $0x15a8] sm:$0xff]  ;;  %6006 = vmatpush.msra.mxu2 %v2547_v7 }
 0xc37   :  { %v2307_v50 = vld [vmem:[%s10902_s9 + $0x1aa8] sm:$0xff]  ;;  %5948 = vmatpush.msrb.mxu3 %v2147_v6 }
 0xc38   :  { %v2427_v37 = vld [vmem:[%s10902_s9 + $0x1e68] sm:$0xff]  ;;  %5964 = vmatpush.msra.mxu0 %v2307_v50 }
 0xc39   :  { %v2539_v12 = vld [vmem:[%s10902_s9 + $0x21e8] sm:$0xff]  ;;  %5985 = vmatpush.msra.mxu1 %v2427_v37 }
 0xc3a   :  { %v2139_v48 = vld [vmem:[%s10902_s9 + $0x1568] sm:$0xff]  ;;  %6007 = vmatpush.msra.mxu2 %v2539_v12  ;;  %v10957_v12 = vld [vmem:[#allocation45_spill] sm:$0xff] }
 0xc3b   :  { %v2299_v47 = vld [vmem:[%s10902_s9 + $0x1a68] sm:$0xff]  ;;  %5949 = vmatpush.msrb.mxu3 %v2139_v48 }
 0xc3c   :  { %v2419_v45 = vld [vmem:[%s10902_s9 + $0x1e28] sm:$0xff]  ;;  %5965 = vmatpush.msra.mxu0 %v2299_v47 }
 0xc3d   :  { %v2531_v36 = vld [vmem:[%s10902_s9 + $0x21a8] sm:$0xff]  ;;  %5986 = vmatpush.msra.mxu1 %v2419_v45 }
 0xc3e   :  { %v2131_v39 = vld [vmem:[%s10902_s9 + $0x1528] sm:$0xff]  ;;  %6008 = vmatpush.msra.mxu2 %v2531_v36 }
 0xc3f   :  { %v2291_v27 = vld [vmem:[%s10902_s9 + $0x1a28] sm:$0xff]  ;;  %5950 = vmatpush.msrb.mxu3 %v2131_v39 }
 0xc40   :  { %v2411_v15 = vld [vmem:[%s10902_s9 + $0x1de8] sm:$0xff]  ;;  %5966 = vmatpush.msra.mxu0 %v2291_v27 }
 0xc41   :  { %v2523_v44 = vld [vmem:[%s10902_s9 + $0x2168] sm:$0xff]  ;;  %5987 = vmatpush.msra.mxu1 %v2411_v15 }
 0xc42   :  { %v2123_v46 = vld [vmem:[%s10902_s9 + $0x14e8] sm:$0xff]  ;;  %6009 = vmatpush.msra.mxu2 %v2523_v44 }
 0xc43   :  { %v2283_v57 = vld [vmem:[%s10902_s9 + $0x19e8] sm:$0xff]  ;;  %5951 = vmatpush.msrb.mxu3 %v2123_v46 }
 0xc44   :  { %v2403_v9 = vld [vmem:[%s10902_s9 + $0x1da8] sm:$0xff]  ;;  %5967 = vmatpush.msra.mxu0 %v2283_v57 }
 0xc45   :  { %v2515_v13 = vld [vmem:[%s10902_s9 + $0x2128] sm:$0xff]  ;;  %5988 = vmatpush.msra.mxu1 %v2403_v9 }
 0xc46   :  { %v2115_v52 = vld [vmem:[%s10902_s9 + $0x14a8] sm:$0xff]  ;;  %6010 = vmatpush.msra.mxu2 %v2515_v13 }
 0xc47   :  { %v2275_v53 = vld [vmem:[%s10902_s9 + $0x19a8] sm:$0xff]  ;;  %5952 = vmatpush.msrb.mxu3 %v2115_v52 }
 0xc48   :  { %v2395_v11 = vld [vmem:[%s10902_s9 + $0x1d68] sm:$0xff]  ;;  %5968 = vmatpush.msra.mxu0 %v2275_v53 }
 0xc49   :  { %v2507_v51 = vld [vmem:[%s10902_s9 + $0x20e8] sm:$0xff]  ;;  %5989 = vmatpush.msra.mxu1 %v2395_v11 }
 0xc4a   :  { %v2107_v16 = vld [vmem:[%s10902_s9 + $0x1468] sm:$0xff]  ;;  %6011 = vmatpush.msra.mxu2 %v2507_v51 }
 0xc4b   :  { %v2267_v32 = vld [vmem:[%s10902_s9 + $0x1968] sm:$0xff]  ;;  %5953 = vmatpush.msrb.mxu3 %v2107_v16 }
 0xc4c   :  { %v2387_v10 = vld [vmem:[%s10902_s9 + $0x1d28] sm:$0xff]  ;;  %5969 = vmatpush.msra.mxu0 %v2267_v32 }
 0xc4d   :  { %v2499_v23 = vld [vmem:[%s10902_s9 + $0x20a8] sm:$0xff]  ;;  %5990 = vmatpush.msra.mxu1 %v2387_v10 }
 0xc4e   :  { %v2099_v55 = vld [vmem:[%s10902_s9 + $0x1428] sm:$0xff]  ;;  %6012 = vmatpush.msra.mxu2 %v2499_v23 }
 0xc4f   :  { %v2259_v58 = vld [vmem:[%s10902_s9 + $0x1928] sm:$0xff]  ;;  %5954 = vmatpush.msrb.mxu3 %v2099_v55 }
 0xc50   :  { %v2379_v63 = vld [vmem:[%s10902_s9 + $0x1ce8] sm:$0xff]  ;;  %5970 = vmatpush.msra.mxu0 %v2259_v58  ;;  %5955 = vmatmul.f32.vlgmr.msrb.gmra.mxu3 %v10956_v30 }
 0xc51   :  { %v2491_v33 = vld [vmem:[%s10902_s9 + $0x2068] sm:$0xff]  ;;  %5991 = vmatpush.msra.mxu1 %v2379_v63 }
 0xc52   :  { %v2731_v31 = vld [vmem:[%s10902_s9 + $0x27e8] sm:$0xff]  ;;  %6013 = vmatpush.msra.mxu2 %v2491_v33 }
 0xc53   :  { %v2251_v61 = vld [vmem:[%s10902_s9 + $0x18e8] sm:$0xff]  ;;  %6019 = vmatpush.msra.mxu3 %v2731_v31 }
 0xc54   :  { %v2371_v42 = vld [vmem:[%s10902_s9 + $0x1ca8] sm:$0xff]  ;;  %5971 = vmatpush.msra.mxu0 %v2251_v61 }
 0xc55   :  { %v2483_v41 = vld [vmem:[%s10902_s9 + $0x2028] sm:$0xff]  ;;  %5992 = vmatpush.msra.mxu1 %v2371_v42 }
 0xc56   :  { %v2723_v35 = vld [vmem:[%s10902_s9 + $0x27a8] sm:$0xff]  ;;  %6014 = vmatpush.msra.mxu2 %v2483_v41 }
 0xc57   :  { %v3115_v4 = vld [vmem:[%s10902_s9 + $0x33e8] sm:$0xff]  ;;  %6020 = vmatpush.msra.mxu3 %v2723_v35  ;;  %6015 = vmatmul.f32.vlgmr.msra.gmra.mxu2 %v8248_v14 }
 0xc58   :  { %v2243_v0 = vld [vmem:[%s10902_s9 + $0x18a8] sm:$0xff]  ;;  %6079 = vmatpush.msrb.mxu2 %v3115_v4 }
 0xc59   :  { %v2363_v26 = vld [vmem:[%s10902_s9 + $0x1c68] sm:$0xff]  ;;  %5972 = vmatpush.msra.mxu0 %v2243_v0 }
 0xc5a   :  { %v2715_v38 = vld [vmem:[%s10902_s9 + $0x2768] sm:$0xff]  ;;  %5993 = vmatpush.msra.mxu1 %v2363_v26 }
 0xc5b   :  { %v3107_v3 = vld [vmem:[%s10902_s9 + $0x33a8] sm:$0xff]  ;;  %6021 = vmatpush.msra.mxu3 %v2715_v38 }
 0xc5c   :  { %v2235_v59 = vld [vmem:[%s10902_s9 + $0x1868] sm:$0xff]  ;;  %6080 = vmatpush.msrb.mxu2 %v3107_v3 }
 0xc5d   :  { %v2355_v43 = vld [vmem:[%s10902_s9 + $0x1c28] sm:$0xff]  ;;  %5973 = vmatpush.msra.mxu0 %v2235_v59  ;;  %v5716_v59 = vpop.f32.mrf.mxu3 }
 0xc5e   :  { %v2707_v40 = vld [vmem:[%s10902_s9 + $0x2728] sm:$0xff]  ;;  %5994 = vmatpush.msra.mxu1 %v2355_v43 }
 0xc5f   :  { %v2987_v17 = vld [vmem:[%s10902_s9 + $0x2fe8] sm:$0xff]  ;;  %6022 = vmatpush.msra.mxu3 %v2707_v40 }
 0xc60   :  { %v3099_v62 = vld [vmem:[%s10902_s9 + $0x3368] sm:$0xff]  ;;  %6059 = vmatpush.msrb.mxu1 %v2987_v17  ;;  %v5717_v17 = vadd.f32 %v5716_v59, %v9999_v1 }
 0xc61   :  { %v2227_v25 = vld [vmem:[%s10902_s9 + $0x1828] sm:$0xff]  ;;  %6081 = vmatpush.msrb.mxu2 %v3099_v62 }
 0xc62   :  { %v2699_v18 = vld [vmem:[%s10902_s9 + $0x26e8] sm:$0xff]  ;;  %5974 = vmatpush.msra.mxu0 %v2227_v25 }
 0xc63   :  { %v2979_v7 = vld [vmem:[%s10902_s9 + $0x2fa8] sm:$0xff]  ;;  %6023 = vmatpush.msra.mxu3 %v2699_v18  ;;  %5975 = vmatmul.f32.vlgmr.msra.gmra.mxu0 %v10957_v12 }
 0xc64   :  { %v2859_v6 = vld [vmem:[%s10902_s9 + $0x2be8] sm:$0xff]  ;;  %6060 = vmatpush.msrb.mxu1 %v2979_v7  ;;  %v5736_v7 = vpop.f32.mrf.mxu0 }
 0xc65   :  { %v3091_v50 = vld [vmem:[%s10902_s9 + $0x3328] sm:$0xff]  ;;  %6039 = vmatpush.msrb.mxu0 %v2859_v6 }
 0xc66   :  { %v2691_v37 = vld [vmem:[%s10902_s9 + $0x26a8] sm:$0xff]  ;;  %6082 = vmatpush.msrb.mxu2 %v3091_v50 }
 0xc67   :  { %v2851_v48 = vld [vmem:[%s10902_s9 + $0x2ba8] sm:$0xff]  ;;  %6024 = vmatpush.msra.mxu3 %v2691_v37  ;;  %v5737_v37 = vadd.f32 %v5736_v7, %v5717_v17 }
 0xc68   :  { %v2971_v47 = vld [vmem:[%s10902_s9 + $0x2f68] sm:$0xff]  ;;  %6040 = vmatpush.msrb.mxu0 %v2851_v48 }
 0xc69   :  { %v3083_v45 = vld [vmem:[%s10902_s9 + $0x32e8] sm:$0xff]  ;;  %6061 = vmatpush.msrb.mxu1 %v2971_v47 }
 0xc6a   :  { %v2683_v36 = vld [vmem:[%s10902_s9 + $0x2668] sm:$0xff]  ;;  %6083 = vmatpush.msrb.mxu2 %v3083_v45 }
 0xc6b   :  { %v10958_v39 = vld [vmem:[#allocation44_spill] sm:$0xff]  ;;  %6025 = vmatpush.msra.mxu3 %v2683_v36  ;;  %v5756_v36 = vpop.f32.mrf.mxu1 }
 0xc6c   :  { %5995 = vmatmul.f32.vlgmr.msra.gmra.mxu1 %v10958_v39  ;;  %v2843_v27 = vld [vmem:[%s10902_s9 + $0x2b68] sm:$0xff] }
 0xc6d   :  { %v2963_v15 = vld [vmem:[%s10902_s9 + $0x2f28] sm:$0xff]  ;;  %6041 = vmatpush.msrb.mxu0 %v2843_v27 }
 0xc6e   :  { %v3075_v44 = vld [vmem:[%s10902_s9 + $0x32a8] sm:$0xff]  ;;  %6062 = vmatpush.msrb.mxu1 %v2963_v15 }
 0xc6f   :  { %v2675_v46 = vld [vmem:[%s10902_s9 + $0x2628] sm:$0xff]  ;;  %6084 = vmatpush.msrb.mxu2 %v3075_v44  ;;  %v5757_v44 = vadd.f32 %v5756_v36, %v5737_v37 }
 0xc70   :  { %v2835_v57 = vld [vmem:[%s10902_s9 + $0x2b28] sm:$0xff]  ;;  %6026 = vmatpush.msra.mxu3 %v2675_v46  ;;  %v5776_v46 = vpop.f32.mrf.mxu2 }
 0xc71   :  { %v2955_v9 = vld [vmem:[%s10902_s9 + $0x2ee8] sm:$0xff]  ;;  %6042 = vmatpush.msrb.mxu0 %v2835_v57 }
 0xc72   :  { %v3067_v13 = vld [vmem:[%s10902_s9 + $0x3268] sm:$0xff]  ;;  %6063 = vmatpush.msrb.mxu1 %v2955_v9 }
 0xc73   :  { %v2667_v52 = vld [vmem:[%s10902_s9 + $0x25e8] sm:$0xff]  ;;  %6085 = vmatpush.msrb.mxu2 %v3067_v13 }
 0xc74   :  { %v2827_v53 = vld [vmem:[%s10902_s9 + $0x2ae8] sm:$0xff]  ;;  %6027 = vmatpush.msra.mxu3 %v2667_v52  ;;  %v10070_v52 = vadd.f32 %v5776_v46, %v5757_v44 }
 0xc75   :  { %v2947_v11 = vld [vmem:[%s10902_s9 + $0x2ea8] sm:$0xff]  ;;  %6043 = vmatpush.msrb.mxu0 %v2827_v53 }
 0xc76   :  { %v3059_v51 = vld [vmem:[%s10902_s9 + $0x3228] sm:$0xff]  ;;  %6064 = vmatpush.msrb.mxu1 %v2947_v11 }
 0xc77   :  { %v2659_v16 = vld [vmem:[%s10902_s9 + $0x25a8] sm:$0xff]  ;;  %6086 = vmatpush.msrb.mxu2 %v3059_v51 }
 0xc78   :  { %v2819_v32 = vld [vmem:[%s10902_s9 + $0x2aa8] sm:$0xff]  ;;  %6028 = vmatpush.msra.mxu3 %v2659_v16 }
 0xc79   :  { %v2939_v10 = vld [vmem:[%s10902_s9 + $0x2e68] sm:$0xff]  ;;  %6044 = vmatpush.msrb.mxu0 %v2819_v32  ;;  %v7325_v32 = vld.sshfl [vmem:[#allocation1 + $0x20] sm:$0xff pattern:$0x73625140] }
 0xc7a   :  { %v3051_v23 = vld [vmem:[%s10902_s9 + $0x31e8] sm:$0xff]  ;;  %6065 = vmatpush.msrb.mxu1 %v2939_v10 }
 0xc7b   :  { %v2651_v55 = vld [vmem:[%s10902_s9 + $0x2568] sm:$0xff]  ;;  %6087 = vmatpush.msrb.mxu2 %v3051_v23 }
 0xc7c   :  { %v2811_v60 = vld [vmem:[%s10902_s9 + $0x2a68] sm:$0xff]  ;;  %6029 = vmatpush.msra.mxu3 %v2651_v55 }
 0xc7d   :  { %v2931_v58 = vld [vmem:[%s10902_s9 + $0x2e28] sm:$0xff]  ;;  %6045 = vmatpush.msrb.mxu0 %v2811_v60 }
 0xc7e   :  { %v3043_v63 = vld [vmem:[%s10902_s9 + $0x31a8] sm:$0xff]  ;;  %6066 = vmatpush.msrb.mxu1 %v2931_v58 }
 0xc7f   :  { %v2643_v34 = vld [vmem:[%s10902_s9 + $0x2528] sm:$0xff]  ;;  %6088 = vmatpush.msrb.mxu2 %v3043_v63 }
 0xc80   :  { %v2803_v33 = vld [vmem:[%s10902_s9 + $0x2a28] sm:$0xff]  ;;  %6030 = vmatpush.msra.mxu3 %v2643_v34 }
 0xc81   :  { %v2923_v31 = vld [vmem:[%s10902_s9 + $0x2de8] sm:$0xff]  ;;  %6046 = vmatpush.msrb.mxu0 %v2803_v33 }
 0xc82   :  { %v3035_v61 = vld [vmem:[%s10902_s9 + $0x3168] sm:$0xff]  ;;  %6067 = vmatpush.msrb.mxu1 %v2923_v31 }
 0xc83   :  { %v2635_v8 = vld [vmem:[%s10902_s9 + $0x24e8] sm:$0xff]  ;;  %6089 = vmatpush.msrb.mxu2 %v3035_v61 }
 0xc84   :  { %v2795_v42 = vld [vmem:[%s10902_s9 + $0x29e8] sm:$0xff]  ;;  %6031 = vmatpush.msra.mxu3 %v2635_v8 }
 0xc85   :  { %v2915_v41 = vld [vmem:[%s10902_s9 + $0x2da8] sm:$0xff]  ;;  %6047 = vmatpush.msrb.mxu0 %v2795_v42 }
 0xc86   :  { %v3027_v21 = vld [vmem:[%s10902_s9 + $0x3128] sm:$0xff]  ;;  %6068 = vmatpush.msrb.mxu1 %v2915_v41 }
 0xc87   :  { %v2627_v35 = vld [vmem:[%s10902_s9 + $0x24a8] sm:$0xff]  ;;  %6090 = vmatpush.msrb.mxu2 %v3027_v21 }
 0xc88   :  { %v2787_v4 = vld [vmem:[%s10902_s9 + $0x29a8] sm:$0xff]  ;;  %6032 = vmatpush.msra.mxu3 %v2627_v35 }
 0xc89   :  { %v2907_v0 = vld [vmem:[%s10902_s9 + $0x2d68] sm:$0xff]  ;;  %6048 = vmatpush.msrb.mxu0 %v2787_v4 }
 0xc8a   :  { %v3019_v26 = vld [vmem:[%s10902_s9 + $0x30e8] sm:$0xff]  ;;  %6069 = vmatpush.msrb.mxu1 %v2907_v0 }
 0xc8b   :  { %v2619_v54 = vld [vmem:[%s10902_s9 + $0x2468] sm:$0xff]  ;;  %6091 = vmatpush.msrb.mxu2 %v3019_v26 }
 0xc8c   :  { %v2779_v38 = vld [vmem:[%s10902_s9 + $0x2968] sm:$0xff]  ;;  %6033 = vmatpush.msra.mxu3 %v2619_v54 }
 0xc8d   :  { %v2899_v3 = vld [vmem:[%s10902_s9 + $0x2d28] sm:$0xff]  ;;  %6049 = vmatpush.msrb.mxu0 %v2779_v38 }
 0xc8e   :  { %v3011_v24 = vld [vmem:[%s10902_s9 + $0x30a8] sm:$0xff]  ;;  %6070 = vmatpush.msrb.mxu1 %v2899_v3 }
 0xc8f   :  { %v2611_v49 = vld [vmem:[%s10902_s9 + $0x2428] sm:$0xff]  ;;  %6092 = vmatpush.msrb.mxu2 %v3011_v24 }
 0xc90   :  { %v2771_v43 = vld [vmem:[%s10902_s9 + $0x2928] sm:$0xff]  ;;  %6034 = vmatpush.msra.mxu3 %v2611_v49 }
 0xc91   :  { %v2891_v40 = vld [vmem:[%s10902_s9 + $0x2ce8] sm:$0xff]  ;;  %6050 = vmatpush.msrb.mxu0 %v2771_v43  ;;  %6035 = vmatmul.f32.vlgmr.msra.gmra.mxu3 %v8253_v20 }
 0xc92   :  { %v3003_v62 = vld [vmem:[%s10902_s9 + $0x3068] sm:$0xff]  ;;  %6071 = vmatpush.msrb.mxu1 %v2891_v40 }
 0xc93   :  { %v3243_v25 = vld [vmem:[%s10902_s9 + $0x37e8] sm:$0xff]  ;;  %6093 = vmatpush.msrb.mxu2 %v3003_v62 }
 0xc94   :  { %v2763_v18 = vld [vmem:[%s10902_s9 + $0x28e8] sm:$0xff]  ;;  %6099 = vmatpush.msrb.mxu3 %v3243_v25 }
 0xc95   :  { %v2883_v6 = vld [vmem:[%s10902_s9 + $0x2ca8] sm:$0xff]  ;;  %6051 = vmatpush.msrb.mxu0 %v2763_v18 }
 0xc96   :  { %v2995_v50 = vld [vmem:[%s10902_s9 + $0x3028] sm:$0xff]  ;;  %6072 = vmatpush.msrb.mxu1 %v2883_v6 }
 0xc97   :  { %v3235_v1 = vld [vmem:[%s10902_s9 + $0x37a8] sm:$0xff]  ;;  %6094 = vmatpush.msrb.mxu2 %v2995_v50 }
 0xc98   :  { %v3627_v48 = vld [vmem:[%s10902_s9 + $0x43e8] sm:$0xff]  ;;  %6100 = vmatpush.msrb.mxu3 %v3235_v1  ;;  %6095 = vmatmul.f32.vlgmr.msrb.gmra.mxu2 %v7325_v32 }
 0xc99   :  { %v2755_v47 = vld [vmem:[%s10902_s9 + $0x28a8] sm:$0xff]  ;;  %6159 = vmatpush.msra.mxu2 %v3627_v48 }
 0xc9a   :  { %v2875_v45 = vld [vmem:[%s10902_s9 + $0x2c68] sm:$0xff]  ;;  %6052 = vmatpush.msrb.mxu0 %v2755_v47 }
 0xc9b   :  { %v3227_v27 = vld [vmem:[%s10902_s9 + $0x3768] sm:$0xff]  ;;  %6073 = vmatpush.msrb.mxu1 %v2875_v45 }
 0xc9c   :  { %v3619_v15 = vld [vmem:[%s10902_s9 + $0x43a8] sm:$0xff]  ;;  %6101 = vmatpush.msrb.mxu3 %v3227_v27 }
 0xc9d   :  { %v2747_v57 = vld [vmem:[%s10902_s9 + $0x2868] sm:$0xff]  ;;  %6160 = vmatpush.msra.mxu2 %v3619_v15 }
 0xc9e   :  { %v2867_v9 = vld [vmem:[%s10902_s9 + $0x2c28] sm:$0xff]  ;;  %6053 = vmatpush.msrb.mxu0 %v2747_v57 }
 0xc9f   :  { %v3219_v13 = vld [vmem:[%s10902_s9 + $0x3728] sm:$0xff]  ;;  %6074 = vmatpush.msrb.mxu1 %v2867_v9  ;;  %v5796_v9 = vpop.f32.mrf.mxu3 }
 0xca0   :  { %v3499_v53 = vld [vmem:[%s10902_s9 + $0x3fe8] sm:$0xff]  ;;  %6102 = vmatpush.msrb.mxu3 %v3219_v13  ;;  %6075 = vmatmul.f32.vlgmr.msrb.gmra.mxu1 %v8255_v22 }
 0xca1   :  { %v3611_v11 = vld [vmem:[%s10902_s9 + $0x4368] sm:$0xff]  ;;  %6139 = vmatpush.msra.mxu1 %v3499_v53 }
 0xca2   :  { %v2739_v51 = vld [vmem:[%s10902_s9 + $0x2828] sm:$0xff]  ;;  %6161 = vmatpush.msra.mxu2 %v3611_v11  ;;  %v5797_v11 = vadd.f32 %v5796_v9, %v10070_v52  ;;  %v1644_v9 = vld [vmem:[%s10902_s9 + $0x5f0] sm:$0xff] }
 0xca3   :  { %v3211_v16 = vld [vmem:[%s10902_s9 + $0x36e8] sm:$0xff]  ;;  %6054 = vmatpush.msrb.mxu0 %v2739_v51 }
 0xca4   :  { %v3491_v10 = vld [vmem:[%s10902_s9 + $0x3fa8] sm:$0xff]  ;;  %6103 = vmatpush.msrb.mxu3 %v3211_v16  ;;  %6055 = vmatmul.f32.vlgmr.msrb.gmra.mxu0 %v8259_v28 }
 0xca5   :  { %v3371_v23 = vld [vmem:[%s10902_s9 + $0x3be8] sm:$0xff]  ;;  %6140 = vmatpush.msra.mxu1 %v3491_v10  ;;  %v5816_v10 = vpop.f32.mrf.mxu0 }
 0xca6   :  { %v3603_v55 = vld [vmem:[%s10902_s9 + $0x4328] sm:$0xff]  ;;  %6119 = vmatpush.msra.mxu0 %v3371_v23 }
 0xca7   :  { %v3203_v60 = vld [vmem:[%s10902_s9 + $0x36a8] sm:$0xff]  ;;  %6162 = vmatpush.msra.mxu2 %v3603_v55 }
 0xca8   :  { %v3363_v58 = vld [vmem:[%s10902_s9 + $0x3ba8] sm:$0xff]  ;;  %6104 = vmatpush.msrb.mxu3 %v3203_v60  ;;  %v5817_v60 = vadd.f32 %v5816_v10, %v5797_v11  ;;  %v1524_v11 = vld [vmem:[%s10902_s9 + $0x230] sm:$0xff] }
 0xca9   :  { %v3483_v63 = vld [vmem:[%s10902_s9 + $0x3f68] sm:$0xff]  ;;  %6120 = vmatpush.msra.mxu0 %v3363_v58  ;;  %v1516_v10 = vld [vmem:[%s10902_s9 + $0x1f0] sm:$0xff] }
 0xcaa   :  { %v3595_v34 = vld [vmem:[%s10902_s9 + $0x42e8] sm:$0xff]  ;;  %6141 = vmatpush.msra.mxu1 %v3483_v63  ;;  %v1708_v63 = vld [vmem:[%s10902_s9 + $0x7f0] sm:$0xff] }
 0xcab   :  { %v3195_v33 = vld [vmem:[%s10902_s9 + $0x3668] sm:$0xff]  ;;  %6163 = vmatpush.msra.mxu2 %v3595_v34  ;;  %v5836_v34 = vpop.f32.mrf.mxu1 }
 0xcac   :  { %v3355_v31 = vld [vmem:[%s10902_s9 + $0x3b68] sm:$0xff]  ;;  %6105 = vmatpush.msrb.mxu3 %v3195_v33 }
 0xcad   :  { %v3475_v61 = vld [vmem:[%s10902_s9 + $0x3f28] sm:$0xff]  ;;  %6121 = vmatpush.msra.mxu0 %v3355_v31 }
 0xcae   :  { %v3587_v8 = vld [vmem:[%s10902_s9 + $0x42a8] sm:$0xff]  ;;  %6142 = vmatpush.msra.mxu1 %v3475_v61  ;;  %v10134_v61 = vadd.f32 %v5836_v34, %v5817_v60 }
 0xcaf   :  { %v3187_v42 = vld [vmem:[%s10902_s9 + $0x3628] sm:$0xff]  ;;  %6164 = vmatpush.msra.mxu2 %v3587_v8 }
 0xcb0   :  { %v3347_v41 = vld [vmem:[%s10902_s9 + $0x3b28] sm:$0xff]  ;;  %6106 = vmatpush.msrb.mxu3 %v3187_v42  ;;  %v1700_v42 = vld [vmem:[%s10902_s9 + $0x7b0] sm:$0xff] }
 0xcb1   :  { %v3467_v21 = vld [vmem:[%s10902_s9 + $0x3ee8] sm:$0xff]  ;;  %6122 = vmatpush.msra.mxu0 %v3347_v41 }
 0xcb2   :  { %v3579_v35 = vld [vmem:[%s10902_s9 + $0x4268] sm:$0xff]  ;;  %6143 = vmatpush.msra.mxu1 %v3467_v21 }
 0xcb3   :  { %v3179_v4 = vld [vmem:[%s10902_s9 + $0x35e8] sm:$0xff]  ;;  %6165 = vmatpush.msra.mxu2 %v3579_v35 }
 0xcb4   :  { %v3339_v0 = vld [vmem:[%s10902_s9 + $0x3ae8] sm:$0xff]  ;;  %6107 = vmatpush.msrb.mxu3 %v3179_v4  ;;  %v1580_v4 = vld [vmem:[%s10902_s9 + $0x3f0] sm:$0xff] }
 0xcb5   :  { %v3459_v26 = vld [vmem:[%s10902_s9 + $0x3ea8] sm:$0xff]  ;;  %6123 = vmatpush.msra.mxu0 %v3339_v0  ;;  %v1692_v0 = vld [vmem:[%s10902_s9 + $0x770] sm:$0xff] }
 0xcb6   :  { %v3571_v54 = vld [vmem:[%s10902_s9 + $0x4228] sm:$0xff]  ;;  %6144 = vmatpush.msra.mxu1 %v3459_v26 }
 0xcb7   :  { %v3171_v38 = vld [vmem:[%s10902_s9 + $0x35a8] sm:$0xff]  ;;  %6166 = vmatpush.msra.mxu2 %v3571_v54 }
 0xcb8   :  { %v3331_v3 = vld [vmem:[%s10902_s9 + $0x3aa8] sm:$0xff]  ;;  %6108 = vmatpush.msrb.mxu3 %v3171_v38  ;;  %v7327_v38 = vld.sshfl [vmem:[#allocation1] sm:$0xff pattern:$0x73625140] }
 0xcb9   :  { %v3451_v24 = vld [vmem:[%s10902_s9 + $0x3e68] sm:$0xff]  ;;  %6124 = vmatpush.msra.mxu0 %v3331_v3  ;;  %v1572_v3 = vld [vmem:[%s10902_s9 + $0x3b0] sm:$0xff] }
 0xcba   :  { %v3563_v49 = vld [vmem:[%s10902_s9 + $0x41e8] sm:$0xff]  ;;  %6145 = vmatpush.msra.mxu1 %v3451_v24 }
 0xcbb   :  { %v3163_v59 = vld [vmem:[%s10902_s9 + $0x3568] sm:$0xff]  ;;  %6167 = vmatpush.msra.mxu2 %v3563_v49  ;;  %v1684_v49 = vld [vmem:[%s10902_s9 + $0x730] sm:$0xff] }
 0xcbc   :  { %v3323_v43 = vld [vmem:[%s10902_s9 + $0x3a68] sm:$0xff]  ;;  %6109 = vmatpush.msrb.mxu3 %v3163_v59 }
 0xcbd   :  { %v3443_v40 = vld [vmem:[%s10902_s9 + $0x3e28] sm:$0xff]  ;;  %6125 = vmatpush.msra.mxu0 %v3323_v43  ;;  %v7328_v43 = vld.sshfl [vmem:[#allocation1 + $0x30] sm:$0xff pattern:$0x73625140] }
 0xcbe   :  { %v3555_v17 = vld [vmem:[%s10902_s9 + $0x41a8] sm:$0xff]  ;;  %6146 = vmatpush.msra.mxu1 %v3443_v40 }
 0xcbf   :  { %v3155_v62 = vld [vmem:[%s10902_s9 + $0x3528] sm:$0xff]  ;;  %6168 = vmatpush.msra.mxu2 %v3555_v17  ;;  %v1564_v17 = vld [vmem:[%s10902_s9 + $0x370] sm:$0xff] }
 0xcc0   :  { %v3315_v25 = vld [vmem:[%s10902_s9 + $0x3a28] sm:$0xff]  ;;  %6110 = vmatpush.msrb.mxu3 %v3155_v62  ;;  %v1676_v62 = vld [vmem:[%s10902_s9 + $0x6f0] sm:$0xff] }
 0xcc1   :  { %v3435_v18 = vld [vmem:[%s10902_s9 + $0x3de8] sm:$0xff]  ;;  %6126 = vmatpush.msra.mxu0 %v3315_v25 }
 0xcc2   :  { %v3547_v7 = vld [vmem:[%s10902_s9 + $0x4168] sm:$0xff]  ;;  %6147 = vmatpush.msra.mxu1 %v3435_v18  ;;  %v7329_v18 = vld.sshfl [vmem:[#allocation1 + $0x38] sm:$0xff pattern:$0x73625140] }
 0xcc3   :  { %v3147_v6 = vld [vmem:[%s10902_s9 + $0x34e8] sm:$0xff]  ;;  %6169 = vmatpush.msra.mxu2 %v3547_v7 }
 0xcc4   :  { %v3307_v50 = vld [vmem:[%s10902_s9 + $0x39e8] sm:$0xff]  ;;  %6111 = vmatpush.msrb.mxu3 %v3147_v6  ;;  %v1556_v6 = vld [vmem:[%s10902_s9 + $0x330] sm:$0xff] }
 0xcc5   :  { %v3427_v37 = vld [vmem:[%s10902_s9 + $0x3da8] sm:$0xff]  ;;  %6127 = vmatpush.msra.mxu0 %v3307_v50  ;;  %v1668_v50 = vld [vmem:[%s10902_s9 + $0x6b0] sm:$0xff] }
 0xcc6   :  { %v3539_v1 = vld [vmem:[%s10902_s9 + $0x4128] sm:$0xff]  ;;  %6148 = vmatpush.msra.mxu1 %v3427_v37 }
 0xcc7   :  { %v3139_v48 = vld [vmem:[%s10902_s9 + $0x34a8] sm:$0xff]  ;;  %6170 = vmatpush.msra.mxu2 %v3539_v1 }
 0xcc8   :  { %v3299_v47 = vld [vmem:[%s10902_s9 + $0x39a8] sm:$0xff]  ;;  %6112 = vmatpush.msrb.mxu3 %v3139_v48  ;;  %v1548_v48 = vld [vmem:[%s10902_s9 + $0x2f0] sm:$0xff] }
 0xcc9   :  { %v3419_v45 = vld [vmem:[%s10902_s9 + $0x3d68] sm:$0xff]  ;;  %6128 = vmatpush.msra.mxu0 %v3299_v47  ;;  %v1660_v47 = vld [vmem:[%s10902_s9 + $0x670] sm:$0xff] }
 0xcca   :  { %v3531_v36 = vld [vmem:[%s10902_s9 + $0x40e8] sm:$0xff]  ;;  %6149 = vmatpush.msra.mxu1 %v3419_v45 }
 0xccb   :  { %v3131_v27 = vld [vmem:[%s10902_s9 + $0x3468] sm:$0xff]  ;;  %6171 = vmatpush.msra.mxu2 %v3531_v36 }
 0xccc   :  { %v3291_v15 = vld [vmem:[%s10902_s9 + $0x3968] sm:$0xff]  ;;  %6113 = vmatpush.msrb.mxu3 %v3131_v27  ;;  %v1540_v27 = vld [vmem:[%s10902_s9 + $0x2b0] sm:$0xff] }
 0xccd   :  { %v3411_v44 = vld [vmem:[%s10902_s9 + $0x3d28] sm:$0xff]  ;;  %6129 = vmatpush.msra.mxu0 %v3291_v15  ;;  %v1652_v15 = vld [vmem:[%s10902_s9 + $0x630] sm:$0xff] }
 0xcce   :  { %v3523_v46 = vld [vmem:[%s10902_s9 + $0x40a8] sm:$0xff]  ;;  %6150 = vmatpush.msra.mxu1 %v3411_v44 }
 0xccf   :  { %v3123_v57 = vld [vmem:[%s10902_s9 + $0x3428] sm:$0xff]  ;;  %6172 = vmatpush.msra.mxu2 %v3523_v46 }
 0xcd0   :  { %v3283_v13 = vld [vmem:[%s10902_s9 + $0x3928] sm:$0xff]  ;;  %6114 = vmatpush.msrb.mxu3 %v3123_v57  ;;  %v1532_v57 = vld [vmem:[%s10902_s9 + $0x270] sm:$0xff] }
 0xcd1   :  { %v3403_v53 = vld [vmem:[%s10902_s9 + $0x3ce8] sm:$0xff]  ;;  %6130 = vmatpush.msra.mxu0 %v3283_v13 }
 0xcd2   :  { %v3515_v51 = vld [vmem:[%s10902_s9 + $0x4068] sm:$0xff]  ;;  %6151 = vmatpush.msra.mxu1 %v3403_v53 }
 0xcd3   :  { %v3755_v16 = vld [vmem:[%s10902_s9 + $0x47e8] sm:$0xff]  ;;  %6173 = vmatpush.msra.mxu2 %v3515_v51  ;;  %v1636_v51 = vld [vmem:[%s10902_s9 + $0x5b0] sm:$0xff] }
 0xcd4   :  { %v3275_v32 = vld [vmem:[%s10902_s9 + $0x38e8] sm:$0xff]  ;;  %6179 = vmatpush.msra.mxu3 %v3755_v16 }
 0xcd5   :  { %v3395_v23 = vld [vmem:[%s10902_s9 + $0x3ca8] sm:$0xff]  ;;  %6131 = vmatpush.msra.mxu0 %v3275_v32 }
 0xcd6   :  { %v3507_v55 = vld [vmem:[%s10902_s9 + $0x4028] sm:$0xff]  ;;  %6152 = vmatpush.msra.mxu1 %v3395_v23  ;;  %v1628_v23 = vld [vmem:[%s10902_s9 + $0x570] sm:$0xff] }
 0xcd7   :  { %v7326_v52 = vld.sshfl [vmem:[#allocation1 + $0x28] sm:$0xff pattern:$0x73625140]  ;;  %6174 = vmatpush.msra.mxu2 %v3507_v55 }
 0xcd8   :  { %6115 = vmatmul.f32.vlgmr.msrb.gmra.mxu3 %v7326_v52  ;;  %v3747_v58 = vld [vmem:[%s10902_s9 + $0x47a8] sm:$0xff]  ;;  %6175 = vmatmul.f32.vlgmr.msra.gmra.mxu2 %v7327_v38  ;;  %v1508_v52 = vld [vmem:[%s10902_s9 + $0x1b0] sm:$0xff] }
 0xcd9   :  { %v3267_v33 = vld [vmem:[%s10902_s9 + $0x38a8] sm:$0xff]  ;;  %6180 = vmatpush.msra.mxu3 %v3747_v58  ;;  %6239 = vmatpush.msrb.mxu2 %v1708_v63  ;;  %v1620_v58 = vld [vmem:[%s10902_s9 + $0x530] sm:$0xff] }
 0xcda   :  { %v3387_v31 = vld [vmem:[%s10902_s9 + $0x3c68] sm:$0xff]  ;;  %6132 = vmatpush.msra.mxu0 %v3267_v33  ;;  %v1500_v33 = vld [vmem:[%s10902_s9 + $0x170] sm:$0xff] }
 0xcdb   :  { %v3739_v8 = vld [vmem:[%s10902_s9 + $0x4768] sm:$0xff]  ;;  %6153 = vmatpush.msra.mxu1 %v3387_v31  ;;  %6240 = vmatpush.msrb.mxu2 %v1700_v42  ;;  %v1612_v31 = vld [vmem:[%s10902_s9 + $0x4f0] sm:$0xff] }
 0xcdc   :  { %v3259_v41 = vld [vmem:[%s10902_s9 + $0x3868] sm:$0xff]  ;;  %6181 = vmatpush.msra.mxu3 %v3739_v8  ;;  %v1596_v38 = vld [vmem:[%s10902_s9 + $0x470] sm:$0xff] }
 0xcdd   :  { %v3379_v21 = vld [vmem:[%s10902_s9 + $0x3c28] sm:$0xff]  ;;  %6133 = vmatpush.msra.mxu0 %v3259_v41  ;;  %6241 = vmatpush.msrb.mxu2 %v1692_v0  ;;  %v1492_v41 = vld [vmem:[%s10902_s9 + $0x130] sm:$0xff] }
 0xcde   :  { %v3731_v35 = vld [vmem:[%s10902_s9 + $0x4728] sm:$0xff]  ;;  %6154 = vmatpush.msra.mxu1 %v3379_v21  ;;  %v1604_v21 = vld [vmem:[%s10902_s9 + $0x4b0] sm:$0xff] }
 0xcdf   :  { %v3251_v26 = vld [vmem:[%s10902_s9 + $0x3828] sm:$0xff]  ;;  %6182 = vmatpush.msra.mxu3 %v3731_v35  ;;  %6242 = vmatpush.msrb.mxu2 %v1684_v49  ;;  %v1484_v0 = vld [vmem:[%s10902_s9 + $0xf0] sm:$0xff] }
 0xce0   :  { %v3723_v54 = vld [vmem:[%s10902_s9 + $0x46e8] sm:$0xff]  ;;  %6219 = vmatpush.msrb.mxu1 %v1580_v4  ;;  %6134 = vmatpush.msra.mxu0 %v3251_v26  ;;  %v7330_v26 = vld [vmem:[%s10931_s19] sm:$0xff] }
 0xce1   :  { %v3867_v24 = vld [vmem:[%s10902_s9 + $0x4b68] sm:$0xff]  ;;  %6183 = vmatpush.msra.mxu3 %v3723_v54  ;;  %6135 = vmatmul.f32.vlgmr.msra.gmra.mxu0 %v7328_v43  ;;  %v3877_v54 = vperm.slane %v7330_v26, 5  ;;  %v1588_v43 = vld [vmem:[%s10902_s9 + $0x430] sm:$0xff] }
 0xce2   :  { %v3715_v59 = vld [vmem:[%s10902_s9 + $0x46a8] sm:$0xff]  ;;  %6220 = vmatpush.msrb.mxu1 %v1572_v3  ;;  %6201 = vmatpush.msrb.mxu0 %v3867_v24  ;;  %v5856_v3 = vpop.f32.mrf.mxu2  ;;  %v1836_v24 = vld [vmem:[%s10902_s9 + $0xbf0] sm:$0xff] }
 0xce3   :  { %v3859_v40 = vld [vmem:[%s10902_s9 + $0x4b28] sm:$0xff]  ;;  %6155 = vmatmul.f32.vlgmr.msra.gmra.mxu1 %v7329_v18  ;;  %6184 = vmatpush.msra.mxu3 %v3715_v59  ;;  %v1476_v59 = vld [vmem:[%s10902_s9 + $0xb0] sm:$0xff] }
 0xce4   :  { %v3707_v25 = vld [vmem:[%s10902_s9 + $0x4668] sm:$0xff]  ;;  %6202 = vmatpush.msrb.mxu0 %v3859_v40  ;;  %6221 = vmatpush.msrb.mxu1 %v1564_v17  ;;  %v1828_v17 = vld [vmem:[%s10902_s9 + $0xbb0] sm:$0xff] }
 0xce5   :  { %v3851_v7 = vld [vmem:[%s10902_s9 + $0x4ae8] sm:$0xff]  ;;  %6243 = vmatpush.msrb.mxu2 %v1676_v62  ;;  %6185 = vmatpush.msra.mxu3 %v3707_v25  ;;  %v2220_v62 = vld [vmem:[%s10902_s9 + $0x17f0] sm:$0xff]  ;;  %v5857_v25 = vadd.f32 %v5856_v3, %v3877_v54 }
 0xce6   :  { %v3699_v37 = vld [vmem:[%s10902_s9 + $0x4628] sm:$0xff]  ;;  %6203 = vmatpush.msrb.mxu0 %v3851_v7  ;;  %6222 = vmatpush.msrb.mxu1 %v1556_v6  ;;  %v1468_v7 = vld [vmem:[%s10902_s9 + $0x70] sm:$0xff] }
 0xce7   :  { %v3843_v1 = vld [vmem:[%s10902_s9 + $0x4aa8] sm:$0xff]  ;;  %6244 = vmatpush.msrb.mxu2 %v1668_v50  ;;  %6186 = vmatpush.msra.mxu3 %v3699_v37  ;;  %v1820_v6 = vld [vmem:[%s10902_s9 + $0xb70] sm:$0xff] }
 0xce8   :  { %v3691_v45 = vld [vmem:[%s10902_s9 + $0x45e8] sm:$0xff]  ;;  %6204 = vmatpush.msrb.mxu0 %v3843_v1  ;;  %6223 = vmatpush.msrb.mxu1 %v1548_v48  ;;  %v1964_v50 = vld [vmem:[%s10902_s9 + $0xff0] sm:$0xff]  ;;  %v5876_v48 = vpop.f32.mrf.mxu3 }
 0xce9   :  { %v3835_v36 = vld [vmem:[%s10902_s9 + $0x4a68] sm:$0xff]  ;;  %6245 = vmatpush.msrb.mxu2 %v1660_v47  ;;  %6187 = vmatpush.msra.mxu3 %v3691_v45  ;;  %v2212_v37 = vld [vmem:[%s10902_s9 + $0x17b0] sm:$0xff] }
 0xcea   :  { %v3683_v44 = vld [vmem:[%s10902_s9 + $0x45a8] sm:$0xff]  ;;  %6205 = vmatpush.msrb.mxu0 %v3835_v36  ;;  %6224 = vmatpush.msrb.mxu1 %v1540_v27  ;;  %v1460_v1 = vld [vmem:[%s10902_s9 + $0x30] sm:$0xff]  ;;  %v5877_v36 = vadd.f32 %v5876_v48, %v5857_v25 }
 0xceb   :  { %v3827_v46 = vld [vmem:[%s10902_s9 + $0x4a28] sm:$0xff]  ;;  %6246 = vmatpush.msrb.mxu2 %v1652_v15  ;;  %6188 = vmatpush.msra.mxu3 %v3683_v44  ;;  %v1812_v47 = vld [vmem:[%s10902_s9 + $0xb30] sm:$0xff] }
 0xcec   :  { %v3675_v13 = vld [vmem:[%s10902_s9 + $0x4568] sm:$0xff]  ;;  %6206 = vmatpush.msrb.mxu0 %v3827_v46  ;;  %6225 = vmatpush.msrb.mxu1 %v1532_v57  ;;  %v1956_v45 = vld [vmem:[%s10902_s9 + $0xfb0] sm:$0xff]  ;;  %v5896_v46 = vpop.f32.mrf.mxu0 }
 0xced   :  { %v3819_v53 = vld [vmem:[%s10902_s9 + $0x49e8] sm:$0xff]  ;;  %6247 = vmatpush.msrb.mxu2 %v1644_v9  ;;  %6189 = vmatpush.msra.mxu3 %v3675_v13  ;;  %v2092_v27 = vld [vmem:[%s10902_s9 + $0x13f0] sm:$0xff]  ;;  %v5897_v13 = vadd.f32 %v5896_v46, %v5877_v36 }
 0xcee   :  { %v3667_v16 = vld [vmem:[%s10902_s9 + $0x4528] sm:$0xff]  ;;  %6207 = vmatpush.msrb.mxu0 %v3819_v53  ;;  %6226 = vmatpush.msrb.mxu1 %v1524_v11  ;;  %v2204_v15 = vld [vmem:[%s10902_s9 + $0x1770] sm:$0xff] }
 0xcef   :  { %v3811_v32 = vld [vmem:[%s10902_s9 + $0x49a8] sm:$0xff]  ;;  %6248 = vmatpush.msrb.mxu2 %v1636_v51  ;;  %6190 = vmatpush.msra.mxu3 %v3667_v16  ;;  %v1804_v44 = vld [vmem:[%s10902_s9 + $0xaf0] sm:$0xff] }
 0xcf0   :  { %v3659_v55 = vld [vmem:[%s10902_s9 + $0x44e8] sm:$0xff]  ;;  %6208 = vmatpush.msrb.mxu0 %v3811_v32  ;;  %6227 = vmatpush.msrb.mxu1 %v1516_v10  ;;  %v1948_v57 = vld [vmem:[%s10902_s9 + $0xf70] sm:$0xff]  ;;  %v5916_v10 = vpop.f32.mrf.mxu1 }
 0xcf1   :  { %v3803_v60 = vld [vmem:[%s10902_s9 + $0x4968] sm:$0xff]  ;;  %6249 = vmatpush.msrb.mxu2 %v1628_v23  ;;  %6191 = vmatpush.msra.mxu3 %v3659_v55  ;;  %v2084_v9 = vld [vmem:[%s10902_s9 + $0x13b0] sm:$0xff] }
 0xcf2   :  { %v3651_v63 = vld [vmem:[%s10902_s9 + $0x44a8] sm:$0xff]  ;;  %6209 = vmatpush.msrb.mxu0 %v3803_v60  ;;  %6228 = vmatpush.msrb.mxu1 %v1508_v52  ;;  %v2196_v53 = vld [vmem:[%s10902_s9 + $0x1730] sm:$0xff]  ;;  %v5917_v60 = vadd.f32 %v5916_v10, %v5897_v13  ;;  %v5936_v52 = vpop.f32.mrf.mxu2 }
 0xcf3   :  { %v3795_v34 = vld [vmem:[%s10902_s9 + $0x4928] sm:$0xff]  ;;  %6250 = vmatpush.msrb.mxu2 %v1620_v58  ;;  %6192 = vmatpush.msra.mxu3 %v3651_v63  ;;  %v1796_v11 = vld [vmem:[%s10902_s9 + $0xab0] sm:$0xff] }
 0xcf4   :  { %v3643_v8 = vld [vmem:[%s10902_s9 + $0x4468] sm:$0xff]  ;;  %6210 = vmatpush.msrb.mxu0 %v3795_v34  ;;  %6229 = vmatpush.msrb.mxu1 %v1500_v33  ;;  %v7332_v51 = vld.sshfl [vmem:[#allocation1 + $0x10] sm:$0xff pattern:$0x73625140] }
 0xcf5   :  { %v3787_v42 = vld [vmem:[%s10902_s9 + $0x48e8] sm:$0xff]  ;;  %6251 = vmatpush.msrb.mxu2 %v1612_v31  ;;  %6193 = vmatpush.msra.mxu3 %v3643_v8  ;;  %v1940_v16 = vld [vmem:[%s10902_s9 + $0xf30] sm:$0xff]  ;;  %v10223_v31 = vadd.f32 %v5936_v52, %v5917_v60 }
 0xcf6   :  { %v3635_v35 = vld [vmem:[%s10902_s9 + $0x4428] sm:$0xff]  ;;  %6211 = vmatpush.msrb.mxu0 %v3787_v42  ;;  %6230 = vmatpush.msrb.mxu1 %v1492_v41  ;;  %v2076_v32 = vld [vmem:[%s10902_s9 + $0x1370] sm:$0xff] }
 0xcf7   :  { %v3779_v4 = vld [vmem:[%s10902_s9 + $0x48a8] sm:$0xff]  ;;  %6252 = vmatpush.msrb.mxu2 %v1604_v21  ;;  %6194 = vmatpush.msra.mxu3 %v3635_v35  ;;  %v2188_v23 = vld [vmem:[%s10902_s9 + $0x16f0] sm:$0xff] }
 0xcf8   :  { %v3771_v49 = vld [vmem:[%s10902_s9 + $0x4868] sm:$0xff]  ;;  %6212 = vmatpush.msrb.mxu0 %v3779_v4  ;;  %6231 = vmatpush.msrb.mxu1 %v1484_v0  ;;  %v1788_v55 = vld [vmem:[%s10902_s9 + $0xa70] sm:$0xff] }
 0xcf9   :  { %6253 = vmatpush.msrb.mxu2 %v1596_v38  ;;  %v7331_v40 = vld.sshfl [vmem:[#allocation1 + $0x8] sm:$0xff pattern:$0x73625140]  ;;  %6259 = vmatpush.msrb.mxu3 %v1836_v24  ;;  %v1932_v58 = vld [vmem:[%s10902_s9 + $0xef0] sm:$0xff] }
 0xcfa   :  { %6195 = vmatmul.f32.vlgmr.msra.gmra.mxu3 %v7331_v40  ;;  %6213 = vmatpush.msrb.mxu0 %v3771_v49  ;;  %v3763_v18 = vld [vmem:[%s10902_s9 + $0x4828] sm:$0xff]  ;;  %v2068_v63 = vld [vmem:[%s10902_s9 + $0x1330] sm:$0xff] }
 0xcfb   :  { %6232 = vmatpush.msrb.mxu1 %v1476_v59  ;;  %6254 = vmatpush.msrb.mxu2 %v1588_v43  ;;  %v2180_v34 = vld [vmem:[%s10902_s9 + $0x16b0] sm:$0xff] }
 0xcfc   :  { %6260 = vmatpush.msrb.mxu3 %v1828_v17  ;;  %6214 = vmatpush.msrb.mxu0 %v3763_v18  ;;  %v1780_v33 = vld [vmem:[%s10902_s9 + $0xa30] sm:$0xff] }
 0xcfd   :  { %6319 = vmatpush.msra.mxu2 %v2220_v62  ;;  %6233 = vmatpush.msrb.mxu1 %v1468_v7  ;;  %v1924_v8 = vld [vmem:[%s10902_s9 + $0xeb0] sm:$0xff] }
 0xcfe   :  { %6261 = vmatpush.msrb.mxu3 %v1820_v6  ;;  %6279 = vmatpush.msra.mxu0 %v1964_v50  ;;  %v2060_v42 = vld [vmem:[%s10902_s9 + $0x12f0] sm:$0xff] }
 0xcff   :  { %6320 = vmatpush.msra.mxu2 %v2212_v37  ;;  %6234 = vmatpush.msrb.mxu1 %v1460_v1  ;;  %v2172_v41 = vld [vmem:[%s10902_s9 + $0x1670] sm:$0xff] }
 0xd00   :  { %6262 = vmatpush.msrb.mxu3 %v1812_v47  ;;  %6280 = vmatpush.msra.mxu0 %v1956_v45  ;;  %v1772_v21 = vld [vmem:[%s10902_s9 + $0x9f0] sm:$0xff] }
 0xd01   :  { %6299 = vmatpush.msra.mxu1 %v2092_v27  ;;  %6321 = vmatpush.msra.mxu2 %v2204_v15  ;;  %v1916_v35 = vld [vmem:[%s10902_s9 + $0xe70] sm:$0xff] }
 0xd02   :  { %7180 = vmatmul.msk.f32.vlgmr.msrb.gmra.mxu0 %vm3936_vm9, %v7332_v51  ;;  %6263 = vmatpush.msrb.mxu3 %v1804_v44  ;;  %v2052_v4 = vld [vmem:[%s10902_s9 + $0x12b0] sm:$0xff] }
 0xd03   :  { %6281 = vmatpush.msra.mxu0 %v1948_v57  ;;  %6300 = vmatpush.msra.mxu1 %v2084_v9  ;;  %v2164_v0 = vld [vmem:[%s10902_s9 + $0x1630] sm:$0xff]  ;;  %v5956_v9 = vpop.f32.mrf.mxu3 }
 0xd04   :  { %6322 = vmatpush.msra.mxu2 %v2196_v53  ;;  %6264 = vmatpush.msrb.mxu3 %v1796_v11  ;;  %v1764_v26 = vld [vmem:[%s10902_s9 + $0x9b0] sm:$0xff]  ;;  %v5957_v11 = vadd.f32 %v5956_v9, %v10223_v31 }
 0xd05   :  { %6282 = vmatpush.msra.mxu0 %v1940_v16  ;;  %6301 = vmatpush.msra.mxu1 %v2076_v32  ;;  %v1908_v54 = vld [vmem:[%s10902_s9 + $0xe30] sm:$0xff] }
 0xd06   :  { %6323 = vmatpush.msra.mxu2 %v2188_v23  ;;  %6265 = vmatpush.msrb.mxu3 %v1788_v55  ;;  %v2044_v38 = vld [vmem:[%s10902_s9 + $0x1270] sm:$0xff]  ;;  %v5976_v55 = vpop.f32.mrf.mxu0 }
 0xd07   :  { %6283 = vmatpush.msra.mxu0 %v1932_v58  ;;  %6302 = vmatpush.msra.mxu1 %v2068_v63  ;;  %v2156_v3 = vld [vmem:[%s10902_s9 + $0x15f0] sm:$0xff]  ;;  %v5977_v58 = vadd.f32 %v5976_v55, %v5957_v11 }
 0xd08   :  { %6324 = vmatpush.msra.mxu2 %v2180_v34  ;;  %6266 = vmatpush.msrb.mxu3 %v1780_v33  ;;  %v1756_v24 = vld [vmem:[%s10902_s9 + $0x970] sm:$0xff]  ;;  %v5996_v34 = vpop.f32.mrf.mxu1 }
 0xd09   :  { %6284 = vmatpush.msra.mxu0 %v1924_v8  ;;  %6303 = vmatpush.msra.mxu1 %v2060_v42  ;;  %v1900_v49 = vld [vmem:[%s10902_s9 + $0xdf0] sm:$0xff]  ;;  %v5997_v8 = vadd.f32 %v5996_v34, %v5977_v58  ;;  %v6016_v42 = vpop.f32.mrf.mxu2 }
 0xd0a   :  { %6325 = vmatpush.msra.mxu2 %v2172_v41  ;;  %6267 = vmatpush.msrb.mxu3 %v1772_v21  ;;  %v2036_v59 = vld [vmem:[%s10902_s9 + $0x1230] sm:$0xff] }
 0xd0b   :  { %6285 = vmatpush.msra.mxu0 %v1916_v35  ;;  %6304 = vmatpush.msra.mxu1 %v2052_v4  ;;  %v2148_v43 = vld [vmem:[%s10902_s9 + $0x15b0] sm:$0xff]  ;;  %v10277_v4 = vadd.f32 %v6016_v42, %v5997_v8 }
 0xd0c   :  { %6326 = vmatpush.msra.mxu2 %v2164_v0  ;;  %6268 = vmatpush.msrb.mxu3 %v1764_v26  ;;  %v1748_v40 = vld [vmem:[%s10902_s9 + $0x930] sm:$0xff] }
 0xd0d   :  { %6286 = vmatpush.msra.mxu0 %v1908_v54  ;;  %6305 = vmatpush.msra.mxu1 %v2044_v38  ;;  %v1892_v17 = vld [vmem:[%s10902_s9 + $0xdb0] sm:$0xff] }
 0xd0e   :  { %6327 = vmatpush.msra.mxu2 %v2156_v3  ;;  %6269 = vmatpush.msrb.mxu3 %v1756_v24  ;;  %v2028_v62 = vld [vmem:[%s10902_s9 + $0x11f0] sm:$0xff] }
 0xd0f   :  { %6287 = vmatpush.msra.mxu0 %v1900_v49  ;;  %6306 = vmatpush.msra.mxu1 %v2036_v59  ;;  %v2140_v25 = vld [vmem:[%s10902_s9 + $0x1570] sm:$0xff] }
 0xd10   :  { %v1740_v18 = vld [vmem:[%s10902_s9 + $0x8f0] sm:$0xff]  ;;  %6328 = vmatpush.msra.mxu2 %v2148_v43  ;;  %6270 = vmatpush.msrb.mxu3 %v1748_v40 }
 0xd11   :  { %v1884_v7 = vld [vmem:[%s10902_s9 + $0xd70] sm:$0xff]  ;;  %6288 = vmatpush.msra.mxu0 %v1892_v17  ;;  %6307 = vmatpush.msra.mxu1 %v2028_v62 }
 0xd12   :  { %v2020_v6 = vld [vmem:[%s10902_s9 + $0x11b0] sm:$0xff]  ;;  %6329 = vmatpush.msra.mxu2 %v2140_v25  ;;  %6271 = vmatpush.msrb.mxu3 %v1740_v18 }
 0xd13   :  { %v2132_v50 = vld [vmem:[%s10902_s9 + $0x1530] sm:$0xff]  ;;  %6289 = vmatpush.msra.mxu0 %v1884_v7  ;;  %6308 = vmatpush.msra.mxu1 %v2020_v6 }
 0xd14   :  { %v1732_v37 = vld [vmem:[%s10902_s9 + $0x8b0] sm:$0xff]  ;;  %6330 = vmatpush.msra.mxu2 %v2132_v50  ;;  %6235 = vmatmul.f32.vlgmr.msrb.gmra.mxu1 %v10951_v56 }
 0xd15   :  { %v1876_v1 = vld [vmem:[%s10902_s9 + $0xd30] sm:$0xff]  ;;  %6272 = vmatpush.msrb.mxu3 %v1732_v37  ;;  %6255 = vmatmul.f32.vlgmr.msrb.gmra.mxu2 %v10952_v5 }
 0xd16   :  { %v2012_v48 = vld [vmem:[%s10902_s9 + $0x1170] sm:$0xff]  ;;  %6290 = vmatpush.msra.mxu0 %v1876_v1 }
 0xd17   :  { %v2124_v47 = vld [vmem:[%s10902_s9 + $0x14f0] sm:$0xff]  ;;  %6309 = vmatpush.msra.mxu1 %v2012_v48 }
 0xd18   :  { %v1724_v45 = vld [vmem:[%s10902_s9 + $0x870] sm:$0xff]  ;;  %6331 = vmatpush.msra.mxu2 %v2124_v47 }
 0xd19   :  { %v1868_v36 = vld [vmem:[%s10902_s9 + $0xcf0] sm:$0xff]  ;;  %6273 = vmatpush.msrb.mxu3 %v1724_v45 }
 0xd1a   :  { %v2004_v27 = vld [vmem:[%s10902_s9 + $0x1130] sm:$0xff]  ;;  %6291 = vmatpush.msra.mxu0 %v1868_v36 }
 0xd1b   :  { %v2116_v15 = vld [vmem:[%s10902_s9 + $0x14b0] sm:$0xff]  ;;  %6310 = vmatpush.msra.mxu1 %v2004_v27 }
 0xd1c   :  { %v1716_v44 = vld [vmem:[%s10902_s9 + $0x830] sm:$0xff]  ;;  %6332 = vmatpush.msra.mxu2 %v2116_v15 }
 0xd1d   :  { %v1860_v46 = vld [vmem:[%s10902_s9 + $0xcb0] sm:$0xff]  ;;  %6274 = vmatpush.msrb.mxu3 %v1716_v44 }
 0xd1e   :  { %v1996_v57 = vld [vmem:[%s10902_s9 + $0x10f0] sm:$0xff]  ;;  %6292 = vmatpush.msra.mxu0 %v1860_v46  ;;  %6275 = vmatmul.f32.vlgmr.msrb.gmra.mxu3 %v10954_v2 }
 0xd1f   :  { %v2108_v13 = vld [vmem:[%s10902_s9 + $0x1470] sm:$0xff]  ;;  %6311 = vmatpush.msra.mxu1 %v1996_v57 }
 0xd20   :  { %v2348_v53 = vld [vmem:[%s10902_s9 + $0x1bf0] sm:$0xff]  ;;  %6333 = vmatpush.msra.mxu2 %v2108_v13 }
 0xd21   :  { %v1852_v51 = vld [vmem:[%s10902_s9 + $0xc70] sm:$0xff]  ;;  %6339 = vmatpush.msra.mxu3 %v2348_v53 }
 0xd22   :  { %v1988_v16 = vld [vmem:[%s10902_s9 + $0x10b0] sm:$0xff]  ;;  %6293 = vmatpush.msra.mxu0 %v1852_v51 }
 0xd23   :  { %v2100_v32 = vld [vmem:[%s10902_s9 + $0x1430] sm:$0xff]  ;;  %6312 = vmatpush.msra.mxu1 %v1988_v16 }
 0xd24   :  { %v2340_v10 = vld [vmem:[%s10902_s9 + $0x1bb0] sm:$0xff]  ;;  %6334 = vmatpush.msra.mxu2 %v2100_v32 }
 0xd25   :  { %v1844_v23 = vld [vmem:[%s10902_s9 + $0xc30] sm:$0xff]  ;;  %6340 = vmatpush.msra.mxu3 %v2340_v10  ;;  %6335 = vmatmul.f32.vlgmr.msra.gmra.mxu2 %v10956_v30 }
 0xd26   :  { %v2732_v60 = vld [vmem:[%s10902_s9 + $0x27f0] sm:$0xff]  ;;  %6294 = vmatpush.msra.mxu0 %v1844_v23 }
 0xd27   :  { %v1980_v52 = vld [vmem:[%s10902_s9 + $0x1070] sm:$0xff]  ;;  %6399 = vmatpush.msrb.mxu2 %v2732_v60  ;;  %6295 = vmatmul.f32.vlgmr.msra.gmra.mxu0 %v10955_v29 }
 0xd28   :  { %v2476_v63 = vld [vmem:[%s10902_s9 + $0x1ff0] sm:$0xff]  ;;  %6313 = vmatpush.msra.mxu1 %v1980_v52 }
 0xd29   :  { %v2332_v33 = vld [vmem:[%s10902_s9 + $0x1b70] sm:$0xff]  ;;  %6359 = vmatpush.msrb.mxu0 %v2476_v63 }
 0xd2a   :  { %v2724_v31 = vld [vmem:[%s10902_s9 + $0x27b0] sm:$0xff]  ;;  %6341 = vmatpush.msra.mxu3 %v2332_v33 }
 0xd2b   :  { %v1972_v41 = vld [vmem:[%s10902_s9 + $0x1030] sm:$0xff]  ;;  %6400 = vmatpush.msrb.mxu2 %v2724_v31 }
 0xd2c   :  { %v2468_v21 = vld [vmem:[%s10902_s9 + $0x1fb0] sm:$0xff]  ;;  %6314 = vmatpush.msra.mxu1 %v1972_v41  ;;  %v6036_v41 = vpop.f32.mrf.mxu3 }
 0xd2d   :  { %v2324_v35 = vld [vmem:[%s10902_s9 + $0x1b30] sm:$0xff]  ;;  %6360 = vmatpush.msrb.mxu0 %v2468_v21  ;;  %6315 = vmatmul.f32.vlgmr.msra.gmra.mxu1 %v10953_v19 }
 0xd2e   :  { %v2604_v0 = vld [vmem:[%s10902_s9 + $0x23f0] sm:$0xff]  ;;  %6342 = vmatpush.msra.mxu3 %v2324_v35 }
 0xd2f   :  { %v2716_v26 = vld [vmem:[%s10902_s9 + $0x2770] sm:$0xff]  ;;  %6379 = vmatpush.msrb.mxu1 %v2604_v0  ;;  %v6037_v0 = vadd.f32 %v6036_v41, %v10277_v4 }
 0xd30   :  { %v2316_v54 = vld [vmem:[%s10902_s9 + $0x1af0] sm:$0xff]  ;;  %6401 = vmatpush.msrb.mxu2 %v2716_v26 }
 0xd31   :  { %v2460_v38 = vld [vmem:[%s10902_s9 + $0x1f70] sm:$0xff]  ;;  %6343 = vmatpush.msra.mxu3 %v2316_v54 }
 0xd32   :  { %v2596_v3 = vld [vmem:[%s10902_s9 + $0x23b0] sm:$0xff]  ;;  %6361 = vmatpush.msrb.mxu0 %v2460_v38 }
 0xd33   :  { %v2708_v24 = vld [vmem:[%s10902_s9 + $0x2730] sm:$0xff]  ;;  %6380 = vmatpush.msrb.mxu1 %v2596_v3 }
 0xd34   :  { %v2308_v49 = vld [vmem:[%s10902_s9 + $0x1ab0] sm:$0xff]  ;;  %6402 = vmatpush.msrb.mxu2 %v2708_v24 }
 0xd35   :  { %v2452_v59 = vld [vmem:[%s10902_s9 + $0x1f30] sm:$0xff]  ;;  %6344 = vmatpush.msra.mxu3 %v2308_v49  ;;  %v6056_v49 = vpop.f32.mrf.mxu0 }
 0xd36   :  { %v2588_v43 = vld [vmem:[%s10902_s9 + $0x2370] sm:$0xff]  ;;  %6362 = vmatpush.msrb.mxu0 %v2452_v59 }
 0xd37   :  { %v2700_v40 = vld [vmem:[%s10902_s9 + $0x26f0] sm:$0xff]  ;;  %6381 = vmatpush.msrb.mxu1 %v2588_v43  ;;  %v6057_v43 = vadd.f32 %v6056_v49, %v6037_v0 }
 0xd38   :  { %v2300_v17 = vld [vmem:[%s10902_s9 + $0x1a70] sm:$0xff]  ;;  %6403 = vmatpush.msrb.mxu2 %v2700_v40 }
 0xd39   :  { %v2444_v62 = vld [vmem:[%s10902_s9 + $0x1ef0] sm:$0xff]  ;;  %6345 = vmatpush.msra.mxu3 %v2300_v17 }
 0xd3a   :  { %v2580_v25 = vld [vmem:[%s10902_s9 + $0x2330] sm:$0xff]  ;;  %6363 = vmatpush.msrb.mxu0 %v2444_v62  ;;  %v6076_v62 = vpop.f32.mrf.mxu1 }
 0xd3b   :  { %v2692_v18 = vld [vmem:[%s10902_s9 + $0x26b0] sm:$0xff]  ;;  %6382 = vmatpush.msrb.mxu1 %v2580_v25 }
 0xd3c   :  { %v2292_v7 = vld [vmem:[%s10902_s9 + $0x1a30] sm:$0xff]  ;;  %6404 = vmatpush.msrb.mxu2 %v2692_v18 }
 0xd3d   :  { %v2436_v6 = vld [vmem:[%s10902_s9 + $0x1eb0] sm:$0xff]  ;;  %6346 = vmatpush.msra.mxu3 %v2292_v7  ;;  %v6077_v7 = vadd.f32 %v6076_v62, %v6057_v43 }
 0xd3e   :  { %v2572_v50 = vld [vmem:[%s10902_s9 + $0x22f0] sm:$0xff]  ;;  %6364 = vmatpush.msrb.mxu0 %v2436_v6  ;;  %v6096_v6 = vpop.f32.mrf.mxu2 }
 0xd3f   :  { %v2684_v37 = vld [vmem:[%s10902_s9 + $0x2670] sm:$0xff]  ;;  %6383 = vmatpush.msrb.mxu1 %v2572_v50 }
 0xd40   :  { %v2284_v1 = vld [vmem:[%s10902_s9 + $0x19f0] sm:$0xff]  ;;  %6405 = vmatpush.msrb.mxu2 %v2684_v37 }
 0xd41   :  { %v2428_v48 = vld [vmem:[%s10902_s9 + $0x1e70] sm:$0xff]  ;;  %6347 = vmatpush.msra.mxu3 %v2284_v1 }
 0xd42   :  { %v2564_v47 = vld [vmem:[%s10902_s9 + $0x22b0] sm:$0xff]  ;;  %6365 = vmatpush.msrb.mxu0 %v2428_v48  ;;  %v10348_v48 = vadd.f32 %v6096_v6, %v6077_v7 }
 0xd43   :  { %v2676_v45 = vld [vmem:[%s10902_s9 + $0x2630] sm:$0xff]  ;;  %6384 = vmatpush.msrb.mxu1 %v2564_v47 }
 0xd44   :  { %v2276_v36 = vld [vmem:[%s10902_s9 + $0x19b0] sm:$0xff]  ;;  %6406 = vmatpush.msrb.mxu2 %v2676_v45 }
 0xd45   :  { %v2420_v27 = vld [vmem:[%s10902_s9 + $0x1e30] sm:$0xff]  ;;  %6348 = vmatpush.msra.mxu3 %v2276_v36 }
 0xd46   :  { %v2556_v15 = vld [vmem:[%s10902_s9 + $0x2270] sm:$0xff]  ;;  %6366 = vmatpush.msrb.mxu0 %v2420_v27 }
 0xd47   :  { %v2668_v44 = vld [vmem:[%s10902_s9 + $0x25f0] sm:$0xff]  ;;  %6385 = vmatpush.msrb.mxu1 %v2556_v15 }
 0xd48   :  { %v2268_v46 = vld [vmem:[%s10902_s9 + $0x1970] sm:$0xff]  ;;  %6407 = vmatpush.msrb.mxu2 %v2668_v44 }
 0xd49   :  { %v2412_v57 = vld [vmem:[%s10902_s9 + $0x1df0] sm:$0xff]  ;;  %6349 = vmatpush.msra.mxu3 %v2268_v46 }
 0xd4a   :  { %v2548_v9 = vld [vmem:[%s10902_s9 + $0x2230] sm:$0xff]  ;;  %6367 = vmatpush.msrb.mxu0 %v2412_v57 }
 0xd4b   :  { %v2660_v13 = vld [vmem:[%s10902_s9 + $0x25b0] sm:$0xff]  ;;  %6386 = vmatpush.msrb.mxu1 %v2548_v9 }
 0xd4c   :  { %v2260_v53 = vld [vmem:[%s10902_s9 + $0x1930] sm:$0xff]  ;;  %6408 = vmatpush.msrb.mxu2 %v2660_v13 }
 0xd4d   :  { %v2404_v11 = vld [vmem:[%s10902_s9 + $0x1db0] sm:$0xff]  ;;  %6350 = vmatpush.msra.mxu3 %v2260_v53 }
 0xd4e   :  { %v2540_v51 = vld [vmem:[%s10902_s9 + $0x21f0] sm:$0xff]  ;;  %6368 = vmatpush.msrb.mxu0 %v2404_v11 }
 0xd4f   :  { %v2652_v16 = vld [vmem:[%s10902_s9 + $0x2570] sm:$0xff]  ;;  %6387 = vmatpush.msrb.mxu1 %v2540_v51 }
 0xd50   :  { %v2252_v32 = vld [vmem:[%s10902_s9 + $0x18f0] sm:$0xff]  ;;  %6409 = vmatpush.msrb.mxu2 %v2652_v16 }
 0xd51   :  { %v2396_v10 = vld [vmem:[%s10902_s9 + $0x1d70] sm:$0xff]  ;;  %6351 = vmatpush.msra.mxu3 %v2252_v32 }
 0xd52   :  { %v2532_v23 = vld [vmem:[%s10902_s9 + $0x21b0] sm:$0xff]  ;;  %6369 = vmatpush.msrb.mxu0 %v2396_v10 }
 0xd53   :  { %v2644_v55 = vld [vmem:[%s10902_s9 + $0x2530] sm:$0xff]  ;;  %6388 = vmatpush.msrb.mxu1 %v2532_v23 }
 0xd54   :  { %v2244_v60 = vld [vmem:[%s10902_s9 + $0x18b0] sm:$0xff]  ;;  %6410 = vmatpush.msrb.mxu2 %v2644_v55 }
 0xd55   :  { %v2388_v52 = vld [vmem:[%s10902_s9 + $0x1d30] sm:$0xff]  ;;  %6352 = vmatpush.msra.mxu3 %v2244_v60 }
 0xd56   :  { %v2524_v58 = vld [vmem:[%s10902_s9 + $0x2170] sm:$0xff]  ;;  %6370 = vmatpush.msrb.mxu0 %v2388_v52 }
 0xd57   :  { %v2636_v63 = vld [vmem:[%s10902_s9 + $0x24f0] sm:$0xff]  ;;  %6389 = vmatpush.msrb.mxu1 %v2524_v58 }
 0xd58   :  { %v2236_v34 = vld [vmem:[%s10902_s9 + $0x1870] sm:$0xff]  ;;  %6411 = vmatpush.msrb.mxu2 %v2636_v63 }
 0xd59   :  { %v2380_v33 = vld [vmem:[%s10902_s9 + $0x1cf0] sm:$0xff]  ;;  %6353 = vmatpush.msra.mxu3 %v2236_v34 }
 0xd5a   :  { %v2516_v31 = vld [vmem:[%s10902_s9 + $0x2130] sm:$0xff]  ;;  %6371 = vmatpush.msrb.mxu0 %v2380_v33 }
 0xd5b   :  { %v2628_v8 = vld [vmem:[%s10902_s9 + $0x24b0] sm:$0xff]  ;;  %6390 = vmatpush.msrb.mxu1 %v2516_v31 }
 0xd5c   :  { %v2228_v42 = vld [vmem:[%s10902_s9 + $0x1830] sm:$0xff]  ;;  %6412 = vmatpush.msrb.mxu2 %v2628_v8 }
 0xd5d   :  { %v2372_v21 = vld [vmem:[%s10902_s9 + $0x1cb0] sm:$0xff]  ;;  %6354 = vmatpush.msra.mxu3 %v2228_v42 }
 0xd5e   :  { %v2508_v35 = vld [vmem:[%s10902_s9 + $0x20f0] sm:$0xff]  ;;  %6372 = vmatpush.msrb.mxu0 %v2372_v21  ;;  %6355 = vmatmul.f32.vlgmr.msra.gmra.mxu3 %v10957_v12 }
 0xd5f   :  { %v2620_v26 = vld [vmem:[%s10902_s9 + $0x2470] sm:$0xff]  ;;  %6391 = vmatpush.msrb.mxu1 %v2508_v35 }
 0xd60   :  { %v2860_v54 = vld [vmem:[%s10902_s9 + $0x2bf0] sm:$0xff]  ;;  %6413 = vmatpush.msrb.mxu2 %v2620_v26 }
 0xd61   :  { %v2364_v38 = vld [vmem:[%s10902_s9 + $0x1c70] sm:$0xff]  ;;  %6419 = vmatpush.msrb.mxu3 %v2860_v54 }
 0xd62   :  { %v2500_v3 = vld [vmem:[%s10902_s9 + $0x20b0] sm:$0xff]  ;;  %6373 = vmatpush.msrb.mxu0 %v2364_v38 }
 0xd63   :  { %v2612_v24 = vld [vmem:[%s10902_s9 + $0x2430] sm:$0xff]  ;;  %6392 = vmatpush.msrb.mxu1 %v2500_v3 }
 0xd64   :  { %v2852_v4 = vld [vmem:[%s10902_s9 + $0x2bb0] sm:$0xff]  ;;  %6414 = vmatpush.msrb.mxu2 %v2612_v24 }
 0xd65   :  { %v3244_v59 = vld [vmem:[%s10902_s9 + $0x37f0] sm:$0xff]  ;;  %6420 = vmatpush.msrb.mxu3 %v2852_v4  ;;  %6415 = vmatmul.f32.vlgmr.msrb.gmra.mxu2 %v8253_v20 }
 0xd66   :  { %v2356_v40 = vld [vmem:[%s10902_s9 + $0x1c30] sm:$0xff]  ;;  %6479 = vmatpush.msra.mxu2 %v3244_v59 }
 0xd67   :  { %v2492_v17 = vld [vmem:[%s10902_s9 + $0x2070] sm:$0xff]  ;;  %6374 = vmatpush.msrb.mxu0 %v2356_v40 }
 0xd68   :  { %v2844_v25 = vld [vmem:[%s10902_s9 + $0x2b70] sm:$0xff]  ;;  %6393 = vmatpush.msrb.mxu1 %v2492_v17  ;;  %6375 = vmatmul.f32.vlgmr.msrb.gmra.mxu0 %v10958_v39 }
 0xd69   :  { %v2988_v18 = vld [vmem:[%s10902_s9 + $0x2ff0] sm:$0xff]  ;;  %6421 = vmatpush.msrb.mxu3 %v2844_v25 }
 0xd6a   :  { %v3236_v50 = vld [vmem:[%s10902_s9 + $0x37b0] sm:$0xff]  ;;  %6439 = vmatpush.msra.mxu0 %v2988_v18 }
 0xd6b   :  { %v2484_v37 = vld [vmem:[%s10902_s9 + $0x2030] sm:$0xff]  ;;  %6480 = vmatpush.msra.mxu2 %v3236_v50 }
 0xd6c   :  { %v2836_v1 = vld [vmem:[%s10902_s9 + $0x2b30] sm:$0xff]  ;;  %6394 = vmatpush.msrb.mxu1 %v2484_v37  ;;  %v6116_v37 = vpop.f32.mrf.mxu3 }
 0xd6d   :  { %v2980_v47 = vld [vmem:[%s10902_s9 + $0x2fb0] sm:$0xff]  ;;  %6422 = vmatpush.msrb.mxu3 %v2836_v1  ;;  %6395 = vmatmul.f32.vlgmr.msrb.gmra.mxu1 %v8248_v14 }
 0xd6e   :  { %v3116_v45 = vld [vmem:[%s10902_s9 + $0x33f0] sm:$0xff]  ;;  %6440 = vmatpush.msra.mxu0 %v2980_v47 }
 0xd6f   :  { %v3228_v36 = vld [vmem:[%s10902_s9 + $0x3770] sm:$0xff]  ;;  %6459 = vmatpush.msra.mxu1 %v3116_v45  ;;  %v6117_v45 = vadd.f32 %v6116_v37, %v10348_v48 }
 0xd70   :  { %v2828_v27 = vld [vmem:[%s10902_s9 + $0x2af0] sm:$0xff]  ;;  %6481 = vmatpush.msra.mxu2 %v3228_v36 }
 0xd71   :  { %v2972_v15 = vld [vmem:[%s10902_s9 + $0x2f70] sm:$0xff]  ;;  %6423 = vmatpush.msrb.mxu3 %v2828_v27 }
 0xd72   :  { %v3108_v44 = vld [vmem:[%s10902_s9 + $0x33b0] sm:$0xff]  ;;  %6441 = vmatpush.msra.mxu0 %v2972_v15 }
 0xd73   :  { %v3220_v46 = vld [vmem:[%s10902_s9 + $0x3730] sm:$0xff]  ;;  %6460 = vmatpush.msra.mxu1 %v3108_v44 }
 0xd74   :  { %v2820_v57 = vld [vmem:[%s10902_s9 + $0x2ab0] sm:$0xff]  ;;  %6482 = vmatpush.msra.mxu2 %v3220_v46 }
 0xd75   :  { %v2964_v9 = vld [vmem:[%s10902_s9 + $0x2f30] sm:$0xff]  ;;  %6424 = vmatpush.msrb.mxu3 %v2820_v57  ;;  %v6136_v57 = vpop.f32.mrf.mxu0 }
 0xd76   :  { %v3100_v13 = vld [vmem:[%s10902_s9 + $0x3370] sm:$0xff]  ;;  %6442 = vmatpush.msra.mxu0 %v2964_v9 }
 0xd77   :  { %v3212_v53 = vld [vmem:[%s10902_s9 + $0x36f0] sm:$0xff]  ;;  %6461 = vmatpush.msra.mxu1 %v3100_v13  ;;  %v6137_v13 = vadd.f32 %v6136_v57, %v6117_v45 }
 0xd78   :  { %v2812_v11 = vld [vmem:[%s10902_s9 + $0x2a70] sm:$0xff]  ;;  %6483 = vmatpush.msra.mxu2 %v3212_v53 }
 0xd79   :  { %v2956_v51 = vld [vmem:[%s10902_s9 + $0x2ef0] sm:$0xff]  ;;  %6425 = vmatpush.msrb.mxu3 %v2812_v11 }
 0xd7a   :  { %v3092_v16 = vld [vmem:[%s10902_s9 + $0x3330] sm:$0xff]  ;;  %6443 = vmatpush.msra.mxu0 %v2956_v51  ;;  %v6156_v51 = vpop.f32.mrf.mxu1 }
 0xd7b   :  { %v3204_v32 = vld [vmem:[%s10902_s9 + $0x36b0] sm:$0xff]  ;;  %6462 = vmatpush.msra.mxu1 %v3092_v16 }
 0xd7c   :  { %v2804_v10 = vld [vmem:[%s10902_s9 + $0x2a30] sm:$0xff]  ;;  %6484 = vmatpush.msra.mxu2 %v3204_v32 }
 0xd7d   :  { %v2948_v23 = vld [vmem:[%s10902_s9 + $0x2eb0] sm:$0xff]  ;;  %6426 = vmatpush.msrb.mxu3 %v2804_v10  ;;  %v6157_v10 = vadd.f32 %v6156_v51, %v6137_v13 }
 0xd7e   :  { %v3084_v55 = vld [vmem:[%s10902_s9 + $0x32f0] sm:$0xff]  ;;  %6444 = vmatpush.msra.mxu0 %v2948_v23  ;;  %v6176_v23 = vpop.f32.mrf.mxu2 }
 0xd7f   :  { %v3196_v60 = vld [vmem:[%s10902_s9 + $0x3670] sm:$0xff]  ;;  %6463 = vmatpush.msra.mxu1 %v3084_v55 }
 0xd80   :  { %v2796_v52 = vld [vmem:[%s10902_s9 + $0x29f0] sm:$0xff]  ;;  %6485 = vmatpush.msra.mxu2 %v3196_v60 }
 0xd81   :  { %v2940_v58 = vld [vmem:[%s10902_s9 + $0x2e70] sm:$0xff]  ;;  %6427 = vmatpush.msrb.mxu3 %v2796_v52 }
 0xd82   :  { %v3076_v63 = vld [vmem:[%s10902_s9 + $0x32b0] sm:$0xff]  ;;  %6445 = vmatpush.msra.mxu0 %v2940_v58  ;;  %v10419_v58 = vadd.f32 %v6176_v23, %v6157_v10 }
 0xd83   :  { %v3188_v34 = vld [vmem:[%s10902_s9 + $0x3630] sm:$0xff]  ;;  %6464 = vmatpush.msra.mxu1 %v3076_v63 }
 0xd84   :  { %v2788_v33 = vld [vmem:[%s10902_s9 + $0x29b0] sm:$0xff]  ;;  %6486 = vmatpush.msra.mxu2 %v3188_v34 }
 0xd85   :  { %v2932_v31 = vld [vmem:[%s10902_s9 + $0x2e30] sm:$0xff]  ;;  %6428 = vmatpush.msrb.mxu3 %v2788_v33 }
 0xd86   :  { %v3068_v8 = vld [vmem:[%s10902_s9 + $0x3270] sm:$0xff]  ;;  %6446 = vmatpush.msra.mxu0 %v2932_v31  ;;  %v7333_v31 = vld.sshfl [vmem:[#allocation1 + $0x28] sm:$0xff pattern:$0x73625140] }
 0xd87   :  { %v3180_v42 = vld [vmem:[%s10902_s9 + $0x35f0] sm:$0xff]  ;;  %6465 = vmatpush.msra.mxu1 %v3068_v8 }
 0xd88   :  { %v2780_v41 = vld [vmem:[%s10902_s9 + $0x2970] sm:$0xff]  ;;  %6487 = vmatpush.msra.mxu2 %v3180_v42 }
 0xd89   :  { %v2924_v21 = vld [vmem:[%s10902_s9 + $0x2df0] sm:$0xff]  ;;  %6429 = vmatpush.msrb.mxu3 %v2780_v41 }
 0xd8a   :  { %v3060_v35 = vld [vmem:[%s10902_s9 + $0x3230] sm:$0xff]  ;;  %6447 = vmatpush.msra.mxu0 %v2924_v21 }
 0xd8b   :  { %v3172_v0 = vld [vmem:[%s10902_s9 + $0x35b0] sm:$0xff]  ;;  %6466 = vmatpush.msra.mxu1 %v3060_v35 }
 0xd8c   :  { %v2772_v26 = vld [vmem:[%s10902_s9 + $0x2930] sm:$0xff]  ;;  %6488 = vmatpush.msra.mxu2 %v3172_v0 }
 0xd8d   :  { %v2916_v54 = vld [vmem:[%s10902_s9 + $0x2db0] sm:$0xff]  ;;  %6430 = vmatpush.msrb.mxu3 %v2772_v26 }
 0xd8e   :  { %v3052_v38 = vld [vmem:[%s10902_s9 + $0x31f0] sm:$0xff]  ;;  %6448 = vmatpush.msra.mxu0 %v2916_v54 }
 0xd8f   :  { %v3164_v3 = vld [vmem:[%s10902_s9 + $0x3570] sm:$0xff]  ;;  %6467 = vmatpush.msra.mxu1 %v3052_v38 }
 0xd90   :  { %v2764_v24 = vld [vmem:[%s10902_s9 + $0x28f0] sm:$0xff]  ;;  %6489 = vmatpush.msra.mxu2 %v3164_v3  ;;  %v7334_v3 = vld.sshfl [vmem:[#allocation1 + $0x20] sm:$0xff pattern:$0x73625140] }
 0xd91   :  { %v2908_v49 = vld [vmem:[%s10902_s9 + $0x2d70] sm:$0xff]  ;;  %6431 = vmatpush.msrb.mxu3 %v2764_v24 }
 0xd92   :  { %v3044_v4 = vld [vmem:[%s10902_s9 + $0x31b0] sm:$0xff]  ;;  %6449 = vmatpush.msra.mxu0 %v2908_v49 }
 0xd93   :  { %v3156_v59 = vld [vmem:[%s10902_s9 + $0x3530] sm:$0xff]  ;;  %6468 = vmatpush.msra.mxu1 %v3044_v4 }
 0xd94   :  { %v2756_v43 = vld [vmem:[%s10902_s9 + $0x28b0] sm:$0xff]  ;;  %6490 = vmatpush.msra.mxu2 %v3156_v59 }
 0xd95   :  { %v2900_v40 = vld [vmem:[%s10902_s9 + $0x2d30] sm:$0xff]  ;;  %6432 = vmatpush.msrb.mxu3 %v2756_v43 }
 0xd96   :  { %v3036_v17 = vld [vmem:[%s10902_s9 + $0x3170] sm:$0xff]  ;;  %6450 = vmatpush.msra.mxu0 %v2900_v40 }
 0xd97   :  { %v3148_v62 = vld [vmem:[%s10902_s9 + $0x34f0] sm:$0xff]  ;;  %6469 = vmatpush.msra.mxu1 %v3036_v17 }
 0xd98   :  { %v2748_v25 = vld [vmem:[%s10902_s9 + $0x2870] sm:$0xff]  ;;  %6491 = vmatpush.msra.mxu2 %v3148_v62 }
 0xd99   :  { %v2892_v18 = vld [vmem:[%s10902_s9 + $0x2cf0] sm:$0xff]  ;;  %6433 = vmatpush.msrb.mxu3 %v2748_v25 }
 0xd9a   :  { %v3028_v7 = vld [vmem:[%s10902_s9 + $0x3130] sm:$0xff]  ;;  %6451 = vmatpush.msra.mxu0 %v2892_v18 }
 0xd9b   :  { %v3140_v6 = vld [vmem:[%s10902_s9 + $0x34b0] sm:$0xff]  ;;  %6470 = vmatpush.msra.mxu1 %v3028_v7 }
 0xd9c   :  { %v2740_v50 = vld [vmem:[%s10902_s9 + $0x2830] sm:$0xff]  ;;  %6492 = vmatpush.msra.mxu2 %v3140_v6 }
 0xd9d   :  { %v2884_v1 = vld [vmem:[%s10902_s9 + $0x2cb0] sm:$0xff]  ;;  %6434 = vmatpush.msrb.mxu3 %v2740_v50 }
 0xd9e   :  { %v3020_v47 = vld [vmem:[%s10902_s9 + $0x30f0] sm:$0xff]  ;;  %6452 = vmatpush.msra.mxu0 %v2884_v1  ;;  %6435 = vmatmul.f32.vlgmr.msrb.gmra.mxu3 %v8259_v28 }
 0xd9f   :  { %v3132_v36 = vld [vmem:[%s10902_s9 + $0x3470] sm:$0xff]  ;;  %6471 = vmatpush.msra.mxu1 %v3020_v47 }
 0xda0   :  { %v3372_v27 = vld [vmem:[%s10902_s9 + $0x3bf0] sm:$0xff]  ;;  %6493 = vmatpush.msra.mxu2 %v3132_v36 }
 0xda1   :  { %v2876_v15 = vld [vmem:[%s10902_s9 + $0x2c70] sm:$0xff]  ;;  %6499 = vmatpush.msra.mxu3 %v3372_v27 }
 0xda2   :  { %v3012_v44 = vld [vmem:[%s10902_s9 + $0x30b0] sm:$0xff]  ;;  %6453 = vmatpush.msra.mxu0 %v2876_v15 }
 0xda3   :  { %v3124_v46 = vld [vmem:[%s10902_s9 + $0x3430] sm:$0xff]  ;;  %6472 = vmatpush.msra.mxu1 %v3012_v44 }
 0xda4   :  { %v3364_v48 = vld [vmem:[%s10902_s9 + $0x3bb0] sm:$0xff]  ;;  %6494 = vmatpush.msra.mxu2 %v3124_v46 }
 0xda5   :  { %v3756_v9 = vld [vmem:[%s10902_s9 + $0x47f0] sm:$0xff]  ;;  %6500 = vmatpush.msra.mxu3 %v3364_v48  ;;  %6495 = vmatmul.f32.vlgmr.msra.gmra.mxu2 %v7333_v31 }
 0xda6   :  { %v2868_v53 = vld [vmem:[%s10902_s9 + $0x2c30] sm:$0xff]  ;;  %6559 = vmatpush.msrb.mxu2 %v3756_v9 }
 0xda7   :  { %v3004_v11 = vld [vmem:[%s10902_s9 + $0x3070] sm:$0xff]  ;;  %6454 = vmatpush.msra.mxu0 %v2868_v53 }
 0xda8   :  { %v3356_v16 = vld [vmem:[%s10902_s9 + $0x3b70] sm:$0xff]  ;;  %6473 = vmatpush.msra.mxu1 %v3004_v11  ;;  %6455 = vmatmul.f32.vlgmr.msra.gmra.mxu0 %v8255_v22 }
 0xda9   :  { %v3500_v32 = vld [vmem:[%s10902_s9 + $0x3ff0] sm:$0xff]  ;;  %6501 = vmatpush.msra.mxu3 %v3356_v16 }
 0xdaa   :  { %v3748_v55 = vld [vmem:[%s10902_s9 + $0x47b0] sm:$0xff]  ;;  %6519 = vmatpush.msrb.mxu0 %v3500_v32 }
 0xdab   :  { %v2996_v60 = vld [vmem:[%s10902_s9 + $0x3030] sm:$0xff]  ;;  %6560 = vmatpush.msrb.mxu2 %v3748_v55 }
 0xdac   :  { %v3348_v52 = vld [vmem:[%s10902_s9 + $0x3b30] sm:$0xff]  ;;  %6474 = vmatpush.msra.mxu1 %v2996_v60 }
 0xdad   :  { %v3492_v63 = vld [vmem:[%s10902_s9 + $0x3fb0] sm:$0xff]  ;;  %6502 = vmatpush.msra.mxu3 %v3348_v52  ;;  %6475 = vmatmul.f32.vlgmr.msra.gmra.mxu1 %v7334_v3 }
 0xdae   :  { %v3628_v34 = vld [vmem:[%s10902_s9 + $0x43f0] sm:$0xff]  ;;  %6520 = vmatpush.msrb.mxu0 %v3492_v63  ;;  %v6196_v63 = vpop.f32.mrf.mxu3 }
 0xdaf   :  { %v3740_v33 = vld [vmem:[%s10902_s9 + $0x4770] sm:$0xff]  ;;  %6539 = vmatpush.msrb.mxu1 %v3628_v34  ;;  %v6197_v31 = vadd.f32 %v6196_v63, %v10419_v58  ;;  %v1525_v63 = vld [vmem:[%s10902_s9 + $0x238] sm:$0xff] }
 0xdb0   :  { %v3340_v8 = vld [vmem:[%s10902_s9 + $0x3af0] sm:$0xff]  ;;  %6561 = vmatpush.msrb.mxu2 %v3740_v33 }
 0xdb1   :  { %v3484_v42 = vld [vmem:[%s10902_s9 + $0x3f70] sm:$0xff]  ;;  %6503 = vmatpush.msra.mxu3 %v3340_v8 }
 0xdb2   :  { %v3620_v41 = vld [vmem:[%s10902_s9 + $0x43b0] sm:$0xff]  ;;  %6521 = vmatpush.msrb.mxu0 %v3484_v42 }
 0xdb3   :  { %v3732_v21 = vld [vmem:[%s10902_s9 + $0x4730] sm:$0xff]  ;;  %6540 = vmatpush.msrb.mxu1 %v3620_v41 }
 0xdb4   :  { %v3332_v35 = vld [vmem:[%s10902_s9 + $0x3ab0] sm:$0xff]  ;;  %6562 = vmatpush.msrb.mxu2 %v3732_v21  ;;  %v6216_v21 = vpop.f32.mrf.mxu0 }
 0xdb5   :  { %v3476_v0 = vld [vmem:[%s10902_s9 + $0x3f30] sm:$0xff]  ;;  %6504 = vmatpush.msra.mxu3 %v3332_v35 }
 0xdb6   :  { %v3612_v26 = vld [vmem:[%s10902_s9 + $0x4370] sm:$0xff]  ;;  %6522 = vmatpush.msrb.mxu0 %v3476_v0 }
 0xdb7   :  { %v3724_v54 = vld [vmem:[%s10902_s9 + $0x46f0] sm:$0xff]  ;;  %6541 = vmatpush.msrb.mxu1 %v3612_v26  ;;  %v6217_v26 = vadd.f32 %v6216_v21, %v6197_v31 }
 0xdb8   :  { %v3324_v38 = vld [vmem:[%s10902_s9 + $0x3a70] sm:$0xff]  ;;  %6563 = vmatpush.msrb.mxu2 %v3724_v54 }
 0xdb9   :  { %v3468_v24 = vld [vmem:[%s10902_s9 + $0x3ef0] sm:$0xff]  ;;  %6505 = vmatpush.msra.mxu3 %v3324_v38  ;;  %v1837_v38 = vld [vmem:[%s10902_s9 + $0xbf8] sm:$0xff] }
 0xdba   :  { %v3604_v49 = vld [vmem:[%s10902_s9 + $0x4330] sm:$0xff]  ;;  %6523 = vmatpush.msrb.mxu0 %v3468_v24 }
 0xdbb   :  { %v3716_v4 = vld [vmem:[%s10902_s9 + $0x46b0] sm:$0xff]  ;;  %6542 = vmatpush.msrb.mxu1 %v3604_v49  ;;  %v6984_v49 = vmax.f32 %v6217_v26, 0.0  ;;  %v1757_v26 = vld [vmem:[%s10902_s9 + $0x978] sm:$0xff] }
 0xdbc   :  { %v3316_v59 = vld [vmem:[%s10902_s9 + $0x3a30] sm:$0xff]  ;;  %6564 = vmatpush.msrb.mxu2 %v3716_v4 }
 0xdbd   :  { %v3460_v43 = vld [vmem:[%s10902_s9 + $0x3eb0] sm:$0xff]  ;;  %6506 = vmatpush.msra.mxu3 %v3316_v59  ;;  %v1581_v59 = vld [vmem:[%s10902_s9 + $0x3f8] sm:$0xff] }
 0xdbe   :  { %v3596_v40 = vld [vmem:[%s10902_s9 + $0x42f0] sm:$0xff]  ;;  %6524 = vmatpush.msrb.mxu0 %v3460_v43  ;;  %v6983_v43 = vmax.f32 %v10134_v61, 0.0  ;;  %v1821_v61 = vld [vmem:[%s10902_s9 + $0xb78] sm:$0xff] }
 0xdbf   :  { %v3708_v17 = vld [vmem:[%s10902_s9 + $0x4670] sm:$0xff]  ;;  %6543 = vmatpush.msrb.mxu1 %v3596_v40  ;;  %v1829_v40 = vld [vmem:[%s10902_s9 + $0xbb8] sm:$0xff] }
 0xdc0   :  { %v3308_v62 = vld [vmem:[%s10902_s9 + $0x39f0] sm:$0xff]  ;;  %6565 = vmatpush.msrb.mxu2 %v3708_v17 }
 0xdc1   :  { %v3452_v25 = vld [vmem:[%s10902_s9 + $0x3e70] sm:$0xff]  ;;  %6507 = vmatpush.msra.mxu3 %v3308_v62  ;;  %v6998_v62 = vrot.slane %v6984_v49, 6  ;;  %v1493_v49 = vld [vmem:[%s10902_s9 + $0x138] sm:$0xff] }
 0xdc2   :  { %v3588_v18 = vld [vmem:[%s10902_s9 + $0x42b0] sm:$0xff]  ;;  %6525 = vmatpush.msrb.mxu0 %v3452_v25 }
 0xdc3   :  { %v3700_v7 = vld [vmem:[%s10902_s9 + $0x4630] sm:$0xff]  ;;  %6544 = vmatpush.msrb.mxu1 %v3588_v18  ;;  %v1573_v18 = vld [vmem:[%s10902_s9 + $0x3b8] sm:$0xff] }
 0xdc4   :  { %v3300_v6 = vld [vmem:[%s10902_s9 + $0x39b0] sm:$0xff]  ;;  %6566 = vmatpush.msrb.mxu2 %v3700_v7  ;;  %v1709_v7 = vld [vmem:[%s10902_s9 + $0x7f8] sm:$0xff] }
 0xdc5   :  { %v3444_v50 = vld [vmem:[%s10902_s9 + $0x3e30] sm:$0xff]  ;;  %6508 = vmatpush.msra.mxu3 %v3300_v6  ;;  %v10491_v6 = vsel %vm7001_vm0, %v6983_v43, %v6998_v62  ;;  %v1965_v43 = vld [vmem:[%s10902_s9 + $0xff8] sm:$0xff] }
 0xdc6   :  { %v3580_v37 = vld [vmem:[%s10902_s9 + $0x4270] sm:$0xff]  ;;  %6526 = vmatpush.msrb.mxu0 %v3444_v50  ;;  %v7336_v50 = vld.sshfl [vmem:[#allocation1 + $0x8] sm:$0xff pattern:$0x73625140]  ;;  %v1733_v62 = vld [vmem:[%s10902_s9 + $0x8b8] sm:$0xff] }
 0xdc7   :  { %v3692_v1 = vld [vmem:[%s10902_s9 + $0x45f0] sm:$0xff]  ;;  %6545 = vmatpush.msrb.mxu1 %v3580_v37 }
 0xdc8   :  { %v3292_v47 = vld [vmem:[%s10902_s9 + $0x3970] sm:$0xff]  ;;  %6567 = vmatpush.msrb.mxu2 %v3692_v1  ;;  %v1565_v1 = vld [vmem:[%s10902_s9 + $0x378] sm:$0xff] }
 0xdc9   :  { %v3436_v45 = vld [vmem:[%s10902_s9 + $0x3df0] sm:$0xff]  ;;  %6509 = vmatpush.msra.mxu3 %v3292_v47  ;;  %v1701_v47 = vld [vmem:[%s10902_s9 + $0x7b8] sm:$0xff] }
 0xdca   :  { %v3572_v36 = vld [vmem:[%s10902_s9 + $0x4230] sm:$0xff]  ;;  %6527 = vmatpush.msrb.mxu0 %v3436_v45  ;;  %v1813_v45 = vld [vmem:[%s10902_s9 + $0xb38] sm:$0xff] }
 0xdcb   :  { %v3684_v27 = vld [vmem:[%s10902_s9 + $0x45b0] sm:$0xff]  ;;  %6546 = vmatpush.msrb.mxu1 %v3572_v36  ;;  %v7337_v36 = vld.sshfl [vmem:[#allocation1 + $0x38] sm:$0xff pattern:$0x73625140] }
 0xdcc   :  { %v3284_v15 = vld [vmem:[%s10902_s9 + $0x3930] sm:$0xff]  ;;  %6568 = vmatpush.msrb.mxu2 %v3684_v27 }
 0xdcd   :  { %v3428_v44 = vld [vmem:[%s10902_s9 + $0x3db0] sm:$0xff]  ;;  %6510 = vmatpush.msra.mxu3 %v3284_v15  ;;  %v1557_v15 = vld [vmem:[%s10902_s9 + $0x338] sm:$0xff] }
 0xdce   :  { %v3564_v46 = vld [vmem:[%s10902_s9 + $0x41f0] sm:$0xff]  ;;  %6528 = vmatpush.msrb.mxu0 %v3428_v44  ;;  %v1693_v44 = vld [vmem:[%s10902_s9 + $0x778] sm:$0xff] }
 0xdcf   :  { %v3676_v57 = vld [vmem:[%s10902_s9 + $0x4570] sm:$0xff]  ;;  %6547 = vmatpush.msrb.mxu1 %v3564_v46  ;;  %v1805_v46 = vld [vmem:[%s10902_s9 + $0xaf8] sm:$0xff] }
 0xdd0   :  { %v3276_v48 = vld [vmem:[%s10902_s9 + $0x38f0] sm:$0xff]  ;;  %6569 = vmatpush.msrb.mxu2 %v3676_v57 }
 0xdd1   :  { %v3420_v9 = vld [vmem:[%s10902_s9 + $0x3d70] sm:$0xff]  ;;  %6511 = vmatpush.msra.mxu3 %v3276_v48  ;;  %v7338_v48 = vld.sshfl [vmem:[#allocation1] sm:$0xff pattern:$0x73625140] }
 0xdd2   :  { %v3556_v13 = vld [vmem:[%s10902_s9 + $0x41b0] sm:$0xff]  ;;  %6529 = vmatpush.msrb.mxu0 %v3420_v9  ;;  %v1549_v9 = vld [vmem:[%s10902_s9 + $0x2f8] sm:$0xff] }
 0xdd3   :  { %v3668_v53 = vld [vmem:[%s10902_s9 + $0x4530] sm:$0xff]  ;;  %6548 = vmatpush.msrb.mxu1 %v3556_v13  ;;  %v1685_v13 = vld [vmem:[%s10902_s9 + $0x738] sm:$0xff] }
 0xdd4   :  { %v3268_v11 = vld [vmem:[%s10902_s9 + $0x38b0] sm:$0xff]  ;;  %6570 = vmatpush.msrb.mxu2 %v3668_v53  ;;  %v1797_v53 = vld [vmem:[%s10902_s9 + $0xab8] sm:$0xff] }
 0xdd5   :  { %v3412_v51 = vld [vmem:[%s10902_s9 + $0x3d30] sm:$0xff]  ;;  %6512 = vmatpush.msra.mxu3 %v3268_v11 }
 0xdd6   :  { %v3548_v16 = vld [vmem:[%s10902_s9 + $0x4170] sm:$0xff]  ;;  %6530 = vmatpush.msrb.mxu0 %v3412_v51  ;;  %v1541_v51 = vld [vmem:[%s10902_s9 + $0x2b8] sm:$0xff] }
 0xdd7   :  { %v3660_v32 = vld [vmem:[%s10902_s9 + $0x44f0] sm:$0xff]  ;;  %6549 = vmatpush.msrb.mxu1 %v3548_v16  ;;  %v1677_v16 = vld [vmem:[%s10902_s9 + $0x6f8] sm:$0xff] }
 0xdd8   :  { %v3260_v10 = vld [vmem:[%s10902_s9 + $0x3870] sm:$0xff]  ;;  %6571 = vmatpush.msrb.mxu2 %v3660_v32  ;;  %v1789_v32 = vld [vmem:[%s10902_s9 + $0xa78] sm:$0xff] }
 0xdd9   :  { %v3404_v23 = vld [vmem:[%s10902_s9 + $0x3cf0] sm:$0xff]  ;;  %6513 = vmatpush.msra.mxu3 %v3260_v10 }
 0xdda   :  { %v3540_v55 = vld [vmem:[%s10902_s9 + $0x4130] sm:$0xff]  ;;  %6531 = vmatpush.msrb.mxu0 %v3404_v23  ;;  %v1533_v23 = vld [vmem:[%s10902_s9 + $0x278] sm:$0xff] }
 0xddb   :  { %v3652_v60 = vld [vmem:[%s10902_s9 + $0x44b0] sm:$0xff]  ;;  %6550 = vmatpush.msrb.mxu1 %v3540_v55  ;;  %v1669_v55 = vld [vmem:[%s10902_s9 + $0x6b8] sm:$0xff] }
 0xddc   :  { %v3252_v52 = vld [vmem:[%s10902_s9 + $0x3830] sm:$0xff]  ;;  %6572 = vmatpush.msrb.mxu2 %v3652_v60  ;;  %v1781_v60 = vld [vmem:[%s10902_s9 + $0xa38] sm:$0xff] }
 0xddd   :  { %v3396_v34 = vld [vmem:[%s10902_s9 + $0x3cb0] sm:$0xff]  ;;  %6514 = vmatpush.msra.mxu3 %v3252_v52 }
 0xdde   :  { %v3532_v33 = vld [vmem:[%s10902_s9 + $0x40f0] sm:$0xff]  ;;  %6532 = vmatpush.msrb.mxu0 %v3396_v34  ;;  %v1661_v34 = vld [vmem:[%s10902_s9 + $0x678] sm:$0xff] }
 0xddf   :  { %v3644_v8 = vld [vmem:[%s10902_s9 + $0x4470] sm:$0xff]  ;;  %6551 = vmatpush.msrb.mxu1 %v3532_v33  ;;  %v1773_v33 = vld [vmem:[%s10902_s9 + $0x9f8] sm:$0xff] }
 0xde0   :  { %v3868_v42 = vld [vmem:[%s10902_s9 + $0x4b70] sm:$0xff]  ;;  %6573 = vmatpush.msrb.mxu2 %v3644_v8  ;;  %v1517_v8 = vld [vmem:[%s10902_s9 + $0x1f8] sm:$0xff] }
 0xde1   :  { %v3388_v41 = vld [vmem:[%s10902_s9 + $0x3c70] sm:$0xff]  ;;  %6581 = vmatpush.msrb.mxu3 %v3868_v42  ;;  %v1653_v42 = vld [vmem:[%s10902_s9 + $0x638] sm:$0xff] }
 0xde2   :  { %v3524_v35 = vld [vmem:[%s10902_s9 + $0x40b0] sm:$0xff]  ;;  %6533 = vmatpush.msrb.mxu0 %v3388_v41  ;;  %v1765_v41 = vld [vmem:[%s10902_s9 + $0x9b8] sm:$0xff] }
 0xde3   :  { %v3636_v0 = vld [vmem:[%s10902_s9 + $0x4430] sm:$0xff]  ;;  %6552 = vmatpush.msrb.mxu1 %v3524_v35  ;;  %v1509_v35 = vld [vmem:[%s10902_s9 + $0x1b8] sm:$0xff] }
 0xde4   :  { %v7335_v58 = vld.sshfl [vmem:[#allocation1 + $0x30] sm:$0xff pattern:$0x73625140]  ;;  %6574 = vmatpush.msrb.mxu2 %v3636_v0  ;;  %v1645_v0 = vld [vmem:[%s10902_s9 + $0x5f8] sm:$0xff] }
 0xde5   :  { %6515 = vmatmul.f32.vlgmr.msra.gmra.mxu3 %v7335_v58  ;;  %v3860_v54 = vld [vmem:[%s10902_s9 + $0x4b30] sm:$0xff]  ;;  %6575 = vmatmul.f32.vlgmr.msrb.gmra.mxu2 %v7336_v50  ;;  %v1725_v50 = vld [vmem:[%s10902_s9 + $0x878] sm:$0xff] }
 0xde6   :  { %v3380_v3 = vld [vmem:[%s10902_s9 + $0x3c30] sm:$0xff]  ;;  %6582 = vmatpush.msrb.mxu3 %v3860_v54  ;;  %6639 = vmatpush.msra.mxu2 %v1837_v38  ;;  %v1501_v54 = vld [vmem:[%s10902_s9 + $0x178] sm:$0xff] }
 0xde7   :  { %v3516_v24 = vld [vmem:[%s10902_s9 + $0x4070] sm:$0xff]  ;;  %6534 = vmatpush.msrb.mxu0 %v3380_v3  ;;  %v1637_v38 = vld [vmem:[%s10902_s9 + $0x5b8] sm:$0xff] }
 0xde8   :  { %v3852_v4 = vld [vmem:[%s10902_s9 + $0x4af0] sm:$0xff]  ;;  %6553 = vmatpush.msrb.mxu1 %v3516_v24  ;;  %6640 = vmatpush.msra.mxu2 %v1829_v40  ;;  %v1749_v3 = vld [vmem:[%s10902_s9 + $0x938] sm:$0xff] }
 0xde9   :  { %v3508_v17 = vld [vmem:[%s10902_s9 + $0x4030] sm:$0xff]  ;;  %6583 = vmatpush.msrb.mxu3 %v3852_v4  ;;  %6599 = vmatpush.msra.mxu0 %v1581_v59  ;;  %v1629_v4 = vld [vmem:[%s10902_s9 + $0x578] sm:$0xff] }
 0xdea   :  { %v3844_v25 = vld [vmem:[%s10902_s9 + $0x4ab0] sm:$0xff]  ;;  %6554 = vmatpush.msrb.mxu1 %v3508_v17  ;;  %6641 = vmatpush.msra.mxu2 %v1821_v61  ;;  %v1741_v59 = vld [vmem:[%s10902_s9 + $0x8f8] sm:$0xff] }
 0xdeb   :  { %6584 = vmatpush.msrb.mxu3 %v3844_v25  ;;  %v3836_v37 = vld [vmem:[%s10902_s9 + $0x4a70] sm:$0xff]  ;;  %6600 = vmatpush.msra.mxu0 %v1573_v18  ;;  %v1485_v40 = vld [vmem:[%s10902_s9 + $0xf8] sm:$0xff] }
 0xdec   :  { %6619 = vmatpush.msra.mxu1 %v1709_v7  ;;  %6535 = vmatmul.f32.vlgmr.msrb.gmra.mxu0 %v7337_v36  ;;  %v3828_v27 = vld [vmem:[%s10902_s9 + $0x4a30] sm:$0xff]  ;;  %v1621_v17 = vld [vmem:[%s10902_s9 + $0x538] sm:$0xff] }
 0xded   :  { %6585 = vmatpush.msrb.mxu3 %v3836_v37  ;;  %6601 = vmatpush.msra.mxu0 %v1565_v1  ;;  %v3820_v57 = vld [vmem:[%s10902_s9 + $0x49f0] sm:$0xff]  ;;  %v1957_v18 = vld [vmem:[%s10902_s9 + $0xfb8] sm:$0xff] }
 0xdee   :  { %6620 = vmatpush.msra.mxu1 %v1701_v47  ;;  %6642 = vmatpush.msra.mxu2 %v1813_v45  ;;  %v3812_v11 = vld [vmem:[%s10902_s9 + $0x49b0] sm:$0xff]  ;;  %v1477_v7 = vld [vmem:[%s10902_s9 + $0xb8] sm:$0xff] }
 0xdef   :  { %6555 = vmatmul.f32.vlgmr.msrb.gmra.mxu1 %v7338_v48  ;;  %6586 = vmatpush.msrb.mxu3 %v3828_v27  ;;  %v3804_v10 = vld [vmem:[%s10902_s9 + $0x4970] sm:$0xff]  ;;  %v1613_v61 = vld [vmem:[%s10902_s9 + $0x4f8] sm:$0xff] }
 0xdf0   :  { %6602 = vmatpush.msra.mxu0 %v1557_v15  ;;  %6621 = vmatpush.msra.mxu1 %v1693_v44  ;;  %v3796_v52 = vld [vmem:[%s10902_s9 + $0x4930] sm:$0xff]  ;;  %v1949_v37 = vld [vmem:[%s10902_s9 + $0xf78] sm:$0xff] }
 0xdf1   :  { %6643 = vmatpush.msra.mxu2 %v1805_v46  ;;  %6587 = vmatpush.msrb.mxu3 %v3820_v57  ;;  %v3788_v31 = vld [vmem:[%s10902_s9 + $0x48f0] sm:$0xff]  ;;  %v1469_v1 = vld [vmem:[%s10902_s9 + $0x78] sm:$0xff] }
 0xdf2   :  { %6603 = vmatpush.msra.mxu0 %v1549_v9  ;;  %6622 = vmatpush.msra.mxu1 %v1685_v13  ;;  %v3780_v21 = vld [vmem:[%s10902_s9 + $0x48b0] sm:$0xff]  ;;  %v1605_v47 = vld [vmem:[%s10902_s9 + $0x4b8] sm:$0xff] }
 0xdf3   :  { %6644 = vmatpush.msra.mxu2 %v1797_v53  ;;  %6588 = vmatpush.msrb.mxu3 %v3812_v11  ;;  %v3772_v58 = vld [vmem:[%s10902_s9 + $0x4870] sm:$0xff]  ;;  %v1717_v45 = vld [vmem:[%s10902_s9 + $0x838] sm:$0xff] }
 0xdf4   :  { %6604 = vmatpush.msra.mxu0 %v1541_v51  ;;  %6623 = vmatpush.msra.mxu1 %v1677_v16  ;;  %v3764_v24 = vld [vmem:[%s10902_s9 + $0x4830] sm:$0xff]  ;;  %v1941_v36 = vld [vmem:[%s10902_s9 + $0xf38] sm:$0xff] }
 0xdf5   :  { %6645 = vmatpush.msra.mxu2 %v1789_v32  ;;  %6589 = vmatpush.msrb.mxu3 %v3804_v10  ;;  %v7339_v25 = vld.sshfl [vmem:[#allocation1 + $0x10] sm:$0xff pattern:$0x73625140]  ;;  %v2349_v27 = vld [vmem:[%s10902_s9 + $0x1bf8] sm:$0xff] }
 0xdf6   :  { %6605 = vmatpush.msra.mxu0 %v1533_v23  ;;  %6624 = vmatpush.msra.mxu1 %v1669_v55  ;;  %v1461_v15 = vld [vmem:[%s10902_s9 + $0x38] sm:$0xff] }
 0xdf7   :  { %6646 = vmatpush.msra.mxu2 %v1781_v60  ;;  %6590 = vmatpush.msrb.mxu3 %v3796_v52  ;;  %v1597_v44 = vld [vmem:[%s10902_s9 + $0x478] sm:$0xff] }
 0xdf8   :  { %6606 = vmatpush.msra.mxu0 %v1525_v63  ;;  %6625 = vmatpush.msra.mxu1 %v1661_v34  ;;  %v1933_v46 = vld [vmem:[%s10902_s9 + $0xef8] sm:$0xff] }
 0xdf9   :  { %6647 = vmatpush.msra.mxu2 %v1773_v33  ;;  %6591 = vmatpush.msrb.mxu3 %v3788_v31  ;;  %v2093_v57 = vld [vmem:[%s10902_s9 + $0x13f8] sm:$0xff] }
 0xdfa   :  { %6607 = vmatpush.msra.mxu0 %v1517_v8  ;;  %6626 = vmatpush.msra.mxu1 %v1653_v42  ;;  %v2341_v48 = vld [vmem:[%s10902_s9 + $0x1bb8] sm:$0xff] }
 0xdfb   :  { %6648 = vmatpush.msra.mxu2 %v1765_v41  ;;  %6592 = vmatpush.msrb.mxu3 %v3780_v21  ;;  %v1589_v9 = vld [vmem:[%s10902_s9 + $0x438] sm:$0xff] }
 0xdfc   :  { %6608 = vmatpush.msra.mxu0 %v1509_v35  ;;  %6627 = vmatpush.msra.mxu1 %v1645_v0  ;;  %v1925_v13 = vld [vmem:[%s10902_s9 + $0xeb8] sm:$0xff] }
 0xdfd   :  { %6649 = vmatpush.msra.mxu2 %v1757_v26  ;;  %6593 = vmatpush.msrb.mxu3 %v3772_v58  ;;  %v2085_v53 = vld [vmem:[%s10902_s9 + $0x13b8] sm:$0xff] }
 0xdfe   :  { %6609 = vmatpush.msra.mxu0 %v1501_v54  ;;  %6628 = vmatpush.msra.mxu1 %v1637_v38  ;;  %v2221_v11 = vld [vmem:[%s10902_s9 + $0x17f8] sm:$0xff] }
 0xdff   :  { %6650 = vmatpush.msra.mxu2 %v1749_v3  ;;  %6594 = vmatpush.msrb.mxu3 %v3764_v24  ;;  %v2333_v51 = vld [vmem:[%s10902_s9 + $0x1b78] sm:$0xff] }
 0xe00   :  { %6610 = vmatpush.msra.mxu0 %v1493_v49  ;;  %6629 = vmatpush.msra.mxu1 %v1629_v4  ;;  %v1917_v16 = vld [vmem:[%s10902_s9 + $0xe78] sm:$0xff] }
 0xe01   :  { %6651 = vmatpush.msra.mxu2 %v1741_v59  ;;  %7181 = vmatmul.msk.f32.vlgmr.msrb.gmra.mxu3 %vm3936_vm9, %v7339_v25  ;;  %v2077_v32 = vld [vmem:[%s10902_s9 + $0x1378] sm:$0xff] }
 0xe02   :  { %6659 = vmatpush.msra.mxu3 %v1965_v43  ;;  %6611 = vmatpush.msra.mxu0 %v1485_v40  ;;  %v2213_v10 = vld [vmem:[%s10902_s9 + $0x17b8] sm:$0xff] }
 0xe03   :  { %6630 = vmatpush.msra.mxu1 %v1621_v17  ;;  %6652 = vmatpush.msra.mxu2 %v1733_v62  ;;  %v2325_v23 = vld [vmem:[%s10902_s9 + $0x1b38] sm:$0xff] }
 0xe04   :  { %6660 = vmatpush.msra.mxu3 %v1957_v18  ;;  %6612 = vmatpush.msra.mxu0 %v1477_v7  ;;  %v1909_v55 = vld [vmem:[%s10902_s9 + $0xe38] sm:$0xff] }
 0xe05   :  { %6631 = vmatpush.msra.mxu1 %v1613_v61  ;;  %6653 = vmatpush.msra.mxu2 %v1725_v50  ;;  %v2069_v60 = vld [vmem:[%s10902_s9 + $0x1338] sm:$0xff] }
 0xe06   :  { %6661 = vmatpush.msra.mxu3 %v1949_v37  ;;  %6613 = vmatpush.msra.mxu0 %v1469_v1  ;;  %v2205_v52 = vld [vmem:[%s10902_s9 + $0x1778] sm:$0xff] }
 0xe07   :  { %6632 = vmatpush.msra.mxu1 %v1605_v47  ;;  %6654 = vmatpush.msra.mxu2 %v1717_v45  ;;  %v2317_v63 = vld [vmem:[%s10902_s9 + $0x1af8] sm:$0xff] }
 0xe08   :  { %6662 = vmatpush.msra.mxu3 %v1941_v36  ;;  %6614 = vmatpush.msra.mxu0 %v1461_v15  ;;  %v1901_v34 = vld [vmem:[%s10902_s9 + $0xdf8] sm:$0xff] }
 0xe09   :  { %6719 = vmatpush.msrb.mxu2 %v2349_v27  ;;  %6633 = vmatpush.msra.mxu1 %v1597_v44  ;;  %v2061_v33 = vld [vmem:[%s10902_s9 + $0x12f8] sm:$0xff] }
 0xe0a   :  { %6663 = vmatpush.msra.mxu3 %v1933_v46  ;;  %6679 = vmatpush.msrb.mxu0 %v2093_v57  ;;  %v2197_v31 = vld [vmem:[%s10902_s9 + $0x1738] sm:$0xff] }
 0xe0b   :  { %6720 = vmatpush.msrb.mxu2 %v2341_v48  ;;  %6634 = vmatpush.msra.mxu1 %v1589_v9  ;;  %v2309_v8 = vld [vmem:[%s10902_s9 + $0x1ab8] sm:$0xff] }
 0xe0c   :  { %6664 = vmatpush.msra.mxu3 %v1925_v13  ;;  %6680 = vmatpush.msrb.mxu0 %v2085_v53  ;;  %v1893_v42 = vld [vmem:[%s10902_s9 + $0xdb8] sm:$0xff] }
 0xe0d   :  { %6699 = vmatpush.msrb.mxu1 %v2221_v11  ;;  %6721 = vmatpush.msrb.mxu2 %v2333_v51  ;;  %v2053_v41 = vld [vmem:[%s10902_s9 + $0x12b8] sm:$0xff] }
 0xe0e   :  { %6665 = vmatpush.msra.mxu3 %v1917_v16  ;;  %6681 = vmatpush.msrb.mxu0 %v2077_v32  ;;  %v2189_v21 = vld [vmem:[%s10902_s9 + $0x16f8] sm:$0xff] }
 0xe0f   :  { %6700 = vmatpush.msrb.mxu1 %v2213_v10  ;;  %6722 = vmatpush.msrb.mxu2 %v2325_v23  ;;  %v2301_v35 = vld [vmem:[%s10902_s9 + $0x1a78] sm:$0xff] }
 0xe10   :  { %6666 = vmatpush.msra.mxu3 %v1909_v55  ;;  %6682 = vmatpush.msrb.mxu0 %v2069_v60  ;;  %v1885_v0 = vld [vmem:[%s10902_s9 + $0xd78] sm:$0xff] }
 0xe11   :  { %6701 = vmatpush.msrb.mxu1 %v2205_v52  ;;  %6723 = vmatpush.msrb.mxu2 %v2317_v63  ;;  %v2045_v26 = vld [vmem:[%s10902_s9 + $0x1278] sm:$0xff] }
 0xe12   :  { %6667 = vmatpush.msra.mxu3 %v1901_v34  ;;  %6683 = vmatpush.msrb.mxu0 %v2061_v33  ;;  %v2181_v58 = vld [vmem:[%s10902_s9 + $0x16b8] sm:$0xff] }
 0xe13   :  { %6702 = vmatpush.msrb.mxu1 %v2197_v31  ;;  %6724 = vmatpush.msrb.mxu2 %v2309_v8  ;;  %v2293_v54 = vld [vmem:[%s10902_s9 + $0x1a38] sm:$0xff] }
 0xe14   :  { %6668 = vmatpush.msra.mxu3 %v1893_v42  ;;  %6684 = vmatpush.msrb.mxu0 %v2053_v41  ;;  %v1877_v38 = vld [vmem:[%s10902_s9 + $0xd38] sm:$0xff] }
 0xe15   :  { %6703 = vmatpush.msrb.mxu1 %v2189_v21  ;;  %6725 = vmatpush.msrb.mxu2 %v2301_v35  ;;  %v2037_v3 = vld [vmem:[%s10902_s9 + $0x1238] sm:$0xff] }
 0xe16   :  { %6669 = vmatpush.msra.mxu3 %v1885_v0  ;;  %6685 = vmatpush.msrb.mxu0 %v2045_v26  ;;  %v2173_v24 = vld [vmem:[%s10902_s9 + $0x1678] sm:$0xff] }
 0xe17   :  { %v2285_v49 = vld [vmem:[%s10902_s9 + $0x19f8] sm:$0xff]  ;;  %6704 = vmatpush.msrb.mxu1 %v2181_v58  ;;  %6726 = vmatpush.msrb.mxu2 %v2293_v54 }
 0xe18   :  { %v1869_v4 = vld [vmem:[%s10902_s9 + $0xcf8] sm:$0xff]  ;;  %6670 = vmatpush.msra.mxu3 %v1877_v38  ;;  %6686 = vmatpush.msrb.mxu0 %v2037_v3 }
 0xe19   :  { %v2029_v59 = vld [vmem:[%s10902_s9 + $0x11f8] sm:$0xff]  ;;  %6705 = vmatpush.msrb.mxu1 %v2173_v24  ;;  %6727 = vmatpush.msrb.mxu2 %v2285_v49 }
 0xe1a   :  { %v2165_v43 = vld [vmem:[%s10902_s9 + $0x1638] sm:$0xff]  ;;  %6671 = vmatpush.msra.mxu3 %v1869_v4  ;;  %6687 = vmatpush.msrb.mxu0 %v2029_v59 }
 0xe1b   :  { %v2277_v40 = vld [vmem:[%s10902_s9 + $0x19b8] sm:$0xff]  ;;  %6706 = vmatpush.msrb.mxu1 %v2165_v43  ;;  %6655 = vmatmul.f32.vlgmr.msra.gmra.mxu2 %v10954_v2 }
 0xe1c   :  { %v1861_v17 = vld [vmem:[%s10902_s9 + $0xcb8] sm:$0xff]  ;;  %6728 = vmatpush.msrb.mxu2 %v2277_v40  ;;  %6615 = vmatmul.f32.vlgmr.msra.gmra.mxu0 %v10951_v56 }
 0xe1d   :  { %v2021_v62 = vld [vmem:[%s10902_s9 + $0x11b8] sm:$0xff]  ;;  %6672 = vmatpush.msra.mxu3 %v1861_v17  ;;  %6635 = vmatmul.f32.vlgmr.msra.gmra.mxu1 %v10952_v5 }
 0xe1e   :  { %v2157_v25 = vld [vmem:[%s10902_s9 + $0x15f8] sm:$0xff]  ;;  %6688 = vmatpush.msrb.mxu0 %v2021_v62 }
 0xe1f   :  { %v2269_v18 = vld [vmem:[%s10902_s9 + $0x1978] sm:$0xff]  ;;  %6707 = vmatpush.msrb.mxu1 %v2157_v25 }
 0xe20   :  { %v1853_v7 = vld [vmem:[%s10902_s9 + $0xc78] sm:$0xff]  ;;  %6729 = vmatpush.msrb.mxu2 %v2269_v18 }
 0xe21   :  { %v2013_v61 = vld [vmem:[%s10902_s9 + $0x1178] sm:$0xff]  ;;  %6673 = vmatpush.msra.mxu3 %v1853_v7 }
 0xe22   :  { %v2149_v50 = vld [vmem:[%s10902_s9 + $0x15b8] sm:$0xff]  ;;  %6689 = vmatpush.msrb.mxu0 %v2013_v61 }
 0xe23   :  { %v2261_v37 = vld [vmem:[%s10902_s9 + $0x1938] sm:$0xff]  ;;  %6708 = vmatpush.msrb.mxu1 %v2149_v50 }
 0xe24   :  { %v1845_v1 = vld [vmem:[%s10902_s9 + $0xc38] sm:$0xff]  ;;  %6730 = vmatpush.msrb.mxu2 %v2261_v37 }
 0xe25   :  { %v2005_v47 = vld [vmem:[%s10902_s9 + $0x1138] sm:$0xff]  ;;  %6674 = vmatpush.msra.mxu3 %v1845_v1 }
 0xe26   :  { %v2141_v45 = vld [vmem:[%s10902_s9 + $0x1578] sm:$0xff]  ;;  %6690 = vmatpush.msrb.mxu0 %v2005_v47  ;;  %6675 = vmatmul.f32.vlgmr.msra.gmra.mxu3 %v10955_v29 }
 0xe27   :  { %v2253_v36 = vld [vmem:[%s10902_s9 + $0x18f8] sm:$0xff]  ;;  %6709 = vmatpush.msrb.mxu1 %v2141_v45 }
 0xe28   :  { %v2477_v27 = vld [vmem:[%s10902_s9 + $0x1ff8] sm:$0xff]  ;;  %6731 = vmatpush.msrb.mxu2 %v2253_v36 }
 0xe29   :  { %v1997_v15 = vld [vmem:[%s10902_s9 + $0x10f8] sm:$0xff]  ;;  %6739 = vmatpush.msrb.mxu3 %v2477_v27 }
 0xe2a   :  { %v2133_v44 = vld [vmem:[%s10902_s9 + $0x1538] sm:$0xff]  ;;  %6691 = vmatpush.msrb.mxu0 %v1997_v15 }
 0xe2b   :  { %v2245_v46 = vld [vmem:[%s10902_s9 + $0x18b8] sm:$0xff]  ;;  %6710 = vmatpush.msrb.mxu1 %v2133_v44 }
 0xe2c   :  { %v2469_v57 = vld [vmem:[%s10902_s9 + $0x1fb8] sm:$0xff]  ;;  %6732 = vmatpush.msrb.mxu2 %v2245_v46 }
 0xe2d   :  { %v1989_v48 = vld [vmem:[%s10902_s9 + $0x10b8] sm:$0xff]  ;;  %6740 = vmatpush.msrb.mxu3 %v2469_v57 }
 0xe2e   :  { %v2125_v9 = vld [vmem:[%s10902_s9 + $0x14f8] sm:$0xff]  ;;  %6692 = vmatpush.msrb.mxu0 %v1989_v48 }
 0xe2f   :  { %v2237_v13 = vld [vmem:[%s10902_s9 + $0x1878] sm:$0xff]  ;;  %6711 = vmatpush.msrb.mxu1 %v2125_v9 }
 0xe30   :  { %v2461_v53 = vld [vmem:[%s10902_s9 + $0x1f78] sm:$0xff]  ;;  %6733 = vmatpush.msrb.mxu2 %v2237_v13 }
 0xe31   :  { %v1981_v11 = vld [vmem:[%s10902_s9 + $0x1078] sm:$0xff]  ;;  %6741 = vmatpush.msrb.mxu3 %v2461_v53 }
 0xe32   :  { %v2117_v51 = vld [vmem:[%s10902_s9 + $0x14b8] sm:$0xff]  ;;  %6693 = vmatpush.msrb.mxu0 %v1981_v11 }
 0xe33   :  { %v2229_v16 = vld [vmem:[%s10902_s9 + $0x1838] sm:$0xff]  ;;  %6712 = vmatpush.msrb.mxu1 %v2117_v51 }
 0xe34   :  { %v2453_v32 = vld [vmem:[%s10902_s9 + $0x1f38] sm:$0xff]  ;;  %6734 = vmatpush.msrb.mxu2 %v2229_v16 }
 0xe35   :  { %v2861_v10 = vld [vmem:[%s10902_s9 + $0x2bf8] sm:$0xff]  ;;  %6742 = vmatpush.msrb.mxu3 %v2453_v32  ;;  %6735 = vmatmul.f32.vlgmr.msrb.gmra.mxu2 %v10957_v12 }
 0xe36   :  { %v1973_v23 = vld [vmem:[%s10902_s9 + $0x1038] sm:$0xff]  ;;  %6799 = vmatpush.msra.mxu2 %v2861_v10 }
 0xe37   :  { %v2109_v55 = vld [vmem:[%s10902_s9 + $0x1478] sm:$0xff]  ;;  %6694 = vmatpush.msrb.mxu0 %v1973_v23 }
 0xe38   :  { %v2605_v60 = vld [vmem:[%s10902_s9 + $0x23f8] sm:$0xff]  ;;  %6713 = vmatpush.msrb.mxu1 %v2109_v55  ;;  %6695 = vmatmul.f32.vlgmr.msrb.gmra.mxu0 %v10953_v19 }
 0xe39   :  { %v2445_v52 = vld [vmem:[%s10902_s9 + $0x1ef8] sm:$0xff]  ;;  %6759 = vmatpush.msra.mxu0 %v2605_v60 }
 0xe3a   :  { %v2853_v63 = vld [vmem:[%s10902_s9 + $0x2bb8] sm:$0xff]  ;;  %6743 = vmatpush.msrb.mxu3 %v2445_v52 }
 0xe3b   :  { %v2101_v34 = vld [vmem:[%s10902_s9 + $0x1438] sm:$0xff]  ;;  %6800 = vmatpush.msra.mxu2 %v2853_v63 }
 0xe3c   :  { %v2597_v33 = vld [vmem:[%s10902_s9 + $0x23b8] sm:$0xff]  ;;  %6714 = vmatpush.msrb.mxu1 %v2101_v34 }
 0xe3d   :  { %v2437_v2 = vld [vmem:[%s10902_s9 + $0x1eb8] sm:$0xff]  ;;  %6760 = vmatpush.msra.mxu0 %v2597_v33  ;;  %6715 = vmatmul.f32.vlgmr.msrb.gmra.mxu1 %v10956_v30 }
 0xe3e   :  { %v2733_v31 = vld [vmem:[%s10902_s9 + $0x27f8] sm:$0xff]  ;;  %6744 = vmatpush.msrb.mxu3 %v2437_v2 }
 0xe3f   :  { %v2845_v8 = vld [vmem:[%s10902_s9 + $0x2b78] sm:$0xff]  ;;  %6779 = vmatpush.msra.mxu1 %v2733_v31 }
 0xe40   :  { %v2429_v42 = vld [vmem:[%s10902_s9 + $0x1e78] sm:$0xff]  ;;  %6801 = vmatpush.msra.mxu2 %v2845_v8 }
 0xe41   :  { %v2589_v56 = vld [vmem:[%s10902_s9 + $0x2378] sm:$0xff]  ;;  %6745 = vmatpush.msrb.mxu3 %v2429_v42 }
 0xe42   :  { %v2725_v29 = vld [vmem:[%s10902_s9 + $0x27b8] sm:$0xff]  ;;  %6761 = vmatpush.msra.mxu0 %v2589_v56 }
 0xe43   :  { %v2837_v41 = vld [vmem:[%s10902_s9 + $0x2b38] sm:$0xff]  ;;  %6780 = vmatpush.msra.mxu1 %v2725_v29 }
 0xe44   :  { %v2421_v21 = vld [vmem:[%s10902_s9 + $0x1e38] sm:$0xff]  ;;  %6802 = vmatpush.msra.mxu2 %v2837_v41 }
 0xe45   :  { %v2581_v35 = vld [vmem:[%s10902_s9 + $0x2338] sm:$0xff]  ;;  %6746 = vmatpush.msrb.mxu3 %v2421_v21 }
 0xe46   :  { %v2717_v0 = vld [vmem:[%s10902_s9 + $0x2778] sm:$0xff]  ;;  %6762 = vmatpush.msra.mxu0 %v2581_v35 }
 0xe47   :  { %v2829_v5 = vld [vmem:[%s10902_s9 + $0x2af8] sm:$0xff]  ;;  %6781 = vmatpush.msra.mxu1 %v2717_v0 }
 0xe48   :  { %v2413_v26 = vld [vmem:[%s10902_s9 + $0x1df8] sm:$0xff]  ;;  %6803 = vmatpush.msra.mxu2 %v2829_v5 }
 0xe49   :  { %v2573_v58 = vld [vmem:[%s10902_s9 + $0x22f8] sm:$0xff]  ;;  %6747 = vmatpush.msrb.mxu3 %v2413_v26 }
 0xe4a   :  { %v2709_v54 = vld [vmem:[%s10902_s9 + $0x2738] sm:$0xff]  ;;  %6763 = vmatpush.msra.mxu0 %v2573_v58 }
 0xe4b   :  { %v2821_v38 = vld [vmem:[%s10902_s9 + $0x2ab8] sm:$0xff]  ;;  %6782 = vmatpush.msra.mxu1 %v2709_v54 }
 0xe4c   :  { %v2405_v3 = vld [vmem:[%s10902_s9 + $0x1db8] sm:$0xff]  ;;  %6804 = vmatpush.msra.mxu2 %v2821_v38 }
 0xe4d   :  { %v2565_v12 = vld [vmem:[%s10902_s9 + $0x22b8] sm:$0xff]  ;;  %6748 = vmatpush.msrb.mxu3 %v2405_v3 }
 0xe4e   :  { %v2701_v24 = vld [vmem:[%s10902_s9 + $0x26f8] sm:$0xff]  ;;  %6764 = vmatpush.msra.mxu0 %v2565_v12 }
 0xe4f   :  { %v2813_v49 = vld [vmem:[%s10902_s9 + $0x2a78] sm:$0xff]  ;;  %6783 = vmatpush.msra.mxu1 %v2701_v24 }
 0xe50   :  { %v2397_v4 = vld [vmem:[%s10902_s9 + $0x1d78] sm:$0xff]  ;;  %6805 = vmatpush.msra.mxu2 %v2813_v49 }
 0xe51   :  { %v2557_v59 = vld [vmem:[%s10902_s9 + $0x2278] sm:$0xff]  ;;  %6749 = vmatpush.msrb.mxu3 %v2397_v4 }
 0xe52   :  { %v2693_v19 = vld [vmem:[%s10902_s9 + $0x26b8] sm:$0xff]  ;;  %6765 = vmatpush.msra.mxu0 %v2557_v59 }
 0xe53   :  { %v2805_v43 = vld [vmem:[%s10902_s9 + $0x2a38] sm:$0xff]  ;;  %6784 = vmatpush.msra.mxu1 %v2693_v19 }
 0xe54   :  { %v2389_v40 = vld [vmem:[%s10902_s9 + $0x1d38] sm:$0xff]  ;;  %6806 = vmatpush.msra.mxu2 %v2805_v43 }
 0xe55   :  { %v2549_v17 = vld [vmem:[%s10902_s9 + $0x2238] sm:$0xff]  ;;  %6750 = vmatpush.msrb.mxu3 %v2389_v40 }
 0xe56   :  { %v2685_v62 = vld [vmem:[%s10902_s9 + $0x2678] sm:$0xff]  ;;  %6766 = vmatpush.msra.mxu0 %v2549_v17 }
 0xe57   :  { %v2797_v30 = vld [vmem:[%s10902_s9 + $0x29f8] sm:$0xff]  ;;  %6785 = vmatpush.msra.mxu1 %v2685_v62 }
 0xe58   :  { %v2381_v25 = vld [vmem:[%s10902_s9 + $0x1cf8] sm:$0xff]  ;;  %6807 = vmatpush.msra.mxu2 %v2797_v30 }
 0xe59   :  { %v2541_v18 = vld [vmem:[%s10902_s9 + $0x21f8] sm:$0xff]  ;;  %6751 = vmatpush.msrb.mxu3 %v2381_v25 }
 0xe5a   :  { %v2677_v7 = vld [vmem:[%s10902_s9 + $0x2638] sm:$0xff]  ;;  %6767 = vmatpush.msra.mxu0 %v2541_v18 }
 0xe5b   :  { %v2789_v61 = vld [vmem:[%s10902_s9 + $0x29b8] sm:$0xff]  ;;  %6786 = vmatpush.msra.mxu1 %v2677_v7 }
 0xe5c   :  { %v2373_v50 = vld [vmem:[%s10902_s9 + $0x1cb8] sm:$0xff]  ;;  %6808 = vmatpush.msra.mxu2 %v2789_v61 }
 0xe5d   :  { %v2533_v37 = vld [vmem:[%s10902_s9 + $0x21b8] sm:$0xff]  ;;  %6752 = vmatpush.msrb.mxu3 %v2373_v50 }
 0xe5e   :  { %v2669_v1 = vld [vmem:[%s10902_s9 + $0x25f8] sm:$0xff]  ;;  %6768 = vmatpush.msra.mxu0 %v2533_v37 }
 0xe5f   :  { %v2781_v47 = vld [vmem:[%s10902_s9 + $0x2978] sm:$0xff]  ;;  %6787 = vmatpush.msra.mxu1 %v2669_v1 }
 0xe60   :  { %v2365_v45 = vld [vmem:[%s10902_s9 + $0x1c78] sm:$0xff]  ;;  %6809 = vmatpush.msra.mxu2 %v2781_v47 }
 0xe61   :  { %v2525_v36 = vld [vmem:[%s10902_s9 + $0x2178] sm:$0xff]  ;;  %6753 = vmatpush.msrb.mxu3 %v2365_v45 }
 0xe62   :  { %v2661_v27 = vld [vmem:[%s10902_s9 + $0x25b8] sm:$0xff]  ;;  %6769 = vmatpush.msra.mxu0 %v2525_v36 }
 0xe63   :  { %v2773_v15 = vld [vmem:[%s10902_s9 + $0x2938] sm:$0xff]  ;;  %6788 = vmatpush.msra.mxu1 %v2661_v27 }
 0xe64   :  { %v2357_v44 = vld [vmem:[%s10902_s9 + $0x1c38] sm:$0xff]  ;;  %6810 = vmatpush.msra.mxu2 %v2773_v15 }
 0xe65   :  { %v2517_v46 = vld [vmem:[%s10902_s9 + $0x2138] sm:$0xff]  ;;  %6754 = vmatpush.msrb.mxu3 %v2357_v44 }
 0xe66   :  { %v2653_v57 = vld [vmem:[%s10902_s9 + $0x2578] sm:$0xff]  ;;  %6770 = vmatpush.msra.mxu0 %v2517_v46  ;;  %6755 = vmatmul.f32.vlgmr.msrb.gmra.mxu3 %v10958_v39 }
 0xe67   :  { %v2765_v48 = vld [vmem:[%s10902_s9 + $0x28f8] sm:$0xff]  ;;  %6789 = vmatpush.msra.mxu1 %v2653_v57 }
 0xe68   :  { %v2989_v9 = vld [vmem:[%s10902_s9 + $0x2ff8] sm:$0xff]  ;;  %6811 = vmatpush.msra.mxu2 %v2765_v48 }
 0xe69   :  { %v2509_v13 = vld [vmem:[%s10902_s9 + $0x20f8] sm:$0xff]  ;;  %6819 = vmatpush.msra.mxu3 %v2989_v9 }
 0xe6a   :  { %v2645_v53 = vld [vmem:[%s10902_s9 + $0x2538] sm:$0xff]  ;;  %6771 = vmatpush.msra.mxu0 %v2509_v13 }
 0xe6b   :  { %v2757_v11 = vld [vmem:[%s10902_s9 + $0x28b8] sm:$0xff]  ;;  %6790 = vmatpush.msra.mxu1 %v2645_v53 }
 0xe6c   :  { %v2981_v51 = vld [vmem:[%s10902_s9 + $0x2fb8] sm:$0xff]  ;;  %6812 = vmatpush.msra.mxu2 %v2757_v11 }
 0xe6d   :  { %v2501_v16 = vld [vmem:[%s10902_s9 + $0x20b8] sm:$0xff]  ;;  %6820 = vmatpush.msra.mxu3 %v2981_v51 }
 0xe6e   :  { %v2637_v32 = vld [vmem:[%s10902_s9 + $0x24f8] sm:$0xff]  ;;  %6772 = vmatpush.msra.mxu0 %v2501_v16 }
 0xe6f   :  { %v2749_v10 = vld [vmem:[%s10902_s9 + $0x2878] sm:$0xff]  ;;  %6791 = vmatpush.msra.mxu1 %v2637_v32 }
 0xe70   :  { %v2973_v23 = vld [vmem:[%s10902_s9 + $0x2f78] sm:$0xff]  ;;  %6813 = vmatpush.msra.mxu2 %v2749_v10 }
 0xe71   :  { %v2493_v55 = vld [vmem:[%s10902_s9 + $0x2078] sm:$0xff]  ;;  %6821 = vmatpush.msra.mxu3 %v2973_v23 }
 0xe72   :  { %v2629_v60 = vld [vmem:[%s10902_s9 + $0x24b8] sm:$0xff]  ;;  %6773 = vmatpush.msra.mxu0 %v2493_v55 }
 0xe73   :  { %v2741_v39 = vld [vmem:[%s10902_s9 + $0x2838] sm:$0xff]  ;;  %6792 = vmatpush.msra.mxu1 %v2629_v60 }
 0xe74   :  { %v2965_v52 = vld [vmem:[%s10902_s9 + $0x2f38] sm:$0xff]  ;;  %6814 = vmatpush.msra.mxu2 %v2741_v39 }
 0xe75   :  { %v3373_v63 = vld [vmem:[%s10902_s9 + $0x3bf8] sm:$0xff]  ;;  %6815 = vmatmul.f32.vlgmr.msra.gmra.mxu2 %v8259_v28  ;;  %6822 = vmatpush.msra.mxu3 %v2965_v52 }
 0xe76   :  { %v2485_v34 = vld [vmem:[%s10902_s9 + $0x2038] sm:$0xff]  ;;  %6879 = vmatpush.msrb.mxu2 %v3373_v63 }
 0xe77   :  { %v2621_v33 = vld [vmem:[%s10902_s9 + $0x2478] sm:$0xff]  ;;  %6774 = vmatpush.msra.mxu0 %v2485_v34 }
 0xe78   :  { %v2957_v2 = vld [vmem:[%s10902_s9 + $0x2ef8] sm:$0xff]  ;;  %6793 = vmatpush.msra.mxu1 %v2621_v33  ;;  %6775 = vmatmul.f32.vlgmr.msra.gmra.mxu0 %v8248_v14 }
 0xe79   :  { %v3117_v31 = vld [vmem:[%s10902_s9 + $0x33f8] sm:$0xff]  ;;  %6823 = vmatpush.msra.mxu3 %v2957_v2 }
 0xe7a   :  { %v3365_v8 = vld [vmem:[%s10902_s9 + $0x3bb8] sm:$0xff]  ;;  %6839 = vmatpush.msrb.mxu0 %v3117_v31  ;;  %v7340_v31 = vld.sshfl [vmem:[#allocation1 + $0x30] sm:$0xff pattern:$0x73625140] }
 0xe7b   :  { %v2613_v42 = vld [vmem:[%s10902_s9 + $0x2438] sm:$0xff]  ;;  %6880 = vmatpush.msrb.mxu2 %v3365_v8 }
 0xe7c   :  { %v2949_v56 = vld [vmem:[%s10902_s9 + $0x2eb8] sm:$0xff]  ;;  %6794 = vmatpush.msra.mxu1 %v2613_v42 }
 0xe7d   :  { %v3109_v28 = vld [vmem:[%s10902_s9 + $0x33b8] sm:$0xff]  ;;  %6795 = vmatmul.f32.vlgmr.msra.gmra.mxu1 %v8253_v20  ;;  %6824 = vmatpush.msra.mxu3 %v2949_v56 }
 0xe7e   :  { %v3245_v29 = vld [vmem:[%s10902_s9 + $0x37f8] sm:$0xff]  ;;  %6840 = vmatpush.msrb.mxu0 %v3109_v28  ;;  %v7341_v28 = vld.sshfl [vmem:[#allocation1 + $0x20] sm:$0xff pattern:$0x73625140] }
 0xe7f   :  { %v3357_v41 = vld [vmem:[%s10902_s9 + $0x3b78] sm:$0xff]  ;;  %6859 = vmatpush.msrb.mxu1 %v3245_v29 }
 0xe80   :  { %v2941_v21 = vld [vmem:[%s10902_s9 + $0x2e78] sm:$0xff]  ;;  %6881 = vmatpush.msrb.mxu2 %v3357_v41 }
 0xe81   :  { %v3101_v35 = vld [vmem:[%s10902_s9 + $0x3378] sm:$0xff]  ;;  %6825 = vmatpush.msra.mxu3 %v2941_v21 }
 0xe82   :  { %v3237_v14 = vld [vmem:[%s10902_s9 + $0x37b8] sm:$0xff]  ;;  %6841 = vmatpush.msrb.mxu0 %v3101_v35 }
 0xe83   :  { %v3349_v0 = vld [vmem:[%s10902_s9 + $0x3b38] sm:$0xff]  ;;  %6860 = vmatpush.msrb.mxu1 %v3237_v14  ;;  %v7342_v14 = vld.sshfl [vmem:[#allocation1 + $0x28] sm:$0xff pattern:$0x73625140] }
 0xe84   :  { %v2933_v5 = vld [vmem:[%s10902_s9 + $0x2e38] sm:$0xff]  ;;  %6882 = vmatpush.msrb.mxu2 %v3349_v0 }
 0xe85   :  { %v3093_v26 = vld [vmem:[%s10902_s9 + $0x3338] sm:$0xff]  ;;  %6826 = vmatpush.msra.mxu3 %v2933_v5 }
 0xe86   :  { %v3229_v58 = vld [vmem:[%s10902_s9 + $0x3778] sm:$0xff]  ;;  %6842 = vmatpush.msrb.mxu0 %v3093_v26 }
 0xe87   :  { %v3341_v20 = vld [vmem:[%s10902_s9 + $0x3af8] sm:$0xff]  ;;  %6861 = vmatpush.msrb.mxu1 %v3229_v58 }
 0xe88   :  { %v2925_v54 = vld [vmem:[%s10902_s9 + $0x2df8] sm:$0xff]  ;;  %6883 = vmatpush.msrb.mxu2 %v3341_v20 }
 0xe89   :  { %v3085_v38 = vld [vmem:[%s10902_s9 + $0x32f8] sm:$0xff]  ;;  %6827 = vmatpush.msra.mxu3 %v2925_v54 }
 0xe8a   :  { %v3221_v3 = vld [vmem:[%s10902_s9 + $0x3738] sm:$0xff]  ;;  %6843 = vmatpush.msrb.mxu0 %v3085_v38 }
 0xe8b   :  { %v3333_v12 = vld [vmem:[%s10902_s9 + $0x3ab8] sm:$0xff]  ;;  %6862 = vmatpush.msrb.mxu1 %v3221_v3 }
 0xe8c   :  { %v2917_v24 = vld [vmem:[%s10902_s9 + $0x2db8] sm:$0xff]  ;;  %6884 = vmatpush.msrb.mxu2 %v3333_v12 }
 0xe8d   :  { %v3077_v49 = vld [vmem:[%s10902_s9 + $0x32b8] sm:$0xff]  ;;  %6828 = vmatpush.msra.mxu3 %v2917_v24 }
 0xe8e   :  { %v3213_v4 = vld [vmem:[%s10902_s9 + $0x36f8] sm:$0xff]  ;;  %6844 = vmatpush.msrb.mxu0 %v3077_v49 }
 0xe8f   :  { %v3325_v59 = vld [vmem:[%s10902_s9 + $0x3a78] sm:$0xff]  ;;  %6863 = vmatpush.msrb.mxu1 %v3213_v4 }
 0xe90   :  { %v2909_v19 = vld [vmem:[%s10902_s9 + $0x2d78] sm:$0xff]  ;;  %6885 = vmatpush.msrb.mxu2 %v3325_v59 }
 0xe91   :  { %v3069_v43 = vld [vmem:[%s10902_s9 + $0x3278] sm:$0xff]  ;;  %6829 = vmatpush.msra.mxu3 %v2909_v19 }
 0xe92   :  { %v3205_v40 = vld [vmem:[%s10902_s9 + $0x36b8] sm:$0xff]  ;;  %6845 = vmatpush.msrb.mxu0 %v3069_v43 }
 0xe93   :  { %v3317_v17 = vld [vmem:[%s10902_s9 + $0x3a38] sm:$0xff]  ;;  %6864 = vmatpush.msrb.mxu1 %v3205_v40 }
 0xe94   :  { %v2901_v62 = vld [vmem:[%s10902_s9 + $0x2d38] sm:$0xff]  ;;  %6886 = vmatpush.msrb.mxu2 %v3317_v17 }
 0xe95   :  { %v3061_v30 = vld [vmem:[%s10902_s9 + $0x3238] sm:$0xff]  ;;  %6830 = vmatpush.msra.mxu3 %v2901_v62 }
 0xe96   :  { %v3197_v25 = vld [vmem:[%s10902_s9 + $0x3678] sm:$0xff]  ;;  %6846 = vmatpush.msrb.mxu0 %v3061_v30 }
 0xe97   :  { %v3309_v18 = vld [vmem:[%s10902_s9 + $0x39f8] sm:$0xff]  ;;  %6865 = vmatpush.msrb.mxu1 %v3197_v25 }
 0xe98   :  { %v2893_v7 = vld [vmem:[%s10902_s9 + $0x2cf8] sm:$0xff]  ;;  %6887 = vmatpush.msrb.mxu2 %v3309_v18 }
 0xe99   :  { %v3053_v61 = vld [vmem:[%s10902_s9 + $0x31f8] sm:$0xff]  ;;  %6831 = vmatpush.msra.mxu3 %v2893_v7 }
 0xe9a   :  { %v3189_v50 = vld [vmem:[%s10902_s9 + $0x3638] sm:$0xff]  ;;  %6847 = vmatpush.msrb.mxu0 %v3053_v61 }
 0xe9b   :  { %v3301_v37 = vld [vmem:[%s10902_s9 + $0x39b8] sm:$0xff]  ;;  %6866 = vmatpush.msrb.mxu1 %v3189_v50 }
 0xe9c   :  { %v2885_v1 = vld [vmem:[%s10902_s9 + $0x2cb8] sm:$0xff]  ;;  %6888 = vmatpush.msrb.mxu2 %v3301_v37 }
 0xe9d   :  { %v3045_v47 = vld [vmem:[%s10902_s9 + $0x31b8] sm:$0xff]  ;;  %6832 = vmatpush.msra.mxu3 %v2885_v1 }
 0xe9e   :  { %v3181_v45 = vld [vmem:[%s10902_s9 + $0x35f8] sm:$0xff]  ;;  %6848 = vmatpush.msrb.mxu0 %v3045_v47 }
 0xe9f   :  { %v3293_v36 = vld [vmem:[%s10902_s9 + $0x3978] sm:$0xff]  ;;  %6867 = vmatpush.msrb.mxu1 %v3181_v45 }
 0xea0   :  { %v2877_v27 = vld [vmem:[%s10902_s9 + $0x2c78] sm:$0xff]  ;;  %6889 = vmatpush.msrb.mxu2 %v3293_v36 }
 0xea1   :  { %v3037_v15 = vld [vmem:[%s10902_s9 + $0x3178] sm:$0xff]  ;;  %6833 = vmatpush.msra.mxu3 %v2877_v27 }
 0xea2   :  { %v3173_v44 = vld [vmem:[%s10902_s9 + $0x35b8] sm:$0xff]  ;;  %6849 = vmatpush.msrb.mxu0 %v3037_v15 }
 0xea3   :  { %v3285_v46 = vld [vmem:[%s10902_s9 + $0x3938] sm:$0xff]  ;;  %6868 = vmatpush.msrb.mxu1 %v3173_v44 }
 0xea4   :  { %v2869_v57 = vld [vmem:[%s10902_s9 + $0x2c38] sm:$0xff]  ;;  %6890 = vmatpush.msrb.mxu2 %v3285_v46 }
 0xea5   :  { %v3029_v48 = vld [vmem:[%s10902_s9 + $0x3138] sm:$0xff]  ;;  %6834 = vmatpush.msra.mxu3 %v2869_v57 }
 0xea6   :  { %v3165_v9 = vld [vmem:[%s10902_s9 + $0x3578] sm:$0xff]  ;;  %6850 = vmatpush.msrb.mxu0 %v3029_v48  ;;  %6835 = vmatmul.f32.vlgmr.msra.gmra.mxu3 %v8255_v22 }
 0xea7   :  { %v3277_v13 = vld [vmem:[%s10902_s9 + $0x38f8] sm:$0xff]  ;;  %6869 = vmatpush.msrb.mxu1 %v3165_v9 }
 0xea8   :  { %v3501_v53 = vld [vmem:[%s10902_s9 + $0x3ff8] sm:$0xff]  ;;  %6891 = vmatpush.msrb.mxu2 %v3277_v13 }
 0xea9   :  { %v3021_v11 = vld [vmem:[%s10902_s9 + $0x30f8] sm:$0xff]  ;;  %6899 = vmatpush.msrb.mxu3 %v3501_v53 }
 0xeaa   :  { %v3157_v51 = vld [vmem:[%s10902_s9 + $0x3538] sm:$0xff]  ;;  %6851 = vmatpush.msrb.mxu0 %v3021_v11 }
 0xeab   :  { %v3269_v16 = vld [vmem:[%s10902_s9 + $0x38b8] sm:$0xff]  ;;  %6870 = vmatpush.msrb.mxu1 %v3157_v51 }
 0xeac   :  { %v3493_v32 = vld [vmem:[%s10902_s9 + $0x3fb8] sm:$0xff]  ;;  %6892 = vmatpush.msrb.mxu2 %v3269_v16 }
 0xead   :  { %v3013_v10 = vld [vmem:[%s10902_s9 + $0x30b8] sm:$0xff]  ;;  %6900 = vmatpush.msrb.mxu3 %v3493_v32 }
 0xeae   :  { %v3149_v23 = vld [vmem:[%s10902_s9 + $0x34f8] sm:$0xff]  ;;  %6852 = vmatpush.msrb.mxu0 %v3013_v10 }
 0xeaf   :  { %v3261_v55 = vld [vmem:[%s10902_s9 + $0x3878] sm:$0xff]  ;;  %6871 = vmatpush.msrb.mxu1 %v3149_v23 }
 0xeb0   :  { %v3485_v60 = vld [vmem:[%s10902_s9 + $0x3f78] sm:$0xff]  ;;  %6893 = vmatpush.msrb.mxu2 %v3261_v55 }
 0xeb1   :  { %v3005_v39 = vld [vmem:[%s10902_s9 + $0x3078] sm:$0xff]  ;;  %6901 = vmatpush.msrb.mxu3 %v3485_v60 }
 0xeb2   :  { %v3141_v52 = vld [vmem:[%s10902_s9 + $0x34b8] sm:$0xff]  ;;  %6853 = vmatpush.msrb.mxu0 %v3005_v39 }
 0xeb3   :  { %v3253_v22 = vld [vmem:[%s10902_s9 + $0x3838] sm:$0xff]  ;;  %6872 = vmatpush.msrb.mxu1 %v3141_v52 }
 0xeb4   :  { %v3477_v63 = vld [vmem:[%s10902_s9 + $0x3f38] sm:$0xff]  ;;  %6894 = vmatpush.msrb.mxu2 %v3253_v22 }
 0xeb5   :  { %v2997_v34 = vld [vmem:[%s10902_s9 + $0x3038] sm:$0xff]  ;;  %6895 = vmatmul.f32.vlgmr.msrb.gmra.mxu2 %v7340_v31  ;;  %6902 = vmatpush.msrb.mxu3 %v3477_v63  ;;  %v7345_v31 = vld.sshfl [vmem:[#allocation1] sm:$0xff pattern:$0x73625140] }
 0xeb6   :  { %v3133_v33 = vld [vmem:[%s10902_s9 + $0x3478] sm:$0xff]  ;;  %6854 = vmatpush.msrb.mxu0 %v2997_v34 }
 0xeb7   :  { %v3469_v2 = vld [vmem:[%s10902_s9 + $0x3ef8] sm:$0xff]  ;;  %6873 = vmatpush.msrb.mxu1 %v3133_v33  ;;  %6855 = vmatmul.f32.vlgmr.msrb.gmra.mxu0 %v7341_v28  ;;  %v7344_v33 = vld.sshfl [vmem:[#allocation1 + $0x10] sm:$0xff pattern:$0x73625140] }
 0xeb8   :  { %v3629_v8 = vld [vmem:[%s10902_s9 + $0x43f8] sm:$0xff]  ;;  %6903 = vmatpush.msrb.mxu3 %v3469_v2 }
 0xeb9   :  { %v3125_v42 = vld [vmem:[%s10902_s9 + $0x3438] sm:$0xff]  ;;  %6919 = vmatpush.msra.mxu0 %v3629_v8  ;;  %v7346_v8 = vld.sshfl [vmem:[#allocation1 + $0x8] sm:$0xff pattern:$0x73625140] }
 0xeba   :  { %v3461_v56 = vld [vmem:[%s10902_s9 + $0x3eb8] sm:$0xff]  ;;  %6874 = vmatpush.msrb.mxu1 %v3125_v42 }
 0xebb   :  { %v3621_v29 = vld [vmem:[%s10902_s9 + $0x43b8] sm:$0xff]  ;;  %6875 = vmatmul.f32.vlgmr.msrb.gmra.mxu1 %v7342_v14  ;;  %6904 = vmatpush.msrb.mxu3 %v3461_v56 }
 0xebc   :  { %v3757_v41 = vld [vmem:[%s10902_s9 + $0x47f8] sm:$0xff]  ;;  %6920 = vmatpush.msra.mxu0 %v3621_v29 }
 0xebd   :  { %v3869_v21 = vld [vmem:[%s10902_s9 + $0x4b78] sm:$0xff]  ;;  %6939 = vmatpush.msra.mxu1 %v3757_v41 }
 0xebe   :  { %v3453_v35 = vld [vmem:[%s10902_s9 + $0x3e78] sm:$0xff]  ;;  %6961 = vmatpush.msra.mxu2 %v3869_v21 }
 0xebf   :  { %v3613_v0 = vld [vmem:[%s10902_s9 + $0x4378] sm:$0xff]  ;;  %6905 = vmatpush.msrb.mxu3 %v3453_v35 }
 0xec0   :  { %v3749_v5 = vld [vmem:[%s10902_s9 + $0x47b8] sm:$0xff]  ;;  %6921 = vmatpush.msra.mxu0 %v3613_v0 }
 0xec1   :  { %v3861_v26 = vld [vmem:[%s10902_s9 + $0x4b38] sm:$0xff]  ;;  %6940 = vmatpush.msra.mxu1 %v3749_v5 }
 0xec2   :  { %v3445_v58 = vld [vmem:[%s10902_s9 + $0x3e38] sm:$0xff]  ;;  %6962 = vmatpush.msra.mxu2 %v3861_v26 }
 0xec3   :  { %v3605_v20 = vld [vmem:[%s10902_s9 + $0x4338] sm:$0xff]  ;;  %6906 = vmatpush.msrb.mxu3 %v3445_v58 }
 0xec4   :  { %v3741_v54 = vld [vmem:[%s10902_s9 + $0x4778] sm:$0xff]  ;;  %6922 = vmatpush.msra.mxu0 %v3605_v20 }
 0xec5   :  { %v3853_v38 = vld [vmem:[%s10902_s9 + $0x4af8] sm:$0xff]  ;;  %6941 = vmatpush.msra.mxu1 %v3741_v54 }
 0xec6   :  { %v3437_v3 = vld [vmem:[%s10902_s9 + $0x3df8] sm:$0xff]  ;;  %6963 = vmatpush.msra.mxu2 %v3853_v38 }
 0xec7   :  { %v3597_v12 = vld [vmem:[%s10902_s9 + $0x42f8] sm:$0xff]  ;;  %6907 = vmatpush.msrb.mxu3 %v3437_v3 }
 0xec8   :  { %v3733_v24 = vld [vmem:[%s10902_s9 + $0x4738] sm:$0xff]  ;;  %6923 = vmatpush.msra.mxu0 %v3597_v12 }
 0xec9   :  { %v3845_v49 = vld [vmem:[%s10902_s9 + $0x4ab8] sm:$0xff]  ;;  %6942 = vmatpush.msra.mxu1 %v3733_v24 }
 0xeca   :  { %v3429_v4 = vld [vmem:[%s10902_s9 + $0x3db8] sm:$0xff]  ;;  %6964 = vmatpush.msra.mxu2 %v3845_v49 }
 0xecb   :  { %v3589_v59 = vld [vmem:[%s10902_s9 + $0x42b8] sm:$0xff]  ;;  %6908 = vmatpush.msrb.mxu3 %v3429_v4 }
 0xecc   :  { %v3725_v19 = vld [vmem:[%s10902_s9 + $0x46f8] sm:$0xff]  ;;  %6924 = vmatpush.msra.mxu0 %v3589_v59 }
 0xecd   :  { %v3837_v43 = vld [vmem:[%s10902_s9 + $0x4a78] sm:$0xff]  ;;  %6943 = vmatpush.msra.mxu1 %v3725_v19 }
 0xece   :  { %v3421_v40 = vld [vmem:[%s10902_s9 + $0x3d78] sm:$0xff]  ;;  %6965 = vmatpush.msra.mxu2 %v3837_v43 }
 0xecf   :  { %v3581_v17 = vld [vmem:[%s10902_s9 + $0x4278] sm:$0xff]  ;;  %6909 = vmatpush.msrb.mxu3 %v3421_v40 }
 0xed0   :  { %v3717_v62 = vld [vmem:[%s10902_s9 + $0x46b8] sm:$0xff]  ;;  %6925 = vmatpush.msra.mxu0 %v3581_v17 }
 0xed1   :  { %v3829_v30 = vld [vmem:[%s10902_s9 + $0x4a38] sm:$0xff]  ;;  %6944 = vmatpush.msra.mxu1 %v3717_v62 }
 0xed2   :  { %v3413_v25 = vld [vmem:[%s10902_s9 + $0x3d38] sm:$0xff]  ;;  %6966 = vmatpush.msra.mxu2 %v3829_v30 }
 0xed3   :  { %v3573_v18 = vld [vmem:[%s10902_s9 + $0x4238] sm:$0xff]  ;;  %6910 = vmatpush.msrb.mxu3 %v3413_v25 }
 0xed4   :  { %v3709_v7 = vld [vmem:[%s10902_s9 + $0x4678] sm:$0xff]  ;;  %6926 = vmatpush.msra.mxu0 %v3573_v18 }
 0xed5   :  { %v3821_v61 = vld [vmem:[%s10902_s9 + $0x49f8] sm:$0xff]  ;;  %6945 = vmatpush.msra.mxu1 %v3709_v7 }
 0xed6   :  { %v3405_v50 = vld [vmem:[%s10902_s9 + $0x3cf8] sm:$0xff]  ;;  %6967 = vmatpush.msra.mxu2 %v3821_v61 }
 0xed7   :  { %v3565_v37 = vld [vmem:[%s10902_s9 + $0x41f8] sm:$0xff]  ;;  %6911 = vmatpush.msrb.mxu3 %v3405_v50 }
 0xed8   :  { %v3701_v1 = vld [vmem:[%s10902_s9 + $0x4638] sm:$0xff]  ;;  %6927 = vmatpush.msra.mxu0 %v3565_v37 }
 0xed9   :  { %v3813_v47 = vld [vmem:[%s10902_s9 + $0x49b8] sm:$0xff]  ;;  %6946 = vmatpush.msra.mxu1 %v3701_v1 }
 0xeda   :  { %v3397_v45 = vld [vmem:[%s10902_s9 + $0x3cb8] sm:$0xff]  ;;  %6968 = vmatpush.msra.mxu2 %v3813_v47 }
 0xedb   :  { %v3557_v36 = vld [vmem:[%s10902_s9 + $0x41b8] sm:$0xff]  ;;  %6912 = vmatpush.msrb.mxu3 %v3397_v45 }
 0xedc   :  { %v3693_v27 = vld [vmem:[%s10902_s9 + $0x45f8] sm:$0xff]  ;;  %6928 = vmatpush.msra.mxu0 %v3557_v36 }
 0xedd   :  { %v3805_v15 = vld [vmem:[%s10902_s9 + $0x4978] sm:$0xff]  ;;  %6947 = vmatpush.msra.mxu1 %v3693_v27 }
 0xede   :  { %v3389_v44 = vld [vmem:[%s10902_s9 + $0x3c78] sm:$0xff]  ;;  %6969 = vmatpush.msra.mxu2 %v3805_v15 }
 0xedf   :  { %v3549_v46 = vld [vmem:[%s10902_s9 + $0x4178] sm:$0xff]  ;;  %6913 = vmatpush.msrb.mxu3 %v3389_v44 }
 0xee0   :  { %v3685_v57 = vld [vmem:[%s10902_s9 + $0x45b8] sm:$0xff]  ;;  %6929 = vmatpush.msra.mxu0 %v3549_v46 }
 0xee1   :  { %v3797_v48 = vld [vmem:[%s10902_s9 + $0x4938] sm:$0xff]  ;;  %6948 = vmatpush.msra.mxu1 %v3685_v57 }
 0xee2   :  { %v3381_v9 = vld [vmem:[%s10902_s9 + $0x3c38] sm:$0xff]  ;;  %6970 = vmatpush.msra.mxu2 %v3797_v48 }
 0xee3   :  { %v3541_v13 = vld [vmem:[%s10902_s9 + $0x4138] sm:$0xff]  ;;  %6914 = vmatpush.msrb.mxu3 %v3381_v9 }
 0xee4   :  { %v3677_v53 = vld [vmem:[%s10902_s9 + $0x4578] sm:$0xff]  ;;  %6930 = vmatpush.msra.mxu0 %v3541_v13 }
 0xee5   :  { %v3789_v11 = vld [vmem:[%s10902_s9 + $0x48f8] sm:$0xff]  ;;  %6949 = vmatpush.msra.mxu1 %v3677_v53 }
 0xee6   :  { %v3533_v51 = vld [vmem:[%s10902_s9 + $0x40f8] sm:$0xff]  ;;  %6971 = vmatpush.msra.mxu2 %v3789_v11 }
 0xee7   :  { %v3669_v16 = vld [vmem:[%s10902_s9 + $0x4538] sm:$0xff]  ;;  %6931 = vmatpush.msra.mxu0 %v3533_v51 }
 0xee8   :  { %v3781_v32 = vld [vmem:[%s10902_s9 + $0x48b8] sm:$0xff]  ;;  %6950 = vmatpush.msra.mxu1 %v3669_v16 }
 0xee9   :  { %v7343_v10 = vld.sshfl [vmem:[#allocation1 + $0x38] sm:$0xff pattern:$0x73625140]  ;;  %6972 = vmatpush.msra.mxu2 %v3781_v32 }
 0xeea   :  { %6915 = vmatmul.f32.vlgmr.msrb.gmra.mxu3 %v7343_v10  ;;  %v3525_v23 = vld [vmem:[%s10902_s9 + $0x40b8] sm:$0xff] }
 0xeeb   :  { %v3661_v55 = vld [vmem:[%s10902_s9 + $0x44f8] sm:$0xff]  ;;  %6932 = vmatpush.msra.mxu0 %v3525_v23 }
 0xeec   :  { %v3773_v60 = vld [vmem:[%s10902_s9 + $0x4878] sm:$0xff]  ;;  %6951 = vmatpush.msra.mxu1 %v3661_v55 }
 0xeed   :  { %v3517_v39 = vld [vmem:[%s10902_s9 + $0x4078] sm:$0xff]  ;;  %6973 = vmatpush.msra.mxu2 %v3773_v60 }
 0xeee   :  { %v3653_v52 = vld [vmem:[%s10902_s9 + $0x44b8] sm:$0xff]  ;;  %6933 = vmatpush.msra.mxu0 %v3517_v39 }
 0xeef   :  { %v3765_v22 = vld [vmem:[%s10902_s9 + $0x4838] sm:$0xff]  ;;  %6952 = vmatpush.msra.mxu1 %v3653_v52 }
 0xef0   :  { %v3509_v63 = vld [vmem:[%s10902_s9 + $0x4038] sm:$0xff]  ;;  %6974 = vmatpush.msra.mxu2 %v3765_v22 }
 0xef1   :  { %v3645_v34 = vld [vmem:[%s10902_s9 + $0x4478] sm:$0xff]  ;;  %7182 = vmatmul.msk.f32.vlgmr.msra.gmra.mxu2 %vm3936_vm9, %v7344_v33  ;;  %6934 = vmatpush.msra.mxu0 %v3509_v63 }
 0xef2   :  { %v3637_v2 = vld [vmem:[%s10902_s9 + $0x4438] sm:$0xff]  ;;  %6953 = vmatpush.msra.mxu1 %v3645_v34  ;;  %6935 = vmatmul.f32.vlgmr.msra.gmra.mxu0 %v7345_v31 }
 0xef4   :  { %6954 = vmatpush.msra.mxu1 %v3637_v2 }
 0xef5   :  { %6955 = vmatmul.f32.vlgmr.msra.gmra.mxu1 %v7346_v8 }
 0xef6   :  { %7371 = shalt.err (!%p7368_p4)
}
 0xef7   :  { %7040 = dma.vmem_to_hbm [thread:$0]  %s7036_s12, 32, %s7038_s4, [#allocation6]  }
 0xef8   :  { %s10959_s26 = sld [smem:[#allocation37_spill]]  ;;  %s7510_s28 = smov [#allocation3]  }
 0xef9   :  { %s7024_s2 = sshll.u32 %s7510_s28, 4  ;;  %s7025_s2 = int_to_ptr.vmem [resolvable:$true] %s7024_s2 }
 0xefe   :  { %s7026_s30 = sshll.u32 %s10959_s26, 4  ;;  %s7388_s11 = scalar_lea.hbm %s10959_s26, 2  ;;  %s7027_s30 = int_to_ptr.hbm [resolvable:$true] %s7026_s30 }
 0xeff   :  { %s7384_s27 = sshra.s32 %s7027_s30, 4  ;;  %s7385_s27 = int_to_ptr.hbm [resolvable:$true] %s7384_s27 }
 0xf00   :  { %s7386_s7 = scalar_lea.hbm %s7385_s27, 2  ;;  %p7389_p6 = scmp.lt.s32.totalorder %s7385_s27, %s10959_s26 }
 0xf01   :  { %p7387_p5 = scmp.ne.s32.totalorder %s7385_s27, %s7386_s7  ;;  %p7390_p7 = scmp.lt.s32.totalorder %s7388_s11, %s7386_s7 }
 0xf03   :  { %p7391_p8 = por %p7390_p7, %p7389_p6 }
 0xf05   :  { %p7392_p9 = pnand %p7391_p8, %p7387_p5 }
 0xf07   :  { %7395 = shalt.err (!%p7392_p9)
}
 0xf08   :  { %7029 = dma.vmem_to_hbm [thread:$0]  %s7025_s2, 32, %s7027_s30, [#allocation4]  }
 0xf09   :  { %s7511_s1 = smov [#allocation7]   ;;  %s7048_s16 = sshll.u32 %s7724_s10, 4  ;;  %s7049_s16 = int_to_ptr.hbm [resolvable:$true] %s7048_s16 }
 0xf0a   :  { %s7046_s13 = sshll.u32 %s7511_s1, 4  ;;  %s7408_s18 = sshra.s32 %s7049_s16, 4  ;;  %s7047_s13 = int_to_ptr.vmem [resolvable:$true] %s7046_s13  ;;  %s7409_s18 = int_to_ptr.hbm [resolvable:$true] %s7408_s18 }
 0xf0b   :  { %s7410_s22 = scalar_lea.hbm %s7409_s18, 2  ;;  %s7412_s0 = scalar_lea.hbm %s7724_s10, 2 }
 0xf0c   :  { %p7411_p10 = scmp.ne.s32.totalorder %s7409_s18, %s7410_s22  ;;  %p7413_p11 = scmp.lt.s32.totalorder %s7409_s18, %s7724_s10 }
 0xf0d   :  { %p7414_p12 = scmp.lt.s32.totalorder %s7412_s0, %s7410_s22 }
 0xf0f   :  { %p7415_p13 = por %p7414_p12, %p7413_p11 }
 0xf11   :  { %p7416_p0 = pnand %p7415_p13, %p7411_p10 }
 0xf13   :  { %7419 = shalt.err (!%p7416_p0)
}
 0xf14   :  { %7051 = dma.vmem_to_hbm [thread:$0]  %s7047_s13, 32, %s7049_s16, [#allocation6]   ;;  %v6236_v42 = vpop.f32.mrf.mxu1  ;;  %v6256_v56 = vpop.f32.mrf.mxu2  ;;  %v7347_v54 = vld [vmem:[%s10931_s19] sm:$0xff]  ;;  %vm7013_vm4 = vcmask 1043458   ;;  %vm7016_vm7 = vcmask 261126  }
 0xf15   :  { %v6296_v28 = vpop.f32.mrf.mxu0  ;;  %v6276_v29 = vpop.f32.mrf.mxu3  ;;  %v3878_v38 = vperm.slane %v7347_v54, 6  ;;  %v3879_v59 = vperm.slane %v7347_v54, 7  ;;  %vm7014_vm5 = vmor %vm7013_vm4, %vm7001_vm0  ;;  %s7512_s10 = smov [#allocation8]   ;;  %s7061_s9 = sshll.u32 %s7734_s20, 4  ;;  %s7062_s9 = int_to_ptr.hbm [resolvable:$true] %s7061_s9 }
 0xf16   :  { %vm7015_vm6 = vmor %vm7003_vm2, %vm7014_vm5  ;;  %s7059_s5 = sshll.u32 %s7512_s10, 4  ;;  %s7432_s17 = sshra.s32 %s7062_s9, 4  ;;  %s7060_s5 = int_to_ptr.vmem [resolvable:$true] %s7059_s5  ;;  %s7433_s17 = int_to_ptr.hbm [resolvable:$true] %s7432_s17 }
 0xf17   :  { %v6237_v24 = vadd.f32 %v6236_v42, %v3878_v38  ;;  %vm7017_vm8 = vmor %vm7016_vm7, %vm7015_vm6  ;;  %s7434_s21 = scalar_lea.hbm %s7433_s17, 16  ;;  %s7436_s25 = scalar_lea.hbm %s7734_s20, 16 }
 0xf18   :  { %p7435_p1 = scmp.ne.s32.totalorder %s7433_s17, %s7434_s21  ;;  %p7437_p2 = scmp.lt.s32.totalorder %s7433_s17, %s7734_s20 }
 0xf19   :  { %v6257_v19 = vadd.f32 %v6256_v56, %v6237_v24  ;;  %p7438_p3 = scmp.lt.s32.totalorder %s7436_s25, %s7434_s21 }
 0xf1b   :  { %v6277_v62 = vadd.f32 %v6276_v29, %v6257_v19  ;;  %p7439_p4 = por %p7438_p3, %p7437_p2 }
 0xf1c   :  { %v6316_v41 = vpop.f32.mrf.mxu1  ;;  %v6336_v21 = vpop.f32.mrf.mxu2 }
 0xf1d   :  { %v6376_v35 = vpop.f32.mrf.mxu0  ;;  %v6356_v14 = vpop.f32.mrf.mxu3  ;;  %v6297_v7 = vadd.f32 %v6296_v28, %v6277_v62  ;;  %p7440_p5 = pnand %p7439_p4, %p7435_p1 }
 0xf1f   :  { %v6317_v37 = vadd.f32 %v6316_v41, %v6297_v7 }
 0xf21   :  { %v6337_v45 = vadd.f32 %v6336_v21, %v6317_v37 }
 0xf23   :  { %v6357_v27 = vadd.f32 %v6356_v14, %v6337_v45 }
 0xf24   :  { %v6396_v0 = vpop.f32.mrf.mxu1  ;;  %v6416_v5 = vpop.f32.mrf.mxu2 }
 0xf25   :  { %v6456_v26 = vpop.f32.mrf.mxu0  ;;  %v6436_v58 = vpop.f32.mrf.mxu3  ;;  %v6377_v46 = vadd.f32 %v6376_v35, %v6357_v27 }
 0xf27   :  { %v6397_v9 = vadd.f32 %v6396_v0, %v6377_v46 }
 0xf29   :  { %v6417_v51 = vadd.f32 %v6416_v5, %v6397_v9 }
 0xf2b   :  { %v6437_v32 = vadd.f32 %v6436_v58, %v6417_v51 }
 0xf2c   :  { %v6476_v20 = vpop.f32.mrf.mxu1  ;;  %v6496_v3 = vpop.f32.mrf.mxu2 }
 0xf2d   :  { %v6536_v12 = vpop.f32.mrf.mxu0  ;;  %v6516_v49 = vpop.f32.mrf.mxu3  ;;  %v6457_v55 = vadd.f32 %v6456_v26, %v6437_v32 }
 0xf2f   :  { %v6477_v52 = vadd.f32 %v6476_v20, %v6457_v55 }
 0xf31   :  { %v6497_v33 = vadd.f32 %v6496_v3, %v6477_v52 }
 0xf33   :  { %v6517_v31 = vadd.f32 %v6516_v49, %v6497_v33 }
 0xf34   :  { %v6556_v4 = vpop.f32.mrf.mxu1  ;;  %v6576_v43 = vpop.f32.mrf.mxu2 }
 0xf35   :  { %v6616_v40 = vpop.f32.mrf.mxu0  ;;  %v6596_v30 = vpop.f32.mrf.mxu3  ;;  %v6537_v56 = vadd.f32 %v6536_v12, %v6517_v31 }
 0xf36   :  { %v6617_v17 = vadd.f32 %v6616_v40, %v3879_v59 }
 0xf37   :  { %v6557_v41 = vadd.f32 %v6556_v4, %v6537_v56 }
 0xf39   :  { %v6577_v0 = vadd.f32 %v6576_v43, %v6557_v41 }
 0xf3b   :  { %v6597_v58 = vadd.f32 %v6596_v30, %v6577_v0 }
 0xf3c   :  { %v6636_v25 = vpop.f32.mrf.mxu1  ;;  %v6656_v61 = vpop.f32.mrf.mxu2 }
 0xf3d   :  { %v6637_v18 = vadd.f32 %v6636_v25, %v6617_v17  ;;  %v6676_v1 = vpop.f32.mrf.mxu3  ;;  %v6696_v36 = vpop.f32.mrf.mxu0  ;;  %v6985_v3 = vmax.f32 %v6597_v58, 0.0 }
 0xf3f   :  { %v6657_v50 = vadd.f32 %v6656_v61, %v6637_v18  ;;  %v6999_v49 = vrot.slane %v6985_v3, 4 }
 0xf41   :  { %v6677_v47 = vadd.f32 %v6676_v1, %v6657_v50 }
 0xf43   :  { %v6697_v15 = vadd.f32 %v6696_v36, %v6677_v47 }
 0xf44   :  { %v6716_v44 = vpop.f32.mrf.mxu1  ;;  %v6736_v48 = vpop.f32.mrf.mxu2 }
 0xf45   :  { %v6717_v57 = vadd.f32 %v6716_v44, %v6697_v15  ;;  %v6756_v13 = vpop.f32.mrf.mxu3  ;;  %v6776_v16 = vpop.f32.mrf.mxu0 }
 0xf47   :  { %v6737_v53 = vadd.f32 %v6736_v48, %v6717_v57 }
 0xf49   :  { %v6757_v11 = vadd.f32 %v6756_v13, %v6737_v53 }
 0xf4b   :  { %v6777_v10 = vadd.f32 %v6776_v16, %v6757_v11 }
 0xf4c   :  { %v6796_v23 = vpop.f32.mrf.mxu1  ;;  %v6816_v39 = vpop.f32.mrf.mxu2 }
 0xf4d   :  { %v6797_v60 = vadd.f32 %v6796_v23, %v6777_v10  ;;  %v6836_v22 = vpop.f32.mrf.mxu3  ;;  %v6856_v2 = vpop.f32.mrf.mxu0 }
 0xf4f   :  { %v6817_v63 = vadd.f32 %v6816_v39, %v6797_v60 }
 0xf51   :  { %v6837_v34 = vadd.f32 %v6836_v22, %v6817_v63 }
 0xf53   :  { %v6857_v8 = vadd.f32 %v6856_v2, %v6837_v34 }
 0xf54   :  { %v6876_v42 = vpop.f32.mrf.mxu1  ;;  %v6896_v29 = vpop.f32.mrf.mxu2 }
 0xf55   :  { %v6877_v28 = vadd.f32 %v6876_v42, %v6857_v8 }
 0xf57   :  { %v6897_v21 = vadd.f32 %v6896_v29, %v6877_v28 }
 0xf6d   :  { %v6916_v35 = vpop.f32.mrf.mxu3 }
 0xf6e   :  { %v6917_v14 = vadd.f32 %v6916_v35, %v6897_v21 }
 0xf6f   :  { %v6936_v5 = vpop.f32.mrf.mxu0 }
 0xf70   :  { %v6937_v26 = vadd.f32 %v6936_v5, %v6917_v14 }
 0xf72   :  { %v6956_v20 = vpop.f32.mrf.mxu1 }
 0xf73   :  { %v6957_v54 = vadd.f32 %v6956_v20, %v6937_v26 }
 0xf74   :  { %v6976_v38 = vpop.f32.mrf.mxu2 }
 0xf75   :  { %v6977_v24 = vadd.f32 %v6976_v38, %v6957_v54 }
 0xf77   :  { %v6986_v12 = vmax.f32 %v6977_v24, 0.0 }
 0xf79   :  { %v7000_v4 = vrot.slane %v6986_v12, 2 }
 0xf7b   :  { %v7008_v59 = vsel %vm7003_vm2, %v6999_v49, %v7000_v4 }
 0xf7c   :  { %v7009_v19 = vsel %vm7005_vm3, %v10491_v6, %v7008_v59 }
 0xf7d   :  { %7018 = vst.msk [vmem:[#allocation8 + $0x8] sm:$0xff] %vm7017_vm8, %v7009_v19 }
 0xf7e   :  { %7443 = shalt.err (!%p7440_p5)
}
 0xf7f   :  { %7064 = dma.vmem_to_hbm [thread:$0]  %s7060_s5, 256, %s7062_s9, [#allocation9]  }
 0xf80   :  { %7444 = dma.done.wait [#allocation4], 32  }
 0xf81   :  { %7445 = vsyncadd [#allocation4], 4294967264 }
 0xf82   :  { %7446 = dma.done.wait [#allocation6], 64  }
 0xf83   :  { %7447 = vsyncadd [#allocation6], 4294967232 }
 0xf84   :  { %7448 = dma.done.wait [#allocation9], 256  }
 0xf85   :  { %7449 = vsyncadd [#allocation9], 4294967040 }
 0xf86   :  { %7083 = vsyncpa [#allocation4], 1 }
 0xf87   :  { %7084 = vsyncpa [#allocation6], 1 }
 0xf88   :  { %7085 = vsyncpa [#allocation9], 1 }

</bundles_post_ra>
